<compile_context>
chip_gen: v5e
topology: v5e:2x2
jax: 0.10.0
libtpu: 0.0.40
codegen_flags: <defaults>
</compile_context>

<pallas_src>
import functools
import math

import jax
import jax.numpy as jnp
from jax import lax
from jax.experimental import pallas as pl
from jax.experimental.pallas import tpu as pltpu

# ----------------------------- config ---------------------------------------
EMBED_DIM = 32
NUM_HEADS = 4
MLP_DIM = 64
ATTN_DOWNSAMPLE = 2
LN_EPS = 1e-5

BATCH = 2
N_QUERIES = 8        # sparse point tokens
N_KEYS = 64          # dense image tokens (8x8 feature map, flattened)

_SLAB_WIDTH = 64     # lane width of both parameter slabs (>= widest parameter)
_BIAS_STRIDE = 8     # sublane-aligned row stride for 1-row parameters


# ------------------------- in-kernel math helpers ----------------------------
def _mm(x, w):
    """MXU matmul: bf16 operands (native MXU datapath), f32 accumulation."""
    return jnp.dot(x.astype(jnp.bfloat16), w.astype(jnp.bfloat16),
                   preferred_element_type=jnp.float32)


def _layernorm(x, gamma, beta):
    mean = jnp.mean(x, axis=-1, keepdims=True)
    xc = x - mean
    var = jnp.mean(xc * xc, axis=-1, keepdims=True)
    return xc * lax.rsqrt(var + LN_EPS) * gamma + beta


def _mha(q, k, v, wo, bo, *, num_heads, batch):
    """Multi-head attention on batch-folded rows.

    q: (batch*nq, ci), k/v: (batch*nk, ci).  The 1/sqrt(head_dim) softmax
    scale is already folded into q (via its projection weights).  Per-head
    scores / PV use a B-batched dot_general (reshape only splits the leading
    sublane dim -> no transposes, no cross-batch mixing).  Head outputs are
    concatenated along lanes so the output projection is a single K=ci matmul
    instead of num_heads serial rank-d updates.
    """
    bnq, ci = q.shape
    bnk = k.shape[0]
    nq = bnq // batch
    nk = bnk // batch
    d = ci // num_heads
    qk_dims = (((2,), (2,)), ((0,), (0,)))   # contract head dim, batch dim 0
    pv_dims = (((2,), (1,)), ((0,), (0,)))
    heads = []
    for h in range(num_heads):               # static unroll; num_heads is tiny
        sl = slice(h * d, (h + 1) * d)
        qh = q[:, sl].reshape(batch, nq, d).astype(jnp.bfloat16)
        kh = k[:, sl].reshape(batch, nk, d).astype(jnp.bfloat16)
        vh = v[:, sl].reshape(batch, nk, d).astype(jnp.bfloat16)
        s = lax.dot_general(qh, kh, qk_dims,
                            preferred_element_type=jnp.float32)    # (B,nq,nk)
        s = s - jnp.max(s, axis=-1, keepdims=True)                 # stable, f32
        p = jnp.exp(s)
        p = p / jnp.sum(p, axis=-1, keepdims=True)                 # exact norm
        oh = lax.dot_general(p.astype(jnp.bfloat16), vh, pv_dims,
                             preferred_element_type=jnp.float32)   # (B,nq,d)
        heads.append(oh.reshape(bnq, d))
    ctx = jnp.concatenate(heads, axis=-1)                          # (B*nq, ci)
    return _mm(ctx, wo) + bo


# ------------------------------ fused kernel ---------------------------------
def _two_way_block_kernel(num_heads, batch, skip_first_layer_pe, w_index, b_index,
                          q_ref, k_ref, qpe_ref, kpe_ref, w_ref, b_ref,
                          out_q_ref, out_k_ref):
    def W(name):                              # static slab views: zero cost
        off, rows, cols = w_index[name]
        return w_ref[off:off + rows, 0:cols]

    def V(name, col=0, ncols=None):           # (1, ncols) f32 bias / LN param
        off, cols = b_index[name]
        ncols = cols if ncols is None else ncols
        return b_ref[off:off + 1, col:col + ncols]

    mha = functools.partial(_mha, num_heads=num_heads, batch=batch)

    queries = q_ref[...]                      # (B*Nq, C)  f32
    keys = k_ref[...]                         # (B*Nk, C)  f32
    qpe = qpe_ref[...]
    kpe = kpe_ref[...]

    ci_s = w_index["wv_s"][2]                 # self-attn internal dim
    ci_x = w_index["wo_t"][1]                 # cross-attn internal dim

    # ---- (1) self-attention on sparse tokens (fused q|k projection) ---------
    x_qk = queries if skip_first_layer_pe else queries + qpe
    qk = _mm(x_qk, W("wqk_s")) + V("bqk_s")
    v = _mm(queries, W("wv_s")) + V("bv_s")
    attn = mha(qk[:, :ci_s], qk[:, ci_s:], v, W("wo_s"), V("bo_s"))
    queries = attn if skip_first_layer_pe else queries + attn
    queries = _layernorm(queries, V("g1"), V("be1"))

    keys_pe = keys + kpe                      # hoisted: reused by (2) and (4)

    # ---- (2) cross attention, tokens -> image --------------------------------
    q_pe = queries + qpe
    w_t = W("wqkv_t")
    qp = _mm(q_pe, w_t[:, 0:ci_x]) + V("bqkv_t", 0, ci_x)
    kp = _mm(keys_pe, w_t[:, ci_x:2 * ci_x]) + V("bqkv_t", ci_x, ci_x)
    vp = _mm(keys, w_t[:, 2 * ci_x:3 * ci_x]) + V("bqkv_t", 2 * ci_x, ci_x)
    attn = mha(qp, kp, vp, W("wo_t"), V("bo_t"))
    queries = _layernorm(queries + attn, V("g2"), V("be2"))

    # ---- (3) MLP on sparse tokens ---------------------------------------------
    h = jnp.maximum(_mm(queries, W("w1m")) + V("b1m"), 0.0)
    mlp_out = _mm(h, W("w2m")) + V("b2m")
    queries = _layernorm(queries + mlp_out, V("g3"), V("be3"))

    # ---- (4) cross attention, image -> tokens ---------------------------------
    q_pe = queries + qpe
    w_i = W("wqkv_i")
    qp = _mm(keys_pe, w_i[:, 0:ci_x]) + V("bqkv_i", 0, ci_x)
    kp = _mm(q_pe, w_i[:, ci_x:2 * ci_x]) + V("bqkv_i", ci_x, ci_x)
    vp = _mm(queries, w_i[:, 2 * ci_x:3 * ci_x]) + V("bqkv_i", 2 * ci_x, ci_x)
    attn = mha(qp, kp, vp, W("wo_i"), V("bo_i"))
    keys = _layernorm(keys + attn, V("g4"), V("be4"))

    out_q_ref[...] = queries
    out_k_ref[...] = keys


# --------------------------- host-side weight packing --------------------------
def _pack_params(params, num_heads):
    """Pack ALL weights/biases into two lane-dense slabs (1 DMA each).

    Returns (w_slab[bf16], b_slab[f32], w_index, b_index).  Weight matrices are
    stored x @ W style, i.e. (in, out); PyTorch nn.Linear weights need a
    transpose when loading.  The 1/sqrt(head_dim) softmax scale is folded into
    the q-projection weights AND biases.
    """
    sa, ct, cim = params["self_attn"], params["cross_t2i"], params["cross_i2t"]
    mlp = params["mlp"]
    embed = params["norm1"]["gamma"].shape[1]
    for a in (sa, ct, cim):
        assert a["wq"].shape[0] == embed and a["wo"].shape[1] == embed, (
            "weights must be (in, out); transpose PyTorch nn.Linear weights")

    s_self = 1.0 / math.sqrt(sa["wq"].shape[1] // num_heads)
    s_cross = 1.0 / math.sqrt(ct["wq"].shape[1] // num_heads)

    w_entries = [
        ("wqk_s", jnp.concatenate([sa["wq"] * s_self, sa["wk"]], axis=1)),
        ("wv_s", sa["wv"]),
        ("wo_s", sa["wo"]),
        ("wqkv_t", jnp.concatenate([ct["wq"] * s_cross, ct["wk"], ct["wv"]], axis=1)),
        ("wo_t", ct["wo"]),
        ("w1m", mlp["w1"]),
        ("w2m", mlp["w2"]),
        ("wqkv_i", jnp.concatenate([cim["wq"] * s_cross, cim["wk"], cim["wv"]], axis=1)),
        ("wo_i", cim["wo"]),
    ]
    w_index, blocks, off = {}, [], 0
    for name, w in w_entries:
        r, c = w.shape
        assert r % 8 == 0 and c <= _SLAB_WIDTH
        w_index[name] = (off, r, c)
        blocks.append(jnp.pad(w, ((0, 0), (0, _SLAB_WIDTH - c))))
        off += r
    w_slab = jnp.concatenate(blocks, axis=0).astype(jnp.bfloat16)

    b_entries = [
        ("bqk_s", jnp.concatenate([sa["bq"] * s_self, sa["bk"]], axis=1)),
        ("bv_s", sa["bv"]),
        ("bo_s", sa["bo"]),
        ("g1", params["norm1"]["gamma"]), ("be1", params["norm1"]["beta"]),
        ("bqkv_t", jnp.concatenate([ct["bq"] * s_cross, ct["bk"], ct["bv"]], axis=1)),
        ("bo_t", ct["bo"]),
        ("g2", params["norm2"]["gamma"]), ("be2", params["norm2"]["beta"]),
        ("b1m", mlp["b1"]), ("b2m", mlp["b2"]),
        ("g3", params["norm3"]["gamma"]), ("be3", params["norm3"]["beta"]),
        ("bqkv_i", jnp.concatenate([cim["bq"] * s_cross, cim["bk"], cim["bv"]], axis=1)),
        ("bo_i", cim["bo"]),
        ("g4", params["norm4"]["gamma"]), ("be4", params["norm4"]["beta"]),
    ]
    b_index, rows = {}, []
    for i, (name, b) in enumerate(b_entries):
        c = b.shape[1]
        assert c <= _SLAB_WIDTH
        b_index[name] = (i * _BIAS_STRIDE, c)
        rows.append(jnp.pad(b.astype(jnp.float32),
                            ((0, _BIAS_STRIDE - 1), (0, _SLAB_WIDTH - c))))
    b_slab = jnp.concatenate(rows, axis=0)
    return w_slab, b_slab, w_index, b_index


# --------------------------- host-side wrapper --------------------------------
def two_way_attention_block(params, queries, keys, query_pe, key_pe, *,
                            num_heads=NUM_HEADS, skip_first_layer_pe=False):
    """queries/query_pe: (B, Nq, C); keys/key_pe: (B, Nk, C) -> (queries, keys)."""
    B, Nq, C = queries.shape
    Nk = keys.shape[1]
    assert Nq % 8 == 0 and Nk % 8 == 0, "token counts must be sublane-aligned"

    w_slab, b_slab, w_index, b_index = _pack_params(params, num_heads)

    # Fold batch into rows (weights are batch-shared) and drop the grid: every
    # projection / LayerNorm / MLP runs once on (B*N, C); only the attention
    # score / PV matmuls are B-batched inside the kernel.
    qf = queries.reshape(B * Nq, C).astype(jnp.float32)
    kf = keys.reshape(B * Nk, C).astype(jnp.float32)
    qpef = query_pe.reshape(B * Nq, C).astype(jnp.float32)
    kpef = key_pe.reshape(B * Nk, C).astype(jnp.float32)

    kernel = functools.partial(_two_way_block_kernel, num_heads, B,
                               skip_first_layer_pe, w_index, b_index)
    vmem = functools.partial(pl.BlockSpec, memory_space=pltpu.MemorySpace.VMEM)

    out_q, out_k = pl.pallas_call(
        kernel,
        out_shape=(jax.ShapeDtypeStruct((B * Nq, C), jnp.float32),
                   jax.ShapeDtypeStruct((B * Nk, C), jnp.float32)),
        in_specs=[vmem() for _ in range(6)],
        out_specs=(vmem(), vmem()),
    )(qf, kf, qpef, kpef, w_slab, b_slab)
    return out_q.reshape(B, Nq, C), out_k.reshape(B, Nk, C)


# --------------------------- parameter init ------------------------------------
def _init_attention(key, embed_dim, num_heads, downsample_rate=1):
    internal = embed_dim // downsample_rate
    assert internal % num_heads == 0, "num_heads must divide internal dim"
    ks = jax.random.split(key, 8)
    s = 0.05
    return {
        "wq": s * jax.random.normal(ks[0], (embed_dim, internal), jnp.float32),
        "bq": s * jax.random.normal(ks[1], (1, internal), jnp.float32),
        "wk": s * jax.random.normal(ks[2], (embed_dim, internal), jnp.float32),
        "bk": s * jax.random.normal(ks[3], (1, internal), jnp.float32),
        "wv": s * jax.random.normal(ks[4], (embed_dim, internal), jnp.float32),
        "bv": s * jax.random.normal(ks[5], (1, internal), jnp.float32),
        "wo": s * jax.random.normal(ks[6], (internal, embed_dim), jnp.float32),
        "bo": s * jax.random.normal(ks[7], (1, embed_dim), jnp.float32),
    }


def _init_layernorm(embed_dim):
    return {"gamma": jnp.ones((1, embed_dim), jnp.float32),
            "beta": jnp.zeros((1, embed_dim), jnp.float32)}


def _init_mlp(key, embed_dim, mlp_dim):
    ks = jax.random.split(key, 4)
    s = 0.05
    return {
        "w1": s * jax.random.normal(ks[0], (embed_dim, mlp_dim), jnp.float32),
        "b1": s * jax.random.normal(ks[1], (1, mlp_dim), jnp.float32),
        "w2": s * jax.random.normal(ks[2], (mlp_dim, embed_dim), jnp.float32),
        "b2": s * jax.random.normal(ks[3], (1, embed_dim), jnp.float32),
    }


def init_two_way_attention_block(key, embed_dim, num_heads, mlp_dim, attn_downsample):
    k1, k2, k3, k4 = jax.random.split(key, 4)
    return {
        "self_attn": _init_attention(k1, embed_dim, num_heads, 1),
        "norm1": _init_layernorm(embed_dim),
        "cross_t2i": _init_attention(k2, embed_dim, num_heads, attn_downsample),
        "norm2": _init_layernorm(embed_dim),
        "mlp": _init_mlp(k3, embed_dim, mlp_dim),
        "norm3": _init_layernorm(embed_dim),
        "cross_i2t": _init_attention(k4, embed_dim, num_heads, attn_downsample),
        "norm4": _init_layernorm(embed_dim),
    }


# --------------------------- pure-JAX reference --------------------------------
def _attention_ref(p, x_q, x_k, x_v, num_heads):
    q = x_q @ p["wq"] + p["bq"]
    k = x_k @ p["wk"] + p["bk"]
    v = x_v @ p["wv"] + p["bv"]
    b, nq, ci = q.shape
    nk = k.shape[1]
    d = ci // num_heads
    qh = q.reshape(b, nq, num_heads, d).transpose(0, 2, 1, 3)
    kh = k.reshape(b, nk, num_heads, d).transpose(0, 2, 1, 3)
    vh = v.reshape(b, nk, num_heads, d).transpose(0, 2, 1, 3)
    s = jnp.einsum("bhqd,bhkd->bhqk", qh, kh) / math.sqrt(d)
    a = jax.nn.softmax(s, axis=-1)
    o = jnp.einsum("bhqk,bhkd->bhqd", a, vh)
    o = o.transpose(0, 2, 1, 3).reshape(b, nq, ci)
    return o @ p["wo"] + p["bo"]


def _layernorm_ref(x, p):
    mean = jnp.mean(x, axis=-1, keepdims=True)
    var = jnp.mean((x - mean) ** 2, axis=-1, keepdims=True)
    return (x - mean) * lax.rsqrt(var + LN_EPS) * p["gamma"] + p["beta"]


def two_way_attention_block_ref(params, queries, keys, query_pe, key_pe,
                                num_heads=NUM_HEADS, skip_first_layer_pe=False):
    if skip_first_layer_pe:
        queries = _attention_ref(params["self_attn"], queries, queries, queries, num_heads)
    else:
        q = queries + query_pe
        queries = queries + _attention_ref(params["self_attn"], q, q, queries, num_heads)
    queries = _layernorm_ref(queries, params["norm1"])

    q = queries + query_pe
    k = keys + key_pe
    queries = queries + _attention_ref(params["cross_t2i"], q, k, keys, num_heads)
    queries = _layernorm_ref(queries, params["norm2"])

    h = jnp.maximum(queries @ params["mlp"]["w1"] + params["mlp"]["b1"], 0.0)
    queries = queries + (h @ params["mlp"]["w2"] + params["mlp"]["b2"])
    queries = _layernorm_ref(queries, params["norm3"])

    q = queries + query_pe
    k = keys + key_pe
    keys = keys + _attention_ref(params["cross_i2t"], k, q, queries, num_heads)
    keys = _layernorm_ref(keys, params["norm4"])
    return queries, keys


# ------------------------------------ main --------------------------------------
if __name__ == "__main__":
    root = jax.random.PRNGKey(0)
    kp, kq, kk, kqpe, kkpe = jax.random.split(root, 5)

    params = init_two_way_attention_block(kp, EMBED_DIM, NUM_HEADS, MLP_DIM, ATTN_DOWNSAMPLE)

    queries = jax.random.normal(kq, (BATCH, N_QUERIES, EMBED_DIM), jnp.float32)
    keys = jax.random.normal(kk, (BATCH, N_KEYS, EMBED_DIM), jnp.float32)
    query_pe = jax.random.normal(kqpe, (BATCH, N_QUERIES, EMBED_DIM), jnp.float32)
    key_pe = jax.random.normal(kkpe, (BATCH, N_KEYS, EMBED_DIM), jnp.float32)

    # Tolerance covers only the intentional bf16 MXU-operand rounding (exact
    # softmax division is used); residual/LayerNorm/softmax math is f32.
    TOL = 2e-2
    for skip in (False, True):
        fwd = jax.jit(functools.partial(two_way_attention_block,
                                        num_heads=NUM_HEADS,
                                        skip_first_layer_pe=skip))
        q_out, k_out = fwd(params, queries, keys, query_pe, key_pe)
        jax.block_until_ready((q_out, k_out))

        assert q_out.shape == (BATCH, N_QUERIES, EMBED_DIM)
        assert k_out.shape == (BATCH, N_KEYS, EMBED_DIM)
        assert bool(jnp.all(jnp.isfinite(q_out))) and bool(jnp.all(jnp.isfinite(k_out)))

        q_ref, k_ref = two_way_attention_block_ref(
            params, queries, keys, query_pe, key_pe,
            num_heads=NUM_HEADS, skip_first_layer_pe=skip)
        assert bool(jnp.allclose(q_out, q_ref, rtol=TOL, atol=TOL)), f"queries mismatch (skip={skip})"
        assert bool(jnp.allclose(k_out, k_ref, rtol=TOL, atol=TOL)), f"keys mismatch (skip={skip})"

    print("KERNEL_OK")
</pallas_src>

<mosaic_0001>
module attributes {stable_mosaic.version = 11 : i64} {
  func.func @_two_way_block_kernel(%arg0: memref<16x32xf32, #tpu.memory_space<vmem>>, %arg1: memref<128x32xf32, #tpu.memory_space<vmem>>, %arg2: memref<16x32xf32, #tpu.memory_space<vmem>>, %arg3: memref<128x32xf32, #tpu.memory_space<vmem>>, %arg4: memref<288x64xbf16, #tpu.memory_space<vmem>>, %arg5: memref<136x64xf32, #tpu.memory_space<vmem>>, %arg6: memref<16x32xf32, #tpu.memory_space<vmem>>, %arg7: memref<128x32xf32, #tpu.memory_space<vmem>>) attributes {dimension_semantics = [], scalar_prefetch = 0 : i64, scratch_operands = 0 : i64, tpu.core_type = #tpu.core_type<tc>} {
    %c0 = arith.constant 0 : index
    %c0_0 = arith.constant 0 : index
    %0 = vector.load %arg0[%c0, %c0_0] : memref<16x32xf32, #tpu.memory_space<vmem>>, vector<16x32xf32>
    %c0_1 = arith.constant 0 : index
    %c0_2 = arith.constant 0 : index
    %1 = vector.load %arg1[%c0_1, %c0_2] : memref<128x32xf32, #tpu.memory_space<vmem>>, vector<128x32xf32>
    %c0_3 = arith.constant 0 : index
    %c0_4 = arith.constant 0 : index
    %2 = vector.load %arg2[%c0_3, %c0_4] : memref<16x32xf32, #tpu.memory_space<vmem>>, vector<16x32xf32>
    %c0_5 = arith.constant 0 : index
    %c0_6 = arith.constant 0 : index
    %3 = vector.load %arg3[%c0_5, %c0_6] : memref<128x32xf32, #tpu.memory_space<vmem>>, vector<128x32xf32>
    %4 = arith.addf %0, %2 : vector<16x32xf32>
    %c0_7 = arith.constant 0 : index
    %c0_8 = arith.constant 0 : index
    %5 = vector.load %arg4[%c0_7, %c0_8] : memref<288x64xbf16, #tpu.memory_space<vmem>>, vector<32x64xbf16>
    %6 = arith.truncf %4 : vector<16x32xf32> to vector<16x32xbf16>
    %cst = arith.constant dense<0.000000e+00> : vector<16x64xf32>
    %7 = tpu.matmul %6, %5, %cst {dimension_numbers = #tpu.dot_dimension_numbers<[1], [0], [0], [1], [0, 0, 1, 1], [], []>} : vector<16x32xbf16>, vector<32x64xbf16>, vector<16x64xf32> -> vector<16x64xf32>
    %c0_9 = arith.constant 0 : index
    %c0_10 = arith.constant 0 : index
    %8 = vector.load %arg5[%c0_9, %c0_10] : memref<136x64xf32, #tpu.memory_space<vmem>>, vector<1x64xf32>
    %9 = vector.broadcast %8 : vector<1x64xf32> to vector<16x64xf32>
    %10 = arith.addf %7, %9 : vector<16x64xf32>
    %c32 = arith.constant 32 : index
    %c0_11 = arith.constant 0 : index
    %11 = vector.load %arg4[%c32, %c0_11] : memref<288x64xbf16, #tpu.memory_space<vmem>>, vector<32x32xbf16>
    %12 = arith.truncf %0 : vector<16x32xf32> to vector<16x32xbf16>
    %cst_12 = arith.constant dense<0.000000e+00> : vector<16x32xf32>
    %13 = tpu.matmul %12, %11, %cst_12 {dimension_numbers = #tpu.dot_dimension_numbers<[1], [0], [0], [1], [0, 0, 1, 1], [], []>} : vector<16x32xbf16>, vector<32x32xbf16>, vector<16x32xf32> -> vector<16x32xf32>
    %c8 = arith.constant 8 : index
    %c0_13 = arith.constant 0 : index
    %14 = vector.load %arg5[%c8, %c0_13] : memref<136x64xf32, #tpu.memory_space<vmem>>, vector<1x32xf32>
    %15 = vector.broadcast %14 : vector<1x32xf32> to vector<16x32xf32>
    %16 = arith.addf %13, %15 : vector<16x32xf32>
    %17 = vector.extract_strided_slice %10 {offsets = [0, 0], sizes = [16, 32], strides = [1, 1]} : vector<16x64xf32> to vector<16x32xf32>
    %18 = vector.extract_strided_slice %10 {offsets = [0, 32], sizes = [16, 32], strides = [1, 1]} : vector<16x64xf32> to vector<16x32xf32>
    %c64 = arith.constant 64 : index
    %c0_14 = arith.constant 0 : index
    %19 = vector.load %arg4[%c64, %c0_14] : memref<288x64xbf16, #tpu.memory_space<vmem>>, vector<32x32xbf16>
    %c16 = arith.constant 16 : index
    %c0_15 = arith.constant 0 : index
    %20 = vector.load %arg5[%c16, %c0_15] : memref<136x64xf32, #tpu.memory_space<vmem>>, vector<1x32xf32>
    %21 = vector.extract_strided_slice %17 {offsets = [0, 0], sizes = [16, 8], strides = [1, 1]} : vector<16x32xf32> to vector<16x8xf32>
    %22 = vector.shape_cast %21 : vector<16x8xf32> to vector<2x8x8xf32>
    %23 = arith.truncf %22 : vector<2x8x8xf32> to vector<2x8x8xbf16>
    %24 = vector.extract_strided_slice %18 {offsets = [0, 0], sizes = [16, 8], strides = [1, 1]} : vector<16x32xf32> to vector<16x8xf32>
    %25 = vector.shape_cast %24 : vector<16x8xf32> to vector<2x8x8xf32>
    %26 = arith.truncf %25 : vector<2x8x8xf32> to vector<2x8x8xbf16>
    %27 = vector.extract_strided_slice %16 {offsets = [0, 0], sizes = [16, 8], strides = [1, 1]} : vector<16x32xf32> to vector<16x8xf32>
    %28 = vector.shape_cast %27 : vector<16x8xf32> to vector<2x8x8xf32>
    %29 = arith.truncf %28 : vector<2x8x8xf32> to vector<2x8x8xbf16>
    %cst_16 = arith.constant dense<0.000000e+00> : vector<2x8x8xf32>
    %30 = tpu.matmul %23, %26, %cst_16 {dimension_numbers = #tpu.dot_dimension_numbers<[2], [2], [1], [1], [0, 0, 0, 1, 1, 1], [0], [0]>} : vector<2x8x8xbf16>, vector<2x8x8xbf16>, vector<2x8x8xf32> -> vector<2x8x8xf32>
    %cst_17 = arith.constant dense<0xFF800000> : vector<2x8xf32>
    %31 = vector.multi_reduction <maximumf>, %30, %cst_17 [2] : vector<2x8x8xf32> to vector<2x8xf32>
    %32 = vector.shape_cast %31 : vector<2x8xf32> to vector<2x8x1xf32>
    %33 = vector.broadcast %32 : vector<2x8x1xf32> to vector<2x8x8xf32>
    %34 = arith.subf %30, %33 : vector<2x8x8xf32>
    %35 = math.exp %34 : vector<2x8x8xf32>
    %cst_18 = arith.constant dense<0.000000e+00> : vector<2x8xf32>
    %36 = vector.multi_reduction <add>, %35, %cst_18 [2] : vector<2x8x8xf32> to vector<2x8xf32>
    %37 = vector.shape_cast %36 : vector<2x8xf32> to vector<2x8x1xf32>
    %38 = vector.broadcast %37 : vector<2x8x1xf32> to vector<2x8x8xf32>
    %39 = arith.divf %35, %38 : vector<2x8x8xf32>
    %40 = arith.truncf %39 : vector<2x8x8xf32> to vector<2x8x8xbf16>
    %cst_19 = arith.constant dense<0.000000e+00> : vector<2x8x8xf32>
    %41 = tpu.matmul %40, %29, %cst_19 {dimension_numbers = #tpu.dot_dimension_numbers<[2], [1], [1], [2], [0, 0, 0, 1, 1, 2], [0], [0]>} : vector<2x8x8xbf16>, vector<2x8x8xbf16>, vector<2x8x8xf32> -> vector<2x8x8xf32>
    %42 = vector.shape_cast %41 : vector<2x8x8xf32> to vector<16x8xf32>
    %43 = vector.extract_strided_slice %17 {offsets = [0, 8], sizes = [16, 8], strides = [1, 1]} : vector<16x32xf32> to vector<16x8xf32>
    %44 = vector.shape_cast %43 : vector<16x8xf32> to vector<2x8x8xf32>
    %45 = arith.truncf %44 : vector<2x8x8xf32> to vector<2x8x8xbf16>
    %46 = vector.extract_strided_slice %18 {offsets = [0, 8], sizes = [16, 8], strides = [1, 1]} : vector<16x32xf32> to vector<16x8xf32>
    %47 = vector.shape_cast %46 : vector<16x8xf32> to vector<2x8x8xf32>
    %48 = arith.truncf %47 : vector<2x8x8xf32> to vector<2x8x8xbf16>
    %49 = vector.extract_strided_slice %16 {offsets = [0, 8], sizes = [16, 8], strides = [1, 1]} : vector<16x32xf32> to vector<16x8xf32>
    %50 = vector.shape_cast %49 : vector<16x8xf32> to vector<2x8x8xf32>
    %51 = arith.truncf %50 : vector<2x8x8xf32> to vector<2x8x8xbf16>
    %cst_20 = arith.constant dense<0.000000e+00> : vector<2x8x8xf32>
    %52 = tpu.matmul %45, %48, %cst_20 {dimension_numbers = #tpu.dot_dimension_numbers<[2], [2], [1], [1], [0, 0, 0, 1, 1, 1], [0], [0]>} : vector<2x8x8xbf16>, vector<2x8x8xbf16>, vector<2x8x8xf32> -> vector<2x8x8xf32>
    %cst_21 = arith.constant dense<0xFF800000> : vector<2x8xf32>
    %53 = vector.multi_reduction <maximumf>, %52, %cst_21 [2] : vector<2x8x8xf32> to vector<2x8xf32>
    %54 = vector.shape_cast %53 : vector<2x8xf32> to vector<2x8x1xf32>
    %55 = vector.broadcast %54 : vector<2x8x1xf32> to vector<2x8x8xf32>
    %56 = arith.subf %52, %55 : vector<2x8x8xf32>
    %57 = math.exp %56 : vector<2x8x8xf32>
    %cst_22 = arith.constant dense<0.000000e+00> : vector<2x8xf32>
    %58 = vector.multi_reduction <add>, %57, %cst_22 [2] : vector<2x8x8xf32> to vector<2x8xf32>
    %59 = vector.shape_cast %58 : vector<2x8xf32> to vector<2x8x1xf32>
    %60 = vector.broadcast %59 : vector<2x8x1xf32> to vector<2x8x8xf32>
    %61 = arith.divf %57, %60 : vector<2x8x8xf32>
    %62 = arith.truncf %61 : vector<2x8x8xf32> to vector<2x8x8xbf16>
    %cst_23 = arith.constant dense<0.000000e+00> : vector<2x8x8xf32>
    %63 = tpu.matmul %62, %51, %cst_23 {dimension_numbers = #tpu.dot_dimension_numbers<[2], [1], [1], [2], [0, 0, 0, 1, 1, 2], [0], [0]>} : vector<2x8x8xbf16>, vector<2x8x8xbf16>, vector<2x8x8xf32> -> vector<2x8x8xf32>
    %64 = vector.shape_cast %63 : vector<2x8x8xf32> to vector<16x8xf32>
    %65 = vector.extract_strided_slice %17 {offsets = [0, 16], sizes = [16, 8], strides = [1, 1]} : vector<16x32xf32> to vector<16x8xf32>
    %66 = vector.shape_cast %65 : vector<16x8xf32> to vector<2x8x8xf32>
    %67 = arith.truncf %66 : vector<2x8x8xf32> to vector<2x8x8xbf16>
    %68 = vector.extract_strided_slice %18 {offsets = [0, 16], sizes = [16, 8], strides = [1, 1]} : vector<16x32xf32> to vector<16x8xf32>
    %69 = vector.shape_cast %68 : vector<16x8xf32> to vector<2x8x8xf32>
    %70 = arith.truncf %69 : vector<2x8x8xf32> to vector<2x8x8xbf16>
    %71 = vector.extract_strided_slice %16 {offsets = [0, 16], sizes = [16, 8], strides = [1, 1]} : vector<16x32xf32> to vector<16x8xf32>
    %72 = vector.shape_cast %71 : vector<16x8xf32> to vector<2x8x8xf32>
    %73 = arith.truncf %72 : vector<2x8x8xf32> to vector<2x8x8xbf16>
    %cst_24 = arith.constant dense<0.000000e+00> : vector<2x8x8xf32>
    %74 = tpu.matmul %67, %70, %cst_24 {dimension_numbers = #tpu.dot_dimension_numbers<[2], [2], [1], [1], [0, 0, 0, 1, 1, 1], [0], [0]>} : vector<2x8x8xbf16>, vector<2x8x8xbf16>, vector<2x8x8xf32> -> vector<2x8x8xf32>
    %cst_25 = arith.constant dense<0xFF800000> : vector<2x8xf32>
    %75 = vector.multi_reduction <maximumf>, %74, %cst_25 [2] : vector<2x8x8xf32> to vector<2x8xf32>
    %76 = vector.shape_cast %75 : vector<2x8xf32> to vector<2x8x1xf32>
    %77 = vector.broadcast %76 : vector<2x8x1xf32> to vector<2x8x8xf32>
    %78 = arith.subf %74, %77 : vector<2x8x8xf32>
    %79 = math.exp %78 : vector<2x8x8xf32>
    %cst_26 = arith.constant dense<0.000000e+00> : vector<2x8xf32>
    %80 = vector.multi_reduction <add>, %79, %cst_26 [2] : vector<2x8x8xf32> to vector<2x8xf32>
    %81 = vector.shape_cast %80 : vector<2x8xf32> to vector<2x8x1xf32>
    %82 = vector.broadcast %81 : vector<2x8x1xf32> to vector<2x8x8xf32>
    %83 = arith.divf %79, %82 : vector<2x8x8xf32>
    %84 = arith.truncf %83 : vector<2x8x8xf32> to vector<2x8x8xbf16>
    %cst_27 = arith.constant dense<0.000000e+00> : vector<2x8x8xf32>
    %85 = tpu.matmul %84, %73, %cst_27 {dimension_numbers = #tpu.dot_dimension_numbers<[2], [1], [1], [2], [0, 0, 0, 1, 1, 2], [0], [0]>} : vector<2x8x8xbf16>, vector<2x8x8xbf16>, vector<2x8x8xf32> -> vector<2x8x8xf32>
    %86 = vector.shape_cast %85 : vector<2x8x8xf32> to vector<16x8xf32>
    %87 = vector.extract_strided_slice %17 {offsets = [0, 24], sizes = [16, 8], strides = [1, 1]} : vector<16x32xf32> to vector<16x8xf32>
    %88 = vector.shape_cast %87 : vector<16x8xf32> to vector<2x8x8xf32>
    %89 = arith.truncf %88 : vector<2x8x8xf32> to vector<2x8x8xbf16>
    %90 = vector.extract_strided_slice %18 {offsets = [0, 24], sizes = [16, 8], strides = [1, 1]} : vector<16x32xf32> to vector<16x8xf32>
    %91 = vector.shape_cast %90 : vector<16x8xf32> to vector<2x8x8xf32>
    %92 = arith.truncf %91 : vector<2x8x8xf32> to vector<2x8x8xbf16>
    %93 = vector.extract_strided_slice %16 {offsets = [0, 24], sizes = [16, 8], strides = [1, 1]} : vector<16x32xf32> to vector<16x8xf32>
    %94 = vector.shape_cast %93 : vector<16x8xf32> to vector<2x8x8xf32>
    %95 = arith.truncf %94 : vector<2x8x8xf32> to vector<2x8x8xbf16>
    %cst_28 = arith.constant dense<0.000000e+00> : vector<2x8x8xf32>
    %96 = tpu.matmul %89, %92, %cst_28 {dimension_numbers = #tpu.dot_dimension_numbers<[2], [2], [1], [1], [0, 0, 0, 1, 1, 1], [0], [0]>} : vector<2x8x8xbf16>, vector<2x8x8xbf16>, vector<2x8x8xf32> -> vector<2x8x8xf32>
    %cst_29 = arith.constant dense<0xFF800000> : vector<2x8xf32>
    %97 = vector.multi_reduction <maximumf>, %96, %cst_29 [2] : vector<2x8x8xf32> to vector<2x8xf32>
    %98 = vector.shape_cast %97 : vector<2x8xf32> to vector<2x8x1xf32>
    %99 = vector.broadcast %98 : vector<2x8x1xf32> to vector<2x8x8xf32>
    %100 = arith.subf %96, %99 : vector<2x8x8xf32>
    %101 = math.exp %100 : vector<2x8x8xf32>
    %cst_30 = arith.constant dense<0.000000e+00> : vector<2x8xf32>
    %102 = vector.multi_reduction <add>, %101, %cst_30 [2] : vector<2x8x8xf32> to vector<2x8xf32>
    %103 = vector.shape_cast %102 : vector<2x8xf32> to vector<2x8x1xf32>
    %104 = vector.broadcast %103 : vector<2x8x1xf32> to vector<2x8x8xf32>
    %105 = arith.divf %101, %104 : vector<2x8x8xf32>
    %106 = arith.truncf %105 : vector<2x8x8xf32> to vector<2x8x8xbf16>
    %cst_31 = arith.constant dense<0.000000e+00> : vector<2x8x8xf32>
    %107 = tpu.matmul %106, %95, %cst_31 {dimension_numbers = #tpu.dot_dimension_numbers<[2], [1], [1], [2], [0, 0, 0, 1, 1, 2], [0], [0]>} : vector<2x8x8xbf16>, vector<2x8x8xbf16>, vector<2x8x8xf32> -> vector<2x8x8xf32>
    %108 = vector.shape_cast %107 : vector<2x8x8xf32> to vector<16x8xf32>
    %109 = tpu.concatenate %42, %64, %86, %108 in 1 : vector<16x8xf32>, vector<16x8xf32>, vector<16x8xf32>, vector<16x8xf32> -> vector<16x32xf32>
    %110 = arith.truncf %109 : vector<16x32xf32> to vector<16x32xbf16>
    %cst_32 = arith.constant dense<0.000000e+00> : vector<16x32xf32>
    %111 = tpu.matmul %110, %19, %cst_32 {dimension_numbers = #tpu.dot_dimension_numbers<[1], [0], [0], [1], [0, 0, 1, 1], [], []>} : vector<16x32xbf16>, vector<32x32xbf16>, vector<16x32xf32> -> vector<16x32xf32>
    %112 = vector.broadcast %20 : vector<1x32xf32> to vector<16x32xf32>
    %113 = arith.addf %111, %112 : vector<16x32xf32>
    %114 = arith.addf %0, %113 : vector<16x32xf32>
    %c24 = arith.constant 24 : index
    %c0_33 = arith.constant 0 : index
    %115 = vector.load %arg5[%c24, %c0_33] : memref<136x64xf32, #tpu.memory_space<vmem>>, vector<1x32xf32>
    %c32_34 = arith.constant 32 : index
    %c0_35 = arith.constant 0 : index
    %116 = vector.load %arg5[%c32_34, %c0_35] : memref<136x64xf32, #tpu.memory_space<vmem>>, vector<1x32xf32>
    %cst_36 = arith.constant dense<0.000000e+00> : vector<16xf32>
    %117 = vector.multi_reduction <add>, %114, %cst_36 [1] : vector<16x32xf32> to vector<16xf32>
    %118 = vector.shape_cast %117 : vector<16xf32> to vector<16x1xf32>
    %cst_37 = arith.constant 3.200000e+01 : f32
    %119 = vector.broadcast %cst_37 : f32 to vector<16x1xf32>
    %120 = arith.divf %118, %119 : vector<16x1xf32>
    %121 = vector.broadcast %120 : vector<16x1xf32> to vector<16x32xf32>
    %122 = arith.subf %114, %121 : vector<16x32xf32>
    %123 = arith.mulf %122, %122 : vector<16x32xf32>
    %cst_38 = arith.constant dense<0.000000e+00> : vector<16xf32>
    %124 = vector.multi_reduction <add>, %123, %cst_38 [1] : vector<16x32xf32> to vector<16xf32>
    %125 = vector.shape_cast %124 : vector<16xf32> to vector<16x1xf32>
    %cst_39 = arith.constant 3.200000e+01 : f32
    %126 = vector.broadcast %cst_39 : f32 to vector<16x1xf32>
    %127 = arith.divf %125, %126 : vector<16x1xf32>
    %cst_40 = arith.constant 9.99999974E-6 : f32
    %128 = vector.broadcast %cst_40 : f32 to vector<16x1xf32>
    %129 = arith.addf %127, %128 : vector<16x1xf32>
    %130 = math.rsqrt %129 : vector<16x1xf32>
    %131 = vector.broadcast %130 : vector<16x1xf32> to vector<16x32xf32>
    %132 = arith.mulf %122, %131 : vector<16x32xf32>
    %133 = vector.broadcast %115 : vector<1x32xf32> to vector<16x32xf32>
    %134 = arith.mulf %132, %133 : vector<16x32xf32>
    %135 = vector.broadcast %116 : vector<1x32xf32> to vector<16x32xf32>
    %136 = arith.addf %134, %135 : vector<16x32xf32>
    %137 = arith.addf %1, %3 : vector<128x32xf32>
    %138 = arith.addf %136, %2 : vector<16x32xf32>
    %c96 = arith.constant 96 : index
    %c0_41 = arith.constant 0 : index
    %139 = vector.load %arg4[%c96, %c0_41] : memref<288x64xbf16, #tpu.memory_space<vmem>>, vector<32x48xbf16>
    %140 = vector.extract_strided_slice %139 {offsets = [0, 0], sizes = [32, 16], strides = [1, 1]} : vector<32x48xbf16> to vector<32x16xbf16>
    %141 = arith.truncf %138 : vector<16x32xf32> to vector<16x32xbf16>
    %cst_42 = arith.constant dense<0.000000e+00> : vector<16x16xf32>
    %142 = tpu.matmul %141, %140, %cst_42 {dimension_numbers = #tpu.dot_dimension_numbers<[1], [0], [0], [1], [0, 0, 1, 1], [], []>} : vector<16x32xbf16>, vector<32x16xbf16>, vector<16x16xf32> -> vector<16x16xf32>
    %c40 = arith.constant 40 : index
    %c0_43 = arith.constant 0 : index
    %143 = vector.load %arg5[%c40, %c0_43] : memref<136x64xf32, #tpu.memory_space<vmem>>, vector<1x16xf32>
    %144 = vector.broadcast %143 : vector<1x16xf32> to vector<16x16xf32>
    %145 = arith.addf %142, %144 : vector<16x16xf32>
    %146 = vector.extract_strided_slice %139 {offsets = [0, 16], sizes = [32, 16], strides = [1, 1]} : vector<32x48xbf16> to vector<32x16xbf16>
    %147 = arith.truncf %137 : vector<128x32xf32> to vector<128x32xbf16>
    %cst_44 = arith.constant dense<0.000000e+00> : vector<128x16xf32>
    %148 = tpu.matmul %147, %146, %cst_44 {dimension_numbers = #tpu.dot_dimension_numbers<[1], [0], [0], [1], [0, 0, 1, 1], [], []>} : vector<128x32xbf16>, vector<32x16xbf16>, vector<128x16xf32> -> vector<128x16xf32>
    %c40_45 = arith.constant 40 : index
    %c16_46 = arith.constant 16 : index
    %149 = vector.load %arg5[%c40_45, %c16_46] : memref<136x64xf32, #tpu.memory_space<vmem>>, vector<1x16xf32>
    %150 = vector.broadcast %149 : vector<1x16xf32> to vector<128x16xf32>
    %151 = arith.addf %148, %150 : vector<128x16xf32>
    %152 = vector.extract_strided_slice %139 {offsets = [0, 32], sizes = [32, 16], strides = [1, 1]} : vector<32x48xbf16> to vector<32x16xbf16>
    %153 = arith.truncf %1 : vector<128x32xf32> to vector<128x32xbf16>
    %cst_47 = arith.constant dense<0.000000e+00> : vector<128x16xf32>
    %154 = tpu.matmul %153, %152, %cst_47 {dimension_numbers = #tpu.dot_dimension_numbers<[1], [0], [0], [1], [0, 0, 1, 1], [], []>} : vector<128x32xbf16>, vector<32x16xbf16>, vector<128x16xf32> -> vector<128x16xf32>
    %c40_48 = arith.constant 40 : index
    %c32_49 = arith.constant 32 : index
    %155 = vector.load %arg5[%c40_48, %c32_49] : memref<136x64xf32, #tpu.memory_space<vmem>>, vector<1x16xf32>
    %156 = vector.broadcast %155 : vector<1x16xf32> to vector<128x16xf32>
    %157 = arith.addf %154, %156 : vector<128x16xf32>
    %c128 = arith.constant 128 : index
    %c0_50 = arith.constant 0 : index
    %158 = vector.load %arg4[%c128, %c0_50] : memref<288x64xbf16, #tpu.memory_space<vmem>>, vector<16x32xbf16>
    %c48 = arith.constant 48 : index
    %c0_51 = arith.constant 0 : index
    %159 = vector.load %arg5[%c48, %c0_51] : memref<136x64xf32, #tpu.memory_space<vmem>>, vector<1x32xf32>
    %160 = vector.extract_strided_slice %145 {offsets = [0, 0], sizes = [16, 4], strides = [1, 1]} : vector<16x16xf32> to vector<16x4xf32>
    %161 = vector.shape_cast %160 : vector<16x4xf32> to vector<2x8x4xf32>
    %162 = arith.truncf %161 : vector<2x8x4xf32> to vector<2x8x4xbf16>
    %163 = vector.extract_strided_slice %151 {offsets = [0, 0], sizes = [128, 4], strides = [1, 1]} : vector<128x16xf32> to vector<128x4xf32>
    %164 = vector.shape_cast %163 : vector<128x4xf32> to vector<2x64x4xf32>
    %165 = arith.truncf %164 : vector<2x64x4xf32> to vector<2x64x4xbf16>
    %166 = vector.extract_strided_slice %157 {offsets = [0, 0], sizes = [128, 4], strides = [1, 1]} : vector<128x16xf32> to vector<128x4xf32>
    %167 = vector.shape_cast %166 : vector<128x4xf32> to vector<2x64x4xf32>
    %168 = arith.truncf %167 : vector<2x64x4xf32> to vector<2x64x4xbf16>
    %cst_52 = arith.constant dense<0.000000e+00> : vector<2x8x64xf32>
    %169 = tpu.matmul %162, %165, %cst_52 {dimension_numbers = #tpu.dot_dimension_numbers<[2], [2], [1], [1], [0, 0, 0, 1, 1, 1], [0], [0]>} : vector<2x8x4xbf16>, vector<2x64x4xbf16>, vector<2x8x64xf32> -> vector<2x8x64xf32>
    %cst_53 = arith.constant dense<0xFF800000> : vector<2x8xf32>
    %170 = vector.multi_reduction <maximumf>, %169, %cst_53 [2] : vector<2x8x64xf32> to vector<2x8xf32>
    %171 = vector.shape_cast %170 : vector<2x8xf32> to vector<2x8x1xf32>
    %172 = vector.broadcast %171 : vector<2x8x1xf32> to vector<2x8x64xf32>
    %173 = arith.subf %169, %172 : vector<2x8x64xf32>
    %174 = math.exp %173 : vector<2x8x64xf32>
    %cst_54 = arith.constant dense<0.000000e+00> : vector<2x8xf32>
    %175 = vector.multi_reduction <add>, %174, %cst_54 [2] : vector<2x8x64xf32> to vector<2x8xf32>
    %176 = vector.shape_cast %175 : vector<2x8xf32> to vector<2x8x1xf32>
    %177 = vector.broadcast %176 : vector<2x8x1xf32> to vector<2x8x64xf32>
    %178 = arith.divf %174, %177 : vector<2x8x64xf32>
    %179 = arith.truncf %178 : vector<2x8x64xf32> to vector<2x8x64xbf16>
    %cst_55 = arith.constant dense<0.000000e+00> : vector<2x8x4xf32>
    %180 = tpu.matmul %179, %168, %cst_55 {dimension_numbers = #tpu.dot_dimension_numbers<[2], [1], [1], [2], [0, 0, 0, 1, 1, 2], [0], [0]>} : vector<2x8x64xbf16>, vector<2x64x4xbf16>, vector<2x8x4xf32> -> vector<2x8x4xf32>
    %181 = vector.shape_cast %180 : vector<2x8x4xf32> to vector<16x4xf32>
    %182 = vector.extract_strided_slice %145 {offsets = [0, 4], sizes = [16, 4], strides = [1, 1]} : vector<16x16xf32> to vector<16x4xf32>
    %183 = vector.shape_cast %182 : vector<16x4xf32> to vector<2x8x4xf32>
    %184 = arith.truncf %183 : vector<2x8x4xf32> to vector<2x8x4xbf16>
    %185 = vector.extract_strided_slice %151 {offsets = [0, 4], sizes = [128, 4], strides = [1, 1]} : vector<128x16xf32> to vector<128x4xf32>
    %186 = vector.shape_cast %185 : vector<128x4xf32> to vector<2x64x4xf32>
    %187 = arith.truncf %186 : vector<2x64x4xf32> to vector<2x64x4xbf16>
    %188 = vector.extract_strided_slice %157 {offsets = [0, 4], sizes = [128, 4], strides = [1, 1]} : vector<128x16xf32> to vector<128x4xf32>
    %189 = vector.shape_cast %188 : vector<128x4xf32> to vector<2x64x4xf32>
    %190 = arith.truncf %189 : vector<2x64x4xf32> to vector<2x64x4xbf16>
    %cst_56 = arith.constant dense<0.000000e+00> : vector<2x8x64xf32>
    %191 = tpu.matmul %184, %187, %cst_56 {dimension_numbers = #tpu.dot_dimension_numbers<[2], [2], [1], [1], [0, 0, 0, 1, 1, 1], [0], [0]>} : vector<2x8x4xbf16>, vector<2x64x4xbf16>, vector<2x8x64xf32> -> vector<2x8x64xf32>
    %cst_57 = arith.constant dense<0xFF800000> : vector<2x8xf32>
    %192 = vector.multi_reduction <maximumf>, %191, %cst_57 [2] : vector<2x8x64xf32> to vector<2x8xf32>
    %193 = vector.shape_cast %192 : vector<2x8xf32> to vector<2x8x1xf32>
    %194 = vector.broadcast %193 : vector<2x8x1xf32> to vector<2x8x64xf32>
    %195 = arith.subf %191, %194 : vector<2x8x64xf32>
    %196 = math.exp %195 : vector<2x8x64xf32>
    %cst_58 = arith.constant dense<0.000000e+00> : vector<2x8xf32>
    %197 = vector.multi_reduction <add>, %196, %cst_58 [2] : vector<2x8x64xf32> to vector<2x8xf32>
    %198 = vector.shape_cast %197 : vector<2x8xf32> to vector<2x8x1xf32>
    %199 = vector.broadcast %198 : vector<2x8x1xf32> to vector<2x8x64xf32>
    %200 = arith.divf %196, %199 : vector<2x8x64xf32>
    %201 = arith.truncf %200 : vector<2x8x64xf32> to vector<2x8x64xbf16>
    %cst_59 = arith.constant dense<0.000000e+00> : vector<2x8x4xf32>
    %202 = tpu.matmul %201, %190, %cst_59 {dimension_numbers = #tpu.dot_dimension_numbers<[2], [1], [1], [2], [0, 0, 0, 1, 1, 2], [0], [0]>} : vector<2x8x64xbf16>, vector<2x64x4xbf16>, vector<2x8x4xf32> -> vector<2x8x4xf32>
    %203 = vector.shape_cast %202 : vector<2x8x4xf32> to vector<16x4xf32>
    %204 = vector.extract_strided_slice %145 {offsets = [0, 8], sizes = [16, 4], strides = [1, 1]} : vector<16x16xf32> to vector<16x4xf32>
    %205 = vector.shape_cast %204 : vector<16x4xf32> to vector<2x8x4xf32>
    %206 = arith.truncf %205 : vector<2x8x4xf32> to vector<2x8x4xbf16>
    %207 = vector.extract_strided_slice %151 {offsets = [0, 8], sizes = [128, 4], strides = [1, 1]} : vector<128x16xf32> to vector<128x4xf32>
    %208 = vector.shape_cast %207 : vector<128x4xf32> to vector<2x64x4xf32>
    %209 = arith.truncf %208 : vector<2x64x4xf32> to vector<2x64x4xbf16>
    %210 = vector.extract_strided_slice %157 {offsets = [0, 8], sizes = [128, 4], strides = [1, 1]} : vector<128x16xf32> to vector<128x4xf32>
    %211 = vector.shape_cast %210 : vector<128x4xf32> to vector<2x64x4xf32>
    %212 = arith.truncf %211 : vector<2x64x4xf32> to vector<2x64x4xbf16>
    %cst_60 = arith.constant dense<0.000000e+00> : vector<2x8x64xf32>
    %213 = tpu.matmul %206, %209, %cst_60 {dimension_numbers = #tpu.dot_dimension_numbers<[2], [2], [1], [1], [0, 0, 0, 1, 1, 1], [0], [0]>} : vector<2x8x4xbf16>, vector<2x64x4xbf16>, vector<2x8x64xf32> -> vector<2x8x64xf32>
    %cst_61 = arith.constant dense<0xFF800000> : vector<2x8xf32>
    %214 = vector.multi_reduction <maximumf>, %213, %cst_61 [2] : vector<2x8x64xf32> to vector<2x8xf32>
    %215 = vector.shape_cast %214 : vector<2x8xf32> to vector<2x8x1xf32>
    %216 = vector.broadcast %215 : vector<2x8x1xf32> to vector<2x8x64xf32>
    %217 = arith.subf %213, %216 : vector<2x8x64xf32>
    %218 = math.exp %217 : vector<2x8x64xf32>
    %cst_62 = arith.constant dense<0.000000e+00> : vector<2x8xf32>
    %219 = vector.multi_reduction <add>, %218, %cst_62 [2] : vector<2x8x64xf32> to vector<2x8xf32>
    %220 = vector.shape_cast %219 : vector<2x8xf32> to vector<2x8x1xf32>
    %221 = vector.broadcast %220 : vector<2x8x1xf32> to vector<2x8x64xf32>
    %222 = arith.divf %218, %221 : vector<2x8x64xf32>
    %223 = arith.truncf %222 : vector<2x8x64xf32> to vector<2x8x64xbf16>
    %cst_63 = arith.constant dense<0.000000e+00> : vector<2x8x4xf32>
    %224 = tpu.matmul %223, %212, %cst_63 {dimension_numbers = #tpu.dot_dimension_numbers<[2], [1], [1], [2], [0, 0, 0, 1, 1, 2], [0], [0]>} : vector<2x8x64xbf16>, vector<2x64x4xbf16>, vector<2x8x4xf32> -> vector<2x8x4xf32>
    %225 = vector.shape_cast %224 : vector<2x8x4xf32> to vector<16x4xf32>
    %226 = vector.extract_strided_slice %145 {offsets = [0, 12], sizes = [16, 4], strides = [1, 1]} : vector<16x16xf32> to vector<16x4xf32>
    %227 = vector.shape_cast %226 : vector<16x4xf32> to vector<2x8x4xf32>
    %228 = arith.truncf %227 : vector<2x8x4xf32> to vector<2x8x4xbf16>
    %229 = vector.extract_strided_slice %151 {offsets = [0, 12], sizes = [128, 4], strides = [1, 1]} : vector<128x16xf32> to vector<128x4xf32>
    %230 = vector.shape_cast %229 : vector<128x4xf32> to vector<2x64x4xf32>
    %231 = arith.truncf %230 : vector<2x64x4xf32> to vector<2x64x4xbf16>
    %232 = vector.extract_strided_slice %157 {offsets = [0, 12], sizes = [128, 4], strides = [1, 1]} : vector<128x16xf32> to vector<128x4xf32>
    %233 = vector.shape_cast %232 : vector<128x4xf32> to vector<2x64x4xf32>
    %234 = arith.truncf %233 : vector<2x64x4xf32> to vector<2x64x4xbf16>
    %cst_64 = arith.constant dense<0.000000e+00> : vector<2x8x64xf32>
    %235 = tpu.matmul %228, %231, %cst_64 {dimension_numbers = #tpu.dot_dimension_numbers<[2], [2], [1], [1], [0, 0, 0, 1, 1, 1], [0], [0]>} : vector<2x8x4xbf16>, vector<2x64x4xbf16>, vector<2x8x64xf32> -> vector<2x8x64xf32>
    %cst_65 = arith.constant dense<0xFF800000> : vector<2x8xf32>
    %236 = vector.multi_reduction <maximumf>, %235, %cst_65 [2] : vector<2x8x64xf32> to vector<2x8xf32>
    %237 = vector.shape_cast %236 : vector<2x8xf32> to vector<2x8x1xf32>
    %238 = vector.broadcast %237 : vector<2x8x1xf32> to vector<2x8x64xf32>
    %239 = arith.subf %235, %238 : vector<2x8x64xf32>
    %240 = math.exp %239 : vector<2x8x64xf32>
    %cst_66 = arith.constant dense<0.000000e+00> : vector<2x8xf32>
    %241 = vector.multi_reduction <add>, %240, %cst_66 [2] : vector<2x8x64xf32> to vector<2x8xf32>
    %242 = vector.shape_cast %241 : vector<2x8xf32> to vector<2x8x1xf32>
    %243 = vector.broadcast %242 : vector<2x8x1xf32> to vector<2x8x64xf32>
    %244 = arith.divf %240, %243 : vector<2x8x64xf32>
    %245 = arith.truncf %244 : vector<2x8x64xf32> to vector<2x8x64xbf16>
    %cst_67 = arith.constant dense<0.000000e+00> : vector<2x8x4xf32>
    %246 = tpu.matmul %245, %234, %cst_67 {dimension_numbers = #tpu.dot_dimension_numbers<[2], [1], [1], [2], [0, 0, 0, 1, 1, 2], [0], [0]>} : vector<2x8x64xbf16>, vector<2x64x4xbf16>, vector<2x8x4xf32> -> vector<2x8x4xf32>
    %247 = vector.shape_cast %246 : vector<2x8x4xf32> to vector<16x4xf32>
    %248 = tpu.concatenate %181, %203, %225, %247 in 1 : vector<16x4xf32>, vector<16x4xf32>, vector<16x4xf32>, vector<16x4xf32> -> vector<16x16xf32>
    %249 = arith.truncf %248 : vector<16x16xf32> to vector<16x16xbf16>
    %cst_68 = arith.constant dense<0.000000e+00> : vector<16x32xf32>
    %250 = tpu.matmul %249, %158, %cst_68 {dimension_numbers = #tpu.dot_dimension_numbers<[1], [0], [0], [1], [0, 0, 1, 1], [], []>} : vector<16x16xbf16>, vector<16x32xbf16>, vector<16x32xf32> -> vector<16x32xf32>
    %251 = vector.broadcast %159 : vector<1x32xf32> to vector<16x32xf32>
    %252 = arith.addf %250, %251 : vector<16x32xf32>
    %253 = arith.addf %136, %252 : vector<16x32xf32>
    %c56 = arith.constant 56 : index
    %c0_69 = arith.constant 0 : index
    %254 = vector.load %arg5[%c56, %c0_69] : memref<136x64xf32, #tpu.memory_space<vmem>>, vector<1x32xf32>
    %c64_70 = arith.constant 64 : index
    %c0_71 = arith.constant 0 : index
    %255 = vector.load %arg5[%c64_70, %c0_71] : memref<136x64xf32, #tpu.memory_space<vmem>>, vector<1x32xf32>
    %cst_72 = arith.constant dense<0.000000e+00> : vector<16xf32>
    %256 = vector.multi_reduction <add>, %253, %cst_72 [1] : vector<16x32xf32> to vector<16xf32>
    %257 = vector.shape_cast %256 : vector<16xf32> to vector<16x1xf32>
    %cst_73 = arith.constant 3.200000e+01 : f32
    %258 = vector.broadcast %cst_73 : f32 to vector<16x1xf32>
    %259 = arith.divf %257, %258 : vector<16x1xf32>
    %260 = vector.broadcast %259 : vector<16x1xf32> to vector<16x32xf32>
    %261 = arith.subf %253, %260 : vector<16x32xf32>
    %262 = arith.mulf %261, %261 : vector<16x32xf32>
    %cst_74 = arith.constant dense<0.000000e+00> : vector<16xf32>
    %263 = vector.multi_reduction <add>, %262, %cst_74 [1] : vector<16x32xf32> to vector<16xf32>
    %264 = vector.shape_cast %263 : vector<16xf32> to vector<16x1xf32>
    %cst_75 = arith.constant 3.200000e+01 : f32
    %265 = vector.broadcast %cst_75 : f32 to vector<16x1xf32>
    %266 = arith.divf %264, %265 : vector<16x1xf32>
    %cst_76 = arith.constant 9.99999974E-6 : f32
    %267 = vector.broadcast %cst_76 : f32 to vector<16x1xf32>
    %268 = arith.addf %266, %267 : vector<16x1xf32>
    %269 = math.rsqrt %268 : vector<16x1xf32>
    %270 = vector.broadcast %269 : vector<16x1xf32> to vector<16x32xf32>
    %271 = arith.mulf %261, %270 : vector<16x32xf32>
    %272 = vector.broadcast %254 : vector<1x32xf32> to vector<16x32xf32>
    %273 = arith.mulf %271, %272 : vector<16x32xf32>
    %274 = vector.broadcast %255 : vector<1x32xf32> to vector<16x32xf32>
    %275 = arith.addf %273, %274 : vector<16x32xf32>
    %c144 = arith.constant 144 : index
    %c0_77 = arith.constant 0 : index
    %276 = vector.load %arg4[%c144, %c0_77] : memref<288x64xbf16, #tpu.memory_space<vmem>>, vector<32x64xbf16>
    %277 = arith.truncf %275 : vector<16x32xf32> to vector<16x32xbf16>
    %cst_78 = arith.constant dense<0.000000e+00> : vector<16x64xf32>
    %278 = tpu.matmul %277, %276, %cst_78 {dimension_numbers = #tpu.dot_dimension_numbers<[1], [0], [0], [1], [0, 0, 1, 1], [], []>} : vector<16x32xbf16>, vector<32x64xbf16>, vector<16x64xf32> -> vector<16x64xf32>
    %c72 = arith.constant 72 : index
    %c0_79 = arith.constant 0 : index
    %279 = vector.load %arg5[%c72, %c0_79] : memref<136x64xf32, #tpu.memory_space<vmem>>, vector<1x64xf32>
    %280 = vector.broadcast %279 : vector<1x64xf32> to vector<16x64xf32>
    %281 = arith.addf %278, %280 : vector<16x64xf32>
    %cst_80 = arith.constant 0.000000e+00 : f32
    %282 = vector.broadcast %cst_80 : f32 to vector<16x64xf32>
    %283 = arith.maximumf %281, %282 : vector<16x64xf32>
    %c176 = arith.constant 176 : index
    %c0_81 = arith.constant 0 : index
    %284 = vector.load %arg4[%c176, %c0_81] : memref<288x64xbf16, #tpu.memory_space<vmem>>, vector<64x32xbf16>
    %285 = arith.truncf %283 : vector<16x64xf32> to vector<16x64xbf16>
    %cst_82 = arith.constant dense<0.000000e+00> : vector<16x32xf32>
    %286 = tpu.matmul %285, %284, %cst_82 {dimension_numbers = #tpu.dot_dimension_numbers<[1], [0], [0], [1], [0, 0, 1, 1], [], []>} : vector<16x64xbf16>, vector<64x32xbf16>, vector<16x32xf32> -> vector<16x32xf32>
    %c80 = arith.constant 80 : index
    %c0_83 = arith.constant 0 : index
    %287 = vector.load %arg5[%c80, %c0_83] : memref<136x64xf32, #tpu.memory_space<vmem>>, vector<1x32xf32>
    %288 = vector.broadcast %287 : vector<1x32xf32> to vector<16x32xf32>
    %289 = arith.addf %286, %288 : vector<16x32xf32>
    %290 = arith.addf %275, %289 : vector<16x32xf32>
    %c88 = arith.constant 88 : index
    %c0_84 = arith.constant 0 : index
    %291 = vector.load %arg5[%c88, %c0_84] : memref<136x64xf32, #tpu.memory_space<vmem>>, vector<1x32xf32>
    %c96_85 = arith.constant 96 : index
    %c0_86 = arith.constant 0 : index
    %292 = vector.load %arg5[%c96_85, %c0_86] : memref<136x64xf32, #tpu.memory_space<vmem>>, vector<1x32xf32>
    %cst_87 = arith.constant dense<0.000000e+00> : vector<16xf32>
    %293 = vector.multi_reduction <add>, %290, %cst_87 [1] : vector<16x32xf32> to vector<16xf32>
    %294 = vector.shape_cast %293 : vector<16xf32> to vector<16x1xf32>
    %cst_88 = arith.constant 3.200000e+01 : f32
    %295 = vector.broadcast %cst_88 : f32 to vector<16x1xf32>
    %296 = arith.divf %294, %295 : vector<16x1xf32>
    %297 = vector.broadcast %296 : vector<16x1xf32> to vector<16x32xf32>
    %298 = arith.subf %290, %297 : vector<16x32xf32>
    %299 = arith.mulf %298, %298 : vector<16x32xf32>
    %cst_89 = arith.constant dense<0.000000e+00> : vector<16xf32>
    %300 = vector.multi_reduction <add>, %299, %cst_89 [1] : vector<16x32xf32> to vector<16xf32>
    %301 = vector.shape_cast %300 : vector<16xf32> to vector<16x1xf32>
    %cst_90 = arith.constant 3.200000e+01 : f32
    %302 = vector.broadcast %cst_90 : f32 to vector<16x1xf32>
    %303 = arith.divf %301, %302 : vector<16x1xf32>
    %cst_91 = arith.constant 9.99999974E-6 : f32
    %304 = vector.broadcast %cst_91 : f32 to vector<16x1xf32>
    %305 = arith.addf %303, %304 : vector<16x1xf32>
    %306 = math.rsqrt %305 : vector<16x1xf32>
    %307 = vector.broadcast %306 : vector<16x1xf32> to vector<16x32xf32>
    %308 = arith.mulf %298, %307 : vector<16x32xf32>
    %309 = vector.broadcast %291 : vector<1x32xf32> to vector<16x32xf32>
    %310 = arith.mulf %308, %309 : vector<16x32xf32>
    %311 = vector.broadcast %292 : vector<1x32xf32> to vector<16x32xf32>
    %312 = arith.addf %310, %311 : vector<16x32xf32>
    %313 = arith.addf %312, %2 : vector<16x32xf32>
    %c240 = arith.constant 240 : index
    %c0_92 = arith.constant 0 : index
    %314 = vector.load %arg4[%c240, %c0_92] : memref<288x64xbf16, #tpu.memory_space<vmem>>, vector<32x48xbf16>
    %315 = vector.extract_strided_slice %314 {offsets = [0, 0], sizes = [32, 16], strides = [1, 1]} : vector<32x48xbf16> to vector<32x16xbf16>
    %316 = arith.truncf %137 : vector<128x32xf32> to vector<128x32xbf16>
    %cst_93 = arith.constant dense<0.000000e+00> : vector<128x16xf32>
    %317 = tpu.matmul %316, %315, %cst_93 {dimension_numbers = #tpu.dot_dimension_numbers<[1], [0], [0], [1], [0, 0, 1, 1], [], []>} : vector<128x32xbf16>, vector<32x16xbf16>, vector<128x16xf32> -> vector<128x16xf32>
    %c104 = arith.constant 104 : index
    %c0_94 = arith.constant 0 : index
    %318 = vector.load %arg5[%c104, %c0_94] : memref<136x64xf32, #tpu.memory_space<vmem>>, vector<1x16xf32>
    %319 = vector.broadcast %318 : vector<1x16xf32> to vector<128x16xf32>
    %320 = arith.addf %317, %319 : vector<128x16xf32>
    %321 = vector.extract_strided_slice %314 {offsets = [0, 16], sizes = [32, 16], strides = [1, 1]} : vector<32x48xbf16> to vector<32x16xbf16>
    %322 = arith.truncf %313 : vector<16x32xf32> to vector<16x32xbf16>
    %cst_95 = arith.constant dense<0.000000e+00> : vector<16x16xf32>
    %323 = tpu.matmul %322, %321, %cst_95 {dimension_numbers = #tpu.dot_dimension_numbers<[1], [0], [0], [1], [0, 0, 1, 1], [], []>} : vector<16x32xbf16>, vector<32x16xbf16>, vector<16x16xf32> -> vector<16x16xf32>
    %c104_96 = arith.constant 104 : index
    %c16_97 = arith.constant 16 : index
    %324 = vector.load %arg5[%c104_96, %c16_97] : memref<136x64xf32, #tpu.memory_space<vmem>>, vector<1x16xf32>
    %325 = vector.broadcast %324 : vector<1x16xf32> to vector<16x16xf32>
    %326 = arith.addf %323, %325 : vector<16x16xf32>
    %327 = vector.extract_strided_slice %314 {offsets = [0, 32], sizes = [32, 16], strides = [1, 1]} : vector<32x48xbf16> to vector<32x16xbf16>
    %328 = arith.truncf %312 : vector<16x32xf32> to vector<16x32xbf16>
    %cst_98 = arith.constant dense<0.000000e+00> : vector<16x16xf32>
    %329 = tpu.matmul %328, %327, %cst_98 {dimension_numbers = #tpu.dot_dimension_numbers<[1], [0], [0], [1], [0, 0, 1, 1], [], []>} : vector<16x32xbf16>, vector<32x16xbf16>, vector<16x16xf32> -> vector<16x16xf32>
    %c104_99 = arith.constant 104 : index
    %c32_100 = arith.constant 32 : index
    %330 = vector.load %arg5[%c104_99, %c32_100] : memref<136x64xf32, #tpu.memory_space<vmem>>, vector<1x16xf32>
    %331 = vector.broadcast %330 : vector<1x16xf32> to vector<16x16xf32>
    %332 = arith.addf %329, %331 : vector<16x16xf32>
    %c272 = arith.constant 272 : index
    %c0_101 = arith.constant 0 : index
    %333 = vector.load %arg4[%c272, %c0_101] : memref<288x64xbf16, #tpu.memory_space<vmem>>, vector<16x32xbf16>
    %c112 = arith.constant 112 : index
    %c0_102 = arith.constant 0 : index
    %334 = vector.load %arg5[%c112, %c0_102] : memref<136x64xf32, #tpu.memory_space<vmem>>, vector<1x32xf32>
    %335 = vector.extract_strided_slice %320 {offsets = [0, 0], sizes = [128, 4], strides = [1, 1]} : vector<128x16xf32> to vector<128x4xf32>
    %336 = vector.shape_cast %335 : vector<128x4xf32> to vector<2x64x4xf32>
    %337 = arith.truncf %336 : vector<2x64x4xf32> to vector<2x64x4xbf16>
    %338 = vector.extract_strided_slice %326 {offsets = [0, 0], sizes = [16, 4], strides = [1, 1]} : vector<16x16xf32> to vector<16x4xf32>
    %339 = vector.shape_cast %338 : vector<16x4xf32> to vector<2x8x4xf32>
    %340 = arith.truncf %339 : vector<2x8x4xf32> to vector<2x8x4xbf16>
    %341 = vector.extract_strided_slice %332 {offsets = [0, 0], sizes = [16, 4], strides = [1, 1]} : vector<16x16xf32> to vector<16x4xf32>
    %342 = vector.shape_cast %341 : vector<16x4xf32> to vector<2x8x4xf32>
    %343 = arith.truncf %342 : vector<2x8x4xf32> to vector<2x8x4xbf16>
    %cst_103 = arith.constant dense<0.000000e+00> : vector<2x64x8xf32>
    %344 = tpu.matmul %337, %340, %cst_103 {dimension_numbers = #tpu.dot_dimension_numbers<[2], [2], [1], [1], [0, 0, 0, 1, 1, 1], [0], [0]>} : vector<2x64x4xbf16>, vector<2x8x4xbf16>, vector<2x64x8xf32> -> vector<2x64x8xf32>
    %cst_104 = arith.constant dense<0xFF800000> : vector<2x64xf32>
    %345 = vector.multi_reduction <maximumf>, %344, %cst_104 [2] : vector<2x64x8xf32> to vector<2x64xf32>
    %346 = vector.shape_cast %345 : vector<2x64xf32> to vector<2x64x1xf32>
    %347 = vector.broadcast %346 : vector<2x64x1xf32> to vector<2x64x8xf32>
    %348 = arith.subf %344, %347 : vector<2x64x8xf32>
    %349 = math.exp %348 : vector<2x64x8xf32>
    %cst_105 = arith.constant dense<0.000000e+00> : vector<2x64xf32>
    %350 = vector.multi_reduction <add>, %349, %cst_105 [2] : vector<2x64x8xf32> to vector<2x64xf32>
    %351 = vector.shape_cast %350 : vector<2x64xf32> to vector<2x64x1xf32>
    %352 = vector.broadcast %351 : vector<2x64x1xf32> to vector<2x64x8xf32>
    %353 = arith.divf %349, %352 : vector<2x64x8xf32>
    %354 = arith.truncf %353 : vector<2x64x8xf32> to vector<2x64x8xbf16>
    %cst_106 = arith.constant dense<0.000000e+00> : vector<2x64x4xf32>
    %355 = tpu.matmul %354, %343, %cst_106 {dimension_numbers = #tpu.dot_dimension_numbers<[2], [1], [1], [2], [0, 0, 0, 1, 1, 2], [0], [0]>} : vector<2x64x8xbf16>, vector<2x8x4xbf16>, vector<2x64x4xf32> -> vector<2x64x4xf32>
    %356 = vector.shape_cast %355 : vector<2x64x4xf32> to vector<128x4xf32>
    %357 = vector.extract_strided_slice %320 {offsets = [0, 4], sizes = [128, 4], strides = [1, 1]} : vector<128x16xf32> to vector<128x4xf32>
    %358 = vector.shape_cast %357 : vector<128x4xf32> to vector<2x64x4xf32>
    %359 = arith.truncf %358 : vector<2x64x4xf32> to vector<2x64x4xbf16>
    %360 = vector.extract_strided_slice %326 {offsets = [0, 4], sizes = [16, 4], strides = [1, 1]} : vector<16x16xf32> to vector<16x4xf32>
    %361 = vector.shape_cast %360 : vector<16x4xf32> to vector<2x8x4xf32>
    %362 = arith.truncf %361 : vector<2x8x4xf32> to vector<2x8x4xbf16>
    %363 = vector.extract_strided_slice %332 {offsets = [0, 4], sizes = [16, 4], strides = [1, 1]} : vector<16x16xf32> to vector<16x4xf32>
    %364 = vector.shape_cast %363 : vector<16x4xf32> to vector<2x8x4xf32>
    %365 = arith.truncf %364 : vector<2x8x4xf32> to vector<2x8x4xbf16>
    %cst_107 = arith.constant dense<0.000000e+00> : vector<2x64x8xf32>
    %366 = tpu.matmul %359, %362, %cst_107 {dimension_numbers = #tpu.dot_dimension_numbers<[2], [2], [1], [1], [0, 0, 0, 1, 1, 1], [0], [0]>} : vector<2x64x4xbf16>, vector<2x8x4xbf16>, vector<2x64x8xf32> -> vector<2x64x8xf32>
    %cst_108 = arith.constant dense<0xFF800000> : vector<2x64xf32>
    %367 = vector.multi_reduction <maximumf>, %366, %cst_108 [2] : vector<2x64x8xf32> to vector<2x64xf32>
    %368 = vector.shape_cast %367 : vector<2x64xf32> to vector<2x64x1xf32>
    %369 = vector.broadcast %368 : vector<2x64x1xf32> to vector<2x64x8xf32>
    %370 = arith.subf %366, %369 : vector<2x64x8xf32>
    %371 = math.exp %370 : vector<2x64x8xf32>
    %cst_109 = arith.constant dense<0.000000e+00> : vector<2x64xf32>
    %372 = vector.multi_reduction <add>, %371, %cst_109 [2] : vector<2x64x8xf32> to vector<2x64xf32>
    %373 = vector.shape_cast %372 : vector<2x64xf32> to vector<2x64x1xf32>
    %374 = vector.broadcast %373 : vector<2x64x1xf32> to vector<2x64x8xf32>
    %375 = arith.divf %371, %374 : vector<2x64x8xf32>
    %376 = arith.truncf %375 : vector<2x64x8xf32> to vector<2x64x8xbf16>
    %cst_110 = arith.constant dense<0.000000e+00> : vector<2x64x4xf32>
    %377 = tpu.matmul %376, %365, %cst_110 {dimension_numbers = #tpu.dot_dimension_numbers<[2], [1], [1], [2], [0, 0, 0, 1, 1, 2], [0], [0]>} : vector<2x64x8xbf16>, vector<2x8x4xbf16>, vector<2x64x4xf32> -> vector<2x64x4xf32>
    %378 = vector.shape_cast %377 : vector<2x64x4xf32> to vector<128x4xf32>
    %379 = vector.extract_strided_slice %320 {offsets = [0, 8], sizes = [128, 4], strides = [1, 1]} : vector<128x16xf32> to vector<128x4xf32>
    %380 = vector.shape_cast %379 : vector<128x4xf32> to vector<2x64x4xf32>
    %381 = arith.truncf %380 : vector<2x64x4xf32> to vector<2x64x4xbf16>
    %382 = vector.extract_strided_slice %326 {offsets = [0, 8], sizes = [16, 4], strides = [1, 1]} : vector<16x16xf32> to vector<16x4xf32>
    %383 = vector.shape_cast %382 : vector<16x4xf32> to vector<2x8x4xf32>
    %384 = arith.truncf %383 : vector<2x8x4xf32> to vector<2x8x4xbf16>
    %385 = vector.extract_strided_slice %332 {offsets = [0, 8], sizes = [16, 4], strides = [1, 1]} : vector<16x16xf32> to vector<16x4xf32>
    %386 = vector.shape_cast %385 : vector<16x4xf32> to vector<2x8x4xf32>
    %387 = arith.truncf %386 : vector<2x8x4xf32> to vector<2x8x4xbf16>
    %cst_111 = arith.constant dense<0.000000e+00> : vector<2x64x8xf32>
    %388 = tpu.matmul %381, %384, %cst_111 {dimension_numbers = #tpu.dot_dimension_numbers<[2], [2], [1], [1], [0, 0, 0, 1, 1, 1], [0], [0]>} : vector<2x64x4xbf16>, vector<2x8x4xbf16>, vector<2x64x8xf32> -> vector<2x64x8xf32>
    %cst_112 = arith.constant dense<0xFF800000> : vector<2x64xf32>
    %389 = vector.multi_reduction <maximumf>, %388, %cst_112 [2] : vector<2x64x8xf32> to vector<2x64xf32>
    %390 = vector.shape_cast %389 : vector<2x64xf32> to vector<2x64x1xf32>
    %391 = vector.broadcast %390 : vector<2x64x1xf32> to vector<2x64x8xf32>
    %392 = arith.subf %388, %391 : vector<2x64x8xf32>
    %393 = math.exp %392 : vector<2x64x8xf32>
    %cst_113 = arith.constant dense<0.000000e+00> : vector<2x64xf32>
    %394 = vector.multi_reduction <add>, %393, %cst_113 [2] : vector<2x64x8xf32> to vector<2x64xf32>
    %395 = vector.shape_cast %394 : vector<2x64xf32> to vector<2x64x1xf32>
    %396 = vector.broadcast %395 : vector<2x64x1xf32> to vector<2x64x8xf32>
    %397 = arith.divf %393, %396 : vector<2x64x8xf32>
    %398 = arith.truncf %397 : vector<2x64x8xf32> to vector<2x64x8xbf16>
    %cst_114 = arith.constant dense<0.000000e+00> : vector<2x64x4xf32>
    %399 = tpu.matmul %398, %387, %cst_114 {dimension_numbers = #tpu.dot_dimension_numbers<[2], [1], [1], [2], [0, 0, 0, 1, 1, 2], [0], [0]>} : vector<2x64x8xbf16>, vector<2x8x4xbf16>, vector<2x64x4xf32> -> vector<2x64x4xf32>
    %400 = vector.shape_cast %399 : vector<2x64x4xf32> to vector<128x4xf32>
    %401 = vector.extract_strided_slice %320 {offsets = [0, 12], sizes = [128, 4], strides = [1, 1]} : vector<128x16xf32> to vector<128x4xf32>
    %402 = vector.shape_cast %401 : vector<128x4xf32> to vector<2x64x4xf32>
    %403 = arith.truncf %402 : vector<2x64x4xf32> to vector<2x64x4xbf16>
    %404 = vector.extract_strided_slice %326 {offsets = [0, 12], sizes = [16, 4], strides = [1, 1]} : vector<16x16xf32> to vector<16x4xf32>
    %405 = vector.shape_cast %404 : vector<16x4xf32> to vector<2x8x4xf32>
    %406 = arith.truncf %405 : vector<2x8x4xf32> to vector<2x8x4xbf16>
    %407 = vector.extract_strided_slice %332 {offsets = [0, 12], sizes = [16, 4], strides = [1, 1]} : vector<16x16xf32> to vector<16x4xf32>
    %408 = vector.shape_cast %407 : vector<16x4xf32> to vector<2x8x4xf32>
    %409 = arith.truncf %408 : vector<2x8x4xf32> to vector<2x8x4xbf16>
    %cst_115 = arith.constant dense<0.000000e+00> : vector<2x64x8xf32>
    %410 = tpu.matmul %403, %406, %cst_115 {dimension_numbers = #tpu.dot_dimension_numbers<[2], [2], [1], [1], [0, 0, 0, 1, 1, 1], [0], [0]>} : vector<2x64x4xbf16>, vector<2x8x4xbf16>, vector<2x64x8xf32> -> vector<2x64x8xf32>
    %cst_116 = arith.constant dense<0xFF800000> : vector<2x64xf32>
    %411 = vector.multi_reduction <maximumf>, %410, %cst_116 [2] : vector<2x64x8xf32> to vector<2x64xf32>
    %412 = vector.shape_cast %411 : vector<2x64xf32> to vector<2x64x1xf32>
    %413 = vector.broadcast %412 : vector<2x64x1xf32> to vector<2x64x8xf32>
    %414 = arith.subf %410, %413 : vector<2x64x8xf32>
    %415 = math.exp %414 : vector<2x64x8xf32>
    %cst_117 = arith.constant dense<0.000000e+00> : vector<2x64xf32>
    %416 = vector.multi_reduction <add>, %415, %cst_117 [2] : vector<2x64x8xf32> to vector<2x64xf32>
    %417 = vector.shape_cast %416 : vector<2x64xf32> to vector<2x64x1xf32>
    %418 = vector.broadcast %417 : vector<2x64x1xf32> to vector<2x64x8xf32>
    %419 = arith.divf %415, %418 : vector<2x64x8xf32>
    %420 = arith.truncf %419 : vector<2x64x8xf32> to vector<2x64x8xbf16>
    %cst_118 = arith.constant dense<0.000000e+00> : vector<2x64x4xf32>
    %421 = tpu.matmul %420, %409, %cst_118 {dimension_numbers = #tpu.dot_dimension_numbers<[2], [1], [1], [2], [0, 0, 0, 1, 1, 2], [0], [0]>} : vector<2x64x8xbf16>, vector<2x8x4xbf16>, vector<2x64x4xf32> -> vector<2x64x4xf32>
    %422 = vector.shape_cast %421 : vector<2x64x4xf32> to vector<128x4xf32>
    %423 = tpu.concatenate %356, %378, %400, %422 in 1 : vector<128x4xf32>, vector<128x4xf32>, vector<128x4xf32>, vector<128x4xf32> -> vector<128x16xf32>
    %424 = arith.truncf %423 : vector<128x16xf32> to vector<128x16xbf16>
    %cst_119 = arith.constant dense<0.000000e+00> : vector<128x32xf32>
    %425 = tpu.matmul %424, %333, %cst_119 {dimension_numbers = #tpu.dot_dimension_numbers<[1], [0], [0], [1], [0, 0, 1, 1], [], []>} : vector<128x16xbf16>, vector<16x32xbf16>, vector<128x32xf32> -> vector<128x32xf32>
    %426 = vector.broadcast %334 : vector<1x32xf32> to vector<128x32xf32>
    %427 = arith.addf %425, %426 : vector<128x32xf32>
    %428 = arith.addf %1, %427 : vector<128x32xf32>
    %c120 = arith.constant 120 : index
    %c0_120 = arith.constant 0 : index
    %429 = vector.load %arg5[%c120, %c0_120] : memref<136x64xf32, #tpu.memory_space<vmem>>, vector<1x32xf32>
    %c128_121 = arith.constant 128 : index
    %c0_122 = arith.constant 0 : index
    %430 = vector.load %arg5[%c128_121, %c0_122] : memref<136x64xf32, #tpu.memory_space<vmem>>, vector<1x32xf32>
    %cst_123 = arith.constant dense<0.000000e+00> : vector<128xf32>
    %431 = vector.multi_reduction <add>, %428, %cst_123 [1] : vector<128x32xf32> to vector<128xf32>
    %432 = vector.shape_cast %431 : vector<128xf32> to vector<128x1xf32>
    %cst_124 = arith.constant 3.200000e+01 : f32
    %433 = vector.broadcast %cst_124 : f32 to vector<128x1xf32>
    %434 = arith.divf %432, %433 : vector<128x1xf32>
    %435 = vector.broadcast %434 : vector<128x1xf32> to vector<128x32xf32>
    %436 = arith.subf %428, %435 : vector<128x32xf32>
    %437 = arith.mulf %436, %436 : vector<128x32xf32>
    %cst_125 = arith.constant dense<0.000000e+00> : vector<128xf32>
    %438 = vector.multi_reduction <add>, %437, %cst_125 [1] : vector<128x32xf32> to vector<128xf32>
    %439 = vector.shape_cast %438 : vector<128xf32> to vector<128x1xf32>
    %cst_126 = arith.constant 3.200000e+01 : f32
    %440 = vector.broadcast %cst_126 : f32 to vector<128x1xf32>
    %441 = arith.divf %439, %440 : vector<128x1xf32>
    %cst_127 = arith.constant 9.99999974E-6 : f32
    %442 = vector.broadcast %cst_127 : f32 to vector<128x1xf32>
    %443 = arith.addf %441, %442 : vector<128x1xf32>
    %444 = math.rsqrt %443 : vector<128x1xf32>
    %445 = vector.broadcast %444 : vector<128x1xf32> to vector<128x32xf32>
    %446 = arith.mulf %436, %445 : vector<128x32xf32>
    %447 = vector.broadcast %429 : vector<1x32xf32> to vector<128x32xf32>
    %448 = arith.mulf %446, %447 : vector<128x32xf32>
    %449 = vector.broadcast %430 : vector<1x32xf32> to vector<128x32xf32>
    %450 = arith.addf %448, %449 : vector<128x32xf32>
    %c0_128 = arith.constant 0 : index
    %c0_129 = arith.constant 0 : index
    %451 = vector.load %arg6[%c0_128, %c0_129] : memref<16x32xf32, #tpu.memory_space<vmem>>, vector<16x32xf32>
    tpu.vector_store %arg6[%c0_128, %c0_129], %312 {strides = array<i32>} : memref<16x32xf32, #tpu.memory_space<vmem>>, vector<16x32xf32>,
    %c0_130 = arith.constant 0 : index
    %c0_131 = arith.constant 0 : index
    %452 = vector.load %arg7[%c0_130, %c0_131] : memref<128x32xf32, #tpu.memory_space<vmem>>, vector<128x32xf32>
    tpu.vector_store %arg7[%c0_130, %c0_131], %450 {strides = array<i32>} : memref<128x32xf32, #tpu.memory_space<vmem>>, vector<128x32xf32>,
    return
  }
}

</mosaic_0001>

<bundles_post_ra>
// kernel: two_way_attention_block.1
= control target key start
LH: loop header
LB: loop body
LE: loop exit
PB: predicated region body
PF: predicated region fallthrough
CT: control target
= control target key end

     0   :  { %vm84_vm0 = vcmask 261120   ;;  %s9499_s0 = inlined_call_operand.vmem [shape: f32[16,32], index: 0, kind: input, shape index: {}]   ;;  %s9500_s1 = inlined_call_operand.vmem [shape: f32[128,32], index: 1, kind: input, shape index: {}]   ;;  %s9501_s2 = inlined_call_operand.vmem [shape: f32[16,32], index: 2, kind: input, shape index: {}]   ;;  %s9502_s3 = inlined_call_operand.vmem [shape: f32[128,32], index: 3, kind: input, shape index: {}]   ;;  %s9503_s4 = inlined_call_operand.vmem [shape: bf16[288,64], index: 4, kind: input, shape index: {}]   ;;  %s9504_s5 = inlined_call_operand.vmem [shape: f32[136,64], index: 5, kind: input, shape index: {}]   ;;  %s9505_s6 = inlined_call_operand.hbm [shape: f32[16,32], index: 6, kind: output, shape index: {0}]   ;;  %s9506_s7 = inlined_call_operand.vmem [shape: f32[128,32], index: 7, kind: output, shape index: {1}]  }
   0x1   :  { %v5852_v0 = vld [vmem:[%s9503_s4 + $0x8] sm:$0xff]  ;;  %v6530_v1 = vld [vmem:[%s9499_s0] sm:$0xff] }
   0x2   :  { %v6535_v2 = vld [vmem:[%s9499_s0 + $0x8] sm:$0xff]  ;;  %v45_v3 = vld [vmem:[%s9501_s2] sm:$0xff]  ;;  %94 = vmatpush.bf16.msra.mxu3 %v5852_v0 }
   0x3   :  { %v46_v4 = vld [vmem:[%s9501_s2 + $0x8] sm:$0xff]  ;;  %v5851_v5 = vld [vmem:[%s9503_s4] sm:$0xff]  ;;  %v63_v6 = vadd.f32 %v45_v3, %v6530_v1 }
   0x4   :  { %v64_v7 = vadd.f32 %v46_v4, %v6535_v2 }
   0x6   :  { %v69_v8 = vpack.c.bf16 %v64_v7, %v63_v6  ;;  %95 = vmatpush.bf16.msra.mxu3 %v5851_v5 }
   0x7   :  { %13 = vsyncpa [#allocation3], 0  ;;  %v6038_v9 = vld [vmem:[%s9504_s5] ss:$0 sm:$0xff]  ;;  %s6467_s14 = smov 120   ;;  %s6468_s15 = smov 88   ;;  %v106_v41 = vpack.c.bf16 %v6535_v2, %v6530_v1 }
   0x8   :  { %s6469_s16 = smov 96   ;;  %s6470_s17 = smov 112   ;;  %vm152_vm1 = vcmask 64512   ;;  %v5854_v39 = vld [vmem:[%s9503_s4 + $0x18] sm:$0xff]  ;;  %v5853_v40 = vld [vmem:[%s9503_s4 + $0x10] sm:$0xff]  ;;  %vm249_vm2 = vcmask 1043456  }
   0x9   :  { %5650 = vmatmul.msk.bf16.vlgmr.msra.gmra.mxu3 %vm84_vm0, %v69_v8  ;;  %s6471_s18 = smov 80   ;;  %s6472_s19 = smov 72   ;;  %130 = vmatpush.bf16.msra.mxu1 %v5854_v39  ;;  %v6039_v6 = vld [vmem:[%s9504_s5 + $0x8] ss:$0 sm:$0xff] }
   0xa   :  { %s6473_s20 = smov 104   ;;  %s6474_s27 = smov 8  }
   0xb   :  { %s6475_s28 = smov 16   ;;  %s6476_s29 = smov 24  }
   0xc   :  { %s6478_s26 = smov 124   ;;  %s6479_s11 = smov 116  }
   0xd   :  { %131 = vmatpush.bf16.msra.mxu1 %v5853_v40  ;;  %s6480_s12 = smov 4   ;;  %s6481_s0 = smov 12  }
  0x10   :  { %5659 = vmatmul.msk.bf16.vlgmr.msra.gmra.mxu1 %vm84_vm0, %v106_v41 }
  0x8c   :  { %v97_v10 = vpop.f32.mrf.mxu3 }
  0x8d   :  { %v98_v11 = vadd.f32 %v6038_v9, %v97_v10  ;;  %v133_v7 = vpop.f32.mrf.mxu1 }
  0x8e   :  { %v134_v8 = vadd.f32 %v6039_v6, %v133_v7 }
  0x8f   :  { %v143_v12 = vpack.c.bf16 %v98_v11, %v98_v11 }
  0x90   :  { %v145_v10 = vpack.c.bf16 %v134_v8, %v134_v8 }
  0x91   :  { %v148_v13 = vunpack.c.l.b16 %v143_v12 }
  0x92   :  { %v382_v11 = vunpack.c.l.b16 %v145_v10 }
  0x93   :  { %v149_v14 = vpack.c.b16 %v148_v13, %v148_v13 }
  0x94   :  { %v99_v15 = vpop.f32.mrf.mxu3 }
  0x95   :  { %v100_v16 = vadd.f32 %v6038_v9, %v99_v15  ;;  %285 = vrot.lane.b32.xlu2 %v149_v14, %s6467_s14  ;;  %287 = vrot.lane.b32.xlu1 %v149_v14, %s6468_s15  ;;  %v135_v13 = vpop.f32.mrf.mxu1 }
  0x96   :  { %150 = vrot.lane.b32.xlu0 %v149_v14, %s6469_s16 }
  0x97   :  { %v144_v17 = vpack.c.bf16 %v100_v16, %v100_v16  ;;  %v251_v16 = vsel %vm249_vm2, %v145_v10, 0 }
  0x98   :  { %260 = vmatpush.bf16.msra.mxu0 %v251_v16 }
  0x99   :  { %v173_v18 = vunpack.c.l.b16 %v144_v17 }
  0x9b   :  { %v174_v19 = vpack.c.b16 %v173_v18, %v173_v18 }
  0x9d   :  { %308 = vrot.lane.b32.xlu2 %v174_v19, %s6467_s14  ;;  %310 = vrot.lane.b32.xlu1 %v174_v19, %s6468_s15 }
  0x9e   :  { %175 = vrot.lane.b32.xlu0 %v174_v19, %s6469_s16 }
  0xa5   :  { %429 = vrot.lane.b32.xlu2 %v149_v14, %s6470_s17  ;;  %454 = vrot.lane.b32.xlu1 %v174_v19, %s6471_s18 }
  0xa6   :  { %431 = vrot.lane.b32.xlu0 %v149_v14, %s6471_s18 }
  0xad   :  { %592 = vrot.lane.b32.xlu2 %v174_v19, %s6472_s19  ;;  %569 = vrot.lane.b32.xlu1 %v149_v14, %s6472_s19 }
  0xae   :  { %452 = vrot.lane.b32.xlu0 %v174_v19, %s6470_s17 }
  0xb5   :  { %590 = vrot.lane.b32.xlu1 %v174_v19, %s6473_s20 }
  0xb6   :  { %567 = vrot.lane.b32.xlu0 %v149_v14, %s6473_s20  ;;  %v136_v14 = vadd.f32 %v6039_v6, %v135_v13 }
  0xb8   :  { %v146_v15 = vpack.c.bf16 %v136_v14, %v136_v14 }
  0xef   :  { %v286_v21 = vpop.permute.xlu2 %285 }
  0xf7   :  { %v309_v29 = vpop.permute.xlu2 %308 }
  0xff   :  { %v430_v34 = vpop.permute.xlu2 %429 }
 0x107   :  { %v288_v20 = vpop.permute.xlu1 %287  ;;  %v593_v37 = vpop.permute.xlu2 %592 }
 0x108   :  { %v151_v22 = vpop.permute.xlu0 %150  ;;  %v293_v23 = vsel %vm152_vm1, %v288_v20, 0  ;;  %v598_v38 = vsel %vm152_vm1, %v593_v37, 0 }
 0x109   :  { %v157_v24 = vsel %vm152_vm1, %v151_v22, 0 }
 0x10a   :  { %166 = vmatpush.bf16.xpose.msra.mxu2 %v157_v24 }
 0x10f   :  { %v311_v25 = vpop.permute.xlu1 %310 }
 0x110   :  { %v316_v26 = vsel %vm152_vm1, %v311_v25, 0  ;;  %v176_v27 = vpop.permute.xlu0 %175 }
 0x111   :  { %5660 = vmatmul.msk.bf16.vlgmr.msra.gmra.mxu2 %vm152_vm1, %v143_v12  ;;  %v181_v28 = vsel %vm152_vm1, %v176_v27, 0  ;;  %v6602_v12 = vpack.c.b16 %v382_v11, %v382_v11 }
 0x112   :  { %302 = vmatpush.bf16.xpose.msrb.mxu2 %v293_v23  ;;  %190 = vmatpush.bf16.xpose.msrb.mxu3 %v181_v28 }
 0x117   :  { %v455_v30 = vpop.permute.xlu1 %454 }
 0x118   :  { %v460_v31 = vsel %vm152_vm1, %v455_v30, 0  ;;  %v432_v32 = vpop.permute.xlu0 %431 }
 0x119   :  { %v437_v33 = vsel %vm152_vm1, %v432_v32, 0  ;;  %5661 = vmatmul.msk.bf16.vlgmr.msrb.gmra.mxu3 %vm152_vm1, %v144_v17  ;;  %v270_v17 = vsel %vm249_vm2, %v146_v15, 0 }
 0x11a   :  { %325 = vmatpush.bf16.xpose.msra.mxu3 %v316_v26  ;;  %446 = vmatpush.bf16.xpose.msra.mxu2 %v437_v33 }
 0x11b   :  { %279 = vmatpush.bf16.msrb.mxu0 %v270_v17 }
 0x11f   :  { %v570_v35 = vpop.permute.xlu1 %569 }
 0x120   :  { %v575_v36 = vsel %vm152_vm1, %v570_v35, 0  ;;  %v453_v42 = vpop.permute.xlu0 %452 }
 0x121   :  { %5664 = vmatmul.msk.bf16.vlgmr.msrb.gmra.mxu2 %vm152_vm1, %v286_v21 }
 0x122   :  { %469 = vmatpush.bf16.xpose.msrb.mxu3 %v460_v31  ;;  %584 = vmatpush.bf16.xpose.msrb.mxu2 %v575_v36 }
 0x127   :  { %v591_v44 = vpop.permute.xlu1 %590 }
 0x128   :  { %v568_v43 = vpop.permute.xlu0 %567 }
 0x129   :  { %5665 = vmatmul.msk.bf16.vlgmr.msra.gmra.mxu3 %vm152_vm1, %v309_v29 }
 0x12a   :  { %607 = vmatpush.bf16.xpose.msra.mxu3 %v598_v38  ;;  %v406_v38 = vunpack.c.l.b16 %v146_v15 }
 0x131   :  { %5668 = vmatmul.msk.bf16.vlgmr.msra.gmra.mxu2 %vm152_vm1, %v430_v34 }
 0x139   :  { %5669 = vmatmul.msk.bf16.vlgmr.msrb.gmra.mxu3 %vm152_vm1, %v453_v42 }
 0x141   :  { %5672 = vmatmul.msk.bf16.vlgmr.msrb.gmra.mxu2 %vm152_vm1, %v568_v43  ;;  %v407_v43 = vpack.c.b16 %v406_v38, %v406_v38 }
 0x149   :  { %5673 = vmatmul.msk.bf16.vlgmr.msra.gmra.mxu3 %vm152_vm1, %v591_v44 }
 0x194   :  { %v168_v45 = vpop.f32.mrf.mxu2 }
 0x195   :  { %v196_v46 = vsel %vm152_vm1, %v168_v45, -inf }
 0x196   :  { %197 = vmax.xlane.f32.xlu2 %v196_v46 }
 0x19c   :  { %v170_v47 = vpop.f32.mrf.mxu2  ;;  %v192_v48 = vpop.f32.mrf.mxu3 }
 0x19d   :  { %v199_v49 = vsel %vm152_vm1, %v192_v48, -inf }
 0x19e   :  { %200 = vmax.xlane.f32.xlu0 %v199_v49 }
 0x1a4   :  { %v194_v50 = vpop.f32.mrf.mxu3  ;;  %v304_v51 = vpop.f32.mrf.mxu2 }
 0x1a5   :  { %v331_v52 = vsel %vm152_vm1, %v304_v51, -inf }
 0x1a6   :  { %332 = vmax.xlane.f32.xlu1 %v331_v52 }
 0x1ac   :  { %v306_v53 = vpop.f32.mrf.mxu2  ;;  %v327_v54 = vpop.f32.mrf.mxu3 }
 0x1ad   :  { %v334_v55 = vsel %vm152_vm1, %v327_v54, -inf }
 0x1ae   :  { %335 = vmax.xlane.f32.xlu2 %v334_v55 }
 0x1b4   :  { %v329_v56 = vpop.f32.mrf.mxu3  ;;  %v6589_v57 = vpop.f32.mrf.mxu2 }
 0x1b5   :  { %v475_v58 = vsel %vm152_vm1, %v6589_v57, -inf }
 0x1b6   :  { %476 = vmax.xlane.f32.xlu2 %v475_v58 }
 0x1bc   :  { %v450_v59 = vpop.f32.mrf.mxu2  ;;  %v471_v60 = vpop.f32.mrf.mxu3 }
 0x1bd   :  { %v478_v61 = vsel %vm152_vm1, %v471_v60, -inf }
 0x1be   :  { %479 = vmax.xlane.f32.xlu0 %v478_v61 }
 0x1c4   :  { %v473_v62 = vpop.f32.mrf.mxu3  ;;  %v586_v63 = vpop.f32.mrf.mxu2 }
 0x1c5   :  { %v613_v0 = vsel %vm152_vm1, %v586_v63, -inf }
 0x1c6   :  { %614 = vmax.xlane.f32.xlu2 %v613_v0 }
 0x1cc   :  { %v588_v3 = vpop.f32.mrf.mxu2  ;;  %v6595_v4 = vpop.f32.mrf.mxu3 }
 0x1cd   :  { %v616_v5 = vsel %vm152_vm1, %v6595_v4, -inf }
 0x1ce   :  { %617 = vmax.xlane.f32.xlu0 %v616_v5 }
 0x1d4   :  { %v611_v9 = vpop.f32.mrf.mxu3 }
 0x1e2   :  { %384 = vrot.lane.b32.xlu0 %v6602_v12, %s6467_s14 }
 0x209   :  { %v198_v18 = vpop.xlane.xlu2 %197 }
 0x20a   :  { %v202_v19 = vsub.f32 %v168_v45, %v198_v18 }
 0x20c   :  { %v204_v20 = vmul.f32 1.442695, %v202_v19 }
 0x20e   :  { %6055 = vpow2.f32 %v204_v20 }
 0x211   :  { %v201_v21 = vpop.xlane.xlu0 %200 }
 0x212   :  { %v203_v22 = vsub.f32 %v192_v48, %v201_v21 }
 0x214   :  { %v6608_v23 = vpop.eup %6055  ;;  %v206_v24 = vmul.f32 1.442695, %v203_v22 }
 0x215   :  { %v208_v25 = vsel %vm152_vm1, %v6608_v23, 0.0 }
 0x216   :  { %6057 = vpow2.f32 %v206_v24  ;;  %209 = vadd.xlane.f32.xlu1 %v208_v25 }
 0x219   :  { %v333_v26 = vpop.xlane.xlu1 %332 }
 0x21a   :  { %v337_v27 = vsub.f32 %v304_v51, %v333_v26 }
 0x21c   :  { %v6612_v28 = vpop.eup %6057  ;;  %v339_v29 = vmul.f32 1.442695, %v337_v27 }
 0x21d   :  { %v211_v30 = vsel %vm152_vm1, %v6612_v28, 0.0 }
 0x21e   :  { %6059 = vpow2.f32 %v339_v29  ;;  %212 = vadd.xlane.f32.xlu1 %v211_v30 }
 0x221   :  { %v336_v31 = vpop.xlane.xlu2 %335 }
 0x222   :  { %v338_v32 = vsub.f32 %v327_v54, %v336_v31 }
 0x224   :  { %v6616_v33 = vpop.eup %6059  ;;  %v341_v34 = vmul.f32 1.442695, %v338_v32 }
 0x225   :  { %v343_v35 = vsel %vm152_vm1, %v6616_v33, 0.0 }
 0x226   :  { %6061 = vpow2.f32 %v341_v34  ;;  %344 = vadd.xlane.f32.xlu2 %v343_v35 }
 0x229   :  { %v477_v39 = vpop.xlane.xlu2 %476 }
 0x22a   :  { %v481_v56 = vsub.f32 %v6589_v57, %v477_v39 }
 0x22c   :  { %v6620_v36 = vpop.eup %6061  ;;  %v483_v58 = vmul.f32 1.442695, %v481_v56 }
 0x22d   :  { %v346_v37 = vsel %vm152_vm1, %v6620_v36, 0.0 }
 0x22e   :  { %347 = vadd.xlane.f32.xlu0 %v346_v37 }
 0x231   :  { %v480_v40 = vpop.xlane.xlu0 %479 }
 0x232   :  { %v482_v41 = vsub.f32 %v471_v60, %v480_v40 }
 0x234   :  { %v485_v42 = vmul.f32 1.442695, %v482_v41 }
 0x236   :  { %6063 = vpow2.f32 %v485_v42 }
 0x237   :  { %408 = vrot.lane.b32.xlu1 %v407_v43, %s6467_s14 }
 0x239   :  { %v615_v44 = vpop.xlane.xlu2 %614 }
 0x23a   :  { %v619_v45 = vsub.f32 %v586_v63, %v615_v44 }
 0x23c   :  { %v6625_v46 = vpop.eup %6063  ;;  %v621_v47 = vmul.f32 1.442695, %v619_v45 }
 0x23d   :  { %v490_v48 = vsel %vm152_vm1, %v6625_v46, 0.0 }
 0x23e   :  { %6065 = vpow2.f32 %v621_v47  ;;  %491 = vadd.xlane.f32.xlu2 %v490_v48 }
 0x241   :  { %v618_v49 = vpop.xlane.xlu0 %617 }
 0x242   :  { %v620_v50 = vsub.f32 %v6595_v4, %v618_v49  ;;  %525 = vrot.lane.b32.xlu0 %v6602_v12, %s6470_s17 }
 0x244   :  { %v6632_v51 = vpop.eup %6065  ;;  %v623_v52 = vmul.f32 1.442695, %v620_v50 }
 0x245   :  { %v625_v53 = vsel %vm152_vm1, %v6632_v51, 0.0 }
 0x246   :  { %6067 = vpow2.f32 %v623_v52  ;;  %626 = vadd.xlane.f32.xlu2 %v625_v53 }
 0x247   :  { %6069 = vpow2.f32 %v483_v58 }
 0x24a   :  { %684 = vrot.lane.b32.xlu0 %v407_v43, %s6473_s20 }
 0x24c   :  { %v6637_v54 = vpop.eup %6067 }
 0x24d   :  { %v628_v55 = vsel %vm152_vm1, %v6637_v54, 0.0  ;;  %v6642_v59 = vpop.eup %6069 }
 0x24e   :  { %629 = vadd.xlane.f32.xlu2 %v628_v55  ;;  %v487_v60 = vsel %vm152_vm1, %v6642_v59, 0.0 }
 0x254   :  { %v385_v6 = vpop.permute.xlu0 %384 }
 0x255   :  { %v390_v18 = vsel %vm249_vm2, %v385_v6, 0 }
 0x261   :  { %488 = vadd.xlane.f32.xlu1 %v487_v60 }
 0x266   :  { %546 = vrot.lane.b32.xlu2 %v407_v43, %s6470_s17 }
 0x27a   :  { %663 = vrot.lane.b32.xlu1 %v6602_v12, %s6473_s20 }
 0x289   :  { %v210_v61 = vpop.xlane.xlu1 %209 }
 0x28a   :  { %6071 = vrcp.f32 %v210_v61  ;;  %v225_v4 = vand.u32 2147483648, %v210_v61  ;;  %v223_v5 = vand.u32 2147483647, %v210_v61  ;;  %vm219_vm4 = vweird.f32 %v210_v61 }
 0x28c   :  { %v226_v12 = vor.u32 1.1754944e-38, %v225_v4  ;;  %vm224_vm6 = vcmp.eq.f32.partialorder %v223_v5, 8.507059e+37 }
 0x290   :  { %v6072_v62 = vpop.eup %6071 }
 0x291   :  { %v215_v63 = vmul.f32 %v6072_v62, %v210_v61  ;;  %v213_v0 = vpop.xlane.xlu1 %212  ;;  %vm220_vm3 = vweird.f32 %v6072_v62 }
 0x292   :  { %6073 = vrcp.f32 %v213_v0  ;;  %vm221_vm5 = vmor %vm219_vm4, %vm220_vm3  ;;  %v240_v21 = vand.u32 2147483648, %v213_v0  ;;  %vm234_vm8 = vweird.f32 %v213_v0  ;;  %v238_v24 = vand.u32 2147483647, %v213_v0 }
 0x293   :  { %v216_v57 = vsub.f32 1.0, %v215_v63 }
 0x294   :  { %v241_v27 = vor.u32 1.1754944e-38, %v240_v21  ;;  %vm239_vm10 = vcmp.eq.f32.partialorder %v238_v24, 8.507059e+37 }
 0x295   :  { %v217_v3 = vmul.f32 %v6072_v62, %v216_v57 }
 0x297   :  { %v218_v7 = vadd.f32 %v6072_v62, %v217_v3 }
 0x298   :  { %v6074_v8 = vpop.eup %6073 }
 0x299   :  { %v230_v9 = vmul.f32 %v6074_v8, %v213_v0  ;;  %v345_v10 = vpop.xlane.xlu2 %344  ;;  %v222_v11 = vsel %vm221_vm5, %v6072_v62, %v218_v7  ;;  %vm235_vm7 = vweird.f32 %v6074_v8 }
 0x29a   :  { %6075 = vrcp.f32 %v345_v10  ;;  %v227_v14 = vsel %vm224_vm6, %v226_v12, %v222_v11  ;;  %vm236_vm9 = vmor %vm234_vm8, %vm235_vm7  ;;  %v360_v45 = vand.u32 2147483648, %v345_v10  ;;  %vm354_vm15 = vweird.f32 %v345_v10 }
 0x29b   :  { %v231_v13 = vsub.f32 1.0, %v230_v9  ;;  %v228_v15 = vmul.f32 %v6608_v23, %v227_v14 }
 0x29c   :  { %v361_v56 = vor.u32 1.1754944e-38, %v360_v45 }
 0x29d   :  { %v232_v16 = vmul.f32 %v6074_v8, %v231_v13  ;;  %v244_v17 = vpack.c.bf16 %v228_v15, %v228_v15 }
 0x29f   :  { %5662 = vmatmul.msk.bf16.vlgmr.msra.gmra.mxu0 %vm152_vm1, %v244_v17  ;;  %v233_v19 = vadd.f32 %v6074_v8, %v232_v16 }
 0x2a0   :  { %v6076_v20 = vpop.eup %6075  ;;  %399 = vmatpush.bf16.msra.mxu0 %v390_v18 }
 0x2a1   :  { %v348_v22 = vpop.xlane.xlu0 %347  ;;  %v350_v25 = vmul.f32 %v6076_v20, %v345_v10  ;;  %v237_v26 = vsel %vm236_vm9, %v6074_v8, %v233_v19  ;;  %vm355_vm13 = vweird.f32 %v6076_v20 }
 0x2a2   :  { %6077 = vrcp.f32 %v348_v22  ;;  %v242_v23 = vsel %vm239_vm10, %v241_v27, %v237_v26  ;;  %v375_v40 = vand.u32 2147483648, %v348_v22  ;;  %v373_v42 = vand.u32 2147483647, %v348_v22  ;;  %vm356_vm4 = vmor %vm354_vm15, %vm355_vm13 }
 0x2a3   :  { %v351_v30 = vsub.f32 1.0, %v350_v25  ;;  %v243_v35 = vmul.f32 %v6612_v28, %v242_v23  ;;  %vm369_vm12 = vweird.f32 %v348_v22  ;;  %v358_v28 = vand.u32 2147483647, %v345_v10 }
 0x2a4   :  { %v376_v47 = vor.u32 1.1754944e-38, %v375_v40  ;;  %vm374_vm3 = vcmp.eq.f32.partialorder %v373_v42, 8.507059e+37 }
 0x2a5   :  { %v352_v38 = vmul.f32 %v6076_v20, %v351_v30  ;;  %v245_v41 = vpack.c.bf16 %v243_v35, %v243_v35  ;;  %vm359_vm5 = vcmp.eq.f32.partialorder %v358_v28, 8.507059e+37 }
 0x2a7   :  { %v353_v44 = vadd.f32 %v6076_v20, %v352_v38 }
 0x2a8   :  { %v6078_v29 = vpop.eup %6077 }
 0x2a9   :  { %v365_v31 = vmul.f32 %v6078_v29, %v348_v22  ;;  %v409_v32 = vpop.permute.xlu1 %408  ;;  %vm370_vm11 = vweird.f32 %v6078_v29  ;;  %v357_v52 = vsel %vm356_vm4, %v6076_v20, %v353_v44 }
 0x2aa   :  { %v414_v34 = vsel %vm249_vm2, %v409_v32, 0  ;;  %vm371_vm14 = vmor %vm369_vm12, %vm370_vm11  ;;  %v362_v61 = vsel %vm359_vm5, %v361_v56, %v357_v52 }
 0x2ab   :  { %v366_v37 = vsub.f32 1.0, %v365_v31  ;;  %423 = vmatpush.bf16.msrb.mxu1 %v414_v34  ;;  %v363_v57 = vmul.f32 %v6616_v33, %v362_v61 }
 0x2ad   :  { %v367_v39 = vmul.f32 %v6078_v29, %v366_v37  ;;  %v379_v5 = vpack.c.bf16 %v363_v57, %v363_v57 }
 0x2af   :  { %v368_v43 = vadd.f32 %v6078_v29, %v367_v39  ;;  %5663 = vmatmul.msk.bf16.vlgmr.msrb.gmra.mxu0 %vm152_vm1, %v245_v41 }
 0x2b1   :  { %v492_v48 = vpop.xlane.xlu2 %491  ;;  %v372_v49 = vsel %vm371_vm14, %v6078_v29, %v368_v43 }
 0x2b2   :  { %6079 = vrcp.f32 %v492_v48  ;;  %v377_v50 = vsel %vm374_vm3, %v376_v47, %v372_v49  ;;  %v519_v6 = vand.u32 2147483648, %v492_v48  ;;  %vm513_vm7 = vweird.f32 %v492_v48 }
 0x2b3   :  { %v378_v55 = vmul.f32 %v6620_v36, %v377_v50  ;;  %v517_v7 = vand.u32 2147483647, %v492_v48 }
 0x2b4   :  { %v526_v53 = vpop.permute.xlu0 %525  ;;  %v520_v10 = vor.u32 1.1754944e-38, %v519_v6 }
 0x2b5   :  { %v531_v58 = vsel %vm249_vm2, %v526_v53, 0  ;;  %v380_v60 = vpack.c.bf16 %v378_v55, %v378_v55  ;;  %vm518_vm9 = vcmp.eq.f32.partialorder %v517_v7, 8.507059e+37 }
 0x2b6   :  { %540 = vmatpush.bf16.msrb.mxu0 %v531_v58 }
 0x2b7   :  { %5667 = vmatmul.msk.bf16.vlgmr.msrb.gmra.mxu1 %vm152_vm1, %v380_v60 }
 0x2b8   :  { %v6080_v62 = vpop.eup %6079 }
 0x2b9   :  { %v509_v63 = vmul.f32 %v6080_v62, %v492_v48  ;;  %v6658_v0 = vpop.xlane.xlu2 %626  ;;  %vm514_vm6 = vweird.f32 %v6080_v62 }
 0x2ba   :  { %vm515_vm8 = vmor %vm513_vm7, %vm514_vm6  ;;  %v642_v49 = vand.u32 2147483648, %v6658_v0  ;;  %vm636_vm6 = vweird.f32 %v6658_v0  ;;  %v640_v28 = vand.u32 2147483647, %v6658_v0 }
 0x2bb   :  { %v510_v3 = vsub.f32 1.0, %v509_v63 }
 0x2bc   :  { %v685_v13 = vpop.permute.xlu0 %684  ;;  %v643_v55 = vor.u32 1.1754944e-38, %v642_v49 }
 0x2bd   :  { %v511_v4 = vmul.f32 %v6080_v62, %v510_v3  ;;  %v690_v17 = vsel %vm249_vm2, %v685_v13, 0 }
 0x2bf   :  { %v512_v36 = vadd.f32 %v6080_v62, %v511_v4  ;;  %5666 = vmatmul.msk.bf16.vlgmr.msra.gmra.mxu0 %vm152_vm1, %v379_v5 }
 0x2c1   :  { %v630_v8 = vpop.xlane.xlu2 %629  ;;  %v516_v9 = vsel %vm515_vm8, %v6080_v62, %v512_v36  ;;  %vm641_vm8 = vcmp.eq.f32.partialorder %v640_v28, 8.507059e+37 }
 0x2c2   :  { %6081 = vrcp.f32 %v630_v8  ;;  %v521_v11 = vsel %vm518_vm9, %v520_v10, %v516_v9  ;;  %v657_v22 = vand.u32 2147483648, %v630_v8  ;;  %vm651_vm11 = vweird.f32 %v630_v8 }
 0x2c3   :  { %v522_v33 = vmul.f32 %v6625_v46, %v521_v11  ;;  %v655_v24 = vand.u32 2147483647, %v630_v8  ;;  %6083 = vrcp.f32 %v6658_v0  ;;  %vm731_vm9 = vcmask 130048  }
 0x2c4   :  { %v658_v25 = vor.u32 1.1754944e-38, %v657_v22 }
 0x2c5   :  { %v524_v19 = vpack.c.bf16 %v522_v33, %v522_v33  ;;  %vm656_vm13 = vcmp.eq.f32.partialorder %v655_v24, 8.507059e+37  ;;  %v5856_v33 = vld [vmem:[%s9503_s4 + $0x28] sm:$0xff] }
 0x2c6   :  { %760 = vmatpush.bf16.msra.mxu2 %v5856_v33  ;;  %v58_v33 = vld [vmem:[%s9502_s3 + $0x58] sm:$0xff] }
 0x2c8   :  { %v6082_v12 = vpop.eup %6081 }
 0x2c9   :  { %v647_v14 = vmul.f32 %v6082_v12, %v630_v8  ;;  %v547_v15 = vpop.permute.xlu2 %546  ;;  %vm652_vm10 = vweird.f32 %v6082_v12  ;;  %v6084_v29 = vpop.eup %6083 }
 0x2ca   :  { %v552_v16 = vsel %vm249_vm2, %v547_v15, 0  ;;  %vm653_vm12 = vmor %vm651_vm11, %vm652_vm10  ;;  %v632_v34 = vmul.f32 %v6084_v29, %v6658_v0  ;;  %vm637_vm5 = vweird.f32 %v6084_v29  ;;  %v6688_v15 = vld [vmem:[%s9503_s4 + $0x38] sm:$0xff]  ;;  %vm734_vm10 = vcmask 195584  }
 0x2cb   :  { %v648_v18 = vsub.f32 1.0, %v647_v14  ;;  %561 = vmatpush.bf16.msra.mxu1 %v552_v16  ;;  %vm638_vm7 = vmor %vm636_vm6, %vm637_vm5  ;;  %v5855_v14 = vld [vmem:[%s9503_s4 + $0x20] sm:$0xff]  ;;  %875 = vmatpush.bf16.msrb.mxu3 %v6688_v15  ;;  %vm1121_vm5 = vcmask 31744   ;;  %vm1198_vm6 = vcmask 523264  }
 0x2cc   :  { %v633_v40 = vsub.f32 1.0, %v632_v34  ;;  %761 = vmatpush.bf16.msra.mxu2 %v5855_v14 }
 0x2cd   :  { %v649_v20 = vmul.f32 %v6082_v12, %v648_v18 }
 0x2ce   :  { %5671 = vmatmul.msk.bf16.vlgmr.msra.gmra.mxu1 %vm152_vm1, %v524_v19  ;;  %v634_v44 = vmul.f32 %v6084_v29, %v633_v40 }
 0x2cf   :  { %699 = vmatpush.bf16.msrb.mxu1 %v690_v17  ;;  %v650_v21 = vadd.f32 %v6082_v12, %v649_v20 }
 0x2d0   :  { %v635_v48 = vadd.f32 %v6084_v29, %v634_v44  ;;  %v6722_v44 = vld [vmem:[%s9500_s1] sm:$0xff] }
 0x2d1   :  { %v654_v46 = vsel %vm653_vm12, %v6082_v12, %v650_v21 }
 0x2d2   :  { %v659_v27 = vsel %vm656_vm13, %v658_v25, %v654_v46  ;;  %v639_v53 = vsel %vm638_vm7, %v6084_v29, %v635_v48 }
 0x2d3   :  { %v660_v23 = vmul.f32 %v6637_v54, %v659_v27 }
 0x2d4   :  { %v489_v26 = vpop.xlane.xlu1 %488 }
 0x2d5   :  { %6085 = vrcp.f32 %v489_v26  ;;  %v662_v32 = vpack.c.bf16 %v660_v23, %v660_v23  ;;  %v504_v37 = vand.u32 2147483648, %v489_v26  ;;  %v502_v39 = vand.u32 2147483647, %v489_v26 }
 0x2d6   :  { %vm498_vm15 = vweird.f32 %v489_v26 }
 0x2d7   :  { %v505_v42 = vor.u32 1.1754944e-38, %v504_v37  ;;  %vm503_vm4 = vcmp.eq.f32.partialorder %v502_v39, 8.507059e+37 }
 0x2db   :  { %v6086_v30 = vpop.eup %6085 }
 0x2dc   :  { %v494_v31 = vmul.f32 %v6086_v30, %v489_v26  ;;  %vm499_vm14 = vweird.f32 %v6086_v30 }
 0x2dd   :  { %vm500_vm3 = vmor %vm498_vm15, %vm499_vm14 }
 0x2de   :  { %v495_v35 = vsub.f32 1.0, %v494_v31  ;;  %5675 = vmatmul.msk.bf16.vlgmr.msrb.gmra.mxu1 %vm152_vm1, %v662_v32  ;;  %v6701_v32 = vld [vmem:[%s9503_s4 + $0x30] sm:$0xff] }
 0x2df   :  { %891 = vrot.lane.b32.xlu2 %v6701_v32, %s6470_s17  ;;  %876 = vmatpush.bf16.msrb.mxu3 %v6701_v32 }
 0x2e0   :  { %v496_v38 = vmul.f32 %v6086_v30, %v495_v35  ;;  %v6040_v35 = vld [vmem:[%s9504_s5 + $0x10] ss:$0 sm:$0xff] }
 0x2e2   :  { %v497_v41 = vadd.f32 %v6086_v30, %v496_v38 }
 0x2e4   :  { %v501_v43 = vsel %vm500_vm3, %v6086_v30, %v497_v41 }
 0x2e5   :  { %v506_v54 = vsel %vm503_vm4, %v505_v42, %v501_v43 }
 0x2e6   :  { %v507_v45 = vmul.f32 %v6642_v59, %v506_v54  ;;  %v644_v59 = vsel %vm641_vm8, %v643_v55, %v639_v53  ;;  %v6744_v53 = vld [vmem:[%s9500_s1 + $0x10] sm:$0xff]  ;;  %v6749_v55 = vld [vmem:[%s9500_s1 + $0x18] sm:$0xff] }
 0x2e7   :  { %v645_v56 = vmul.f32 %v6632_v51, %v644_v59  ;;  %v49_v59 = vld [vmem:[%s9502_s3 + $0x10] sm:$0xff] }
 0x2e8   :  { %v523_v47 = vpack.c.bf16 %v507_v45, %v507_v45  ;;  %v47_v45 = vld [vmem:[%s9502_s3] sm:$0xff] }
 0x2e9   :  { %v661_v58 = vpack.c.bf16 %v645_v56, %v645_v56  ;;  %v50_v56 = vld [vmem:[%s9502_s3 + $0x18] sm:$0xff] }
 0x2ea   :  { %5670 = vmatmul.msk.bf16.vlgmr.msrb.gmra.mxu0 %vm152_vm1, %v523_v47  ;;  %v829_v47 = vadd.f32 %v47_v45, %v6722_v44 }
 0x2ec   :  { %v664_v50 = vpop.permute.xlu1 %663 }
 0x2ed   :  { %v669_v52 = vsel %vm249_vm2, %v664_v50, 0  ;;  %v6477_v50 = vmov 32.0  }
 0x2ee   :  { %678 = vmatpush.bf16.msra.mxu0 %v669_v52  ;;  %6087 = vrcp.f32 %v6477_v50 }
 0x2f4   :  { %v6088_v52 = vpop.eup %6087 }
 0x2f5   :  { %vm783_vm11 = vweird.f32 %v6088_v52 }
 0x2fa   :  { %5674 = vmatmul.msk.bf16.vlgmr.msra.gmra.mxu0 %vm152_vm1, %v661_v58  ;;  %v831_v58 = vadd.f32 %v49_v59, %v6744_v53  ;;  %v6904_v59 = vld [vmem:[%s9500_s1 + $0x78] sm:$0xff] }
 0x31c   :  { %v262_v60 = vpop.f32.mrf.mxu0 }
 0x324   :  { %v264_v61 = vpop.f32.mrf.mxu0 }
 0x325   :  { %v6766_v61 = vld [vmem:[%s9500_s1 + $0x48] sm:$0xff] }
 0x32c   :  { %v281_v62 = vpop.f32.mrf.mxu0 }
 0x334   :  { %v283_v63 = vpop.f32.mrf.mxu0  ;;  %v425_v57 = vpop.f32.mrf.mxu1 }
 0x335   :  { %v55_v63 = vld [vmem:[%s9502_s3 + $0x40] sm:$0xff] }
 0x339   :  { %v892_v49 = vpop.permute.xlu2 %891 }
 0x33c   :  { %v401_v0 = vpop.f32.mrf.mxu0  ;;  %v427_v3 = vpop.f32.mrf.mxu1 }
 0x33d   :  { %v5888_v4 = vpack.i.bf16 %v425_v57, %v401_v0  ;;  %v56_v57 = vld [vmem:[%s9502_s3 + $0x48] sm:$0xff]  ;;  %v779_v0 = vmul.f32 32.0, %v6088_v52 }
 0x33f   :  { %5889 = vrot.lane.b32.xlu1 %v5888_v4, %s6474_s27  ;;  %v838_v4 = vadd.f32 %v56_v57, %v6766_v61 }
 0x344   :  { %v403_v5 = vpop.f32.mrf.mxu0 }
 0x34b   :  { %v563_v36 = vpop.f32.mrf.mxu1 }
 0x353   :  { %v565_v6 = vpop.f32.mrf.mxu1 }
 0x354   :  { %v780_v6 = vsub.f32 1.0, %v779_v0 }
 0x35b   :  { %v701_v7 = vpop.f32.mrf.mxu1 }
 0x363   :  { %v703_v8 = vpop.f32.mrf.mxu1 }
 0x364   :  { %v6793_v8 = vld [vmem:[%s9500_s1 + $0x28] sm:$0xff] }
 0x367   :  { %v542_v51 = vpop.f32.mrf.mxu0 }
 0x368   :  { %v5893_v9 = vpack.i.bf16 %v563_v36, %v542_v51  ;;  %v781_v51 = vmul.f32 %v6088_v52, %v780_v6 }
 0x36a   :  { %5894 = vrot.lane.b32.xlu0 %v5893_v9, %s6475_s28  ;;  %v51_v9 = vld [vmem:[%s9502_s3 + $0x20] sm:$0xff]  ;;  %s5626_s28 = sshll.u32 %s9505_s6, 4  ;;  %s6483_s6 = smov 128   ;;  %s5627_s28 = int_to_ptr.hbm [resolvable:$true] %s5626_s28 }
 0x36f   :  { %v544_v10 = vpop.f32.mrf.mxu0 }
 0x370   :  { %v52_v10 = vld [vmem:[%s9502_s3 + $0x28] sm:$0xff] }
 0x372   :  { %893 = vrot.lane.b32.xlu0 %v6688_v15, %s6470_s17 }
 0x377   :  { %v680_v11 = vpop.f32.mrf.mxu0 }
 0x378   :  { %v5898_v12 = vpack.i.bf16 %v701_v7, %v680_v11  ;;  %v6788_v7 = vld [vmem:[%s9500_s1 + $0x20] sm:$0xff]  ;;  %v6804_v11 = vld [vmem:[%s9500_s1 + $0x50] sm:$0xff] }
 0x379   :  { %v833_v14 = vadd.f32 %v51_v9, %v6788_v7 }
 0x37a   :  { %5899 = vrot.lane.b32.xlu1 %v5898_v12, %s6476_s29  ;;  %v6809_v12 = vld [vmem:[%s9500_s1 + $0x58] sm:$0xff]  ;;  %s6482_s29 = smov [#allocation2]  }
 0x37f   :  { %v682_v13 = vpop.f32.mrf.mxu0 }
 0x380   :  { %v57_v13 = vld [vmem:[%s9502_s3 + $0x50] sm:$0xff] }
 0x3b1   :  { %v5890_v16 = vpop.permute.xlu1 %5889 }
 0x3b2   :  { %v5892_v18 = vunpack.i.h.bf16 %v5890_v16  ;;  %v5891_v19 = vunpack.i.l.bf16 %v5890_v16  ;;  %v834_v16 = vadd.f32 %v52_v10, %v6793_v8 }
 0x3b4   :  { %v730_v24 = vsel %vm152_vm1, %v281_v62, %v5892_v18  ;;  %v729_v46 = vsel %vm152_vm1, %v262_v60, %v5891_v19  ;;  %v6761_v60 = vld [vmem:[%s9500_s1 + $0x40] sm:$0xff]  ;;  %v832_v62 = vadd.f32 %v50_v56, %v6749_v55  ;;  %v839_v18 = vadd.f32 %v57_v13, %v6804_v11  ;;  %v61_v56 = vld [vmem:[%s9502_s3 + $0x70] sm:$0xff] }
 0x3b5   :  { %v837_v3 = vadd.f32 %v55_v63, %v6761_v60  ;;  %v840_v19 = vadd.f32 %v58_v33, %v6809_v12 }
 0x3b6   :  { %v6777_v5 = vpack.c.bf16 %v832_v62, %v831_v58  ;;  %v62_v58 = vld [vmem:[%s9502_s3 + $0x78] sm:$0xff] }
 0x3b7   :  { %v6779_v36 = vpack.c.bf16 %v838_v4, %v837_v3  ;;  %v844_v63 = vadd.f32 %v62_v58, %v6904_v59 }
 0x3dc   :  { %v5895_v17 = vpop.permute.xlu0 %5894 }
 0x3dd   :  { %v5897_v20 = vunpack.i.h.bf16 %v5895_v17  ;;  %v5896_v21 = vunpack.i.l.bf16 %v5895_v17  ;;  %v782_v17 = vadd.f32 %v6088_v52, %v781_v51 }
 0x3df   :  { %v733_v27 = vsel %vm731_vm9, %v730_v24, %v5897_v20  ;;  %v732_v23 = vsel %vm731_vm9, %v729_v46, %v5896_v21  ;;  %v6821_v20 = vpack.c.bf16 %v834_v16, %v833_v14  ;;  %v6823_v21 = vsel %vm783_vm11, %v6088_v52, %v782_v17 }
 0x3e0   :  { %9512 = vst [vmem:[#allocation5_spill] sm:$0xff] %v6823_v21 }
 0x3e4   :  { %v894_v34 = vpop.permute.xlu0 %893 }
 0x3e5   :  { %931 = vmatpush.bf16.msrb.mxu0 %v894_v34  ;;  %5869 = vmatpush.bf16.msra.mxu1 %v894_v34  ;;  %v6863_v34 = vld [vmem:[%s9500_s1 + $0x60] sm:$0xff] }
 0x3e9   :  { %932 = vmatpush.bf16.msrb.mxu0 %v892_v49  ;;  %5870 = vmatpush.bf16.msra.mxu1 %v892_v49 }
 0x3ec   :  { %v5900_v22 = vpop.permute.xlu1 %5899  ;;  %5698 = vmatmul.msk.bf16.vlgmr.msra.gmra.mxu1 %vm84_vm0, %v6779_v36 }
 0x3ed   :  { %v5902_v25 = vunpack.i.h.bf16 %v5900_v22  ;;  %v5901_v26 = vunpack.i.l.bf16 %v5900_v22  ;;  %v6825_v22 = vpack.c.bf16 %v840_v19, %v839_v18 }
 0x3ef   :  { %v735_v29 = vsel %vm734_vm10, %v732_v23, %v5901_v26  ;;  %v736_v30 = vsel %vm734_vm10, %v733_v27, %v5902_v25  ;;  %v6835_v25 = vld [vmem:[%s9504_s5 + $0x28] ss:$0 sm:$0xff]  ;;  %v6847_v23 = vld [vmem:[%s9500_s1 + $0x30] sm:$0xff] }
 0x3f0   :  { %v737_v31 = vpack.c.bf16 %v736_v30, %v735_v29  ;;  %v6852_v29 = vld [vmem:[%s9500_s1 + $0x38] sm:$0xff]  ;;  %v53_v30 = vld [vmem:[%s9502_s3 + $0x30] sm:$0xff] }
 0x3f2   :  { %5684 = vmatmul.msk.bf16.vlgmr.msra.gmra.mxu2 %vm84_vm0, %v737_v31  ;;  %v54_v31 = vld [vmem:[%s9502_s3 + $0x38] sm:$0xff] }
 0x3fc   :  { %5699 = vmatmul.msk.bf16.gmra.mxu1 %vm84_vm0, %v6825_v22 }
 0x469   :  { %v6930_v6 = vpop.f32.mrf.mxu1 }
 0x475   :  { %v763_v37 = vpop.f32.mrf.mxu2 }
 0x476   :  { %v764_v38 = vadd.f32 %v6040_v35, %v763_v37  ;;  %v6869_v37 = vld [vmem:[%s9500_s1 + $0x68] sm:$0xff] }
 0x478   :  { %v6710_v39 = vadd.f32 %v764_v38, %v6530_v1  ;;  %v6727_v1 = vld [vmem:[%s9500_s1 + $0x8] sm:$0xff]  ;;  %v59_v38 = vld [vmem:[%s9502_s3 + $0x60] sm:$0xff] }
 0x479   :  { %v841_v45 = vadd.f32 %v59_v38, %v6863_v34 }
 0x47a   :  { %v772_v40 = vsel %vm84_vm0, %v6710_v39, 0.0 }
 0x47b   :  { %773 = vadd.xlane.f32.xlu1 %v772_v40 }
 0x47d   :  { %v765_v41 = vpop.f32.mrf.mxu2 }
 0x47e   :  { %v766_v42 = vadd.f32 %v6040_v35, %v765_v41 }
 0x480   :  { %v6715_v43 = vadd.f32 %v766_v42, %v6535_v2  ;;  %v48_v2 = vld [vmem:[%s9502_s3 + $0x8] sm:$0xff]  ;;  %v835_v42 = vadd.f32 %v53_v30, %v6847_v23 }
 0x481   :  { %v830_v48 = vadd.f32 %v48_v2, %v6727_v1 }
 0x482   :  { %v775_v54 = vsel %vm84_vm0, %v6715_v43, 0.0 }
 0x483   :  { %776 = vadd.xlane.f32.xlu0 %v775_v54  ;;  %v6737_v28 = vpack.c.bf16 %v830_v48, %v829_v47  ;;  %v836_v54 = vadd.f32 %v54_v31, %v6852_v29 }
 0x485   :  { %5694 = vmatmul.msk.bf16.vlgmr.msrb.gmra.mxu0 %vm84_vm0, %v6737_v28  ;;  %v6887_v49 = vpack.c.bf16 %v836_v54, %v835_v42 }
 0x495   :  { %5695 = vmatmul.msk.bf16.gmra.mxu0 %vm84_vm0, %v6777_v5 }
 0x497   :  { %898 = vrot.lane.b32.xlu0 %v6835_v25, %s6470_s17 }
 0x4a5   :  { %5696 = vmatmul.msk.bf16.gmra.mxu0 %vm84_vm0, %v6821_v20 }
 0x4b5   :  { %5697 = vmatmul.msk.bf16.gmra.mxu0 %vm84_vm0, %v6887_v49 }
 0x4ee   :  { %v774_v24 = vpop.xlane.xlu1 %773 }
 0x4ef   :  { %v785_v46 = vmul.f32 %v6823_v21, %v774_v24 }
 0x4f1   :  { %v6838_v26 = vsub.f32 %v6710_v39, %v785_v46  ;;  %v60_v39 = vld [vmem:[%s9502_s3 + $0x68] sm:$0xff] }
 0x4f2   :  { %v842_v2 = vadd.f32 %v60_v39, %v6869_v37 }
 0x4f3   :  { %v789_v27 = vmul.f32 %v6838_v26, %v6838_v26 }
 0x4f4   :  { %v6889_v50 = vpack.c.bf16 %v842_v2, %v841_v45 }
 0x4f5   :  { %v791_v35 = vsel %vm84_vm0, %v789_v27, 0.0 }
 0x4f6   :  { %v777_v40 = vpop.xlane.xlu0 %776  ;;  %792 = vadd.xlane.f32.xlu2 %v791_v35  ;;  %5700 = vmatmul.msk.bf16.gmra.mxu1 %vm84_vm0, %v6889_v50 }
 0x4f7   :  { %v786_v41 = vmul.f32 %v6823_v21, %v777_v40 }
 0x4f9   :  { %v6883_v47 = vsub.f32 %v6715_v43, %v786_v41  ;;  %v6899_v43 = vld [vmem:[%s9500_s1 + $0x70] sm:$0xff] }
 0x4fa   :  { %v843_v62 = vadd.f32 %v61_v56, %v6899_v43 }
 0x4fb   :  { %v790_v48 = vmul.f32 %v6883_v47, %v6883_v47 }
 0x4fc   :  { %v6914_v57 = vpack.c.bf16 %v844_v63, %v843_v62 }
 0x4fd   :  { %v794_v52 = vsel %vm84_vm0, %v790_v48, 0.0 }
 0x4fe   :  { %795 = vadd.xlane.f32.xlu1 %v794_v52 }
 0x502   :  { %v6924_v0 = vpop.f32.mrf.mxu0 }
 0x506   :  { %5701 = vmatmul.msk.bf16.gmra.mxu1 %vm84_vm0, %v6914_v57 }
 0x509   :  { %v6942_v35 = vpop.permute.xlu0 %898 }
 0x50a   :  { %v6926_v3 = vpop.f32.mrf.mxu0 }
 0x50e   :  { %984 = vrot.lane.b32.xlu2 %v6688_v15, %s6469_s16  ;;  %v6934_v15 = vpop.f32.mrf.mxu1 }
 0x512   :  { %v6928_v4 = vpop.f32.mrf.mxu0 }
 0x516   :  { %v6937_v33 = vpop.f32.mrf.mxu1 }
 0x517   :  { %982 = vrot.lane.b32.xlu1 %v6701_v32, %s6469_s16 }
 0x51a   :  { %v6932_v51 = vpop.f32.mrf.mxu0 }
 0x51e   :  { %v6940_v46 = vpop.f32.mrf.mxu1 }
 0x51f   :  { %988 = vrot.lane.b32.xlu1 %v6835_v25, %s6469_s16 }
 0x522   :  { %v944_v32 = vpop.f32.mrf.mxu0 }
 0x523   :  { %v945_v40 = vadd.f32 %v944_v32, %v6942_v35 }
 0x525   :  { %v1073_v2 = vpack.c.bf16 %v945_v40, %v945_v40 }
 0x527   :  { %v1113_v62 = vunpack.c.l.b16 %v1073_v2 }
 0x52a   :  { %v946_v19 = vpop.f32.mrf.mxu0 }
 0x52b   :  { %v947_v41 = vadd.f32 %v946_v19, %v6942_v35 }
 0x52d   :  { %v1074_v48 = vpack.c.bf16 %v947_v41, %v947_v41 }
 0x52f   :  { %v1114_v63 = vunpack.c.l.b16 %v1074_v48 }
 0x532   :  { %v949_v39 = vpop.f32.mrf.mxu0 }
 0x533   :  { %v950_v58 = vadd.f32 %v949_v39, %v6942_v35 }
 0x53a   :  { %v951_v19 = vpop.f32.mrf.mxu0 }
 0x569   :  { %v793_v9 = vpop.xlane.xlu2 %792 }
 0x56a   :  { %v797_v10 = vmul.f32 %v793_v9, %v6823_v21 }
 0x56c   :  { %v799_v13 = vadd.f32 1e-05, %v797_v10  ;;  %v6042_v10 = vld [vmem:[%s9504_s5 + $0x18] ss:$0 sm:$0xff] }
 0x56e   :  { %6089 = vrsqrt.f32 %v799_v13  ;;  %vm807_vm13 = vweird.f32 %v799_v13 }
 0x571   :  { %v796_v14 = vpop.xlane.xlu1 %795 }
 0x572   :  { %v798_v16 = vmul.f32 %v796_v14, %v6823_v21  ;;  %v6951_v14 = vpack.c.b16 %v1114_v63, %v1113_v62 }
 0x573   :  { %v964_v45 = vpop.f32.mrf.mxu1 }
 0x574   :  { %v6090_v17 = vpop.eup %6089  ;;  %v800_v18 = vadd.f32 1e-05, %v798_v16  ;;  %v1075_v16 = vpack.c.bf16 %v950_v58, %v950_v58  ;;  %1338 = vrot.lane.b32.xlu1 %v6951_v14, %s6478_s26 }
 0x575   :  { %v802_v24 = vmul.f32 %v6090_v17, %v799_v13  ;;  %vm808_vm12 = vweird.f32 %v6090_v17 }
 0x576   :  { %6091 = vrsqrt.f32 %v800_v18  ;;  %vm809_vm14 = vmor %vm807_vm13, %vm808_vm12  ;;  %vm817_vm3 = vweird.f32 %v800_v18  ;;  %v1115_v40 = vunpack.c.l.b16 %v1075_v16  ;;  %v1132_v16 = vsel %vm1121_vm5, %v6951_v14, 0 }
 0x577   :  { %v803_v27 = vmul.f32 %v6090_v17, %v802_v24 }
 0x579   :  { %v804_v30 = vmul.f32 0.5, %v803_v27  ;;  %v952_v27 = vadd.f32 %v951_v19, %v6942_v35 }
 0x57b   :  { %v805_v31 = vsub.f32 1.5, %v804_v30  ;;  %v966_v24 = vpop.f32.mrf.mxu1  ;;  %v6043_v30 = vld [vmem:[%s9504_s5 + $0x20] ss:$0 sm:$0xff]  ;;  %v1076_v39 = vpack.c.bf16 %v952_v27, %v952_v27  ;;  %v937_v27 = vadd.f32 %v6926_v3, %v6942_v35 }
 0x57c   :  { %v6092_v38 = vpop.eup %6091 }
 0x57d   :  { %v806_v42 = vmul.f32 %v6090_v17, %v805_v31  ;;  %v812_v54 = vmul.f32 %v6092_v38, %v800_v18  ;;  %vm818_vm15 = vweird.f32 %v6092_v38  ;;  %v940_v18 = vadd.f32 %v6928_v4, %v6942_v35  ;;  %v6422_v4 = vld [vmem:[%s9501_s2 + $0x8] sm:$0xff] }
 0x57e   :  { %vm819_vm4 = vmor %vm817_vm3, %vm818_vm15 }
 0x57f   :  { %v810_v52 = vsel %vm809_vm14, %v6090_v17, %v806_v42  ;;  %v813_v56 = vmul.f32 %v6092_v38, %v812_v54  ;;  %v1116_v42 = vunpack.c.l.b16 %v1076_v39 }
 0x580   :  { %v821_v32 = vmul.f32 %v810_v52, %v6838_v26  ;;  %v942_v52 = vadd.f32 %v6932_v51, %v6942_v35  ;;  %v1071_v51 = vpack.c.bf16 %v940_v18, %v940_v18  ;;  %v985_v18 = vpop.permute.xlu2 %984 }
 0x581   :  { %v814_v9 = vmul.f32 0.5, %v813_v56  ;;  %v6964_v48 = vpack.c.b16 %v1116_v42, %v1115_v40  ;;  %1021 = vmatpush.bf16.msrb.mxu1 %v985_v18 }
 0x582   :  { %v824_v26 = vmul.f32 %v6042_v10, %v821_v32 }
 0x583   :  { %v815_v13 = vsub.f32 1.5, %v814_v9  ;;  %v1135_v58 = vsel %vm1121_vm5, %v6964_v48, 0  ;;  %v1072_v9 = vpack.c.bf16 %v942_v52, %v942_v52 }
 0x584   :  { %v6960_v54 = vadd.f32 %v6043_v30, %v824_v26  ;;  %1141 = vmatpush.bf16.xpose.msrb.mxu2 %v1135_v58  ;;  %v967_v26 = vadd.f32 %v966_v24, %v6942_v35 }
 0x585   :  { %v816_v17 = vmul.f32 %v6092_v38, %v815_v13  ;;  %v1111_v13 = vunpack.c.l.b16 %v1071_v51  ;;  %v1112_v19 = vunpack.c.l.b16 %v1072_v9  ;;  %v962_v9 = vadd.f32 %v6940_v46, %v6942_v35 }
 0x586   :  { %v955_v46 = vadd.f32 %v6930_v6, %v6942_v35 }
 0x587   :  { %v820_v31 = vsel %vm819_vm4, %v6092_v38, %v816_v17  ;;  %v969_v38 = vpop.f32.mrf.mxu1  ;;  %v935_v17 = vadd.f32 %v6924_v0, %v6942_v35 }
 0x588   :  { %v822_v41 = vmul.f32 %v820_v31, %v6883_v47  ;;  %v6421_v47 = vld [vmem:[%s9501_s2] sm:$0xff]  ;;  %v970_v32 = vadd.f32 %v969_v38, %v6942_v35  ;;  %v1082_v38 = vpack.c.bf16 %v967_v26, %v967_v26  ;;  %v957_v26 = vadd.f32 %v6934_v15, %v6942_v35 }
 0x589   :  { %v845_v62 = vadd.f32 %v6421_v47, %v6960_v54  ;;  %v1069_v42 = vpack.c.bf16 %v935_v17, %v935_v17  ;;  %v974_v15 = vpack.c.bf16 %v6727_v1, %v6722_v44 }
 0x58a   :  { %v825_v2 = vmul.f32 %v6042_v10, %v822_v41  ;;  %v1083_v31 = vpack.c.bf16 %v970_v32, %v970_v32  ;;  %v6991_v41 = vpack.c.b16 %v1112_v19, %v1111_v13  ;;  %v1080_v19 = vpack.c.bf16 %v962_v9, %v962_v9 }
 0x58b   :  { %v1109_v24 = vunpack.c.l.b16 %v1069_v42 }
 0x58c   :  { %v6968_v56 = vadd.f32 %v6043_v30, %v825_v2  ;;  %v965_v30 = vadd.f32 %v964_v45, %v6942_v35  ;;  %1142 = vmatpush.bf16.xpose.msrb.mxu2 %v1132_v16  ;;  %v1070_v2 = vpack.c.bf16 %v937_v27, %v937_v27  ;;  %v1164_v0 = vunpack.c.l.b16 %v1083_v31 }
 0x58d   :  { %v1129_v45 = vsel %vm1121_vm5, %v6991_v41, 0 }
 0x58e   :  { %v846_v63 = vadd.f32 %v6422_v4, %v6968_v56  ;;  %v1081_v52 = vpack.c.bf16 %v965_v30, %v965_v30  ;;  %v1110_v47 = vunpack.c.l.b16 %v1070_v2  ;;  %v1161_v30 = vunpack.c.l.b16 %v1080_v19 }
 0x58f   :  { %v971_v39 = vpop.f32.mrf.mxu1 }
 0x590   :  { %v851_v10 = vpack.c.bf16 %v846_v63, %v845_v62  ;;  %v972_v40 = vadd.f32 %v971_v39, %v6942_v35  ;;  %v960_v62 = vadd.f32 %v6937_v33, %v6942_v35  ;;  %v1162_v4 = vunpack.c.l.b16 %v1081_v52 }
 0x591   :  { %v1163_v63 = vunpack.c.l.b16 %v1082_v38  ;;  %v7003_v32 = vpack.c.b16 %v1110_v47, %v1109_v24  ;;  %v1077_v39 = vpack.c.bf16 %v955_v46, %v955_v46  ;;  %v983_v38 = vpop.permute.xlu1 %982  ;;  %v975_v35 = vpack.c.bf16 %v6749_v55, %v6744_v53 }
 0x592   :  { %5693 = vmatmul.msk.bf16.vlgmr.msrb.gmra.mxu3 %vm84_vm0, %v851_v10  ;;  %v1084_v58 = vpack.c.bf16 %v972_v40, %v972_v40  ;;  %v1079_v13 = vpack.c.bf16 %v960_v62, %v960_v62  ;;  %v1078_v40 = vpack.c.bf16 %v957_v26, %v957_v26  ;;  %1022 = vmatpush.bf16.msrb.mxu1 %v983_v38 }
 0x593   :  { %v7005_v16 = vpack.c.b16 %v1163_v63, %v1162_v4  ;;  %v1126_v33 = vsel %vm1121_vm5, %v7003_v32, 0  ;;  %v1158_v2 = vunpack.c.l.b16 %v1077_v39  ;;  %v977_v53 = vpack.c.bf16 %v6852_v29, %v6847_v23 }
 0x594   :  { %v1165_v3 = vunpack.c.l.b16 %v1084_v58  ;;  %1143 = vmatpush.bf16.xpose.msrb.mxu2 %v1129_v45  ;;  %v1160_v17 = vunpack.c.l.b16 %v1079_v13  ;;  %v1159_v18 = vunpack.c.l.b16 %v1078_v40  ;;  %v976_v45 = vpack.c.bf16 %v6793_v8, %v6788_v7 }
 0x595   :  { %v1180_v27 = vsel %vm1121_vm5, %v7005_v16, 0  ;;  %5702 = vmatmul.msk.bf16.vlgmr.msrb.gmra.mxu1 %vm84_vm0, %v974_v15  ;;  %v978_v55 = vpack.c.bf16 %v6766_v61, %v6761_v60  ;;  %v979_v7 = vpack.c.bf16 %v6809_v12, %v6804_v11  ;;  %v980_v8 = vpack.c.bf16 %v6869_v37, %v6863_v34 }
 0x596   :  { %v6997_v51 = vpack.c.b16 %v1165_v3, %v1164_v0  ;;  %v7015_v31 = vpack.c.b16 %v1161_v30, %v1160_v17  ;;  %v7019_v52 = vpack.c.b16 %v1159_v18, %v1158_v2 }
 0x598   :  { %v1183_v10 = vsel %vm1121_vm5, %v6997_v51, 0  ;;  %v1177_v42 = vsel %vm1121_vm5, %v7015_v31, 0  ;;  %v1174_v6 = vsel %vm1121_vm5, %v7019_v52, 0 }
 0x599   :  { %1189 = vmatpush.bf16.xpose.msra.mxu3 %v1183_v10  ;;  %v7065_v4 = vpop.permute.xlu1 %988 }
 0x59c   :  { %1144 = vmatpush.bf16.xpose.msrb.mxu2 %v1126_v33 }
 0x5a1   :  { %1190 = vmatpush.bf16.xpose.msra.mxu3 %v1180_v27 }
 0x5a5   :  { %5703 = vmatmul.msk.bf16.gmra.mxu1 %vm84_vm0, %v975_v35 }
 0x5a9   :  { %1191 = vmatpush.bf16.xpose.msra.mxu3 %v1177_v42 }
 0x5b1   :  { %1192 = vmatpush.bf16.xpose.msra.mxu3 %v1174_v6 }
 0x5b5   :  { %5704 = vmatmul.msk.bf16.gmra.mxu1 %vm84_vm0, %v976_v45 }
 0x5c5   :  { %5705 = vmatmul.msk.bf16.gmra.mxu1 %vm84_vm0, %v977_v53 }
 0x5d5   :  { %5706 = vmatmul.msk.bf16.gmra.mxu1 %vm84_vm0, %v978_v55 }
 0x5e5   :  { %5707 = vmatmul.msk.bf16.gmra.mxu1 %vm84_vm0, %v979_v7 }
 0x5f5   :  { %5708 = vmatmul.msk.bf16.gmra.mxu1 %vm84_vm0, %v980_v8 }
 0x612   :  { %v1024_v23 = vpop.f32.mrf.mxu1 }
 0x613   :  { %v1025_v6 = vadd.f32 %v1024_v23, %v7065_v4 }
 0x615   :  { %v878_v0 = vpop.f32.mrf.mxu3 }
 0x616   :  { %v879_v58 = vadd.f32 %v6835_v25, %v878_v0 }
 0x618   :  { %v7030_v3 = vpack.c.bf16 %v879_v58, %v879_v58 }
 0x61a   :  { %5710 = vmatmul.msk.bf16.vlgmr.msrb.gmra.mxu2 %vm1121_vm5, %v7030_v3  ;;  %v1026_v29 = vpop.f32.mrf.mxu1 }
 0x61b   :  { %v1027_v38 = vadd.f32 %v1026_v29, %v7065_v4 }
 0x61d   :  { %v880_v24 = vpop.f32.mrf.mxu3  ;;  %v1086_v53 = vpack.c.bf16 %v1027_v38, %v1027_v38 }
 0x61e   :  { %v881_v44 = vadd.f32 %v6835_v25, %v880_v24  ;;  %v981_v25 = vpack.c.bf16 %v6904_v59, %v6899_v43 }
 0x620   :  { %v7038_v1 = vpack.c.bf16 %v881_v44, %v881_v44  ;;  %5709 = vmatmul.msk.bf16.gmra.mxu1 %vm84_vm0, %v981_v25  ;;  %v1085_v44 = vpack.c.bf16 %v1025_v6, %v1025_v6  ;;  %v1258_v25 = vunpack.c.l.b16 %v1086_v53 }
 0x622   :  { %5711 = vmatmul.msk.bf16.vlgmr.msra.gmra.mxu3 %vm1121_vm5, %v7038_v1  ;;  %v1029_v60 = vpop.f32.mrf.mxu1  ;;  %v1257_v8 = vunpack.c.l.b16 %v1085_v44 }
 0x623   :  { %v1030_v17 = vadd.f32 %v1029_v60, %v7065_v4 }
 0x624   :  { %v7092_v29 = vpack.c.b16 %v1258_v25, %v1257_v8 }
 0x625   :  { %v1087_v42 = vpack.c.bf16 %v1030_v17, %v1030_v17 }
 0x627   :  { %v1259_v45 = vunpack.c.l.b16 %v1087_v42 }
 0x62a   :  { %v1031_v61 = vpop.f32.mrf.mxu1 }
 0x62b   :  { %v1032_v27 = vadd.f32 %v1031_v61, %v7065_v4  ;;  %v1371_v61 = vunpack.c.l.b16 %v7038_v1 }
 0x62d   :  { %v1088_v2 = vpack.c.bf16 %v1032_v27, %v1032_v27 }
 0x62f   :  { %v1260_v24 = vunpack.c.l.b16 %v1088_v2 }
 0x631   :  { %v7086_v7 = vpack.c.b16 %v1260_v24, %v1259_v45 }
 0x632   :  { %v1034_v47 = vpop.f32.mrf.mxu1 }
 0x633   :  { %v1035_v10 = vadd.f32 %v1034_v47, %v7065_v4 }
 0x635   :  { %v1089_v46 = vpack.c.bf16 %v1035_v10, %v1035_v10 }
 0x637   :  { %v1261_v15 = vunpack.c.l.b16 %v1089_v46 }
 0x63a   :  { %v1036_v12 = vpop.f32.mrf.mxu1 }
 0x63b   :  { %v1037_v13 = vadd.f32 %v1036_v12, %v7065_v4 }
 0x63d   :  { %v1090_v26 = vpack.c.bf16 %v1037_v13, %v1037_v13 }
 0x63f   :  { %v1262_v35 = vunpack.c.l.b16 %v1090_v26 }
 0x641   :  { %v7082_v55 = vpack.c.b16 %v1262_v35, %v1261_v15 }
 0x642   :  { %v1039_v59 = vpop.f32.mrf.mxu1 }
 0x643   :  { %v1040_v9 = vadd.f32 %v1039_v59, %v7065_v4 }
 0x645   :  { %v1091_v19 = vpack.c.bf16 %v1040_v9, %v1040_v9 }
 0x647   :  { %v1263_v39 = vunpack.c.l.b16 %v1091_v19 }
 0x64a   :  { %v1041_v33 = vpop.f32.mrf.mxu1 }
 0x64b   :  { %v1042_v30 = vadd.f32 %v1041_v33, %v7065_v4 }
 0x64d   :  { %v1092_v40 = vpack.c.bf16 %v1042_v30, %v1042_v30 }
 0x64f   :  { %v1264_v18 = vunpack.c.l.b16 %v1092_v40 }
 0x651   :  { %v7077_v0 = vpack.c.b16 %v1264_v18, %v1263_v39 }
 0x652   :  { %v1044_v58 = vpop.f32.mrf.mxu1 }
 0x653   :  { %1280 = vmatpush.bf16.msra.mxu2 %v7077_v0  ;;  %v1045_v26 = vadd.f32 %v1044_v58, %v7065_v4 }
 0x655   :  { %v1093_v15 = vpack.c.bf16 %v1045_v26, %v1045_v26 }
 0x657   :  { %1281 = vmatpush.bf16.msra.mxu2 %v7082_v55 }
 0x65a   :  { %v1046_v23 = vpop.f32.mrf.mxu1 }
 0x65b   :  { %1282 = vmatpush.bf16.msra.mxu2 %v7086_v7  ;;  %v1047_v39 = vadd.f32 %v1046_v23, %v7065_v4 }
 0x65d   :  { %v1094_v35 = vpack.c.bf16 %v1047_v39, %v1047_v39 }
 0x65f   :  { %1283 = vmatpush.bf16.msra.mxu2 %v7092_v29  ;;  %v1298_v58 = vunpack.c.l.b16 %v1094_v35 }
 0x662   :  { %v1049_v60 = vpop.f32.mrf.mxu1 }
 0x663   :  { %v1050_v10 = vadd.f32 %v1049_v60, %v7065_v4 }
 0x665   :  { %v1095_v40 = vpack.c.bf16 %v1050_v10, %v1050_v10 }
 0x667   :  { %v1299_v45 = vunpack.c.l.b16 %v1095_v40 }
 0x66a   :  { %v1051_v47 = vpop.f32.mrf.mxu1 }
 0x66b   :  { %v1052_v19 = vadd.f32 %v1051_v47, %v7065_v4 }
 0x66d   :  { %v1096_v42 = vpack.c.bf16 %v1052_v19, %v1052_v19 }
 0x66f   :  { %v1300_v24 = vunpack.c.l.b16 %v1096_v42 }
 0x671   :  { %v7127_v53 = vpack.c.b16 %v1300_v24, %v1299_v45 }
 0x672   :  { %v1054_v12 = vpop.f32.mrf.mxu1 }
 0x673   :  { %v1055_v1 = vadd.f32 %v1054_v12, %v7065_v4 }
 0x675   :  { %v1097_v33 = vpack.c.bf16 %v1055_v1, %v1055_v1 }
 0x677   :  { %v1301_v2 = vunpack.c.l.b16 %v1097_v33 }
 0x69d   :  { %v7057_v62 = vpop.f32.mrf.mxu2 }
 0x69e   :  { %v1199_v11 = vsel %vm1198_vm6, %v7057_v62, -inf }
 0x69f   :  { %1200 = vmax.xlane.f32.xlu0 %v1199_v11  ;;  %v7100_v11 = vpack.c.b16 %v1371_v61, %v1371_v61 }
 0x6a5   :  { %v1148_v34 = vpop.f32.mrf.mxu2  ;;  %v7061_v37 = vpop.f32.mrf.mxu3 }
 0x6a6   :  { %v1202_v43 = vsel %vm1198_vm6, %v7061_v37, -inf  ;;  %v1056_v34 = vpop.f32.mrf.mxu1 }
 0x6a7   :  { %1203 = vmax.xlane.f32.xlu2 %v1202_v43 }
 0x6ad   :  { %v1196_v63 = vpop.f32.mrf.mxu3 }
 0x6ae   :  { %v1059_v43 = vpop.f32.mrf.mxu1  ;;  %v1057_v63 = vadd.f32 %v1056_v34, %v7065_v4 }
 0x6af   :  { %v1060_v59 = vadd.f32 %v1059_v43, %v7065_v4 }
 0x6b0   :  { %v1098_v17 = vpack.c.bf16 %v1057_v63, %v1057_v63 }
 0x6b1   :  { %v1099_v9 = vpack.c.bf16 %v1060_v59, %v1060_v59 }
 0x6b2   :  { %v1302_v18 = vunpack.c.l.b16 %v1098_v17 }
 0x6b3   :  { %1381 = vrot.lane.b32.xlu0 %v6997_v51, %s6478_s26  ;;  %v1303_v30 = vunpack.c.l.b16 %v1099_v9 }
 0x6b4   :  { %v7122_v44 = vpack.c.b16 %v1302_v18, %v1301_v2 }
 0x6b6   :  { %v1061_v13 = vpop.f32.mrf.mxu1 }
 0x6b7   :  { %v1062_v27 = vadd.f32 %v1061_v13, %v7065_v4  ;;  %v1297_v4 = vunpack.c.l.b16 %v1093_v15 }
 0x6b9   :  { %v1100_v46 = vpack.c.bf16 %v1062_v27, %v1062_v27  ;;  %v7130_v8 = vpack.c.b16 %v1298_v58, %v1297_v4  ;;  %v1330_v27 = vunpack.c.l.b16 %v7030_v3 }
 0x6bb   :  { %1379 = vrot.lane.b32.xlu0 %v7005_v16, %s6478_s26  ;;  %v1304_v6 = vunpack.c.l.b16 %v1100_v46  ;;  %v7154_v39 = vpack.c.b16 %v1330_v27, %v1330_v27 }
 0x6bd   :  { %v7120_v38 = vpack.c.b16 %v1304_v6, %v1303_v30 }
 0x6bf   :  { %1340 = vrot.lane.b32.xlu2 %v6964_v48, %s6478_s26  ;;  %1320 = vmatpush.bf16.msrb.mxu3 %v7120_v38 }
 0x6c3   :  { %1377 = vrot.lane.b32.xlu0 %v7015_v31, %s6478_s26  ;;  %1321 = vmatpush.bf16.msrb.mxu3 %v7122_v44 }
 0x6c7   :  { %1336 = vrot.lane.b32.xlu2 %v6991_v41, %s6478_s26  ;;  %1322 = vmatpush.bf16.msrb.mxu3 %v7127_v53 }
 0x6cb   :  { %1323 = vmatpush.bf16.msrb.mxu3 %v7130_v8 }
 0x6cf   :  { %1334 = vrot.lane.b32.xlu2 %v7003_v32, %s6478_s26 }
 0x6d7   :  { %1373 = vrot.lane.b32.xlu2 %v7100_v11, %s6478_s26 }
 0x6df   :  { %1563 = vrot.lane.b32.xlu2 %v6997_v51, %s6467_s14 }
 0x6e7   :  { %1465 = vrot.lane.b32.xlu2 %v7082_v55, %s6478_s26 }
 0x6ef   :  { %1561 = vrot.lane.b32.xlu2 %v7005_v16, %s6467_s14 }
 0x6f7   :  { %1461 = vrot.lane.b32.xlu2 %v7092_v29, %s6478_s26 }
 0x6ff   :  { %1559 = vrot.lane.b32.xlu2 %v7015_v31, %s6467_s14 }
 0x707   :  { %1519 = vrot.lane.b32.xlu2 %v7003_v32, %s6467_s14 }
 0x70f   :  { %1743 = vrot.lane.b32.xlu2 %v7005_v16, %s6479_s11 }
 0x712   :  { %v1201_v25 = vpop.xlane.xlu0 %1200 }
 0x713   :  { %v1205_v23 = vsub.f32 %v7057_v62, %v1201_v25 }
 0x715   :  { %v1207_v60 = vmul.f32 1.442695, %v1205_v23 }
 0x717   :  { %6093 = vpow2.f32 %v1207_v60 }
 0x71a   :  { %v1204_v61 = vpop.xlane.xlu2 %1203 }
 0x71b   :  { %v1206_v47 = vsub.f32 %v7061_v37, %v1204_v61  ;;  %v1339_v37 = vpop.permute.xlu1 %1338 }
 0x71c   :  { %v1352_v10 = vsel %vm1121_vm5, %v1339_v37, 0 }
 0x71d   :  { %v6094_v12 = vpop.eup %6093  ;;  %v1209_v34 = vmul.f32 1.442695, %v1206_v47 }
 0x71e   :  { %v1211_v43 = vsel %vm1198_vm6, %v6094_v12, 0.0 }
 0x71f   :  { %6095 = vpow2.f32 %v1209_v34  ;;  %1212 = vadd.xlane.f32.xlu1 %v1211_v43 }
 0x722   :  { %v1341_v59 = vpop.permute.xlu2 %1340 }
 0x723   :  { %v1355_v1 = vsel %vm1121_vm5, %v1341_v59, 0 }
 0x724   :  { %1361 = vmatpush.bf16.xpose.msrb.mxu2 %v1355_v1 }
 0x725   :  { %v7142_v63 = vpop.eup %6095  ;;  %v1382_v16 = vpop.permute.xlu0 %1381 }
 0x726   :  { %v1396_v62 = vsel %vm1121_vm5, %v1382_v16, 0  ;;  %v1214_v9 = vsel %vm1198_vm6, %v7142_v63, 0.0 }
 0x727   :  { %1215 = vadd.xlane.f32.xlu0 %v1214_v9  ;;  %1402 = vmatpush.bf16.xpose.msra.mxu3 %v1396_v62 }
 0x72a   :  { %v1337_v19 = vpop.permute.xlu2 %1336 }
 0x72b   :  { %v1349_v17 = vsel %vm1121_vm5, %v1337_v19, 0 }
 0x72c   :  { %1362 = vmatpush.bf16.xpose.msrb.mxu2 %v1352_v10 }
 0x72d   :  { %v1380_v13 = vpop.permute.xlu0 %1379 }
 0x72e   :  { %v1393_v33 = vsel %vm1121_vm5, %v1380_v13, 0 }
 0x72f   :  { %1403 = vmatpush.bf16.xpose.msra.mxu3 %v1393_v33 }
 0x732   :  { %v1335_v26 = vpop.permute.xlu2 %1334 }
 0x733   :  { %v1346_v40 = vsel %vm1121_vm5, %v1335_v26, 0 }
 0x734   :  { %1363 = vmatpush.bf16.xpose.msrb.mxu2 %v1349_v17 }
 0x735   :  { %v1378_v30 = vpop.permute.xlu0 %1377 }
 0x736   :  { %v1390_v46 = vsel %vm1121_vm5, %v1378_v30, 0 }
 0x737   :  { %1404 = vmatpush.bf16.xpose.msra.mxu3 %v1390_v46 }
 0x738   :  { %1375 = vrot.lane.b32.xlu1 %v7019_v52, %s6478_s26 }
 0x73a   :  { %v1374_v25 = vpop.permute.xlu2 %1373 }
 0x73b   :  { %1332 = vrot.lane.b32.xlu0 %v7154_v39, %s6478_s26 }
 0x73c   :  { %1364 = vmatpush.bf16.xpose.msrb.mxu2 %v1346_v40 }
 0x740   :  { %1467 = vrot.lane.b32.xlu1 %v7077_v0, %s6478_s26 }
 0x742   :  { %v7167_v33 = vpop.permute.xlu2 %1563 }
 0x743   :  { %1525 = vrot.lane.b32.xlu0 %v6964_v48, %s6467_s14 }
 0x74a   :  { %v1466_v26 = vpop.permute.xlu2 %1465 }
 0x74b   :  { %1495 = vrot.lane.b32.xlu0 %v7120_v38, %s6478_s26 }
 0x792   :  { %v1213_v3 = vpop.xlane.xlu1 %1212 }
 0x793   :  { %6097 = vrcp.f32 %v1213_v3  ;;  %v1228_v15 = vand.u32 2147483648, %v1213_v3  ;;  %v1226_v45 = vand.u32 2147483647, %v1213_v3  ;;  %vm1222_vm8 = vweird.f32 %v1213_v3 }
 0x795   :  { %v1229_v58 = vor.u32 1.1754944e-38, %v1228_v15  ;;  %vm1227_vm11 = vcmp.eq.f32.partialorder %v1226_v45, 8.507059e+37 }
 0x799   :  { %v6098_v42 = vpop.eup %6097 }
 0x79a   :  { %v1218_v2 = vmul.f32 %v6098_v42, %v1213_v3  ;;  %v1216_v18 = vpop.xlane.xlu0 %1215  ;;  %vm1223_vm7 = vweird.f32 %v6098_v42 }
 0x79b   :  { %6099 = vrcp.f32 %v1216_v18  ;;  %vm1224_vm10 = vmor %vm1222_vm8, %vm1223_vm7  ;;  %v1243_v43 = vand.u32 2147483648, %v1216_v18  ;;  %v1241_v1 = vand.u32 2147483647, %v1216_v18  ;;  %vm1237_vm13 = vweird.f32 %v1216_v18 }
 0x79c   :  { %v1219_v6 = vsub.f32 1.0, %v1218_v2 }
 0x79d   :  { %v1244_v9 = vor.u32 1.1754944e-38, %v1243_v43  ;;  %vm1242_vm15 = vcmp.eq.f32.partialorder %v1241_v1, 8.507059e+37 }
 0x79e   :  { %v1220_v35 = vmul.f32 %v6098_v42, %v1219_v6 }
 0x7a0   :  { %v1221_v24 = vadd.f32 %v6098_v42, %v1220_v35 }
 0x7a1   :  { %v6100_v4 = vpop.eup %6099 }
 0x7a2   :  { %v1225_v23 = vsel %vm1224_vm10, %v6098_v42, %v1221_v24  ;;  %v1233_v60 = vmul.f32 %v6100_v4, %v1216_v18  ;;  %vm1238_vm12 = vweird.f32 %v6100_v4 }
 0x7a3   :  { %v1230_v61 = vsel %vm1227_vm11, %v1229_v58, %v1225_v23  ;;  %vm1239_vm14 = vmor %vm1237_vm13, %vm1238_vm12 }
 0x7a4   :  { %v1234_v47 = vsub.f32 1.0, %v1233_v60  ;;  %v1231_v34 = vmul.f32 %v6094_v12, %v1230_v61 }
 0x7a6   :  { %v1235_v59 = vmul.f32 %v6100_v4, %v1234_v47  ;;  %v1247_v16 = vpack.c.bf16 %v1231_v34, %v1231_v34  ;;  %v1562_v34 = vpop.permute.xlu2 %1561 }
 0x7a8   :  { %v1236_v62 = vadd.f32 %v6100_v4, %v1235_v59  ;;  %5712 = vmatmul.msk.bf16.vlgmr.msra.gmra.mxu2 %vm1198_vm6, %v1247_v16 }
 0x7aa   :  { %v1240_v37 = vsel %vm1239_vm14, %v6100_v4, %v1236_v62  ;;  %v1376_v10 = vpop.permute.xlu1 %1375 }
 0x7ab   :  { %v1387_v13 = vsel %vm1121_vm5, %v1376_v10, 0  ;;  %v1245_v19 = vsel %vm1242_vm15, %v1244_v9, %v1240_v37  ;;  %v1578_v9 = vsel %vm1121_vm5, %v7167_v33, 0 }
 0x7ac   :  { %1405 = vmatpush.bf16.xpose.msra.mxu3 %v1387_v13  ;;  %v1246_v12 = vmul.f32 %v7142_v63, %v1245_v19  ;;  %v1575_v13 = vsel %vm1121_vm5, %v1562_v34, 0 }
 0x7ad   :  { %v1333_v17 = vpop.permute.xlu0 %1332 }
 0x7ae   :  { %v1248_v27 = vpack.c.bf16 %v1246_v12, %v1246_v12  ;;  %v1462_v1 = vpop.permute.xlu2 %1461 }
 0x7b0   :  { %5713 = vmatmul.msk.bf16.vlgmr.msrb.gmra.mxu3 %vm1198_vm6, %v1248_v27 }
 0x7b2   :  { %v1468_v30 = vpop.permute.xlu1 %1467 }
 0x7b3   :  { %1480 = vmatpush.bf16.msra.mxu2 %v1468_v30 }
 0x7b5   :  { %v1526_v46 = vpop.permute.xlu0 %1525 }
 0x7b6   :  { %v1540_v16 = vsel %vm1121_vm5, %v1526_v46, 0 }
 0x7b7   :  { %1481 = vmatpush.bf16.msra.mxu2 %v1466_v26 }
 0x7b8   :  { %5714 = vmatmul.msk.bf16.vlgmr.msrb.gmra.mxu2 %vm1121_vm5, %v1333_v17 }
 0x7bd   :  { %v1496_v40 = vpop.permute.xlu0 %1495 }
 0x7be   :  { %1508 = vmatpush.bf16.msrb.mxu3 %v1496_v40 }
 0x7c0   :  { %5715 = vmatmul.msk.bf16.vlgmr.msra.gmra.mxu3 %vm1121_vm5, %v1374_v25 }
 0x82b   :  { %v7173_v3 = vpop.f32.mrf.mxu2 }
 0x833   :  { %v1287_v42 = vpop.f32.mrf.mxu2  ;;  %v7175_v2 = vpop.f32.mrf.mxu3 }
 0x83b   :  { %v1327_v63 = vpop.f32.mrf.mxu3  ;;  %v1366_v18 = vpop.f32.mrf.mxu2 }
 0x83c   :  { %v1411_v6 = vsel %vm1198_vm6, %v1366_v18, -inf }
 0x83d   :  { %1412 = vmax.xlane.f32.xlu1 %v1411_v6 }
 0x843   :  { %v1368_v15 = vpop.f32.mrf.mxu2  ;;  %v1407_v35 = vpop.f32.mrf.mxu3 }
 0x844   :  { %v1414_v45 = vsel %vm1198_vm6, %v1407_v35, -inf }
 0x845   :  { %1415 = vmax.xlane.f32.xlu0 %v1414_v45 }
 0x84b   :  { %v1409_v24 = vpop.f32.mrf.mxu3 }
 0x856   :  { %1523 = vrot.lane.b32.xlu1 %v6951_v14, %s6467_s14 }
 0x859   :  { %1493 = vrot.lane.b32.xlu0 %v7122_v44, %s6478_s26 }
 0x85e   :  { %1491 = vrot.lane.b32.xlu1 %v7127_v53, %s6478_s26 }
 0x861   :  { %1463 = vrot.lane.b32.xlu0 %v7086_v7, %s6478_s26 }
 0x866   :  { %1521 = vrot.lane.b32.xlu1 %v6991_v41, %s6467_s14 }
 0x869   :  { %1489 = vrot.lane.b32.xlu0 %v7130_v8, %s6478_s26 }
 0x86e   :  { %1745 = vrot.lane.b32.xlu1 %v6997_v51, %s6479_s11 }
 0x871   :  { %1707 = vrot.lane.b32.xlu0 %v6964_v48, %s6479_s11 }
 0x876   :  { %1705 = vrot.lane.b32.xlu1 %v6951_v14, %s6479_s11 }
 0x879   :  { %1557 = vrot.lane.b32.xlu0 %v7019_v52, %s6467_s14 }
 0x881   :  { %1517 = vrot.lane.b32.xlu0 %v7154_v39, %s6467_s14 }
 0x889   :  { %1741 = vrot.lane.b32.xlu0 %v7015_v31, %s6479_s11 }
 0x891   :  { %1699 = vrot.lane.b32.xlu0 %v7154_v39, %s6479_s11 }
 0x899   :  { %1677 = vrot.lane.b32.xlu0 %v7120_v38, %s6467_s14 }
 0x8a1   :  { %1675 = vrot.lane.b32.xlu0 %v7122_v44, %s6467_s14 }
 0x8b0   :  { %v1413_v48 = vpop.xlane.xlu1 %1412 }
 0x8b1   :  { %v1417_v14 = vsub.f32 %v1366_v18, %v1413_v48 }
 0x8b3   :  { %v1419_v51 = vmul.f32 1.442695, %v1417_v14 }
 0x8b5   :  { %6101 = vpow2.f32 %v1419_v51 }
 0x8b8   :  { %v1416_v4 = vpop.xlane.xlu0 %1415 }
 0x8b9   :  { %v1418_v58 = vsub.f32 %v1407_v35, %v1416_v4 }
 0x8bb   :  { %v7209_v25 = vpop.eup %6101  ;;  %v1421_v23 = vmul.f32 1.442695, %v1418_v58 }
 0x8bc   :  { %v1423_v31 = vsel %vm1198_vm6, %v7209_v25, 0.0 }
 0x8bd   :  { %6103 = vpow2.f32 %v1421_v23  ;;  %1424 = vadd.xlane.f32.xlu2 %v1423_v31 }
 0x8c3   :  { %v7213_v39 = vpop.eup %6103 }
 0x8c4   :  { %v1426_v60 = vsel %vm1198_vm6, %v7213_v39, 0.0 }
 0x8c5   :  { %1427 = vadd.xlane.f32.xlu1 %v1426_v60 }
 0x8c8   :  { %v1524_v61 = vpop.permute.xlu1 %1523 }
 0x8c9   :  { %v1537_v37 = vsel %vm1121_vm5, %v1524_v61, 0 }
 0x8cb   :  { %v1494_v47 = vpop.permute.xlu0 %1493 }
 0x8cc   :  { %1509 = vmatpush.bf16.msrb.mxu3 %v1494_v47 }
 0x8d0   :  { %v1492_v43 = vpop.permute.xlu1 %1491 }
 0x8d1   :  { %1510 = vmatpush.bf16.msrb.mxu3 %v1492_v43 }
 0x8d3   :  { %v1464_v59 = vpop.permute.xlu0 %1463 }
 0x8d4   :  { %1482 = vmatpush.bf16.msra.mxu2 %v1464_v59 }
 0x8d5   :  { %1703 = vrot.lane.b32.xlu2 %v6991_v41, %s6479_s11  ;;  %v1560_v41 = vpop.permute.xlu2 %1559 }
 0x8d6   :  { %v1572_v12 = vsel %vm1121_vm5, %v1560_v41, 0 }
 0x8d8   :  { %1483 = vmatpush.bf16.msra.mxu2 %v1462_v1  ;;  %v1522_v19 = vpop.permute.xlu1 %1521 }
 0x8db   :  { %v1490_v62 = vpop.permute.xlu0 %1489 }
 0x8dc   :  { %1546 = vmatpush.bf16.xpose.msrb.mxu2 %v1540_v16  ;;  %1511 = vmatpush.bf16.msrb.mxu3 %v1490_v62 }
 0x8dd   :  { %1739 = vrot.lane.b32.xlu2 %v7019_v52, %s6479_s11  ;;  %v1534_v52 = vsel %vm1121_vm5, %v1522_v19, 0  ;;  %v1520_v17 = vpop.permute.xlu2 %1519 }
 0x8de   :  { %1555 = vrot.lane.b32.xlu1 %v7100_v11, %s6467_s14  ;;  %v1531_v27 = vsel %vm1121_vm5, %v1520_v17, 0 }
 0x8e0   :  { %1584 = vmatpush.bf16.xpose.msra.mxu3 %v1578_v9  ;;  %v1746_v63 = vpop.permute.xlu1 %1745 }
 0x8e3   :  { %v1708_v10 = vpop.permute.xlu0 %1707 }
 0x8e4   :  { %1547 = vmatpush.bf16.xpose.msrb.mxu2 %v1537_v37  ;;  %v1722_v62 = vsel %vm1121_vm5, %v1708_v10, 0 }
 0x8e5   :  { %1647 = vrot.lane.b32.xlu2 %v7082_v55, %s6467_s14 }
 0x8e6   :  { %1701 = vrot.lane.b32.xlu1 %v7003_v32, %s6479_s11 }
 0x8e8   :  { %1585 = vmatpush.bf16.xpose.msra.mxu3 %v1575_v13  ;;  %v1706_v18 = vpop.permute.xlu1 %1705 }
 0x8eb   :  { %v1558_v33 = vpop.permute.xlu0 %1557 }
 0x8ec   :  { %1548 = vmatpush.bf16.xpose.msrb.mxu2 %v1534_v52  ;;  %v1569_v46 = vsel %vm1121_vm5, %v1558_v33, 0  ;;  %v1760_v52 = vsel %vm1121_vm5, %v1746_v63, 0  ;;  %v1719_v33 = vsel %vm1121_vm5, %v1706_v18, 0 }
 0x8ee   :  { %1737 = vrot.lane.b32.xlu1 %v7100_v11, %s6479_s11  ;;  %v1744_v11 = vpop.permute.xlu2 %1743 }
 0x8f0   :  { %1586 = vmatpush.bf16.xpose.msra.mxu3 %v1572_v12 }
 0x8f3   :  { %v1518_v30 = vpop.permute.xlu0 %1517 }
 0x8f4   :  { %1549 = vmatpush.bf16.xpose.msrb.mxu2 %v1531_v27  ;;  %v1757_v27 = vsel %vm1121_vm5, %v1744_v11, 0 }
 0x8f6   :  { %1649 = vrot.lane.b32.xlu1 %v7077_v0, %s6467_s14 }
 0x8f8   :  { %1587 = vmatpush.bf16.xpose.msra.mxu3 %v1569_v46 }
 0x8fb   :  { %v7240_v32 = vpop.permute.xlu0 %1741 }
 0x903   :  { %v7242_v26 = vpop.permute.xlu0 %1699 }
 0x90b   :  { %v1678_v40 = vpop.permute.xlu0 %1677 }
 0x90c   :  { %1690 = vmatpush.bf16.msra.mxu1 %v1678_v40  ;;  %v1754_v40 = vsel %vm1121_vm5, %v7240_v32, 0 }
 0x913   :  { %v1676_v42 = vpop.permute.xlu0 %1675 }
 0x914   :  { %1691 = vmatpush.bf16.msra.mxu1 %v1676_v42 }
 0x930   :  { %v1425_v6 = vpop.xlane.xlu2 %1424 }
 0x931   :  { %6105 = vrcp.f32 %v1425_v6  ;;  %v1440_v48 = vand.u32 2147483648, %v1425_v6  ;;  %v1438_v51 = vand.u32 2147483647, %v1425_v6  ;;  %vm1434_vm4 = vweird.f32 %v1425_v6 }
 0x933   :  { %v1441_v23 = vor.u32 1.1754944e-38, %v1440_v48  ;;  %vm1439_vm8 = vcmp.eq.f32.partialorder %v1438_v51, 8.507059e+37 }
 0x937   :  { %v6106_v15 = vpop.eup %6105 }
 0x938   :  { %v1430_v35 = vmul.f32 %v6106_v15, %v1425_v6  ;;  %v1428_v45 = vpop.xlane.xlu1 %1427  ;;  %vm1435_vm3 = vweird.f32 %v6106_v15  ;;  %v1704_v12 = vpop.permute.xlu2 %1703 }
 0x939   :  { %6107 = vrcp.f32 %v1428_v45  ;;  %vm1436_vm7 = vmor %vm1434_vm4, %vm1435_vm3  ;;  %v1455_v43 = vand.u32 2147483648, %v1428_v45  ;;  %v1453_v1 = vand.u32 2147483647, %v1428_v45  ;;  %vm1449_vm11 = vweird.f32 %v1428_v45 }
 0x93a   :  { %v1431_v24 = vsub.f32 1.0, %v1430_v35  ;;  %v1716_v17 = vsel %vm1121_vm5, %v1704_v12, 0 }
 0x93b   :  { %v1456_v37 = vor.u32 1.1754944e-38, %v1455_v43  ;;  %vm1454_vm13 = vcmp.eq.f32.partialorder %v1453_v1, 8.507059e+37 }
 0x93c   :  { %v1432_v14 = vmul.f32 %v6106_v15, %v1431_v24 }
 0x93e   :  { %v1433_v4 = vadd.f32 %v6106_v15, %v1432_v14 }
 0x93f   :  { %v6108_v58 = vpop.eup %6107 }
 0x940   :  { %v1437_v31 = vsel %vm1436_vm7, %v6106_v15, %v1433_v4  ;;  %v1445_v60 = vmul.f32 %v6108_v58, %v1428_v45  ;;  %vm1450_vm10 = vweird.f32 %v6108_v58  ;;  %v1740_v63 = vpop.permute.xlu2 %1739 }
 0x941   :  { %v1442_v61 = vsel %vm1439_vm8, %v1441_v23, %v1437_v31  ;;  %vm1451_vm12 = vmor %vm1449_vm11, %vm1450_vm10 }
 0x942   :  { %v1446_v47 = vsub.f32 1.0, %v1445_v60  ;;  %v1443_v34 = vmul.f32 %v7209_v25, %v1442_v61 }
 0x944   :  { %v1447_v59 = vmul.f32 %v6108_v58, %v1446_v47  ;;  %v1459_v16 = vpack.c.bf16 %v1443_v34, %v1443_v34 }
 0x946   :  { %v1448_v9 = vadd.f32 %v6108_v58, %v1447_v59  ;;  %5716 = vmatmul.msk.bf16.vlgmr.msra.gmra.mxu2 %vm1198_vm6, %v1459_v16 }
 0x947   :  { %1728 = vmatpush.bf16.xpose.msra.mxu2 %v1722_v62 }
 0x948   :  { %v1452_v41 = vsel %vm1451_vm12, %v6108_v58, %v1448_v9  ;;  %v1648_v18 = vpop.permute.xlu2 %1647 }
 0x949   :  { %v1457_v13 = vsel %vm1454_vm13, %v1456_v37, %v1452_v41 }
 0x94a   :  { %v1458_v19 = vmul.f32 %v7213_v39, %v1457_v13 }
 0x94c   :  { %v1460_v25 = vpack.c.bf16 %v1458_v19, %v1458_v19 }
 0x94e   :  { %5717 = vmatmul.msk.bf16.vlgmr.msrb.gmra.mxu3 %vm1198_vm6, %v1460_v25 }
 0x94f   :  { %1729 = vmatpush.bf16.xpose.msra.mxu2 %v1719_v33  ;;  %1766 = vmatpush.bf16.xpose.msrb.mxu3 %v1760_v52 }
 0x950   :  { %v1556_v10 = vpop.permute.xlu1 %1555 }
 0x956   :  { %5718 = vmatmul.msk.bf16.vlgmr.msrb.gmra.mxu2 %vm1121_vm5, %v1518_v30  ;;  %v1751_v30 = vsel %vm1121_vm5, %v1740_v63, 0 }
 0x957   :  { %1730 = vmatpush.bf16.xpose.msra.mxu2 %v1716_v17  ;;  %1767 = vmatpush.bf16.xpose.msrb.mxu3 %v1757_v27 }
 0x958   :  { %v1702_v39 = vpop.permute.xlu1 %1701 }
 0x959   :  { %v1713_v46 = vsel %vm1121_vm5, %v1702_v39, 0 }
 0x95e   :  { %5719 = vmatmul.msk.bf16.vlgmr.msra.gmra.mxu3 %vm1121_vm5, %v1556_v10 }
 0x95f   :  { %1731 = vmatpush.bf16.xpose.msra.mxu2 %v1713_v46  ;;  %1768 = vmatpush.bf16.xpose.msrb.mxu3 %v1754_v40 }
 0x960   :  { %v1738_v42 = vpop.permute.xlu1 %1737 }
 0x966   :  { %5722 = vmatmul.msk.bf16.vlgmr.msra.gmra.mxu2 %vm1121_vm5, %v7242_v26 }
 0x967   :  { %1769 = vmatpush.bf16.xpose.msrb.mxu3 %v1751_v30 }
 0x968   :  { %v1650_v11 = vpop.permute.xlu1 %1649 }
 0x969   :  { %1662 = vmatpush.bf16.msra.mxu0 %v1650_v11 }
 0x96d   :  { %1663 = vmatpush.bf16.msra.mxu0 %v1648_v18 }
 0x96e   :  { %5723 = vmatmul.msk.bf16.vlgmr.msrb.gmra.mxu3 %vm1121_vm5, %v1738_v42 }
 0x9c9   :  { %v7262_v6 = vpop.f32.mrf.mxu2 }
 0x9d1   :  { %v1487_v15 = vpop.f32.mrf.mxu2  ;;  %v7264_v32 = vpop.f32.mrf.mxu3 }
 0x9d2   :  { %v5903_v35 = vpack.i.bf16 %v7264_v32, %v7262_v6 }
 0x9d9   :  { %v1515_v45 = vpop.f32.mrf.mxu3  ;;  %v1551_v24 = vpop.f32.mrf.mxu2 }
 0x9da   :  { %v1593_v26 = vsel %vm1198_vm6, %v1551_v24, -inf }
 0x9db   :  { %1594 = vmax.xlane.f32.xlu2 %v1593_v26 }
 0x9e1   :  { %v1553_v48 = vpop.f32.mrf.mxu2  ;;  %v1589_v14 = vpop.f32.mrf.mxu3 }
 0x9e2   :  { %v1596_v51 = vsel %vm1198_vm6, %v1589_v14, -inf }
 0x9e3   :  { %1597 = vmax.xlane.f32.xlu0 %v1596_v51 }
 0x9e9   :  { %v1591_v4 = vpop.f32.mrf.mxu3  ;;  %v1733_v58 = vpop.f32.mrf.mxu2 }
 0x9ea   :  { %v1775_v23 = vsel %vm1198_vm6, %v1733_v58, -inf }
 0x9eb   :  { %1776 = vmax.xlane.f32.xlu1 %v1775_v23 }
 0x9f1   :  { %v1735_v31 = vpop.f32.mrf.mxu2  ;;  %v1771_v60 = vpop.f32.mrf.mxu3 }
 0x9f2   :  { %v1778_v47 = vsel %vm1198_vm6, %v1771_v60, -inf }
 0x9f3   :  { %1673 = vrot.lane.b32.xlu2 %v7127_v53, %s6467_s14 }
 0x9f7   :  { %1857 = vrot.lane.b32.xlu0 %v7122_v44, %s6479_s11 }
 0x9f9   :  { %v1773_v61 = vpop.f32.mrf.mxu3 }
 0x9fb   :  { %1643 = vrot.lane.b32.xlu2 %v7092_v29, %s6467_s14 }
 0xa03   :  { %1671 = vrot.lane.b32.xlu2 %v7130_v8, %s6467_s14 }
 0xa04   :  { %1645 = vrot.lane.b32.xlu1 %v7086_v7, %s6467_s14 }
 0xa0b   :  { %1831 = vrot.lane.b32.xlu2 %v7077_v0, %s6479_s11 }
 0xa13   :  { %1859 = vrot.lane.b32.xlu2 %v7120_v38, %s6479_s11 }
 0xa3c   :  { %1779 = vmax.xlane.f32.xlu2 %v1778_v47 }
 0xa4e   :  { %v1595_v44 = vpop.xlane.xlu2 %1594 }
 0xa4f   :  { %v1599_v34 = vsub.f32 %v1551_v24, %v1595_v44 }
 0xa51   :  { %v1601_v43 = vmul.f32 1.442695, %v1599_v34 }
 0xa53   :  { %6109 = vpow2.f32 %v1601_v43 }
 0xa54   :  { %1829 = vrot.lane.b32.xlu2 %v7082_v55, %s6479_s11 }
 0xa56   :  { %v1674_v59 = vpop.permute.xlu2 %1673  ;;  %v1598_v41 = vpop.xlane.xlu0 %1597 }
 0xa57   :  { %1692 = vmatpush.bf16.msra.mxu1 %v1674_v59  ;;  %v1600_v55 = vsub.f32 %v1589_v14, %v1598_v41 }
 0xa59   :  { %v6110_v1 = vpop.eup %6109  ;;  %v1603_v52 = vmul.f32 1.442695, %v1600_v55 }
 0xa5a   :  { %v1605_v16 = vsel %vm1198_vm6, %v6110_v1, 0.0 }
 0xa5b   :  { %1606 = vadd.xlane.f32.xlu0 %v1605_v16 }
 0xa5e   :  { %v1644_v0 = vpop.permute.xlu2 %1643  ;;  %v1777_v62 = vpop.xlane.xlu1 %1776 }
 0xa5f   :  { %v1781_v9 = vsub.f32 %v1733_v58, %v1777_v62 }
 0xa61   :  { %v1783_v38 = vmul.f32 1.442695, %v1781_v9 }
 0xa63   :  { %6111 = vpow2.f32 %v1783_v38 }
 0xa64   :  { %6113 = vpow2.f32 %v1603_v52 }
 0xa66   :  { %v1672_v37 = vpop.permute.xlu2 %1671 }
 0xa67   :  { %1693 = vmatpush.bf16.msra.mxu1 %v1672_v37 }
 0xa69   :  { %v7289_v13 = vpop.eup %6111  ;;  %v1858_v17 = vpop.permute.xlu0 %1857 }
 0xa6a   :  { %v1787_v19 = vsel %vm1198_vm6, %v7289_v13, 0.0  ;;  %v7293_v12 = vpop.eup %6113 }
 0xa6b   :  { %1788 = vadd.xlane.f32.xlu0 %v1787_v19  ;;  %v1608_v27 = vsel %vm1198_vm6, %v7293_v12, 0.0 }
 0xa6e   :  { %v1832_v25 = vpop.permute.xlu2 %1831 }
 0xa76   :  { %v1860_v33 = vpop.permute.xlu2 %1859  ;;  %v1646_v10 = vpop.permute.xlu1 %1645 }
 0xa77   :  { %1664 = vmatpush.bf16.msra.mxu0 %v1646_v10  ;;  %1872 = vmatpush.bf16.msrb.mxu1 %v1860_v33 }
 0xa7b   :  { %1665 = vmatpush.bf16.msra.mxu0 %v1644_v0  ;;  %1873 = vmatpush.bf16.msrb.mxu1 %v1858_v17 }
 0xa7d   :  { %1609 = vadd.xlane.f32.xlu2 %v1608_v27 }
 0xa7f   :  { %1844 = vmatpush.bf16.msrb.mxu0 %v1832_v25  ;;  %1853 = vrot.lane.b32.xlu0 %v7130_v8, %s6479_s11 }
 0xa95   :  { %1855 = vrot.lane.b32.xlu2 %v7127_v53, %s6479_s11 }
 0xa9d   :  { %1825 = vrot.lane.b32.xlu2 %v7092_v29, %s6479_s11 }
 0xaa5   :  { %5904 = vrot.lane.b32.xlu2 %v5903_v35, %s6480_s12 }
 0xaaf   :  { %v1780_v39 = vpop.xlane.xlu2 %1779 }
 0xab0   :  { %v1782_v46 = vsub.f32 %v1771_v60, %v1780_v39 }
 0xab2   :  { %v1785_v40 = vmul.f32 1.442695, %v1782_v46 }
 0xab4   :  { %6115 = vpow2.f32 %v1785_v40 }
 0xab7   :  { %v1830_v42 = vpop.permute.xlu2 %1829 }
 0xab8   :  { %1845 = vmatpush.bf16.msrb.mxu0 %v1830_v42 }
 0xaba   :  { %v7307_v63 = vpop.eup %6115 }
 0xabb   :  { %v1790_v53 = vsel %vm1198_vm6, %v7307_v63, 0.0 }
 0xabc   :  { %1791 = vadd.xlane.f32.xlu1 %v1790_v53 }
 0xace   :  { %v1607_v8 = vpop.xlane.xlu0 %1606 }
 0xacf   :  { %6117 = vrcp.f32 %v1607_v8  ;;  %v1622_v6 = vand.u32 2147483648, %v1607_v8  ;;  %v1620_v15 = vand.u32 2147483647, %v1607_v8  ;;  %vm1616_vm15 = vweird.f32 %v1607_v8 }
 0xad1   :  { %v1623_v45 = vor.u32 1.1754944e-38, %v1622_v6  ;;  %vm1621_vm4 = vcmp.eq.f32.partialorder %v1620_v15, 8.507059e+37 }
 0xad5   :  { %v6118_v29 = vpop.eup %6117  ;;  %1827 = vrot.lane.b32.xlu1 %v7086_v7, %s6479_s11 }
 0xad6   :  { %v1612_v30 = vmul.f32 %v6118_v29, %v1607_v8  ;;  %vm1617_vm14 = vweird.f32 %v6118_v29 }
 0xad7   :  { %vm1618_vm3 = vmor %vm1616_vm15, %vm1617_vm14 }
 0xad8   :  { %v1613_v11 = vsub.f32 1.0, %v1612_v30 }
 0xada   :  { %v1614_v18 = vmul.f32 %v6118_v29, %v1613_v11 }
 0xadc   :  { %v1615_v32 = vadd.f32 %v6118_v29, %v1614_v18 }
 0xade   :  { %v1619_v35 = vsel %vm1618_vm3, %v6118_v29, %v1615_v32  ;;  %v1789_v7 = vpop.xlane.xlu0 %1788 }
 0xadf   :  { %v1624_v24 = vsel %vm1621_vm4, %v1623_v45, %v1619_v35  ;;  %v1804_v39 = vand.u32 2147483648, %v1789_v7  ;;  %vm1798_vm4 = vweird.f32 %v1789_v7  ;;  %v1802_v40 = vand.u32 2147483647, %v1789_v7 }
 0xae0   :  { %v1625_v26 = vmul.f32 %v6110_v1, %v1624_v24 }
 0xae1   :  { %v1805_v29 = vor.u32 1.1754944e-38, %v1804_v39 }
 0xae2   :  { %v1641_v48 = vpack.c.bf16 %v1625_v26, %v1625_v26 }
 0xae4   :  { %5720 = vmatmul.msk.bf16.vlgmr.msra.gmra.mxu0 %vm1198_vm6, %v1641_v48 }
 0xaf0   :  { %v1610_v14 = vpop.xlane.xlu2 %1609 }
 0xaf1   :  { %6119 = vrcp.f32 %v1610_v14  ;;  %v1637_v31 = vand.u32 2147483648, %v1610_v14  ;;  %v1635_v61 = vand.u32 2147483647, %v1610_v14  ;;  %v1854_v47 = vpop.permute.xlu0 %1853  ;;  %vm1631_vm8 = vweird.f32 %v1610_v14 }
 0xaf2   :  { %6121 = vrcp.f32 %v1789_v7 }
 0xaf3   :  { %v1638_v34 = vor.u32 1.1754944e-38, %v1637_v31  ;;  %vm1636_vm11 = vcmp.eq.f32.partialorder %v1635_v61, 8.507059e+37 }
 0xaf7   :  { %v6120_v51 = vpop.eup %6119 }
 0xaf8   :  { %v1627_v4 = vmul.f32 %v6120_v51, %v1610_v14  ;;  %v1856_v58 = vpop.permute.xlu2 %1855  ;;  %vm1632_vm7 = vweird.f32 %v6120_v51  ;;  %v6122_v62 = vpop.eup %6121 }
 0xaf9   :  { %1874 = vmatpush.bf16.msrb.mxu1 %v1856_v58  ;;  %vm1633_vm10 = vmor %vm1631_vm8, %vm1632_vm7  ;;  %v1794_v9 = vmul.f32 %v6122_v62, %v1789_v7  ;;  %vm1799_vm15 = vweird.f32 %v6122_v62  ;;  %vm1803_vm8 = vcmp.eq.f32.partialorder %v1802_v40, 8.507059e+37 }
 0xafa   :  { %v1628_v23 = vsub.f32 1.0, %v1627_v4  ;;  %vm1800_vm7 = vmor %vm1798_vm4, %vm1799_vm15 }
 0xafb   :  { %v1795_v37 = vsub.f32 1.0, %v1794_v9 }
 0xafc   :  { %v1629_v60 = vmul.f32 %v6120_v51, %v1628_v23 }
 0xafd   :  { %1875 = vmatpush.bf16.msrb.mxu1 %v1854_v47  ;;  %v1796_v25 = vmul.f32 %v6122_v62, %v1795_v37 }
 0xafe   :  { %v1630_v44 = vadd.f32 %v6120_v51, %v1629_v60 }
 0xaff   :  { %v1797_v17 = vadd.f32 %v6122_v62, %v1796_v25 }
 0xb00   :  { %v1634_v43 = vsel %vm1633_vm10, %v6120_v51, %v1630_v44  ;;  %v1826_v6 = vpop.permute.xlu2 %1825  ;;  %v5859_v51 = vld [vmem:[%s9503_s4 + $0x40] sm:$0xff]  ;;  %vm1909_vm10 = vcmask 97280  }
 0xb01   :  { %v1639_v59 = vsel %vm1636_vm11, %v1638_v34, %v1634_v43  ;;  %v1801_v53 = vsel %vm1800_vm7, %v6122_v62, %v1797_v17 }
 0xb02   :  { %v1640_v1 = vmul.f32 %v7293_v12, %v1639_v59  ;;  %v1806_v30 = vsel %vm1803_vm8, %v1805_v29, %v1801_v53  ;;  %v5861_v53 = vld [vmem:[%s9503_s4 + $0x50] sm:$0xff] }
 0xb03   :  { %v1807_v18 = vmul.f32 %v7289_v13, %v1806_v30  ;;  %v5860_v30 = vld [vmem:[%s9503_s4 + $0x48] sm:$0xff] }
 0xb04   :  { %v1642_v16 = vpack.c.bf16 %v1640_v1, %v1640_v1 }
 0xb05   :  { %v1823_v15 = vpack.c.bf16 %v1807_v18, %v1807_v18 }
 0xb06   :  { %5721 = vmatmul.msk.bf16.vlgmr.msra.gmra.mxu1 %vm1198_vm6, %v1642_v16 }
 0xb07   :  { %2019 = vmatpush.bf16.msra.mxu1 %v5861_v53 }
 0xb08   :  { %v5905_v4 = vpop.permute.xlu2 %5904 }
 0xb09   :  { %v5907_v23 = vunpack.i.h.bf16 %v5905_v4  ;;  %v5906_v31 = vunpack.i.l.bf16 %v5905_v4  ;;  %v6045_v4 = vld [vmem:[%s9504_s5 + $0x38] ss:$0 sm:$0xff] }
 0xb0b   :  { %v1906_v44 = vsel %vm1121_vm5, %v7175_v2, %v5907_v23  ;;  %v1905_v34 = vsel %vm1121_vm5, %v7173_v3, %v5906_v31  ;;  %v6044_v2 = vld [vmem:[%s9504_s5 + $0x30] ss:$0 sm:$0xff]  ;;  %2020 = vmatpush.bf16.msra.mxu1 %v5860_v30 }
 0xb2f   :  { %v1792_v0 = vpop.xlane.xlu1 %1791 }
 0xb30   :  { %6123 = vrcp.f32 %v1792_v0  ;;  %v1819_v55 = vand.u32 2147483648, %v1792_v0  ;;  %v1817_v33 = vand.u32 2147483647, %v1792_v0  ;;  %vm1813_vm13 = vweird.f32 %v1792_v0 }
 0xb32   :  { %v1820_v12 = vor.u32 1.1754944e-38, %v1819_v55  ;;  %vm1818_vm3 = vcmp.eq.f32.partialorder %v1817_v33, 8.507059e+37 }
 0xb36   :  { %v6124_v38 = vpop.eup %6123 }
 0xb37   :  { %v1809_v41 = vmul.f32 %v6124_v38, %v1792_v0  ;;  %vm1814_vm12 = vweird.f32 %v6124_v38 }
 0xb38   :  { %vm1815_vm14 = vmor %vm1813_vm13, %vm1814_vm12 }
 0xb39   :  { %v1810_v19 = vsub.f32 1.0, %v1809_v41 }
 0xb3b   :  { %v1811_v52 = vmul.f32 %v6124_v38, %v1810_v19 }
 0xb3d   :  { %v1812_v10 = vadd.f32 %v6124_v38, %v1811_v52 }
 0xb3f   :  { %v1816_v27 = vsel %vm1815_vm14, %v6124_v38, %v1812_v10 }
 0xb40   :  { %v1821_v46 = vsel %vm1818_vm3, %v1820_v12, %v1816_v27 }
 0xb41   :  { %v1822_v42 = vmul.f32 %v7307_v63, %v1821_v46 }
 0xb43   :  { %v1824_v8 = vpack.c.bf16 %v1822_v42, %v1822_v42 }
 0xb45   :  { %5725 = vmatmul.msk.bf16.vlgmr.msrb.gmra.mxu1 %vm1198_vm6, %v1824_v8 }
 0xb47   :  { %v1828_v11 = vpop.permute.xlu1 %1827 }
 0xb48   :  { %1846 = vmatpush.bf16.msrb.mxu0 %v1828_v11 }
 0xb4c   :  { %1847 = vmatpush.bf16.msrb.mxu0 %v1826_v6 }
 0xb4f   :  { %5724 = vmatmul.msk.bf16.vlgmr.msrb.gmra.mxu0 %vm1198_vm6, %v1823_v15 }
 0xb50   :  { %1930 = vmatpush.bf16.msra.mxu0 %v5859_v51 }
 0xb61   :  { %v1667_v32 = vpop.f32.mrf.mxu0 }
 0xb69   :  { %v1669_v35 = vpop.f32.mrf.mxu0 }
 0xb83   :  { %v1695_v63 = vpop.f32.mrf.mxu1 }
 0xb84   :  { %v5908_v45 = vpack.i.bf16 %v1695_v63, %v1667_v32 }
 0xb86   :  { %5909 = vrot.lane.b32.xlu1 %v5908_v45, %s6474_s27 }
 0xb8b   :  { %v1697_v24 = vpop.f32.mrf.mxu1 }
 0xbc2   :  { %v1877_v26 = vpop.f32.mrf.mxu1 }
 0xbca   :  { %v1879_v48 = vpop.f32.mrf.mxu1 }
 0xbcc   :  { %v1849_v14 = vpop.f32.mrf.mxu0 }
 0xbcd   :  { %v5913_v7 = vpack.i.bf16 %v1877_v26, %v1849_v14 }
 0xbcf   :  { %5914 = vrot.lane.b32.xlu0 %v5913_v7, %s6481_s0 }
 0xbd4   :  { %v1851_v13 = vpop.f32.mrf.mxu0 }
 0xbf8   :  { %v5910_v58 = vpop.permute.xlu1 %5909 }
 0xbf9   :  { %v5912_v60 = vunpack.i.h.bf16 %v5910_v58  ;;  %v5911_v61 = vunpack.i.l.bf16 %v5910_v58 }
 0xbfb   :  { %v1908_v1 = vsel %vm152_vm1, %v1906_v44, %v5912_v60  ;;  %v1907_v16 = vsel %vm152_vm1, %v1905_v34, %v5911_v61  ;;  %v6046_v60 = vld [vmem:[%s9504_s5 + $0x40] ss:$0 sm:$0xff] }
 0xc41   :  { %v5915_v47 = vpop.permute.xlu0 %5914 }
 0xc42   :  { %v5917_v43 = vunpack.i.h.bf16 %v5915_v47  ;;  %v5916_v59 = vunpack.i.l.bf16 %v5915_v47 }
 0xc44   :  { %v1910_v0 = vsel %vm1909_vm10, %v1907_v16, %v5916_v59  ;;  %v1911_v62 = vsel %vm1909_vm10, %v1908_v1, %v5917_v43  ;;  %v5865_v1 = vld [vmem:[%s9503_s4 + $0x70] sm:$0xff]  ;;  %v5864_v16 = vld [vmem:[%s9503_s4 + $0x68] sm:$0xff] }
 0xc45   :  { %v1912_v9 = vpack.c.bf16 %v1911_v62, %v1910_v0  ;;  %2071 = vmatpush.bf16.msrb.mxu2 %v5865_v1  ;;  %v5863_v0 = vld [vmem:[%s9503_s4 + $0x60] sm:$0xff]  ;;  %v5862_v62 = vld [vmem:[%s9503_s4 + $0x58] sm:$0xff] }
 0xc47   :  { %5730 = vmatmul.msk.bf16.vlgmr.msra.gmra.mxu0 %vm731_vm9, %v1912_v9 }
 0xc49   :  { %2072 = vmatpush.bf16.msrb.mxu2 %v5864_v16 }
 0xc4d   :  { %2073 = vmatpush.bf16.msrb.mxu2 %v5863_v0 }
 0xc51   :  { %2074 = vmatpush.bf16.msrb.mxu2 %v5862_v62 }
 0xcc4   :  { %v1932_v38 = vpop.f32.mrf.mxu0 }
 0xcc5   :  { %v1933_v37 = vadd.f32 %v6044_v2, %v1932_v38 }
 0xcc7   :  { %v1937_v3 = vadd.f32 %v1933_v37, %v6960_v54 }
 0xcc9   :  { %v1941_v41 = vsel %vm84_vm0, %v1937_v3, 0.0 }
 0xcca   :  { %1942 = vadd.xlane.f32.xlu2 %v1941_v41 }
 0xccc   :  { %v1934_v19 = vpop.f32.mrf.mxu0 }
 0xccd   :  { %v1935_v55 = vadd.f32 %v6044_v2, %v1934_v19  ;;  %v6047_v2 = vld [vmem:[%s9504_s5 + $0x48] ss:$0 sm:$0xff] }
 0xccf   :  { %v1938_v25 = vadd.f32 %v1935_v55, %v6968_v56 }
 0xcd1   :  { %v1944_v52 = vsel %vm84_vm0, %v1938_v25, 0.0 }
 0xcd2   :  { %1945 = vadd.xlane.f32.xlu1 %v1944_v52  ;;  %v5866_v52 = vld [vmem:[%s9503_s4 + $0x78] sm:$0xff] }
 0xd3d   :  { %v1943_v33 = vpop.xlane.xlu2 %1942 }
 0xd3e   :  { %v1947_v10 = vmul.f32 %v1943_v33, %v6823_v21  ;;  %v6048_v33 = vld [vmem:[%s9504_s5 + $0x50] ss:$0 sm:$0xff] }
 0xd40   :  { %v1949_v12 = vsub.f32 %v1937_v3, %v1947_v10 }
 0xd42   :  { %v1951_v17 = vmul.f32 %v1949_v12, %v1949_v12 }
 0xd44   :  { %v1953_v27 = vsel %vm84_vm0, %v1951_v17, 0.0 }
 0xd45   :  { %v1946_v39 = vpop.xlane.xlu1 %1945  ;;  %1954 = vadd.xlane.f32.xlu0 %v1953_v27 }
 0xd46   :  { %v1948_v54 = vmul.f32 %v1946_v39, %v6823_v21 }
 0xd48   :  { %v1950_v46 = vsub.f32 %v1938_v25, %v1948_v54  ;;  %v5867_v25 = vld [vmem:[%s9503_s4 + $0x80] sm:$0xff] }
 0xd49   :  { %2161 = vmatpush.bf16.msra.mxu3 %v5867_v25 }
 0xd4a   :  { %v1952_v40 = vmul.f32 %v1950_v46, %v1950_v46 }
 0xd4c   :  { %v1956_v42 = vsel %vm84_vm0, %v1952_v40, 0.0 }
 0xd4d   :  { %1957 = vadd.xlane.f32.xlu2 %v1956_v42  ;;  %2162 = vmatpush.bf16.msra.mxu3 %v5866_v52 }
 0xd50   :  { %5765 = vmatmul.msk.bf16.vlgmr.msra.gmra.mxu3 %vm84_vm0, %v6737_v28  ;;  %v7408_v28 = vld [vmem:[%s9504_s5 + $0x68] ss:$0 sm:$0xff] }
 0xd60   :  { %5766 = vmatmul.msk.bf16.gmra.mxu3 %vm84_vm0, %v6777_v5 }
 0xd70   :  { %5767 = vmatmul.msk.bf16.gmra.mxu3 %vm84_vm0, %v6821_v20 }
 0xd80   :  { %5768 = vmatmul.msk.bf16.gmra.mxu3 %vm84_vm0, %v6887_v49 }
 0xd90   :  { %5769 = vmatmul.msk.bf16.gmra.mxu3 %vm84_vm0, %v6779_v36 }
 0xda0   :  { %5770 = vmatmul.msk.bf16.gmra.mxu3 %vm84_vm0, %v6825_v22 }
 0xdb0   :  { %5771 = vmatmul.msk.bf16.gmra.mxu3 %vm84_vm0, %v6889_v50 }
 0xdb8   :  { %v1955_v56 = vpop.xlane.xlu0 %1954 }
 0xdb9   :  { %v1959_v8 = vmul.f32 %v1955_v56, %v6823_v21 }
 0xdbb   :  { %v1961_v29 = vadd.f32 1e-05, %v1959_v8 }
 0xdbd   :  { %6125 = vrsqrt.f32 %v1961_v29  ;;  %vm1969_vm12 = vweird.f32 %v1961_v29 }
 0xdc0   :  { %v1958_v11 = vpop.xlane.xlu2 %1957  ;;  %5772 = vmatmul.msk.bf16.gmra.mxu3 %vm84_vm0, %v6914_v57 }
 0xdc1   :  { %v1960_v18 = vmul.f32 %v1958_v11, %v6823_v21 }
 0xdc3   :  { %v6126_v6 = vpop.eup %6125  ;;  %v1962_v15 = vadd.f32 1e-05, %v1960_v18 }
 0xdc4   :  { %v1964_v32 = vmul.f32 %v6126_v6, %v1961_v29  ;;  %vm1970_vm11 = vweird.f32 %v6126_v6 }
 0xdc5   :  { %6127 = vrsqrt.f32 %v1962_v15  ;;  %vm1971_vm13 = vmor %vm1969_vm12, %vm1970_vm11  ;;  %vm1979_vm15 = vweird.f32 %v1962_v15 }
 0xdc6   :  { %v1965_v35 = vmul.f32 %v6126_v6, %v1964_v32 }
 0xdc8   :  { %v1966_v63 = vmul.f32 0.5, %v1965_v35 }
 0xdca   :  { %v1967_v45 = vsub.f32 1.5, %v1966_v63 }
 0xdcb   :  { %v6128_v24 = vpop.eup %6127 }
 0xdcc   :  { %v1968_v26 = vmul.f32 %v6126_v6, %v1967_v45  ;;  %v1974_v48 = vmul.f32 %v6128_v24, %v1962_v15  ;;  %vm1980_vm14 = vweird.f32 %v6128_v24 }
 0xdcd   :  { %vm1981_vm3 = vmor %vm1979_vm15, %vm1980_vm14 }
 0xdce   :  { %v1975_v14 = vmul.f32 %v6128_v24, %v1974_v48  ;;  %v1972_v7 = vsel %vm1971_vm13, %v6126_v6, %v1968_v26 }
 0xdcf   :  { %v1983_v58 = vmul.f32 %v1972_v7, %v1949_v12 }
 0xdd0   :  { %v1976_v13 = vmul.f32 0.5, %v1975_v14 }
 0xdd1   :  { %v1986_v61 = vmul.f32 %v6045_v4, %v1983_v58 }
 0xdd2   :  { %v1977_v51 = vsub.f32 1.5, %v1976_v13 }
 0xdd3   :  { %v1989_v34 = vadd.f32 %v6046_v60, %v1986_v61  ;;  %v2164_v20 = vpop.f32.mrf.mxu3 }
 0xdd4   :  { %v1978_v23 = vmul.f32 %v6128_v24, %v1977_v51  ;;  %v2165_v18 = vadd.f32 %v7408_v28, %v2164_v20 }
 0xdd6   :  { %v1982_v31 = vsel %vm1981_vm3, %v6128_v24, %v1978_v23  ;;  %v2262_v63 = vpack.c.bf16 %v2165_v18, %v2165_v18 }
 0xdd7   :  { %v1984_v47 = vmul.f32 %v1982_v31, %v1950_v46 }
 0xdd8   :  { %v2290_v48 = vunpack.c.l.b16 %v2262_v63 }
 0xdd9   :  { %v1987_v44 = vmul.f32 %v6045_v4, %v1984_v47 }
 0xddb   :  { %v1990_v43 = vadd.f32 %v6046_v60, %v1987_v44  ;;  %v2166_v56 = vpop.f32.mrf.mxu3 }
 0xddc   :  { %v2167_v6 = vadd.f32 %v7408_v28, %v2166_v56 }
 0xddd   :  { %v1995_v59 = vpack.c.bf16 %v1990_v43, %v1989_v34 }
 0xdde   :  { %v2263_v45 = vpack.c.bf16 %v2167_v6, %v2167_v6 }
 0xddf   :  { %5739 = vmatmul.msk.bf16.vlgmr.msra.gmra.mxu1 %vm84_vm0, %v1995_v59 }
 0xde0   :  { %v2291_v14 = vunpack.c.l.b16 %v2263_v45 }
 0xde2   :  { %v7434_v23 = vpack.c.b16 %v2291_v14, %v2290_v48 }
 0xde3   :  { %v2169_v30 = vpop.f32.mrf.mxu3 }
 0xde4   :  { %v2170_v15 = vadd.f32 %v7408_v28, %v2169_v30 }
 0xde6   :  { %v2264_v24 = vpack.c.bf16 %v2170_v15, %v2170_v15 }
 0xde8   :  { %v2292_v13 = vunpack.c.l.b16 %v2264_v24 }
 0xdeb   :  { %v2171_v11 = vpop.f32.mrf.mxu3 }
 0xdec   :  { %v2172_v32 = vadd.f32 %v7408_v28, %v2171_v11 }
 0xdee   :  { %v2265_v26 = vpack.c.bf16 %v2172_v32, %v2172_v32 }
 0xdf0   :  { %v2293_v51 = vunpack.c.l.b16 %v2265_v26 }
 0xdf2   :  { %v7436_v61 = vpack.c.b16 %v2293_v51, %v2292_v13 }
 0xdf3   :  { %v2174_v35 = vpop.f32.mrf.mxu3 }
 0xdf4   :  { %v2175_v7 = vadd.f32 %v7408_v28, %v2174_v35 }
 0xdf6   :  { %v2266_v31 = vpack.c.bf16 %v2175_v7, %v2175_v7 }
 0xdf8   :  { %v2294_v47 = vunpack.c.l.b16 %v2266_v31 }
 0xdfb   :  { %v2176_v4 = vpop.f32.mrf.mxu3 }
 0xdfc   :  { %v2177_v58 = vadd.f32 %v7408_v28, %v2176_v4 }
 0xdfe   :  { %v2267_v60 = vpack.c.bf16 %v2177_v58, %v2177_v58 }
 0xe00   :  { %v2295_v44 = vunpack.c.l.b16 %v2267_v60 }
 0xe5c   :  { %v2022_v9 = vpop.f32.mrf.mxu1 }
 0xe5d   :  { %v2023_v38 = vadd.f32 %v6047_v2, %v2022_v9 }
 0xe5f   :  { %v2027_v41 = vmax.f32 %v2023_v38, 0.0 }
 0xe64   :  { %v2024_v37 = vpop.f32.mrf.mxu1 }
 0xe65   :  { %v2025_v3 = vadd.f32 %v6047_v2, %v2024_v37 }
 0xe67   :  { %v2028_v19 = vmax.f32 %v2025_v3, 0.0 }
 0xe69   :  { %v2037_v55 = vpack.c.bf16 %v2028_v19, %v2027_v41 }
 0xe6b   :  { %5756 = vmatmul.msk.bf16.vlgmr.msrb.gmra.mxu2 %vm1198_vm6, %v2037_v55 }
 0xeee   :  { %v2076_v10 = vpop.f32.mrf.mxu2 }
 0xeef   :  { %v2077_v12 = vadd.f32 %v6048_v33, %v2076_v10 }
 0xef1   :  { %v2081_v17 = vadd.f32 %v2077_v12, %v1989_v34  ;;  %v2179_v34 = vpop.f32.mrf.mxu3 }
 0xef2   :  { %v2180_v59 = vadd.f32 %v7408_v28, %v2179_v34  ;;  %v6050_v34 = vld [vmem:[%s9504_s5 + $0x58] ss:$0 sm:$0xff] }
 0xef3   :  { %v2085_v27 = vsel %vm84_vm0, %v2081_v17, 0.0 }
 0xef4   :  { %2086 = vadd.xlane.f32.xlu1 %v2085_v27  ;;  %v2268_v1 = vpack.c.bf16 %v2180_v59, %v2180_v59 }
 0xef6   :  { %v2078_v39 = vpop.f32.mrf.mxu2  ;;  %v2296_v62 = vunpack.c.l.b16 %v2268_v1 }
 0xef7   :  { %v2079_v54 = vadd.f32 %v6048_v33, %v2078_v39 }
 0xef9   :  { %v2082_v46 = vadd.f32 %v2079_v54, %v1990_v43  ;;  %v7442_v43 = vpack.c.b16 %v2295_v44, %v2294_v47  ;;  %v2181_v16 = vpop.f32.mrf.mxu3 }
 0xefa   :  { %v2182_v0 = vadd.f32 %v7408_v28, %v2181_v16 }
 0xefb   :  { %v2088_v40 = vsel %vm84_vm0, %v2082_v46, 0.0 }
 0xefc   :  { %2089 = vadd.xlane.f32.xlu0 %v2088_v40  ;;  %v2269_v9 = vpack.c.bf16 %v2182_v0, %v2182_v0 }
 0xefe   :  { %v2297_v2 = vunpack.c.l.b16 %v2269_v9 }
 0xf00   :  { %v7450_v38 = vpack.c.b16 %v2297_v2, %v2296_v62  ;;  %v6051_v62 = vld [vmem:[%s9504_s5 + $0x60] ss:$0 sm:$0xff] }
 0xf01   :  { %v2184_v37 = vpop.f32.mrf.mxu3 }
 0xf02   :  { %v2185_v3 = vadd.f32 %v7408_v28, %v2184_v37 }
 0xf04   :  { %v2270_v41 = vpack.c.bf16 %v2185_v3, %v2185_v3 }
 0xf09   :  { %v2186_v19 = vpop.f32.mrf.mxu3 }
 0xf0a   :  { %v2187_v55 = vadd.f32 %v7408_v28, %v2186_v19 }
 0xf10   :  { %2207 = vrot.lane.b32.xlu0 %v5867_v25, %s6470_s17 }
 0xf11   :  { %v2189_v12 = vpop.f32.mrf.mxu3 }
 0xf18   :  { %2235 = vrot.lane.b32.xlu0 %v5867_v25, %s6469_s16  ;;  %v2354_v25 = vunpack.c.l.b16 %v2270_v41 }
 0xf19   :  { %v2191_v39 = vpop.f32.mrf.mxu3 }
 0xf1a   :  { %v2192_v54 = vadd.f32 %v7408_v28, %v2191_v39  ;;  %v6423_v39 = vld [vmem:[%s9501_s2] sm:$0xff] }
 0xf1c   :  { %v2273_v40 = vpack.c.bf16 %v2192_v54, %v2192_v54 }
 0xf20   :  { %2239 = vrot.lane.b32.xlu0 %v7408_v28, %s6469_s16 }
 0xf28   :  { %2944 = vrot.lane.b32.xlu0 %v7450_v38, %s6478_s26 }
 0xf30   :  { %3590 = vrot.lane.b32.xlu0 %v7434_v23, %s6467_s14 }
 0xf67   :  { %v2087_v5 = vpop.xlane.xlu1 %2086 }
 0xf68   :  { %v2091_v36 = vmul.f32 %v2087_v5, %v6823_v21  ;;  %v2357_v5 = vunpack.c.l.b16 %v2273_v40 }
 0xf6a   :  { %v7413_v49 = vsub.f32 %v2081_v17, %v2091_v36  ;;  %v2190_v17 = vadd.f32 %v7408_v28, %v2189_v12 }
 0xf6c   :  { %v2095_v22 = vmul.f32 %v7413_v49, %v7413_v49  ;;  %v2272_v27 = vpack.c.bf16 %v2190_v17, %v2190_v17 }
 0xf6e   :  { %v2097_v50 = vsel %vm84_vm0, %v2095_v22, 0.0  ;;  %v2194_v22 = vpop.f32.mrf.mxu3 }
 0xf6f   :  { %v2090_v57 = vpop.xlane.xlu0 %2089  ;;  %2098 = vadd.xlane.f32.xlu2 %v2097_v50 }
 0xf70   :  { %v2092_v42 = vmul.f32 %v2090_v57, %v6823_v21  ;;  %v2195_v57 = vadd.f32 %v7408_v28, %v2194_v22 }
 0xf72   :  { %v7419_v53 = vsub.f32 %v2082_v46, %v2092_v42  ;;  %v2356_v46 = vunpack.c.l.b16 %v2272_v27 }
 0xf74   :  { %v2096_v8 = vmul.f32 %v7419_v53, %v7419_v53  ;;  %v7464_v36 = vpack.c.b16 %v2357_v5, %v2356_v46  ;;  %v6424_v46 = vld [vmem:[%s9501_s2 + $0x8] sm:$0xff] }
 0xf76   :  { %v2100_v29 = vsel %vm84_vm0, %v2096_v8, 0.0  ;;  %v2196_v30 = vpop.f32.mrf.mxu3 }
 0xf77   :  { %2101 = vadd.xlane.f32.xlu1 %v2100_v29  ;;  %v2274_v29 = vpack.c.bf16 %v2195_v57, %v2195_v57  ;;  %v2197_v11 = vadd.f32 %v7408_v28, %v2196_v30 }
 0xf79   :  { %v2358_v18 = vunpack.c.l.b16 %v2274_v29  ;;  %v2275_v15 = vpack.c.bf16 %v2197_v11, %v2197_v11 }
 0xf7b   :  { %v2359_v63 = vunpack.c.l.b16 %v2275_v15 }
 0xf7d   :  { %v7476_v48 = vpack.c.b16 %v2359_v63, %v2358_v18 }
 0xf7e   :  { %v2199_v14 = vpop.f32.mrf.mxu3 }
 0xf7f   :  { %2999 = vrot.lane.b32.xlu0 %v7476_v48, %s6478_s26  ;;  %v2200_v51 = vadd.f32 %v7408_v28, %v2199_v14 }
 0xf81   :  { %v2276_v44 = vpack.c.bf16 %v2200_v51, %v2200_v51 }
 0xf82   :  { %v2208_v20 = vpop.permute.xlu0 %2207 }
 0xf83   :  { %2224 = vmatpush.bf16.msrb.mxu0 %v2208_v20  ;;  %v2360_v37 = vunpack.c.l.b16 %v2276_v44 }
 0xf86   :  { %v2201_v59 = vpop.f32.mrf.mxu3 }
 0xf87   :  { %2205 = vrot.lane.b32.xlu2 %v5866_v52, %s6470_s17  ;;  %3596 = vrot.lane.b32.xlu0 %v7450_v38, %s6467_s14  ;;  %v2202_v0 = vadd.f32 %v7408_v28, %v2201_v59 }
 0xf89   :  { %v2277_v3 = vpack.c.bf16 %v2202_v0, %v2202_v0 }
 0xf8a   :  { %v2236_v56 = vpop.permute.xlu0 %2235 }
 0xf8b   :  { %2251 = vmatpush.bf16.msrb.mxu1 %v2236_v56 }
 0xf8f   :  { %2233 = vrot.lane.b32.xlu2 %v5866_v52, %s6469_s16  ;;  %v2271_v52 = vpack.c.bf16 %v2187_v55, %v2187_v55  ;;  %v2361_v55 = vunpack.c.l.b16 %v2277_v3  ;;  %s5624_s16 = sshll.u32 %s6482_s29, 4  ;;  %s5625_s16 = int_to_ptr.vmem [resolvable:$true] %s5624_s16 }
 0xf90   :  { %2212 = vrot.lane.b32.xlu1 %v7408_v28, %s6470_s17 }
 0xf91   :  { %v2355_v33 = vunpack.c.l.b16 %v2271_v52 }
 0xf92   :  { %v2240_v5 = vpop.permute.xlu0 %2239 }
 0xf93   :  { %v7458_v10 = vpack.c.b16 %v2355_v33, %v2354_v25  ;;  %v7493_v33 = vpack.c.b16 %v2361_v55, %v2360_v37 }
 0xf95   :  { %3644 = vrot.lane.b32.xlu0 %v7458_v10, %s6467_s14 }
 0xf97   :  { %2938 = vrot.lane.b32.xlu2 %v7434_v23, %s6478_s26 }
 0xf98   :  { %2940 = vrot.lane.b32.xlu1 %v7436_v61, %s6478_s26 }
 0xf9d   :  { %4232 = vrot.lane.b32.xlu0 %v7436_v61, %s6479_s11 }
 0xf9f   :  { %2942 = vrot.lane.b32.xlu2 %v7442_v43, %s6478_s26 }
 0xfa0   :  { %3592 = vrot.lane.b32.xlu1 %v7436_v61, %s6467_s14 }
 0xfa7   :  { %2995 = vrot.lane.b32.xlu2 %v7458_v10, %s6478_s26 }
 0xfa8   :  { %3001 = vrot.lane.b32.xlu1 %v7493_v33, %s6478_s26 }
 0xfaf   :  { %2997 = vrot.lane.b32.xlu2 %v7464_v36, %s6478_s26 }
 0xfb0   :  { %3646 = vrot.lane.b32.xlu1 %v7464_v36, %s6467_s14 }
 0xfb7   :  { %3594 = vrot.lane.b32.xlu2 %v7442_v43, %s6467_s14 }
 0xfb8   :  { %4234 = vrot.lane.b32.xlu1 %v7442_v43, %s6479_s11 }
 0xfbf   :  { %4230 = vrot.lane.b32.xlu2 %v7434_v23, %s6479_s11 }
 0xfc7   :  { %3648 = vrot.lane.b32.xlu2 %v7476_v48, %s6467_s14 }
 0xfe2   :  { %v2099_v50 = vpop.xlane.xlu2 %2098 }
 0xfe3   :  { %v2103_v42 = vmul.f32 %v2099_v50, %v6823_v21 }
 0xfe5   :  { %v2105_v8 = vadd.f32 1e-05, %v2103_v42 }
 0xfe7   :  { %6129 = vrsqrt.f32 %v2105_v8  ;;  %vm2113_vm4 = vweird.f32 %v2105_v8 }
 0xfea   :  { %v2102_v6 = vpop.xlane.xlu1 %2101  ;;  %v2206_v32 = vpop.permute.xlu2 %2205 }
 0xfeb   :  { %v2104_v35 = vmul.f32 %v2102_v6, %v6823_v21  ;;  %2225 = vmatpush.bf16.msrb.mxu0 %v2206_v32 }
 0xfed   :  { %v6130_v45 = vpop.eup %6129  ;;  %v2106_v24 = vadd.f32 1e-05, %v2104_v35 }
 0xfee   :  { %v2108_v26 = vmul.f32 %v6130_v45, %v2105_v8  ;;  %vm2114_vm6 = vweird.f32 %v6130_v45 }
 0xfef   :  { %6131 = vrsqrt.f32 %v2106_v24  ;;  %vm2115_vm7 = vmor %vm2113_vm4, %vm2114_vm6  ;;  %vm2123_vm11 = vweird.f32 %v2106_v24 }
 0xff0   :  { %v2109_v7 = vmul.f32 %v6130_v45, %v2108_v26 }
 0xff2   :  { %v2110_v13 = vmul.f32 0.5, %v2109_v7  ;;  %v2234_v4 = vpop.permute.xlu2 %2233 }
 0xff3   :  { %2252 = vmatpush.bf16.msrb.mxu1 %v2234_v4 }
 0xff4   :  { %v2111_v58 = vsub.f32 1.5, %v2110_v13 }
 0xff5   :  { %v6132_v31 = vpop.eup %6131 }
 0xff6   :  { %v2112_v60 = vmul.f32 %v6130_v45, %v2111_v58  ;;  %v2118_v47 = vmul.f32 %v6132_v31, %v2106_v24  ;;  %vm2124_vm8 = vweird.f32 %v6132_v31 }
 0xff7   :  { %vm2125_vm12 = vmor %vm2123_vm11, %vm2124_vm8 }
 0xff8   :  { %v2116_v1 = vsel %vm2115_vm7, %v6130_v45, %v2112_v60  ;;  %v2119_v16 = vmul.f32 %v6132_v31, %v2118_v47 }
 0xff9   :  { %v2127_v9 = vmul.f32 %v2116_v1, %v7413_v49 }
 0xffa   :  { %v2120_v2 = vmul.f32 0.5, %v2119_v16  ;;  %v2939_v0 = vpop.permute.xlu2 %2938 }
 0xffb   :  { %v2130_v41 = vmul.f32 %v6050_v34, %v2127_v9 }
 0xffc   :  { %v2121_v19 = vsub.f32 1.5, %v2120_v2 }
 0xffd   :  { %v2133_v25 = vadd.f32 %v6051_v62, %v2130_v41 }
 0xffe   :  { %v2122_v52 = vmul.f32 %v6132_v31, %v2121_v19 }
 0xfff   :  { %5602 = vst.msk [vmem:[#allocation2] sm:$0xff] %vm84_vm0, %v2133_v25  ;;  %v2135_v54 = vadd.f32 %v6423_v39, %v2133_v25 }
0x1000   :  { %v2126_v28 = vsel %vm2125_vm12, %v6132_v31, %v2122_v52 }
0x1001   :  { %v2128_v49 = vmul.f32 %v2126_v28, %v7419_v53 }
0x1002   :  { %v2213_v50 = vpop.permute.xlu1 %2212 }
0x1003   :  { %v2131_v12 = vmul.f32 %v6050_v34, %v2128_v49 }
0x1005   :  { %v2134_v17 = vadd.f32 %v6051_v62, %v2131_v12 }
0x1007   :  { %5603 = vst.msk [vmem:[#allocation2 + $0x8] sm:$0xff] %vm84_vm0, %v2134_v17  ;;  %v2232_v27 = vpack.c.bf16 %v2134_v17, %v2133_v25  ;;  %v2136_v40 = vadd.f32 %v6424_v46, %v2134_v17  ;;  %v2943_v17 = vpop.permute.xlu2 %2942 }
0x1008   :  { %5632 = dma.vmem_to_hbm [thread:$0]  %s5625_s16, 256, %s5627_s28, [#allocation3], %s6483_s6, %s6483_s6, %s6474_s27  }
0x1009   :  { %5774 = vmatmul.msk.bf16.vlgmr.msrb.gmra.mxu1 %vm84_vm0, %v2232_v27  ;;  %v2204_v53 = vpack.c.bf16 %v2136_v40, %v2135_v54 }
0x100a   :  { %v2941_v51 = vpop.permute.xlu1 %2940 }
0x100b   :  { %5773 = vmatmul.msk.bf16.vlgmr.msrb.gmra.mxu0 %vm84_vm0, %v2204_v53 }
0x1086   :  { %v2254_v20 = vpop.f32.mrf.mxu1 }
0x1087   :  { %v2255_v22 = vadd.f32 %v2254_v20, %v2240_v5 }
0x1088   :  { %v2227_v57 = vpop.f32.mrf.mxu0 }
0x1089   :  { %v7516_v42 = vpack.c.bf16 %v2255_v22, %v2255_v22  ;;  %v2228_v56 = vadd.f32 %v2227_v57, %v2213_v50 }
0x108b   :  { %v2843_v8 = vsel %vm249_vm2, %v7516_v42, 0  ;;  %v2278_v29 = vpack.c.bf16 %v2228_v56, %v2228_v56 }
0x108c   :  { %2852 = vmatpush.bf16.msra.mxu1 %v2843_v8  ;;  %v7604_v8 = vpop.permute.xlu2 %2995 }
0x108d   :  { %v2315_v30 = vsel %vm1121_vm5, %v2278_v29, 0  ;;  %v2947_v11 = vunpack.c.l.b16 %v2278_v29 }
0x108e   :  { %v2256_v18 = vpop.f32.mrf.mxu1  ;;  %2324 = vmatpush.bf16.xpose.msra.mxu2 %v2315_v30 }
0x108f   :  { %v2948_v6 = vpack.c.b16 %v2947_v11, %v2947_v11  ;;  %v2257_v15 = vadd.f32 %v2256_v18, %v2240_v5 }
0x1090   :  { %v2229_v32 = vpop.f32.mrf.mxu0 }
0x1091   :  { %v7521_v35 = vpack.c.bf16 %v2257_v15, %v2257_v15  ;;  %v2230_v63 = vadd.f32 %v2229_v32, %v2213_v50  ;;  %3598 = vrot.lane.b32.xlu0 %v2948_v6, %s6467_s14  ;;  %2949 = vrot.lane.b32.xlu1 %v2948_v6, %s6478_s26 }
0x1093   :  { %v2279_v45 = vpack.c.bf16 %v2230_v63, %v2230_v63  ;;  %v2907_v24 = vsel %vm249_vm2, %v7521_v35, 0 }
0x1094   :  { %v7609_v30 = vpop.permute.xlu2 %2997 }
0x1095   :  { %v3004_v26 = vunpack.c.l.b16 %v2279_v45  ;;  %5775 = vmatmul.msk.bf16.vlgmr.msra.gmra.mxu2 %vm1121_vm5, %v7434_v23  ;;  %v2379_v14 = vsel %vm1121_vm5, %v2279_v45, 0  ;;  %v2945_v23 = vpop.permute.xlu0 %2944 }
0x1096   :  { %2916 = vmatpush.bf16.msrb.mxu2 %v2907_v24  ;;  %2388 = vmatpush.bf16.xpose.msra.mxu0 %v2379_v14 }
0x1097   :  { %v7530_v7 = vpack.c.b16 %v3004_v26, %v3004_v26 }
0x1099   :  { %3652 = vrot.lane.b32.xlu2 %v7530_v7, %s6467_s14  ;;  %4238 = vrot.lane.b32.xlu1 %v2948_v6, %s6479_s11 }
0x109c   :  { %v3595_v18 = vpop.permute.xlu2 %3594 }
0x109d   :  { %5779 = vmatmul.msk.bf16.vlgmr.msra.gmra.mxu0 %vm1121_vm5, %v7458_v10  ;;  %v3591_v13 = vpop.permute.xlu0 %3590 }
0x10a1   :  { %3006 = vrot.lane.b32.xlu1 %v7530_v7, %s6478_s26 }
0x10a4   :  { %v4231_v32 = vpop.permute.xlu2 %4230 }
0x10a5   :  { %5776 = vmatmul.msk.bf16.gmra.mxu2 %vm1121_vm5, %v7436_v61  ;;  %v7551_v4 = vpop.permute.xlu0 %2999  ;;  %v3593_v61 = vpop.permute.xlu1 %3592 }
0x10ac   :  { %v7622_v45 = vpop.permute.xlu2 %3648 }
0x10ad   :  { %5780 = vmatmul.msk.bf16.gmra.mxu0 %vm1121_vm5, %v7464_v36  ;;  %v7553_v58 = vpop.permute.xlu0 %3596  ;;  %v7555_v31 = vpop.permute.xlu1 %3001 }
0x10b5   :  { %5777 = vmatmul.msk.bf16.gmra.mxu2 %vm1121_vm5, %v7442_v43  ;;  %v7557_v43 = vpop.permute.xlu0 %3644  ;;  %v7559_v60 = vpop.permute.xlu1 %3646 }
0x10bd   :  { %5781 = vmatmul.msk.bf16.gmra.mxu0 %vm1121_vm5, %v7476_v48  ;;  %v7561_v47 = vpop.permute.xlu0 %4232  ;;  %v7563_v44 = vpop.permute.xlu1 %4234 }
0x10c5   :  { %5778 = vmatmul.msk.bf16.gmra.mxu2 %vm1121_vm5, %v7450_v38 }
0x10cd   :  { %5782 = vmatmul.msk.bf16.gmra.mxu0 %vm1121_vm5, %v7493_v33 }
0x1103   :  { %v3599_v34 = vpop.permute.xlu0 %3598  ;;  %v2950_v59 = vpop.permute.xlu1 %2949 }
0x1104   :  { %v3613_v1 = vsel %vm1121_vm5, %v3599_v34, 0  ;;  %v2964_v16 = vsel %vm1121_vm5, %v2950_v59, 0 }
0x1105   :  { %2973 = vmatpush.bf16.xpose.msrb.mxu0 %v2964_v16 }
0x110b   :  { %v4239_v62 = vpop.permute.xlu1 %4238 }
0x110c   :  { %v4253_v9 = vsel %vm1121_vm5, %v4239_v62, 0  ;;  %5791 = vmatmul.msk.bf16.vlgmr.msrb.gmra.mxu0 %vm1121_vm5, %v2939_v0 }
0x110d   :  { %3622 = vmatpush.bf16.xpose.msra.mxu0 %v3613_v1 }
0x1113   :  { %v3007_v2 = vpop.permute.xlu1 %3006 }
0x1114   :  { %v3021_v37 = vsel %vm1121_vm5, %v3007_v2, 0 }
0x1115   :  { %4262 = vmatpush.bf16.xpose.msrb.mxu0 %v4253_v9  ;;  %3030 = vmatpush.bf16.xpose.msrb.mxu1 %v3021_v37 }
0x1118   :  { %v2326_v3 = vpop.f32.mrf.mxu2 }
0x1119   :  { %v2410_v41 = vsel %vm152_vm1, %v2326_v3, -inf }
0x111a   :  { %v7571_v19 = vpop.f32.mrf.mxu0  ;;  %2411 = vmax.xlane.f32.xlu0 %v2410_v41 }
0x111b   :  { %v2434_v25 = vsel %vm152_vm1, %v7571_v19, -inf }
0x111c   :  { %5792 = vmatmul.msk.bf16.gmra.mxu0 %vm1121_vm5, %v2941_v51 }
0x1120   :  { %v2328_v55 = vpop.f32.mrf.mxu2 }
0x1121   :  { %v2413_v52 = vsel %vm152_vm1, %v2328_v55, -inf }
0x1122   :  { %v7577_v28 = vpop.f32.mrf.mxu0  ;;  %2435 = vmax.xlane.f32.xlu0 %v2434_v25  ;;  %2414 = vmax.xlane.f32.xlu1 %v2413_v52 }
0x1123   :  { %v2437_v49 = vsel %vm152_vm1, %v7577_v28, -inf }
0x1124   :  { %2438 = vmax.xlane.f32.xlu2 %v2437_v49 }
0x1128   :  { %v2331_v12 = vpop.f32.mrf.mxu2 }
0x1129   :  { %v2416_v27 = vsel %vm152_vm1, %v2331_v12, -inf }
0x112a   :  { %v7598_v50 = vpop.f32.mrf.mxu0 }
0x112c   :  { %2417 = vmax.xlane.f32.xlu2 %v2416_v27  ;;  %5793 = vmatmul.msk.bf16.gmra.mxu0 %vm1121_vm5, %v2943_v17 }
0x1130   :  { %v2333_v39 = vpop.f32.mrf.mxu2 }
0x1131   :  { %v2419_v54 = vsel %vm152_vm1, %v2333_v39, -inf }
0x1132   :  { %2420 = vmax.xlane.f32.xlu0 %v2419_v54  ;;  %v7606_v29 = vpop.f32.mrf.mxu0 }
0x1138   :  { %v7584_v46 = vpop.f32.mrf.mxu2 }
0x1139   :  { %v2422_v40 = vsel %vm152_vm1, %v7584_v46, -inf }
0x113a   :  { %2423 = vmax.xlane.f32.xlu1 %v2422_v40  ;;  %v7611_v11 = vpop.f32.mrf.mxu0 }
0x113c   :  { %5794 = vmatmul.msk.bf16.gmra.mxu0 %vm1121_vm5, %v2945_v23 }
0x1140   :  { %v7589_v53 = vpop.f32.mrf.mxu2 }
0x1141   :  { %v2425_v5 = vsel %vm152_vm1, %v7589_v53, -inf }
0x1142   :  { %2426 = vmax.xlane.f32.xlu2 %v2425_v5  ;;  %v7614_v6 = vpop.f32.mrf.mxu0 }
0x1148   :  { %v7593_v20 = vpop.f32.mrf.mxu2 }
0x1149   :  { %v2428_v22 = vsel %vm152_vm1, %v7593_v20, -inf }
0x114a   :  { %2429 = vmax.xlane.f32.xlu0 %v2428_v22  ;;  %v7616_v15 = vpop.f32.mrf.mxu0 }
0x114c   :  { %5807 = vmatmul.msk.bf16.vlgmr.msra.gmra.mxu0 %vm1121_vm5, %v3591_v13  ;;  %v7629_v13 = vpop.permute.xlu2 %3652 }
0x1150   :  { %v7600_v57 = vpop.f32.mrf.mxu2 }
0x1151   :  { %v2431_v56 = vsel %vm152_vm1, %v7600_v57, -inf }
0x1152   :  { %2432 = vmax.xlane.f32.xlu1 %v2431_v56  ;;  %v7620_v63 = vpop.f32.mrf.mxu0 }
0x115c   :  { %5808 = vmatmul.msk.bf16.gmra.mxu0 %vm1121_vm5, %v3593_v61 }
0x116c   :  { %5809 = vmatmul.msk.bf16.gmra.mxu0 %vm1121_vm5, %v3595_v18 }
0x117c   :  { %5810 = vmatmul.msk.bf16.gmra.mxu0 %vm1121_vm5, %v7553_v58 }
0x1189   :  { %v7624_v24 = vpop.f32.mrf.mxu0 }
0x118a   :  { %v3052_v26 = vsel %vm152_vm1, %v7624_v24, -inf }
0x118b   :  { %3053 = vmax.xlane.f32.xlu1 %v3052_v26 }
0x118c   :  { %5823 = vmatmul.msk.bf16.vlgmr.msrb.gmra.mxu0 %vm1121_vm5, %v4231_v32 }
0x118d   :  { %v2412_v14 = vpop.xlane.xlu0 %2411 }
0x118e   :  { %v2458_v23 = vsub.f32 %v2326_v3, %v2412_v14 }
0x1190   :  { %v2474_v51 = vmul.f32 1.442695, %v2458_v23 }
0x1191   :  { %v7631_v61 = vpop.f32.mrf.mxu0 }
0x1192   :  { %6133 = vpow2.f32 %v2474_v51  ;;  %v3055_v58 = vsel %vm152_vm1, %v7631_v61, -inf }
0x1193   :  { %3056 = vmax.xlane.f32.xlu0 %v3055_v58 }
0x1195   :  { %v2415_v34 = vpop.xlane.xlu1 %2414  ;;  %v7643_v9 = vpop.xlane.xlu0 %2435 }
0x1196   :  { %v2459_v59 = vsub.f32 %v2328_v55, %v2415_v34 }
0x1197   :  { %v7635_v1 = vpop.xlane.xlu2 %2438 }
0x1198   :  { %v7637_v16 = vpop.eup %6133  ;;  %v2476_v0 = vmul.f32 1.442695, %v2459_v59 }
0x1199   :  { %v2506_v62 = vsel %vm152_vm1, %v7637_v16, 0.0  ;;  %v7676_v23 = vpop.f32.mrf.mxu0 }
0x119a   :  { %2507 = vadd.xlane.f32.xlu2 %v2506_v62  ;;  %6135 = vpow2.f32 %v2476_v0  ;;  %v3058_v34 = vsel %vm152_vm1, %v7676_v23, -inf }
0x119c   :  { %5824 = vmatmul.msk.bf16.gmra.mxu0 %vm1121_vm5, %v7561_v47 }
0x119f   :  { %v2418_v2 = vpop.xlane.xlu2 %2417 }
0x11a0   :  { %v2460_v37 = vsub.f32 %v2331_v12, %v2418_v2  ;;  %v7645_v3 = vpop.eup %6135 }
0x11a1   :  { %v2509_v55 = vsel %vm152_vm1, %v7645_v3, 0.0  ;;  %v7687_v0 = vpop.f32.mrf.mxu0 }
0x11a2   :  { %v2478_v41 = vmul.f32 1.442695, %v2460_v37  ;;  %2510 = vadd.xlane.f32.xlu0 %v2509_v55  ;;  %v2440_v37 = vsel %vm152_vm1, %v7598_v50, -inf }
0x11a4   :  { %6137 = vpow2.f32 %v2478_v41 }
0x11a5   :  { %v2421_v25 = vpop.xlane.xlu0 %2420 }
0x11a6   :  { %v2461_v52 = vsub.f32 %v2333_v39, %v2421_v25  ;;  %v3061_v25 = vsel %vm152_vm1, %v7687_v0, -inf }
0x11a8   :  { %v2480_v49 = vmul.f32 1.442695, %v2461_v52 }
0x11a9   :  { %v7697_v41 = vpop.f32.mrf.mxu0 }
0x11aa   :  { %v7649_v17 = vpop.eup %6137  ;;  %6139 = vpow2.f32 %v2480_v49  ;;  %v3064_v55 = vsel %vm152_vm1, %v7697_v41, -inf }
0x11ab   :  { %v2512_v47 = vsel %vm152_vm1, %v7649_v17, 0.0 }
0x11ac   :  { %2513 = vadd.xlane.f32.xlu1 %v2512_v47  ;;  %5825 = vmatmul.msk.bf16.gmra.mxu0 %vm1121_vm5, %v7563_v44  ;;  %v2449_v47 = vsel %vm152_vm1, %v7614_v6, -inf }
0x11ad   :  { %v2424_v12 = vpop.xlane.xlu1 %2423 }
0x11ae   :  { %v2462_v27 = vsub.f32 %v7584_v46, %v2424_v12 }
0x11b0   :  { %v7656_v54 = vpop.eup %6139  ;;  %v2482_v40 = vmul.f32 1.442695, %v2462_v27 }
0x11b1   :  { %v2515_v39 = vsel %vm152_vm1, %v7656_v54, 0.0 }
0x11b2   :  { %6141 = vpow2.f32 %v2482_v40  ;;  %2516 = vadd.xlane.f32.xlu2 %v2515_v39  ;;  %v7709_v39 = vpop.f32.mrf.mxu0 }
0x11b5   :  { %v2427_v5 = vpop.xlane.xlu2 %2426 }
0x11b6   :  { %v2463_v22 = vsub.f32 %v7589_v53, %v2427_v5 }
0x11b8   :  { %v7661_v56 = vpop.eup %6141  ;;  %v2484_v18 = vmul.f32 1.442695, %v2463_v22 }
0x11b9   :  { %v2518_v44 = vsel %vm152_vm1, %v7661_v56, 0.0 }
0x11ba   :  { %6143 = vpow2.f32 %v2484_v18  ;;  %2519 = vadd.xlane.f32.xlu0 %v2518_v44  ;;  %v3067_v44 = vsel %vm152_vm1, %v7709_v39, -inf }
0x11bd   :  { %v2430_v53 = vpop.xlane.xlu0 %2429 }
0x11be   :  { %v2464_v26 = vsub.f32 %v7593_v20, %v2430_v53  ;;  %v2443_v20 = vsel %vm152_vm1, %v7606_v29, -inf }
0x11c0   :  { %v7665_v46 = vpop.eup %6143  ;;  %v2486_v14 = vmul.f32 1.442695, %v2464_v26 }
0x11c1   :  { %v2521_v32 = vsel %vm152_vm1, %v7665_v46, 0.0 }
0x11c2   :  { %2522 = vadd.xlane.f32.xlu2 %v2521_v32  ;;  %6145 = vpow2.f32 %v2486_v14 }
0x11c5   :  { %4236 = vrot.lane.b32.xlu1 %v7450_v38, %s6479_s11  ;;  %v2433_v51 = vpop.xlane.xlu1 %2432 }
0x11c6   :  { %v2465_v58 = vsub.f32 %v7600_v57, %v2433_v51  ;;  %v2446_v57 = vsel %vm152_vm1, %v7611_v11, -inf }
0x11c8   :  { %v2488_v38 = vmul.f32 1.442695, %v2465_v58  ;;  %v7681_v59 = vpop.eup %6145 }
0x11ca   :  { %6147 = vpow2.f32 %v2488_v38 }
0x11ce   :  { %4292 = vrot.lane.b32.xlu0 %v7530_v7, %s6479_s11  ;;  %v2524_v7 = vsel %vm152_vm1, %v7681_v59, 0.0 }
0x11d0   :  { %v7689_v62 = vpop.eup %6147 }
0x11d1   :  { %v2527_v2 = vsel %vm152_vm1, %v7689_v62, 0.0 }
0x11da   :  { %3650 = vrot.lane.b32.xlu2 %v7493_v33, %s6467_s14 }
0x11ef   :  { %3059 = vmax.xlane.f32.xlu1 %v3058_v34 }
0x11f7   :  { %2525 = vadd.xlane.f32.xlu1 %v2524_v7 }
0x11f8   :  { %2444 = vmax.xlane.f32.xlu0 %v2443_v20  ;;  %v2455_v20 = vsel %vm152_vm1, %v7620_v63, -inf }
0x11fe   :  { %v7711_v5 = vpop.xlane.xlu1 %3053 }
0x11ff   :  { %2447 = vmax.xlane.f32.xlu1 %v2446_v57 }
0x1200   :  { %2528 = vadd.xlane.f32.xlu0 %v2527_v2 }
0x1203   :  { %2441 = vmax.xlane.f32.xlu2 %v2440_v37 }
0x1206   :  { %v7703_v49 = vpop.xlane.xlu0 %3056 }
0x1207   :  { %3065 = vmax.xlane.f32.xlu1 %v3064_v55 }
0x120b   :  { %3062 = vmax.xlane.f32.xlu2 %v3061_v25  ;;  %v7719_v25 = vpop.f32.mrf.mxu0 }
0x120d   :  { %v2508_v52 = vpop.xlane.xlu2 %2507 }
0x120e   :  { %6149 = vrcp.f32 %v2508_v52  ;;  %v2565_v53 = vand.u32 2147483648, %v2508_v52  ;;  %vm2559_vm14 = vweird.f32 %v2508_v52  ;;  %v2563_v14 = vand.u32 2147483647, %v2508_v52 }
0x1210   :  { %v2566_v34 = vor.u32 1.1754944e-38, %v2565_v53  ;;  %vm2564_vm3 = vcmp.eq.f32.partialorder %v2563_v14, 8.507059e+37  ;;  %v3070_v14 = vsel %vm152_vm1, %v7719_v25, -inf }
0x1213   :  { %2450 = vmax.xlane.f32.xlu2 %v2449_v47 }
0x1214   :  { %v6150_v12 = vpop.eup %6149  ;;  %4284 = vrot.lane.b32.xlu0 %v7458_v10, %s6479_s11 }
0x1215   :  { %v2555_v27 = vmul.f32 %v6150_v12, %v2508_v52  ;;  %v2511_v40 = vpop.xlane.xlu0 %2510  ;;  %vm2560_vm13 = vweird.f32 %v6150_v12 }
0x1216   :  { %6151 = vrcp.f32 %v2511_v40  ;;  %vm2561_vm15 = vmor %vm2559_vm14, %vm2560_vm13  ;;  %v2580_v7 = vand.u32 2147483648, %v2511_v40  ;;  %v2578_v37 = vand.u32 2147483647, %v2511_v40  ;;  %vm2574_vm4 = vweird.f32 %v2511_v40 }
0x1217   :  { %v2556_v22 = vsub.f32 1.0, %v2555_v27 }
0x1218   :  { %v2581_v47 = vor.u32 1.1754944e-38, %v2580_v7  ;;  %vm2579_vm8 = vcmp.eq.f32.partialorder %v2578_v37, 8.507059e+37 }
0x1219   :  { %v2557_v18 = vmul.f32 %v6150_v12, %v2556_v22 }
0x121b   :  { %v2558_v32 = vadd.f32 %v6150_v12, %v2557_v18  ;;  %3068 = vmax.xlane.f32.xlu2 %v3067_v44  ;;  %v2466_v44 = vsub.f32 %v7571_v19, %v7643_v9 }
0x121c   :  { %v6152_v26 = vpop.eup %6151 }
0x121d   :  { %v2570_v10 = vmul.f32 %v6152_v26, %v2511_v40  ;;  %v2562_v51 = vsel %vm2561_vm15, %v6150_v12, %v2558_v32  ;;  %vm2575_vm6 = vweird.f32 %v6152_v26 }
0x121e   :  { %v2567_v57 = vsel %vm2564_vm3, %v2566_v34, %v2562_v51  ;;  %vm2576_vm7 = vmor %vm2574_vm4, %vm2575_vm6  ;;  %v2490_v34 = vmul.f32 1.442695, %v2466_v44 }
0x121f   :  { %v2514_v58 = vpop.xlane.xlu1 %2513  ;;  %v2571_v38 = vsub.f32 1.0, %v2570_v10  ;;  %v2568_v52 = vmul.f32 %v7637_v16, %v2567_v57 }
0x1220   :  { %6153 = vrcp.f32 %v2514_v58  ;;  %4286 = vrot.lane.b32.xlu1 %v7464_v36, %s6479_s11  ;;  %v2593_v7 = vand.u32 2147483647, %v2514_v58  ;;  %vm2589_vm12 = vweird.f32 %v2514_v58 }
0x1221   :  { %v2572_v2 = vmul.f32 %v6152_v26, %v2571_v38  ;;  %v2794_v40 = vpack.c.bf16 %v2568_v52, %v2568_v52  ;;  %v3667_v52 = vsel %vm1121_vm5, %v7629_v13, 0 }
0x1222   :  { %vm2594_vm14 = vcmp.eq.f32.partialorder %v2593_v7, 8.507059e+37 }
0x1223   :  { %2456 = vmax.xlane.f32.xlu2 %v2455_v20  ;;  %v2573_v55 = vadd.f32 %v6152_v26, %v2572_v2  ;;  %v2818_v19 = vunpack.c.l.b16 %v2794_v40 }
0x1225   :  { %v2517_v12 = vpop.xlane.xlu2 %2516  ;;  %v2577_v27 = vsel %vm2576_vm7, %v6152_v26, %v2573_v55  ;;  %v2595_v26 = vand.u32 2147483648, %v2514_v58 }
0x1226   :  { %v6154_v36 = vpop.eup %6153  ;;  %6155 = vrcp.f32 %v2517_v12  ;;  %v2582_v22 = vsel %vm2579_vm8, %v2581_v47, %v2577_v27  ;;  %v2610_v27 = vand.u32 2147483648, %v2517_v12  ;;  %vm2604_vm3 = vweird.f32 %v2517_v12 }
0x1227   :  { %v2585_v18 = vmul.f32 %v6154_v36, %v2514_v58  ;;  %v2583_v32 = vmul.f32 %v7645_v3, %v2582_v22  ;;  %vm2590_vm11 = vweird.f32 %v6154_v36  ;;  %v2596_v57 = vor.u32 1.1754944e-38, %v2595_v26 }
0x1228   :  { %4288 = vrot.lane.b32.xlu1 %v7476_v48, %s6479_s11  ;;  %vm2591_vm13 = vmor %vm2589_vm12, %vm2590_vm11  ;;  %v7729_v48 = vpop.f32.mrf.mxu0  ;;  %v2608_v22 = vand.u32 2147483647, %v2517_v12 }
0x1229   :  { %v2586_v53 = vsub.f32 1.0, %v2585_v18  ;;  %v2795_v16 = vpack.c.bf16 %v2583_v32, %v2583_v32  ;;  %v3073_v18 = vsel %vm152_vm1, %v7729_v48, -inf  ;;  %v2611_v32 = vor.u32 1.1754944e-38, %v2610_v27 }
0x122a   :  { %vm2609_vm4 = vcmp.eq.f32.partialorder %v2608_v22, 8.507059e+37  ;;  %v2467_v22 = vsub.f32 %v7577_v28, %v7635_v1 }
0x122b   :  { %v2587_v10 = vmul.f32 %v6154_v36, %v2586_v53  ;;  %3071 = vmax.xlane.f32.xlu2 %v3070_v14  ;;  %v2819_v38 = vunpack.c.l.b16 %v2795_v16 }
0x122c   :  { %v6156_v51 = vpop.eup %6155 }
0x122d   :  { %v2588_v9 = vadd.f32 %v6154_v36, %v2587_v10  ;;  %v2600_v3 = vmul.f32 %v6156_v51, %v2517_v12  ;;  %v2520_v20 = vpop.xlane.xlu0 %2519  ;;  %v2826_v37 = vpack.c.b16 %v2819_v38, %v2818_v19  ;;  %vm2605_vm15 = vweird.f32 %v6156_v51 }
0x122e   :  { %6157 = vrcp.f32 %v2520_v20  ;;  %vm2606_vm6 = vmor %vm2604_vm3, %vm2605_vm15  ;;  %v2625_v19 = vand.u32 2147483648, %v2520_v20  ;;  %vm2619_vm8 = vweird.f32 %v2520_v20 }
0x122f   :  { %v2601_v2 = vsub.f32 1.0, %v2600_v3  ;;  %v2592_v55 = vsel %vm2591_vm13, %v6154_v36, %v2588_v9  ;;  %6159 = vpow2.f32 %v2490_v34  ;;  %5783 = vmatmul.msk.bf16.vlgmr.msra.gmra.mxu1 %vm152_vm1, %v2826_v37  ;;  %v2623_v3 = vand.u32 2147483647, %v2520_v20 }
0x1230   :  { %v2597_v58 = vsel %vm2594_vm14, %v2596_v57, %v2592_v55  ;;  %3676 = vmatpush.bf16.xpose.msra.mxu1 %v3667_v52 }
0x1231   :  { %v2602_v47 = vmul.f32 %v6156_v51, %v2601_v2  ;;  %v2598_v13 = vmul.f32 %v7649_v17, %v2597_v58  ;;  %vm2624_vm12 = vcmp.eq.f32.partialorder %v2623_v3, 8.507059e+37 }
0x1233   :  { %v2603_v44 = vadd.f32 %v6156_v51, %v2602_v47  ;;  %3074 = vmax.xlane.f32.xlu2 %v3073_v18  ;;  %v2796_v38 = vpack.c.bf16 %v2598_v13, %v2598_v13  ;;  %v2626_v47 = vor.u32 1.1754944e-38, %v2625_v19 }
0x1234   :  { %v6158_v36 = vpop.eup %6157 }
0x1235   :  { %v2615_v40 = vmul.f32 %v6158_v36, %v2520_v20  ;;  %v2523_v53 = vpop.xlane.xlu2 %2522  ;;  %v2607_v16 = vsel %vm2606_vm6, %v6156_v51, %v2603_v44  ;;  %v7737_v14 = vpop.eup %6159  ;;  %vm2620_vm7 = vweird.f32 %v6158_v36  ;;  %v2820_v2 = vunpack.c.l.b16 %v2796_v38 }
0x1236   :  { %6161 = vrcp.f32 %v2523_v53  ;;  %v2612_v34 = vsel %vm2609_vm4, %v2611_v32, %v2607_v16  ;;  %v2530_v17 = vsel %vm152_vm1, %v7737_v14, 0.0  ;;  %vm2621_vm11 = vmor %vm2619_vm8, %vm2620_vm7  ;;  %v2640_v18 = vand.u32 2147483648, %v2523_v53  ;;  %v7748_v32 = vpop.f32.mrf.mxu0 }
0x1237   :  { %v2616_v10 = vsub.f32 1.0, %v2615_v40  ;;  %v4237_v26 = vpop.permute.xlu1 %4236  ;;  %v2613_v12 = vmul.f32 %v7656_v54, %v2612_v34  ;;  %v2452_v54 = vsel %vm152_vm1, %v7616_v15, -inf  ;;  %v2638_v13 = vand.u32 2147483647, %v2523_v53 }
0x1238   :  { %5826 = vmatmul.msk.bf16.gmra.mxu0 %vm1121_vm5, %v4237_v26  ;;  %vm2634_vm14 = vweird.f32 %v2523_v53  ;;  %v2492_v16 = vmul.f32 1.442695, %v2467_v22  ;;  %v3698_v28 = vsel %vm152_vm1, %v7748_v32, -inf }
0x1239   :  { %v2617_v7 = vmul.f32 %v6158_v36, %v2616_v10  ;;  %v2797_v9 = vpack.c.bf16 %v2613_v12, %v2613_v12  ;;  %v2641_v10 = vor.u32 1.1754944e-38, %v2640_v18  ;;  %vm2639_vm3 = vcmp.eq.f32.partialorder %v2638_v13, 8.507059e+37 }
0x123a   :  { %6163 = vpow2.f32 %v2492_v16 }
0x123b   :  { %v2618_v51 = vadd.f32 %v6158_v36, %v2617_v7  ;;  %2531 = vadd.xlane.f32.xlu2 %v2530_v17  ;;  %v2821_v37 = vunpack.c.l.b16 %v2797_v9 }
0x123c   :  { %v6162_v57 = vpop.eup %6161 }
0x123d   :  { %v2630_v55 = vmul.f32 %v6162_v57, %v2523_v53  ;;  %v2622_v52 = vsel %vm2621_vm11, %v6158_v36, %v2618_v51  ;;  %v2827_v27 = vpack.c.b16 %v2821_v37, %v2820_v2  ;;  %vm2635_vm13 = vweird.f32 %v6162_v57  ;;  %v7767_v2 = vpop.permute.xlu2 %3650 }
0x123e   :  { %2453 = vmax.xlane.f32.xlu0 %v2452_v54  ;;  %v2627_v20 = vsel %vm2624_vm12, %v2626_v47, %v2622_v52  ;;  %vm2636_vm15 = vmor %vm2634_vm14, %vm2635_vm13 }
0x123f   :  { %v2631_v58 = vsub.f32 1.0, %v2630_v55  ;;  %5784 = vmatmul.msk.bf16.gmra.mxu1 %vm152_vm1, %v2827_v27  ;;  %v2628_v36 = vmul.f32 %v7661_v56, %v2627_v20 }
0x1240   :  { %v7754_v17 = vpop.eup %6163 }
0x1241   :  { %v2632_v44 = vmul.f32 %v6162_v57, %v2631_v58  ;;  %v2798_v12 = vpack.c.bf16 %v2628_v36, %v2628_v36  ;;  %v2533_v56 = vsel %vm152_vm1, %v7754_v17, 0.0 }
0x1243   :  { %v2633_v40 = vadd.f32 %v6162_v57, %v2632_v44  ;;  %v2822_v7 = vunpack.c.l.b16 %v2798_v12 }
0x1245   :  { %v2637_v1 = vsel %vm2636_vm15, %v6162_v57, %v2633_v40  ;;  %v7765_v57 = vpop.f32.mrf.mxu0 }
0x1246   :  { %3699 = vmax.xlane.f32.xlu0 %v3698_v28  ;;  %v2642_v26 = vsel %vm2639_vm3, %v2641_v10, %v2637_v1 }
0x1247   :  { %v2643_v34 = vmul.f32 %v7665_v46, %v2642_v26  ;;  %v7763_v46 = vpop.permute.xlu0 %4292 }
0x1249   :  { %v2799_v38 = vpack.c.bf16 %v2643_v34, %v2643_v34 }
0x124b   :  { %v2823_v19 = vunpack.c.l.b16 %v2799_v38 }
0x124d   :  { %v2828_v53 = vpack.c.b16 %v2823_v19, %v2822_v7  ;;  %v7770_v18 = vpop.f32.mrf.mxu0 }
0x124f   :  { %5785 = vmatmul.msk.bf16.gmra.mxu1 %vm152_vm1, %v2828_v53 }
0x1252   :  { %2534 = vadd.xlane.f32.xlu1 %v2533_v56 }
0x125a   :  { %4290 = vrot.lane.b32.xlu0 %v7493_v33, %s6479_s11 }
0x1262   :  { %v7761_v9 = vpop.xlane.xlu1 %3059 }
0x126a   :  { %v2526_v51 = vpop.xlane.xlu1 %2525 }
0x126b   :  { %6165 = vrcp.f32 %v2526_v51  ;;  %v2445_v3 = vpop.xlane.xlu0 %2444  ;;  %v2655_v13 = vand.u32 2147483648, %v2526_v51  ;;  %vm2649_vm4 = vweird.f32 %v2526_v51  ;;  %v2653_v40 = vand.u32 2147483647, %v2526_v51 }
0x126c   :  { %v2469_v36 = vsub.f32 %v7606_v29, %v2445_v3 }
0x126d   :  { %v2656_v1 = vor.u32 1.1754944e-38, %v2655_v13  ;;  %vm2654_vm8 = vcmp.eq.f32.partialorder %v2653_v40, 8.507059e+37 }
0x126e   :  { %v2496_v34 = vmul.f32 1.442695, %v2469_v36 }
0x1271   :  { %v6166_v37 = vpop.eup %6165 }
0x1272   :  { %v2645_v55 = vmul.f32 %v6166_v37, %v2526_v51  ;;  %v2448_v54 = vpop.xlane.xlu1 %2447  ;;  %vm2650_vm6 = vweird.f32 %v6166_v37  ;;  %v7782_v51 = vpop.f32.mrf.mxu0 }
0x1273   :  { %v2470_v52 = vsub.f32 %v7611_v11, %v2448_v54  ;;  %v2529_v47 = vpop.xlane.xlu0 %2528  ;;  %vm2651_vm7 = vmor %vm2649_vm4, %vm2650_vm6 }
0x1274   :  { %v2646_v27 = vsub.f32 1.0, %v2645_v55  ;;  %6167 = vrcp.f32 %v2529_v47  ;;  %v2670_v38 = vand.u32 2147483648, %v2529_v47  ;;  %v2668_v53 = vand.u32 2147483647, %v2529_v47 }
0x1275   :  { %v2498_v33 = vmul.f32 1.442695, %v2470_v52  ;;  %vm2664_vm12 = vweird.f32 %v2529_v47 }
0x1276   :  { %v2647_v58 = vmul.f32 %v6166_v37, %v2646_v27  ;;  %v2442_v22 = vpop.xlane.xlu2 %2441  ;;  %v2671_v55 = vor.u32 1.1754944e-38, %v2670_v38  ;;  %vm2669_vm14 = vcmp.eq.f32.partialorder %v2668_v53, 8.507059e+37  ;;  %v3473_v38 = vunpack.c.l.b16 %v7516_v42 }
0x1277   :  { %6169 = vpow2.f32 %v2498_v33  ;;  %v2468_v20 = vsub.f32 %v7598_v50, %v2442_v22  ;;  %v3542_v42 = vunpack.c.l.b16 %v7521_v35  ;;  %v3102_v35 = vsub.f32 %v7676_v23, %v7761_v9 }
0x1278   :  { %v2648_v44 = vadd.f32 %v6166_v37, %v2647_v58 }
0x1279   :  { %v2494_v16 = vmul.f32 1.442695, %v2468_v20 }
0x127a   :  { %v6168_v11 = vpop.eup %6167  ;;  %v2652_v28 = vsel %vm2651_vm7, %v6166_v37, %v2648_v44 }
0x127b   :  { %v2660_v10 = vmul.f32 %v6168_v11, %v2529_v47  ;;  %6171 = vpow2.f32 %v2494_v16  ;;  %v2657_v19 = vsel %vm2654_vm8, %v2656_v1, %v2652_v28  ;;  %vm2665_vm11 = vweird.f32 %v6168_v11  ;;  %v7793_v16 = vpop.f32.mrf.mxu0 }
0x127c   :  { %6173 = vpow2.f32 %v2496_v34  ;;  %v2658_v37 = vmul.f32 %v7681_v59, %v2657_v19  ;;  %vm2666_vm13 = vmor %vm2664_vm12, %vm2665_vm11 }
0x127d   :  { %v7774_v26 = vpop.eup %6169  ;;  %v2661_v12 = vsub.f32 1.0, %v2660_v10 }
0x127e   :  { %v7776_v50 = vpop.xlane.xlu2 %3062  ;;  %v2542_v7 = vsel %vm152_vm1, %v7774_v26, 0.0  ;;  %v2800_v58 = vpack.c.bf16 %v2658_v37, %v2658_v37 }
0x127f   :  { %v2662_v29 = vmul.f32 %v6168_v11, %v2661_v12  ;;  %2543 = vadd.xlane.f32.xlu1 %v2542_v7  ;;  %v4307_v7 = vsel %vm1121_vm5, %v7763_v46, 0 }
0x1280   :  { %v2824_v59 = vunpack.c.l.b16 %v2800_v58 }
0x1281   :  { %v7780_v56 = vpop.eup %6171  ;;  %v2663_v3 = vadd.f32 %v6168_v11, %v2662_v29 }
0x1282   :  { %v2536_v54 = vsel %vm152_vm1, %v7780_v56, 0.0  ;;  %v7788_v20 = vpop.eup %6173 }
0x1283   :  { %2537 = vadd.xlane.f32.xlu2 %v2536_v54  ;;  %v2667_v52 = vsel %vm2666_vm13, %v6168_v11, %v2663_v3  ;;  %v2539_v36 = vsel %vm152_vm1, %v7788_v20, 0.0  ;;  %v7800_v28 = vpop.f32.mrf.mxu0  ;;  %v7814_v3 = vpack.c.b16 %v3473_v38, %v3473_v38  ;;  %v3704_v54 = vsel %vm152_vm1, %v7770_v18, -inf }
0x1284   :  { %v2672_v27 = vsel %vm2669_vm14, %v2671_v55, %v2667_v52  ;;  %v7831_v52 = vpop.xlane.xlu1 %3065 }
0x1285   :  { %v2673_v33 = vmul.f32 %v7689_v62, %v2672_v27 }
0x1286   :  { %v2451_v22 = vpop.xlane.xlu2 %2450  ;;  %v7827_v55 = vpop.permute.xlu0 %4284 }
0x1287   :  { %v2471_v44 = vsub.f32 %v7614_v6, %v2451_v22  ;;  %v2801_v47 = vpack.c.bf16 %v2673_v33, %v2673_v33  ;;  %v3713_v22 = vsel %vm152_vm1, %v7800_v28, -inf }
0x1289   :  { %v2500_v13 = vmul.f32 1.442695, %v2471_v44  ;;  %v2825_v40 = vunpack.c.l.b16 %v2801_v47 }
0x128b   :  { %6175 = vpow2.f32 %v2500_v13  ;;  %2540 = vadd.xlane.f32.xlu2 %v2539_v36  ;;  %v2829_v11 = vpack.c.b16 %v2825_v40, %v2824_v59  ;;  %v7810_v29 = vpop.f32.mrf.mxu0  ;;  %v3120_v59 = vmul.f32 1.442695, %v3102_v35 }
0x128d   :  { %5786 = vmatmul.msk.bf16.gmra.mxu1 %vm152_vm1, %v2829_v11 }
0x128e   :  { %v3069_v62 = vpop.xlane.xlu2 %3068 }
0x1291   :  { %v7796_v10 = vpop.eup %6175 }
0x1292   :  { %v2545_v6 = vsel %vm152_vm1, %v7796_v10, 0.0  ;;  %v7844_v47 = vpop.permute.xlu1 %4286 }
0x1293   :  { %2546 = vadd.xlane.f32.xlu1 %v2545_v6  ;;  %v7825_v37 = vpop.f32.mrf.mxu0 }
0x1294   :  { %v3719_v23 = vsel %vm152_vm1, %v7825_v37, -inf }
0x1296   :  { %v2457_v1 = vpop.xlane.xlu2 %2456 }
0x1297   :  { %v2473_v34 = vsub.f32 %v7620_v63, %v2457_v1  ;;  %v3105_v1 = vsub.f32 %v7709_v39, %v3069_v62 }
0x1299   :  { %v2504_v12 = vmul.f32 1.442695, %v2473_v34  ;;  %v3126_v38 = vmul.f32 1.442695, %v3105_v1 }
0x129a   :  { %v7852_v40 = vpop.permute.xlu1 %4288 }
0x129b   :  { %6177 = vpow2.f32 %v2504_v12  ;;  %v7842_v44 = vpop.f32.mrf.mxu0 }
0x129d   :  { %5795 = vmatmul.msk.bf16.vlgmr.msrb.gmra.mxu1 %vm1121_vm5, %v7604_v8  ;;  %v7823_v8 = vpack.c.b16 %v3542_v42, %v3542_v42 }
0x129e   :  { %4316 = vmatpush.bf16.xpose.msrb.mxu1 %v4307_v7  ;;  %v7808_v19 = vpop.xlane.xlu2 %3071 }
0x12a1   :  { %v7812_v53 = vpop.eup %6177 }
0x12a2   :  { %v2551_v63 = vsel %vm152_vm1, %v7812_v53, 0.0 }
0x12a3   :  { %3475 = vrot.lane.b32.xlu2 %v7814_v3, %s6478_s26  ;;  %2552 = vadd.xlane.f32.xlu1 %v2551_v63 }
0x12a6   :  { %v7821_v46 = vpop.xlane.xlu2 %3074 }
0x12ab   :  { %3544 = vrot.lane.b32.xlu2 %v7823_v8, %s6478_s26  ;;  %3705 = vmax.xlane.f32.xlu1 %v3704_v54 }
0x12ad   :  { %5796 = vmatmul.msk.bf16.gmra.mxu1 %vm1121_vm5, %v7609_v30 }
0x12ae   :  { %v2532_v27 = vpop.xlane.xlu2 %2531 }
0x12af   :  { %6179 = vrcp.f32 %v2532_v27  ;;  %vm2679_vm3 = vweird.f32 %v2532_v27  ;;  %v2683_v62 = vand.u32 2147483647, %v2532_v27 }
0x12b1   :  { %v2454_v33 = vpop.xlane.xlu0 %2453  ;;  %vm2684_vm4 = vcmp.eq.f32.partialorder %v2683_v62, 8.507059e+37 }
0x12b2   :  { %v2472_v58 = vsub.f32 %v7616_v15, %v2454_v33  ;;  %v7850_v15 = vpop.f32.mrf.mxu0  ;;  %v2685_v33 = vand.u32 2147483648, %v2532_v27 }
0x12b3   :  { %3714 = vmax.xlane.f32.xlu1 %v3713_v22 }
0x12b4   :  { %v2502_v13 = vmul.f32 1.442695, %v2472_v58 }
0x12b5   :  { %v6180_v30 = vpop.eup %6179 }
0x12b6   :  { %6181 = vpow2.f32 %v2502_v13  ;;  %v2675_v36 = vmul.f32 %v6180_v30, %v2532_v27  ;;  %vm2680_vm15 = vweird.f32 %v6180_v30 }
0x12b7   :  { %6183 = vpow2.f32 %v3120_v59  ;;  %vm2681_vm6 = vmor %vm2679_vm3, %vm2680_vm15 }
0x12b8   :  { %v2676_v34 = vsub.f32 1.0, %v2675_v36 }
0x12b9   :  { %v3700_v42 = vpop.xlane.xlu0 %3699 }
0x12ba   :  { %v2677_v7 = vmul.f32 %v6180_v30, %v2676_v34  ;;  %v7863_v54 = vpop.f32.mrf.mxu0  ;;  %v3746_v35 = vsub.f32 %v7748_v32, %v3700_v42  ;;  %v3701_v42 = vsel %vm152_vm1, %v7765_v57, -inf }
0x12bb   :  { %3720 = vmax.xlane.f32.xlu1 %v3719_v23  ;;  %v4344_v39 = vsel %vm152_vm1, %v7863_v54, -inf  ;;  %v2686_v23 = vor.u32 1.1754944e-38, %v2685_v33 }
0x12bc   :  { %v7848_v9 = vpop.eup %6181  ;;  %v3762_v13 = vmul.f32 1.442695, %v3746_v35 }
0x12bd   :  { %5797 = vmatmul.msk.bf16.gmra.mxu1 %vm1121_vm5, %v7551_v4  ;;  %v2548_v11 = vsel %vm152_vm1, %v7848_v9, 0.0  ;;  %v7858_v6 = vpop.eup %6183  ;;  %v2678_v4 = vadd.f32 %v6180_v30, %v2677_v7 }
0x12be   :  { %2549 = vadd.xlane.f32.xlu0 %v2548_v11  ;;  %v3154_v12 = vsel %vm152_vm1, %v7858_v6, 0.0  ;;  %v7872_v11 = vpop.f32.mrf.mxu1 }
0x12bf   :  { %v2682_v22 = vsel %vm2681_vm6, %v6180_v30, %v2678_v4  ;;  %9513 = vst [vmem:[#allocation6_spill] sm:$0xff] %v7872_v11  ;;  %v3100_v30 = vsub.f32 %v7624_v24, %v7711_v5 }
0x12c0   :  { %v2687_v1 = vsel %vm2684_vm4, %v2686_v23, %v2682_v22 }
0x12c1   :  { %v3116_v24 = vmul.f32 1.442695, %v3100_v30 }
0x12c3   :  { %3155 = vadd.xlane.f32.xlu1 %v3154_v12 }
0x12c5   :  { %v2535_v63 = vpop.xlane.xlu1 %2534 }
0x12c6   :  { %6185 = vrcp.f32 %v2535_v63  ;;  %v2700_v34 = vand.u32 2147483648, %v2535_v63  ;;  %v2698_v12 = vand.u32 2147483647, %v2535_v63  ;;  %vm2694_vm8 = vweird.f32 %v2535_v63 }
0x12c7   :  { %6187 = vpow2.f32 %v3126_v38  ;;  %v2688_v38 = vmul.f32 %v7737_v14, %v2687_v1  ;;  %v7886_v14 = vpop.f32.mrf.mxu1 }
0x12c8   :  { %6189 = vpow2.f32 %v3762_v13  ;;  %v2701_v4 = vor.u32 1.1754944e-38, %v2700_v34  ;;  %vm2699_vm12 = vcmp.eq.f32.partialorder %v2698_v12, 8.507059e+37  ;;  %9514 = vst [vmem:[#allocation7_spill] sm:$0xff] %v7886_v14  ;;  %v3106_v12 = vsub.f32 %v7719_v25, %v7808_v19 }
0x12c9   :  { %6191 = vpow2.f32 %v3116_v24 }
0x12ca   :  { %v3128_v30 = vmul.f32 1.442695, %v3106_v12 }
0x12cb   :  { %4345 = vmax.xlane.f32.xlu1 %v4344_v39  ;;  %v2802_v39 = vpack.c.bf16 %v2688_v38, %v2688_v38 }
0x12cc   :  { %v6186_v58 = vpop.eup %6185 }
0x12cd   :  { %v2690_v59 = vmul.f32 %v6186_v58, %v2535_v63  ;;  %5798 = vmatmul.msk.bf16.gmra.mxu1 %vm1121_vm5, %v7555_v31  ;;  %v7870_v36 = vpop.eup %6187  ;;  %vm2695_vm7 = vweird.f32 %v6186_v58  ;;  %v2882_v13 = vunpack.c.l.b16 %v2802_v39 }
0x12ce   :  { %v3163_v31 = vsel %vm152_vm1, %v7870_v36, 0.0  ;;  %vm2696_vm11 = vmor %vm2694_vm8, %vm2695_vm7  ;;  %v7883_v33 = vpop.eup %6189 }
0x12cf   :  { %v2691_v32 = vsub.f32 1.0, %v2690_v59  ;;  %v3794_v63 = vsel %vm152_vm1, %v7883_v33, 0.0  ;;  %v7901_v34 = vpop.f32.mrf.mxu1 }
0x12d0   :  { %9515 = vst [vmem:[#allocation8_spill] sm:$0xff] %v7901_v34 }
0x12d1   :  { %v2692_v27 = vmul.f32 %v6186_v58, %v2691_v32  ;;  %v3101_v32 = vsub.f32 %v7631_v61, %v7703_v49 }
0x12d2   :  { %4118 = vrot.lane.b32.xlu0 %v7814_v3, %s6467_s14 }
0x12d3   :  { %v2693_v7 = vadd.f32 %v6186_v58, %v2692_v27  ;;  %3164 = vadd.xlane.f32.xlu1 %v3163_v31  ;;  %v3118_v27 = vmul.f32 1.442695, %v3101_v32 }
0x12d4   :  { %3702 = vmax.xlane.f32.xlu2 %v3701_v42 }
0x12d5   :  { %v2697_v35 = vsel %vm2696_vm11, %v6186_v58, %v2693_v7  ;;  %v3707_v58 = vsel %vm152_vm1, %v7782_v51, -inf  ;;  %6193 = vpow2.f32 %v3118_v27 }
0x12d6   :  { %v2702_v5 = vsel %vm2699_vm12, %v2701_v4, %v2697_v35  ;;  %6195 = vpow2.f32 %v3128_v30 }
0x12d7   :  { %v2703_v62 = vmul.f32 %v7754_v17, %v2702_v5  ;;  %v7895_v17 = vpop.eup %6191  ;;  %v7909_v61 = vpop.f32.mrf.mxu1  ;;  %v3103_v5 = vsub.f32 %v7687_v0, %v7776_v50 }
0x12d8   :  { %v3148_v1 = vsel %vm152_vm1, %v7895_v17, 0.0  ;;  %9516 = vst [vmem:[#allocation9_spill] sm:$0xff] %v7909_v61 }
0x12d9   :  { %v2803_v22 = vpack.c.bf16 %v2703_v62, %v2703_v62 }
0x12db   :  { %v2883_v59 = vunpack.c.l.b16 %v2803_v22  ;;  %3795 = vadd.xlane.f32.xlu1 %v3794_v63  ;;  %v7911_v49 = vpop.eup %6193 }
0x12dc   :  { %3708 = vmax.xlane.f32.xlu2 %v3707_v58  ;;  %v3151_v31 = vsel %vm152_vm1, %v7911_v49, 0.0  ;;  %v7915_v25 = vpop.eup %6195  ;;  %v3122_v58 = vmul.f32 1.442695, %v3103_v5 }
0x12dd   :  { %5811 = vmatmul.msk.bf16.vlgmr.msra.gmra.mxu1 %vm1121_vm5, %v7557_v43  ;;  %v2890_v23 = vpack.c.b16 %v2883_v59, %v2882_v13  ;;  %v4338_v43 = vsel %vm152_vm1, %v7842_v44, -inf  ;;  %v3166_v42 = vsel %vm152_vm1, %v7915_v25, 0.0  ;;  %v3716_v59 = vsel %vm152_vm1, %v7810_v29, -inf }
0x12df   :  { %5787 = vmatmul.msk.bf16.vlgmr.msrb.gmra.mxu2 %vm152_vm1, %v2890_v23  ;;  %v7917_v19 = vpop.f32.mrf.mxu1 }
0x12e0   :  { %9517 = vst [vmem:[#allocation10_spill] sm:$0xff] %v7917_v19 }
0x12e4   :  { %3149 = vadd.xlane.f32.xlu2 %v3148_v1 }
0x12e7   :  { %v7932_v22 = vpop.f32.mrf.mxu1 }
0x12e8   :  { %9518 = vst [vmem:[#allocation11_spill] sm:$0xff] %v7932_v22 }
0x12ec   :  { %4339 = vmax.xlane.f32.xlu2 %v4338_v43 }
0x12ed   :  { %5812 = vmatmul.msk.bf16.gmra.mxu1 %vm1121_vm5, %v7559_v60  ;;  %v3710_v60 = vsel %vm152_vm1, %v7793_v16, -inf }
0x12f2   :  { %v7919_v7 = vpop.xlane.xlu1 %2543 }
0x12f4   :  { %3152 = vadd.xlane.f32.xlu2 %v3151_v31  ;;  %v3104_v31 = vsub.f32 %v7697_v41, %v7831_v52 }
0x12f6   :  { %v2538_v38 = vpop.xlane.xlu2 %2537 }
0x12f7   :  { %6197 = vrcp.f32 %v2538_v38  ;;  %v2715_v13 = vand.u32 2147483648, %v2538_v38  ;;  %vm2709_vm14 = vweird.f32 %v2538_v38 }
0x12f8   :  { %6199 = vrcp.f32 %v7919_v7 }
0x12f9   :  { %v2716_v43 = vor.u32 1.1754944e-38, %v2715_v13  ;;  %v3124_v13 = vmul.f32 1.442695, %v3104_v31  ;;  %v3107_v31 = vsub.f32 %v7729_v48, %v7821_v46  ;;  %v2745_v48 = vand.u32 2147483648, %v7919_v7 }
0x12fc   :  { %3711 = vmax.xlane.f32.xlu0 %v3710_v60  ;;  %3167 = vadd.xlane.f32.xlu2 %v3166_v42 }
0x12fd   :  { %v6198_v4 = vpop.eup %6197  ;;  %5813 = vmatmul.msk.bf16.gmra.mxu1 %vm1121_vm5, %v7622_v45  ;;  %v2713_v45 = vand.u32 2147483647, %v2538_v38 }
0x12fe   :  { %v2705_v35 = vmul.f32 %v6198_v4, %v2538_v38  ;;  %v2541_v24 = vpop.xlane.xlu2 %2540  ;;  %v7930_v62 = vpop.eup %6199  ;;  %vm2710_vm13 = vweird.f32 %v6198_v4 }
0x12ff   :  { %6201 = vrcp.f32 %v2541_v24  ;;  %v2735_v0 = vmul.f32 %v7930_v62, %v7919_v7  ;;  %vm2711_vm15 = vmor %vm2709_vm14, %vm2710_vm13  ;;  %vm2714_vm3 = vcmp.eq.f32.partialorder %v2713_v45, 8.507059e+37  ;;  %v2728_v5 = vand.u32 2147483647, %v2541_v24 }
0x1300   :  { %v2706_v39 = vsub.f32 1.0, %v2705_v35  ;;  %v2730_v35 = vand.u32 2147483648, %v2541_v24  ;;  %vm2724_vm4 = vweird.f32 %v2541_v24  ;;  %vm2740_vm11 = vweird.f32 %v7930_v62 }
0x1301   :  { %v2736_v60 = vsub.f32 1.0, %v2735_v0  ;;  %vm2729_vm8 = vcmp.eq.f32.partialorder %v2728_v5, 8.507059e+37  ;;  %vm2739_vm13 = vweird.f32 %v7919_v7 }
0x1302   :  { %v2707_v63 = vmul.f32 %v6198_v4, %v2706_v39  ;;  %vm7970_vm14 = vmor %vm2739_vm13, %vm2740_vm11 }
0x1304   :  { %v2708_v23 = vadd.f32 %v6198_v4, %v2707_v63  ;;  %3717 = vmax.xlane.f32.xlu0 %v3716_v59  ;;  %v4341_v63 = vsel %vm152_vm1, %v7850_v15, -inf }
0x1305   :  { %v6202_v32 = vpop.eup %6201 }
0x1306   :  { %v2712_v50 = vsel %vm2711_vm15, %v6198_v4, %v2708_v23  ;;  %v2720_v1 = vmul.f32 %v6202_v32, %v2541_v24  ;;  %v3476_v27 = vpop.permute.xlu2 %3475  ;;  %v7938_v12 = vpop.xlane.xlu1 %2546  ;;  %vm2725_vm6 = vweird.f32 %v6202_v32  ;;  %v2731_v23 = vor.u32 1.1754944e-38, %v2730_v35 }
0x1307   :  { %v3490_v30 = vsel %vm249_vm2, %v3476_v27, 0  ;;  %6203 = vrcp.f32 %v7938_v12  ;;  %v2717_v42 = vsel %vm2714_vm3, %v2716_v43, %v2712_v50  ;;  %vm2726_vm7 = vmor %vm2724_vm4, %vm2725_vm6  ;;  %v2758_v46 = vand.u32 2147483647, %v7938_v12 }
0x1308   :  { %6205 = vpow2.f32 %v3122_v58  ;;  %v2721_v38 = vsub.f32 1.0, %v2720_v1  ;;  %3499 = vmatpush.bf16.msrb.mxu3 %v3490_v30  ;;  %v2718_v41 = vmul.f32 %v7780_v56, %v2717_v42  ;;  %v2737_v58 = vmul.f32 %v7930_v62, %v2736_v60 }
0x1309   :  { %6207 = vpow2.f32 %v3124_v13  ;;  %v2760_v60 = vand.u32 2147483648, %v7938_v12  ;;  %vm2754_vm15 = vweird.f32 %v7938_v12  ;;  %vm2759_vm6 = vcmp.eq.f32.partialorder %v2758_v46, 8.507059e+37  ;;  %v4291_v46 = vpop.permute.xlu0 %4290 }
0x130a   :  { %v2722_v4 = vmul.f32 %v6202_v32, %v2721_v38  ;;  %v7944_v39 = vpop.f32.mrf.mxu1  ;;  %v2804_v30 = vpack.c.bf16 %v2718_v41, %v2718_v41 }
0x130b   :  { %9519 = vst [vmem:[#allocation12_spill] sm:$0xff] %v7944_v39 }
0x130c   :  { %v2723_v59 = vadd.f32 %v6202_v32, %v2722_v4  ;;  %4342 = vmax.xlane.f32.xlu0 %v4341_v63  ;;  %v2884_v63 = vunpack.c.l.b16 %v2804_v30 }
0x130d   :  { %v6204_v52 = vpop.eup %6203  ;;  %5814 = vmatmul.msk.bf16.gmra.mxu1 %vm1121_vm5, %v7767_v2  ;;  %v2738_v2 = vadd.f32 %v7930_v62, %v2737_v58  ;;  %v2761_v58 = vor.u32 1.1754944e-38, %v2760_v60 }
0x130e   :  { %v7952_v45 = vpop.eup %6205  ;;  %v2727_v0 = vsel %vm2726_vm7, %v6202_v32, %v2723_v59  ;;  %v2750_v50 = vmul.f32 %v6204_v52, %v7938_v12  ;;  %v3545_v1 = vpop.permute.xlu2 %3544  ;;  %vm2755_vm12 = vweird.f32 %v6204_v52  ;;  %v3130_v59 = vmul.f32 1.442695, %v3107_v31 }
0x130f   :  { %v2732_v27 = vsel %vm2729_vm8, %v2731_v23, %v2727_v0  ;;  %v3559_v24 = vsel %vm249_vm2, %v3545_v1, 0  ;;  %v3157_v32 = vsel %vm152_vm1, %v7952_v45, 0.0  ;;  %vm2756_vm3 = vmor %vm2754_vm15, %vm2755_vm12  ;;  %v7976_v41 = vpop.eup %6207  ;;  %v2742_v0 = vsel %vm7970_vm14, %v7930_v62, %v2738_v2 }
0x1310   :  { %v2751_v56 = vsub.f32 1.0, %v2750_v50  ;;  %3568 = vmatpush.bf16.msra.mxu2 %v3559_v24  ;;  %v2733_v43 = vmul.f32 %v7788_v20, %v2732_v27  ;;  %v2743_v20 = vand.u32 2147483647, %v7919_v7  ;;  %v2746_v1 = vor.u32 1.1754944e-38, %v2745_v48 }
0x1311   :  { %6209 = vpow2.f32 %v3130_v59 }
0x1312   :  { %v2752_v38 = vmul.f32 %v6204_v52, %v2751_v56  ;;  %v7964_v42 = vpop.f32.mrf.mxu1  ;;  %v2805_v35 = vpack.c.bf16 %v2733_v43, %v2733_v43  ;;  %vm2744_vm4 = vcmp.eq.f32.partialorder %v2743_v20, 8.507059e+37  ;;  %v3160_v43 = vsel %vm152_vm1, %v7976_v41, 0.0 }
0x1313   :  { %9520 = vst [vmem:[#allocation13_spill] sm:$0xff] %v7964_v42  ;;  %v2747_v27 = vsel %vm2744_vm4, %v2746_v1, %v2742_v0 }
0x1314   :  { %v2753_v5 = vadd.f32 %v6204_v52, %v2752_v38  ;;  %3158 = vadd.xlane.f32.xlu0 %v3157_v32  ;;  %v2885_v13 = vunpack.c.l.b16 %v2805_v35  ;;  %v2748_v30 = vmul.f32 %v7774_v26, %v2747_v27  ;;  %v8000_v35 = vpop.f32.mrf.mxu0 }
0x1316   :  { %v7978_v23 = vpop.xlane.xlu1 %2552  ;;  %v2891_v7 = vpack.c.b16 %v2885_v13, %v2884_v63  ;;  %v2757_v50 = vsel %vm2756_vm3, %v6204_v52, %v2753_v5  ;;  %v2806_v32 = vpack.c.bf16 %v2748_v30, %v2748_v30 }
0x1317   :  { %v2762_v12 = vsel %vm2759_vm6, %v2761_v58, %v2757_v50  ;;  %v7993_v2 = vpop.eup %6209  ;;  %6211 = vrcp.f32 %v7978_v23  ;;  %vm2784_vm8 = vweird.f32 %v7978_v23 }
0x1318   :  { %5788 = vmatmul.msk.bf16.gmra.mxu2 %vm152_vm1, %v2891_v7  ;;  %v2763_v56 = vmul.f32 %v7796_v10, %v2762_v12  ;;  %v3169_v26 = vsel %vm152_vm1, %v7993_v2, 0.0  ;;  %v2790_v12 = vand.u32 2147483648, %v7978_v23 }
0x131a   :  { %v7984_v24 = vpop.f32.mrf.mxu1  ;;  %v2807_v52 = vpack.c.bf16 %v2763_v56, %v2763_v56 }
0x131b   :  { %v3076_v50 = vsel %vm152_vm1, %v7984_v24, -inf }
0x131c   :  { %3161 = vadd.xlane.f32.xlu0 %v3160_v43  ;;  %v2887_v60 = vunpack.c.l.b16 %v2807_v52  ;;  %v8012_v13 = vpop.f32.mrf.mxu0  ;;  %v2791_v52 = vor.u32 1.1754944e-38, %v2790_v12 }
0x131d   :  { %5827 = vmatmul.msk.bf16.vlgmr.msrb.gmra.mxu1 %vm1121_vm5, %v7827_v55  ;;  %v2886_v55 = vunpack.c.l.b16 %v2806_v32  ;;  %v6212_v48 = vpop.eup %6211 }
0x131e   :  { %v3706_v62 = vpop.xlane.xlu1 %3705  ;;  %v2780_v4 = vmul.f32 %v6212_v48, %v7978_v23  ;;  %vm2785_vm7 = vweird.f32 %v6212_v48 }
0x131f   :  { %v3748_v31 = vsub.f32 %v7770_v18, %v3706_v62  ;;  %v2892_v20 = vpack.c.b16 %v2887_v60, %v2886_v55  ;;  %vm2786_vm11 = vmor %vm2784_vm8, %vm2785_vm7 }
0x1320   :  { %v2781_v59 = vsub.f32 1.0, %v2780_v4 }
0x1321   :  { %v3766_v38 = vmul.f32 1.442695, %v3748_v31 }
0x1322   :  { %v7996_v10 = vpop.f32.mrf.mxu1  ;;  %v2782_v7 = vmul.f32 %v6212_v48, %v2781_v59 }
0x1323   :  { %6213 = vpow2.f32 %v3766_v38 }
0x1324   :  { %3170 = vadd.xlane.f32.xlu0 %v3169_v26  ;;  %v2783_v1 = vadd.f32 %v6212_v48, %v2782_v7  ;;  %v8019_v56 = vpop.f32.mrf.mxu0 }
0x1325   :  { %v4353_v32 = vsel %vm152_vm1, %v8019_v56, -inf }
0x1326   :  { %v2787_v62 = vsel %vm2786_vm11, %v6212_v48, %v2783_v1 }
0x1328   :  { %5789 = vmatmul.msk.bf16.gmra.mxu2 %vm152_vm1, %v2892_v20 }
0x1329   :  { %v8003_v18 = vpop.eup %6213 }
0x132a   :  { %v8006_v5 = vpop.f32.mrf.mxu1  ;;  %v3800_v63 = vsel %vm152_vm1, %v8003_v18, 0.0 }
0x132c   :  { %3801 = vadd.xlane.f32.xlu0 %v3800_v63 }
0x132d   :  { %5828 = vmatmul.msk.bf16.gmra.mxu1 %vm1121_vm5, %v7844_v47  ;;  %v2788_v47 = vand.u32 2147483647, %v7978_v23 }
0x132f   :  { %vm2789_vm12 = vcmp.eq.f32.partialorder %v2788_v47, 8.507059e+37 }
0x1330   :  { %v2792_v23 = vsel %vm2789_vm12, %v2791_v52, %v2787_v62 }
0x1331   :  { %v2550_v58 = vpop.xlane.xlu0 %2549  ;;  %v2793_v48 = vmul.f32 %v7812_v53, %v2792_v23 }
0x1332   :  { %6215 = vrcp.f32 %v2550_v58  ;;  %v8014_v0 = vpop.f32.mrf.mxu1  ;;  %v2775_v38 = vand.u32 2147483648, %v2550_v58  ;;  %v2773_v26 = vand.u32 2147483647, %v2550_v58  ;;  %vm2769_vm14 = vweird.f32 %v2550_v58 }
0x1333   :  { %v2809_v1 = vpack.c.bf16 %v2793_v48, %v2793_v48 }
0x1334   :  { %3077 = vmax.xlane.f32.xlu0 %v3076_v50  ;;  %v2776_v20 = vor.u32 1.1754944e-38, %v2775_v38  ;;  %vm2774_vm3 = vcmp.eq.f32.partialorder %v2773_v26, 8.507059e+37 }
0x1335   :  { %v2889_v62 = vunpack.c.l.b16 %v2809_v1  ;;  %v4347_v1 = vsel %vm152_vm1, %v8000_v35, -inf }
0x1338   :  { %v6216_v27 = vpop.eup %6215 }
0x1339   :  { %v2765_v43 = vmul.f32 %v6216_v27, %v2550_v58  ;;  %vm2770_vm13 = vweird.f32 %v6216_v27 }
0x133a   :  { %v8023_v30 = vpop.f32.mrf.mxu1  ;;  %vm2771_vm15 = vmor %vm2769_vm14, %vm2770_vm13 }
0x133b   :  { %v2766_v31 = vsub.f32 1.0, %v2765_v43 }
0x133c   :  { %4354 = vmax.xlane.f32.xlu0 %v4353_v32 }
0x133d   :  { %v2767_v60 = vmul.f32 %v6216_v27, %v2766_v31  ;;  %5829 = vmatmul.msk.bf16.gmra.mxu1 %vm1121_vm5, %v7852_v40 }
0x133f   :  { %v2768_v55 = vadd.f32 %v6216_v27, %v2767_v60 }
0x1341   :  { %v2772_v4 = vsel %vm2771_vm15, %v6216_v27, %v2768_v55  ;;  %v3715_v55 = vpop.xlane.xlu1 %3714 }
0x1342   :  { %v8030_v63 = vpop.f32.mrf.mxu1  ;;  %v2777_v59 = vsel %vm2774_vm3, %v2776_v20, %v2772_v4 }
0x1343   :  { %v2778_v7 = vmul.f32 %v7848_v9, %v2777_v59 }
0x1344   :  { %v4119_v50 = vpop.permute.xlu0 %4118 }
0x1345   :  { %v4133_v12 = vsel %vm249_vm2, %v4119_v50, 0  ;;  %v2808_v47 = vpack.c.bf16 %v2778_v7, %v2778_v7 }
0x1346   :  { %4142 = vmatpush.bf16.msra.mxu3 %v4133_v12 }
0x1347   :  { %v3703_v40 = vpop.xlane.xlu2 %3702  ;;  %v2888_v43 = vunpack.c.l.b16 %v2808_v47  ;;  %v8060_v47 = vpop.f32.mrf.mxu0 }
0x1348   :  { %v3747_v58 = vsub.f32 %v7765_v57, %v3703_v40 }
0x1349   :  { %v2893_v27 = vpack.c.b16 %v2889_v62, %v2888_v43  ;;  %v8058_v12 = vpop.xlane.xlu1 %3720 }
0x134a   :  { %v3764_v52 = vmul.f32 1.442695, %v3747_v58  ;;  %v8035_v53 = vpop.f32.mrf.mxu1 }
0x134b   :  { %5790 = vmatmul.msk.bf16.gmra.mxu2 %vm152_vm1, %v2893_v27  ;;  %v4350_v27 = vsel %vm152_vm1, %v8012_v13, -inf }
0x134c   :  { %6217 = vpow2.f32 %v3764_v52 }
0x134d   :  { %5830 = vmatmul.msk.bf16.gmra.mxu1 %vm1121_vm5, %v4291_v46 }
0x134f   :  { %v3709_v9 = vpop.xlane.xlu2 %3708 }
0x1350   :  { %v3749_v31 = vsub.f32 %v7782_v51, %v3709_v9  ;;  %v3079_v51 = vsel %vm152_vm1, %v7996_v10, -inf }
0x1352   :  { %v8040_v32 = vpop.eup %6217  ;;  %v3768_v38 = vmul.f32 1.442695, %v3749_v31  ;;  %v8042_v60 = vpop.f32.mrf.mxu1 }
0x1353   :  { %v3797_v57 = vsel %vm152_vm1, %v8040_v32, 0.0 }
0x1354   :  { %6219 = vpow2.f32 %v3768_v38  ;;  %3798 = vadd.xlane.f32.xlu2 %v3797_v57  ;;  %v8067_v57 = vpop.xlane.xlu1 %3155 }
0x1355   :  { %vm3231_vm3 = vweird.f32 %v8067_v57 }
0x1357   :  { %v3150_v26 = vpop.xlane.xlu2 %3149 }
0x1358   :  { %6221 = vrcp.f32 %v3150_v26  ;;  %v3207_v9 = vand.u32 2147483648, %v3150_v26  ;;  %vm3201_vm4 = vweird.f32 %v3150_v26  ;;  %v3205_v31 = vand.u32 2147483647, %v3150_v26 }
0x135a   :  { %v8046_v23 = vpop.eup %6219  ;;  %v8048_v20 = vpop.f32.mrf.mxu1  ;;  %vm3206_vm8 = vcmp.eq.f32.partialorder %v3205_v31, 8.507059e+37 }
0x135b   :  { %v3803_v46 = vsel %vm152_vm1, %v8046_v23, 0.0 }
0x135c   :  { %3080 = vmax.xlane.f32.xlu2 %v3079_v51  ;;  %3804 = vadd.xlane.f32.xlu1 %v3803_v46 }
0x135e   :  { %v6222_v48 = vpop.eup %6221 }
0x135f   :  { %v3197_v4 = vmul.f32 %v6222_v48, %v3150_v26  ;;  %v4340_v59 = vpop.xlane.xlu2 %4339  ;;  %vm3202_vm6 = vweird.f32 %v6222_v48 }
0x1360   :  { %v4386_v43 = vsub.f32 %v7842_v44, %v4340_v59  ;;  %vm3203_vm7 = vmor %vm3201_vm4, %vm3202_vm6  ;;  %v8069_v44 = vpop.f32.mrf.mxu0  ;;  %v3208_v59 = vor.u32 1.1754944e-38, %v3207_v9 }
0x1361   :  { %v3198_v50 = vsub.f32 1.0, %v3197_v4 }
0x1362   :  { %v8054_v7 = vpop.f32.mrf.mxu1  ;;  %v4402_v51 = vmul.f32 1.442695, %v4386_v43  ;;  %v4359_v43 = vsel %vm152_vm1, %v8069_v44, -inf }
0x1363   :  { %v3199_v40 = vmul.f32 %v6222_v48, %v3198_v50 }
0x1364   :  { %4348 = vmax.xlane.f32.xlu2 %v4347_v1 }
0x1365   :  { %v3200_v52 = vadd.f32 %v6222_v48, %v3199_v40  ;;  %v3751_v40 = vsub.f32 %v7800_v28, %v3715_v55 }
0x1367   :  { %v3153_v58 = vpop.xlane.xlu2 %3152  ;;  %v3204_v46 = vsel %vm3203_vm7, %v6222_v48, %v3200_v52  ;;  %v3772_v28 = vmul.f32 1.442695, %v3751_v40 }
0x1368   :  { %6223 = vrcp.f32 %v3153_v58  ;;  %v3222_v26 = vand.u32 2147483648, %v3153_v58  ;;  %v3220_v48 = vand.u32 2147483647, %v3153_v58  ;;  %vm3216_vm12 = vweird.f32 %v3153_v58 }
0x1369   :  { %6225 = vpow2.f32 %v4402_v51  ;;  %v8081_v51 = vpop.xlane.xlu1 %4345 }
0x136a   :  { %v8063_v62 = vpop.f32.mrf.mxu1  ;;  %v3223_v55 = vor.u32 1.1754944e-38, %v3222_v26  ;;  %vm3221_vm14 = vcmp.eq.f32.partialorder %v3220_v48, 8.507059e+37 }
0x136c   :  { %4351 = vmax.xlane.f32.xlu2 %v4350_v27  ;;  %v3209_v27 = vsel %vm3206_vm8, %v3208_v59, %v3204_v46 }
0x136e   :  { %v6224_v38 = vpop.eup %6223 }
0x136f   :  { %v3212_v4 = vmul.f32 %v6224_v38, %v3153_v58  ;;  %v3712_v50 = vpop.xlane.xlu0 %3711  ;;  %vm3217_vm11 = vweird.f32 %v6224_v38 }
0x1370   :  { %v3750_v1 = vsub.f32 %v7793_v16, %v3712_v50  ;;  %v3210_v16 = vmul.f32 %v7895_v17, %v3209_v27  ;;  %vm3218_vm13 = vmor %vm3216_vm12, %vm3217_vm11 }
0x1371   :  { %v3213_v21 = vsub.f32 1.0, %v3212_v4 }
0x1372   :  { %v3770_v39 = vmul.f32 1.442695, %v3750_v1  ;;  %v8073_v42 = vpop.f32.mrf.mxu1  ;;  %v3436_v4 = vpack.c.bf16 %v3210_v16, %v3210_v16 }
0x1373   :  { %v3214_v19 = vmul.f32 %v6224_v38, %v3213_v21  ;;  %v8079_v21 = vpop.eup %6225 }
0x1374   :  { %6227 = vpow2.f32 %v3770_v39  ;;  %4360 = vmax.xlane.f32.xlu2 %v4359_v43  ;;  %v4434_v1 = vsel %vm152_vm1, %v8079_v21, 0.0 }
0x1375   :  { %v3215_v52 = vadd.f32 %v6224_v38, %v3214_v19  ;;  %6229 = vrcp.f32 %v8067_v57 }
0x1376   :  { %6231 = vpow2.f32 %v3772_v28  ;;  %v8102_v28 = vpop.xlane.xlu1 %3164 }
0x1377   :  { %v3219_v9 = vsel %vm3218_vm13, %v6224_v38, %v3215_v52  ;;  %v3718_v31 = vpop.xlane.xlu0 %3717  ;;  %v3753_v38 = vsub.f32 %v7825_v37, %v8058_v12 }
0x1378   :  { %v3224_v46 = vsel %vm3221_vm14, %v3223_v55, %v3219_v9  ;;  %v3752_v39 = vsub.f32 %v7810_v29, %v3718_v31 }
0x1379   :  { %v3225_v17 = vmul.f32 %v7911_v49, %v3224_v46  ;;  %v3460_v49 = vunpack.c.l.b16 %v3436_v4  ;;  %v3776_v26 = vmul.f32 1.442695, %v3753_v38  ;;  %v3097_v46 = vsel %vm152_vm1, %v8042_v60, -inf }
0x137a   :  { %v8085_v19 = vpop.eup %6227  ;;  %v3774_v58 = vmul.f32 1.442695, %v3752_v39  ;;  %v8087_v50 = vpop.f32.mrf.mxu1 }
0x137b   :  { %v3437_v59 = vpack.c.bf16 %v3225_v17, %v3225_v17  ;;  %v3806_v40 = vsel %vm152_vm1, %v8085_v19, 0.0  ;;  %v6230_v29 = vpop.eup %6229 }
0x137c   :  { %6233 = vpow2.f32 %v3774_v58  ;;  %4435 = vadd.xlane.f32.xlu2 %v4434_v1  ;;  %3807 = vadd.xlane.f32.xlu1 %v3806_v40  ;;  %v3227_v48 = vmul.f32 %v6230_v29, %v8067_v57  ;;  %v8096_v52 = vpop.eup %6231  ;;  %vm3232_vm15 = vweird.f32 %v6230_v29 }
0x137d   :  { %v3461_v27 = vunpack.c.l.b16 %v3437_v59  ;;  %6235 = vpow2.f32 %v3776_v26  ;;  %v3237_v26 = vand.u32 2147483648, %v8067_v57  ;;  %vm3233_vm6 = vmor %vm3231_vm3, %vm3232_vm15  ;;  %vm3276_vm15 = vweird.f32 %v8102_v28 }
0x137e   :  { %v3228_v31 = vsub.f32 1.0, %v3227_v48 }
0x137f   :  { %v3468_v43 = vpack.c.b16 %v3461_v27, %v3460_v49  ;;  %v4343_v16 = vpop.xlane.xlu0 %4342 }
0x1380   :  { %v4387_v37 = vsub.f32 %v7850_v15, %v4343_v16  ;;  %v3809_v15 = vsel %vm152_vm1, %v8096_v52, 0.0  ;;  %v3229_v4 = vmul.f32 %v6230_v29, %v3228_v31 }
0x1381   :  { %5799 = vmatmul.msk.bf16.vlgmr.msrb.gmra.mxu3 %vm152_vm1, %v3468_v43  ;;  %v3235_v43 = vand.u32 2147483647, %v8067_v57 }
0x1382   :  { %v8100_v12 = vpop.eup %6233  ;;  %v4404_v55 = vmul.f32 1.442695, %v4387_v37  ;;  %v8104_v9 = vpop.f32.mrf.mxu1  ;;  %v3230_v40 = vadd.f32 %v6230_v29, %v3229_v4 }
0x1383   :  { %v3812_v39 = vsel %vm152_vm1, %v8100_v12, 0.0  ;;  %v8113_v58 = vpop.eup %6235  ;;  %vm3236_vm4 = vcmp.eq.f32.partialorder %v3235_v43, 8.507059e+37 }
0x1384   :  { %6237 = vpow2.f32 %v4404_v55  ;;  %3098 = vmax.xlane.f32.xlu2 %v3097_v46  ;;  %3813 = vadd.xlane.f32.xlu0 %v3812_v39  ;;  %v3815_v48 = vsel %vm152_vm1, %v8113_v58, 0.0  ;;  %v3234_v55 = vsel %vm3233_vm6, %v6230_v29, %v3230_v40  ;;  %v3238_v39 = vor.u32 1.1754944e-38, %v3237_v26 }
0x1385   :  { %6239 = vrcp.f32 %v8102_v28  ;;  %3810 = vadd.xlane.f32.xlu1 %v3809_v15  ;;  %v4356_v29 = vsel %vm152_vm1, %v8060_v47, -inf }
0x1386   :  { %v3239_v4 = vsel %vm3236_vm4, %v3238_v39, %v3234_v55 }
0x1387   :  { %v3159_v17 = vpop.xlane.xlu0 %3158  ;;  %v3240_v26 = vmul.f32 %v7858_v6, %v3239_v4 }
0x1388   :  { %6241 = vrcp.f32 %v3159_v17  ;;  %v3252_v22 = vand.u32 2147483648, %v3159_v17  ;;  %v3250_v57 = vand.u32 2147483647, %v3159_v17  ;;  %vm3246_vm8 = vweird.f32 %v3159_v17 }
0x138a   :  { %v8115_v38 = vpop.eup %6237  ;;  %v8117_v59 = vpop.f32.mrf.mxu1  ;;  %v3253_v55 = vor.u32 1.1754944e-38, %v3252_v22  ;;  %vm3251_vm12 = vcmp.eq.f32.partialorder %v3250_v57, 8.507059e+37  ;;  %v3722_v22 = vsel %vm152_vm1, %v8048_v20, -inf }
0x138b   :  { %v8119_v1 = vpop.eup %6239  ;;  %v3740_v49 = vsel %vm152_vm1, %v8117_v59, -inf  ;;  %v4437_v27 = vsel %vm152_vm1, %v8115_v38, 0.0 }
0x138c   :  { %3741 = vmax.xlane.f32.xlu2 %v3740_v49  ;;  %4438 = vadd.xlane.f32.xlu0 %v4437_v27  ;;  %v3272_v37 = vmul.f32 %v8119_v1, %v8102_v28  ;;  %v8132_v27 = vpop.xlane.xlu2 %3167  ;;  %vm3277_vm13 = vweird.f32 %v8119_v1 }
0x138d   :  { %3816 = vadd.xlane.f32.xlu1 %v3815_v48  ;;  %v3088_v48 = vsel %vm152_vm1, %v8023_v30, -inf  ;;  %vm8156_vm3 = vmor %vm3276_vm15, %vm3277_vm13  ;;  %vm3291_vm15 = vweird.f32 %v8132_v27 }
0x138e   :  { %v6242_v16 = vpop.eup %6241  ;;  %v3273_v49 = vsub.f32 1.0, %v3272_v37 }
0x138f   :  { %v3242_v31 = vmul.f32 %v6242_v16, %v3159_v17  ;;  %v3162_v46 = vpop.xlane.xlu0 %3161  ;;  %vm3247_vm7 = vweird.f32 %v6242_v16  ;;  %v3438_v17 = vpack.c.bf16 %v3240_v26, %v3240_v26  ;;  %v3082_v26 = vsel %vm152_vm1, %v8006_v5, -inf }
0x1390   :  { %6243 = vrcp.f32 %v3162_v46  ;;  %v3274_v37 = vmul.f32 %v8119_v1, %v3273_v49  ;;  %vm3248_vm11 = vmor %vm3246_vm8, %vm3247_vm7  ;;  %v3267_v6 = vand.u32 2147483648, %v3162_v46  ;;  %v3265_v49 = vand.u32 2147483647, %v3162_v46 }
0x1391   :  { %v3243_v15 = vsub.f32 1.0, %v3242_v31  ;;  %6245 = vrcp.f32 %v8132_v27  ;;  %vm3261_vm6 = vweird.f32 %v3162_v46 }
0x1392   :  { %vm3266_vm7 = vcmp.eq.f32.partialorder %v3265_v49, 8.507059e+37  ;;  %v3085_v49 = vsel %vm152_vm1, %v8014_v0, -inf }
0x1393   :  { %v3244_v34 = vmul.f32 %v6242_v16, %v3243_v15 }
0x1394   :  { %3089 = vmax.xlane.f32.xlu0 %v3088_v48 }
0x1395   :  { %v3245_v40 = vadd.f32 %v6242_v16, %v3244_v34  ;;  %4357 = vmax.xlane.f32.xlu1 %v4356_v29  ;;  %v3275_v29 = vadd.f32 %v8119_v1, %v3274_v37 }
0x1396   :  { %v6244_v43 = vpop.eup %6243 }
0x1397   :  { %v3249_v31 = vsel %vm3248_vm11, %v6242_v16, %v3245_v40  ;;  %v3257_v39 = vmul.f32 %v6244_v43, %v3162_v46  ;;  %v8141_v15 = vpop.xlane.xlu0 %3170  ;;  %v8149_v16 = vpop.eup %6245  ;;  %vm3262_vm14 = vweird.f32 %v6244_v43  ;;  %v3280_v40 = vand.u32 2147483647, %v8102_v28 }
0x1398   :  { %v3254_v48 = vsel %vm3251_vm12, %v3253_v55, %v3249_v31  ;;  %6247 = vrcp.f32 %v8141_v15  ;;  %vm3263_vm4 = vmor %vm3261_vm6, %vm3262_vm14  ;;  %vm3292_vm12 = vweird.f32 %v8149_v16  ;;  %vm3306_vm13 = vweird.f32 %v8141_v15 }
0x1399   :  { %v3258_v61 = vsub.f32 1.0, %v3257_v39  ;;  %v3255_v34 = vmul.f32 %v7952_v45, %v3254_v48  ;;  %v3282_v45 = vand.u32 2147483648, %v8102_v28  ;;  %v3279_v48 = vsel %vm8156_vm3, %v8119_v1, %v3275_v29  ;;  %vm3293_vm3 = vmor %vm3291_vm15, %vm3292_vm12 }
0x139a   :  { %v3287_v28 = vmul.f32 %v8149_v16, %v8132_v27  ;;  %vm3281_vm8 = vcmp.eq.f32.partialorder %v3280_v40, 8.507059e+37 }
0x139b   :  { %v3259_v4 = vmul.f32 %v6244_v43, %v3258_v61  ;;  %v3439_v57 = vpack.c.bf16 %v3255_v34, %v3255_v34  ;;  %v3462_v61 = vunpack.c.l.b16 %v3438_v17  ;;  %v3268_v34 = vor.u32 1.1754944e-38, %v3267_v6 }
0x139c   :  { %3723 = vmax.xlane.f32.xlu0 %v3722_v22  ;;  %v3283_v17 = vor.u32 1.1754944e-38, %v3282_v45  ;;  %v3288_v29 = vsub.f32 1.0, %v3287_v28 }
0x139d   :  { %v3260_v55 = vadd.f32 %v6244_v43, %v3259_v4  ;;  %3083 = vmax.xlane.f32.xlu1 %v3082_v26  ;;  %v3463_v31 = vunpack.c.l.b16 %v3439_v57  ;;  %v8169_v26 = vpop.f32.mrf.mxu1 }
0x139e   :  { %v6248_v39 = vpop.eup %6247  ;;  %v3284_v1 = vsel %vm3281_vm8, %v3283_v17, %v3279_v48  ;;  %v3743_v6 = vsel %vm152_vm1, %v8169_v26, -inf  ;;  %v3289_v40 = vmul.f32 %v8149_v16, %v3288_v29  ;;  %v3297_v17 = vand.u32 2147483648, %v8132_v27 }
0x139f   :  { %v3264_v22 = vsel %vm3263_vm4, %v6244_v43, %v3260_v55  ;;  %v3302_v11 = vmul.f32 %v6248_v39, %v8141_v15  ;;  %v8167_v4 = vpop.xlane.xlu0 %3801  ;;  %v3469_v46 = vpack.c.b16 %v3463_v31, %v3462_v61  ;;  %v3285_v45 = vmul.f32 %v7870_v36, %v3284_v1 }
0x13a0   :  { %v3269_v57 = vsel %vm3266_vm7, %v3268_v34, %v3264_v22  ;;  %vm3307_vm11 = vweird.f32 %v6248_v39  ;;  %v3290_v22 = vadd.f32 %v8149_v16, %v3289_v40  ;;  %v3310_v36 = vand.u32 2147483647, %v8141_v15  ;;  %v3796_v40 = vpop.xlane.xlu1 %3795 }
0x13a1   :  { %v3303_v37 = vsub.f32 1.0, %v3302_v11  ;;  %5800 = vmatmul.msk.bf16.gmra.mxu3 %vm152_vm1, %v3469_v46  ;;  %v3270_v43 = vmul.f32 %v7976_v41, %v3269_v57  ;;  %v3441_v28 = vpack.c.bf16 %v3285_v45, %v3285_v45  ;;  %v3312_v41 = vand.u32 2147483648, %v8141_v15  ;;  %vm8186_vm14 = vmor %vm3306_vm13, %vm3307_vm11 }
0x13a2   :  { %vm3311_vm6 = vcmp.eq.f32.partialorder %v3310_v36, 8.507059e+37  ;;  %vm3847_vm8 = vweird.f32 %v3796_v40 }
0x13a3   :  { %v3304_v55 = vmul.f32 %v6248_v39, %v3303_v37  ;;  %v3440_v61 = vpack.c.bf16 %v3270_v43, %v3270_v43  ;;  %v3295_v37 = vand.u32 2147483647, %v8132_v27  ;;  %v3465_v15 = vunpack.c.l.b16 %v3441_v28 }
0x13a4   :  { %3744 = vmax.xlane.f32.xlu0 %v3743_v6  ;;  %v3313_v29 = vor.u32 1.1754944e-38, %v3312_v41  ;;  %v3294_v43 = vsel %vm3293_vm3, %v8149_v16, %v3290_v22  ;;  %v3094_v16 = vsel %vm152_vm1, %v8035_v53, -inf }
0x13a5   :  { %3086 = vmax.xlane.f32.xlu1 %v3085_v49  ;;  %v3305_v48 = vadd.f32 %v6248_v39, %v3304_v55  ;;  %v3464_v46 = vunpack.c.l.b16 %v3440_v61  ;;  %v8198_v6 = vpop.f32.mrf.mxu1  ;;  %v3298_v55 = vor.u32 1.1754944e-38, %v3297_v17  ;;  %vm3296_vm4 = vcmp.eq.f32.partialorder %v3295_v37, 8.507059e+37 }
0x13a7   :  { %v3078_v11 = vpop.xlane.xlu0 %3077  ;;  %v3309_v1 = vsel %vm8186_vm14, %v6248_v39, %v3305_v48  ;;  %v3470_v49 = vpack.c.b16 %v3465_v15, %v3464_v46  ;;  %v3299_v39 = vsel %vm3296_vm4, %v3298_v55, %v3294_v43  ;;  %v3853_v43 = vand.u32 2147483648, %v3796_v40 }
0x13a8   :  { %v3108_v31 = vsub.f32 %v7984_v24, %v3078_v11  ;;  %v3091_v24 = vsel %vm152_vm1, %v8030_v63, -inf  ;;  %v3314_v45 = vsel %vm3311_vm6, %v3313_v29, %v3309_v1  ;;  %v3851_v55 = vand.u32 2147483647, %v3796_v40 }
0x13a9   :  { %v3315_v61 = vmul.f32 %v7993_v2, %v3314_v45  ;;  %v3725_v2 = vsel %vm152_vm1, %v8054_v7, -inf }
0x13aa   :  { %v3132_v34 = vmul.f32 1.442695, %v3108_v31  ;;  %v3300_v31 = vmul.f32 %v7915_v25, %v3299_v39  ;;  %vm3852_vm12 = vcmp.eq.f32.partialorder %v3851_v55, 8.507059e+37 }
0x13ab   :  { %v3443_v48 = vpack.c.bf16 %v3315_v61, %v3315_v61 }
0x13ac   :  { %6249 = vpow2.f32 %v3132_v34  ;;  %v3442_v41 = vpack.c.bf16 %v3300_v31, %v3300_v31  ;;  %v3854_v31 = vor.u32 1.1754944e-38, %v3853_v43 }
0x13ad   :  { %3092 = vmax.xlane.f32.xlu1 %v3091_v24  ;;  %6251 = vrcp.f32 %v3796_v40  ;;  %v8210_v28 = vpop.f32.mrf.mxu1  ;;  %v3467_v22 = vunpack.c.l.b16 %v3443_v48  ;;  %v3728_v24 = vsel %vm152_vm1, %v8063_v62, -inf }
0x13ae   :  { %v4365_v34 = vsel %vm152_vm1, %v8210_v28, -inf  ;;  %v3466_v46 = vunpack.c.l.b16 %v3442_v41  ;;  %6253 = vrcp.f32 %v8167_v4 }
0x13b0   :  { %v3471_v57 = vpack.c.b16 %v3467_v22, %v3466_v46 }
0x13b1   :  { %5801 = vmatmul.msk.bf16.gmra.mxu3 %vm152_vm1, %v3470_v49  ;;  %v3731_v49 = vsel %vm152_vm1, %v8073_v42, -inf }
0x13b2   :  { %v8202_v27 = vpop.eup %6249 }
0x13b3   :  { %v3172_v11 = vsel %vm152_vm1, %v8202_v27, 0.0  ;;  %v6252_v36 = vpop.eup %6251 }
0x13b4   :  { %3173 = vadd.xlane.f32.xlu2 %v3172_v11  ;;  %v3843_v17 = vmul.f32 %v6252_v36, %v3796_v40  ;;  %vm3848_vm7 = vweird.f32 %v6252_v36  ;;  %v8220_v29 = vpop.eup %6253 }
0x13b5   :  { %3095 = vmax.xlane.f32.xlu1 %v3094_v16  ;;  %vm3849_vm11 = vmor %vm3847_vm8, %vm3848_vm7  ;;  %v3873_v11 = vmul.f32 %v8220_v29, %v8167_v4  ;;  %vm3878_vm6 = vweird.f32 %v8220_v29  ;;  %vm3877_vm7 = vweird.f32 %v8167_v4 }
0x13b6   :  { %v3844_v25 = vsub.f32 1.0, %v3843_v17  ;;  %vm8246_vm8 = vmor %vm3877_vm7, %vm3878_vm6 }
0x13b7   :  { %v3874_v40 = vsub.f32 1.0, %v3873_v11 }
0x13b8   :  { %v3845_v37 = vmul.f32 %v6252_v36, %v3844_v25 }
0x13ba   :  { %v3846_v15 = vadd.f32 %v6252_v36, %v3845_v37 }
0x13bc   :  { %4366 = vmax.xlane.f32.xlu2 %v4365_v34  ;;  %v3850_v39 = vsel %vm3849_vm11, %v6252_v36, %v3846_v15  ;;  %v3734_v36 = vsel %vm152_vm1, %v8087_v50, -inf  ;;  %v3875_v15 = vmul.f32 %v8220_v29, %v3874_v40 }
0x13bd   :  { %3726 = vmax.xlane.f32.xlu1 %v3725_v2  ;;  %v3855_v22 = vsel %vm3852_vm12, %v3854_v31, %v3850_v39  ;;  %v3883_v31 = vand.u32 2147483648, %v8167_v4 }
0x13be   :  { %v3856_v25 = vmul.f32 %v7883_v33, %v3855_v22  ;;  %v3737_v33 = vsel %vm152_vm1, %v8104_v9, -inf }
0x13c1   :  { %5802 = vmatmul.msk.bf16.gmra.mxu3 %vm152_vm1, %v3471_v57 }
0x13c5   :  { %3729 = vmax.xlane.f32.xlu1 %v3728_v24 }
0x13c7   :  { %v3799_v1 = vpop.xlane.xlu2 %3798 }
0x13c8   :  { %6255 = vrcp.f32 %v3799_v1  ;;  %v3868_v2 = vand.u32 2147483648, %v3799_v1  ;;  %v3866_v57 = vand.u32 2147483647, %v3799_v1  ;;  %vm3862_vm14 = vweird.f32 %v3799_v1 }
0x13ca   :  { %vm3867_vm3 = vcmp.eq.f32.partialorder %v3866_v57, 8.507059e+37 }
0x13cd   :  { %3732 = vmax.xlane.f32.xlu1 %v3731_v49 }
0x13ce   :  { %v6256_v45 = vpop.eup %6255 }
0x13cf   :  { %v3858_v61 = vmul.f32 %v6256_v45, %v3799_v1  ;;  %v3081_v16 = vpop.xlane.xlu2 %3080  ;;  %v3805_v41 = vpop.xlane.xlu1 %3804  ;;  %vm3863_vm13 = vweird.f32 %v6256_v45 }
0x13d0   :  { %v3109_v48 = vsub.f32 %v7996_v10, %v3081_v16  ;;  %6257 = vrcp.f32 %v3805_v41  ;;  %vm3864_vm15 = vmor %vm3862_vm14, %vm3863_vm13  ;;  %v3869_v10 = vor.u32 1.1754944e-38, %v3868_v2  ;;  %v3898_v2 = vand.u32 2147483648, %v3805_v41 }
0x13d1   :  { %v3859_v34 = vsub.f32 1.0, %v3858_v61  ;;  %v4082_v61 = vpack.c.bf16 %v3856_v25, %v3856_v25  ;;  %vm3892_vm11 = vweird.f32 %v3805_v41 }
0x13d2   :  { %v3134_v46 = vmul.f32 1.442695, %v3109_v48 }
0x13d3   :  { %v3860_v17 = vmul.f32 %v6256_v45, %v3859_v34  ;;  %v3876_v34 = vadd.f32 %v8220_v29, %v3875_v15  ;;  %v4106_v40 = vunpack.c.l.b16 %v4082_v61  ;;  %v3899_v15 = vor.u32 1.1754944e-38, %v3898_v2 }
0x13d4   :  { %6259 = vpow2.f32 %v3134_v46  ;;  %v4362_v61 = vsel %vm152_vm1, %v8198_v6, -inf }
0x13d5   :  { %v3861_v24 = vadd.f32 %v6256_v45, %v3860_v17  ;;  %3735 = vmax.xlane.f32.xlu1 %v3734_v36  ;;  %v3881_v17 = vand.u32 2147483647, %v8167_v4  ;;  %v3884_v4 = vor.u32 1.1754944e-38, %v3883_v31 }
0x13d6   :  { %v6258_v37 = vpop.eup %6257 }
0x13d7   :  { %v3865_v43 = vsel %vm3864_vm15, %v6256_v45, %v3861_v24  ;;  %v4349_v49 = vpop.xlane.xlu2 %4348  ;;  %v3888_v39 = vmul.f32 %v6258_v37, %v3805_v41  ;;  %vm3893_vm4 = vweird.f32 %v6258_v37  ;;  %v3880_v24 = vsel %vm8246_vm8, %v8220_v29, %v3876_v34  ;;  %v8266_v34 = vpop.xlane.xlu0 %4354 }
0x13d8   :  { %v3870_v55 = vsel %vm3867_vm3, %v3869_v10, %v3865_v43  ;;  %v4389_v11 = vsub.f32 %v8000_v35, %v4349_v49  ;;  %vm3894_vm12 = vmor %vm3892_vm11, %vm3893_vm4  ;;  %vm3882_vm14 = vcmp.eq.f32.partialorder %v3881_v17, 8.507059e+37 }
0x13d9   :  { %v3871_v16 = vmul.f32 %v8040_v32, %v3870_v55  ;;  %v3889_v48 = vsub.f32 1.0, %v3888_v39  ;;  %v3896_v32 = vand.u32 2147483647, %v3805_v41 }
0x13da   :  { %v8235_v1 = vpop.eup %6259  ;;  %v4408_v45 = vmul.f32 1.442695, %v4389_v11  ;;  %v3885_v11 = vsel %vm3882_vm14, %v3884_v4, %v3880_v24 }
0x13db   :  { %v4083_v22 = vpack.c.bf16 %v3871_v16, %v3871_v16  ;;  %v3175_v35 = vsel %vm152_vm1, %v8235_v1, 0.0  ;;  %v3890_v46 = vmul.f32 %v6258_v37, %v3889_v48  ;;  %vm3897_vm13 = vcmp.eq.f32.partialorder %v3896_v32, 8.507059e+37 }
0x13dc   :  { %6261 = vpow2.f32 %v4408_v45  ;;  %3176 = vadd.xlane.f32.xlu0 %v3175_v35 }
0x13dd   :  { %v4107_v57 = vunpack.c.l.b16 %v4083_v22  ;;  %3738 = vmax.xlane.f32.xlu1 %v3737_v33  ;;  %v3891_v25 = vadd.f32 %v6258_v37, %v3890_v46 }
0x13df   :  { %v4114_v10 = vpack.c.b16 %v4107_v57, %v4106_v40  ;;  %v8253_v43 = vpop.xlane.xlu2 %4351  ;;  %v3895_v49 = vsel %vm3894_vm12, %v6258_v37, %v3891_v25  ;;  %v3886_v37 = vmul.f32 %v8003_v18, %v3885_v11 }
0x13e0   :  { %v3900_v55 = vsel %vm3897_vm13, %v3899_v15, %v3895_v49 }
0x13e1   :  { %5815 = vmatmul.msk.bf16.vlgmr.msra.gmra.mxu3 %vm152_vm1, %v4114_v10  ;;  %v3901_v29 = vmul.f32 %v8046_v23, %v3900_v55  ;;  %v4084_v31 = vpack.c.bf16 %v3886_v37, %v3886_v37 }
0x13e2   :  { %v8256_v39 = vpop.eup %6261 }
0x13e3   :  { %9529 = vst [vmem:[#allocation14_spill] sm:$0xff] %v8256_v39  ;;  %v4443_v41 = vsel %vm152_vm1, %v8256_v39, 0.0  ;;  %v4085_v33 = vpack.c.bf16 %v3901_v29, %v3901_v29  ;;  %v4108_v45 = vunpack.c.l.b16 %v4084_v31 }
0x13e4   :  { %4444 = vadd.xlane.f32.xlu0 %v4443_v41 }
0x13e5   :  { %4363 = vmax.xlane.f32.xlu1 %v4362_v61  ;;  %v4109_v48 = vunpack.c.l.b16 %v4085_v33 }
0x13e7   :  { %v8264_v16 = vpop.xlane.xlu2 %4360  ;;  %v4115_v35 = vpack.c.b16 %v4109_v48, %v4108_v45 }
0x13ef   :  { %v4436_v22 = vpop.xlane.xlu2 %4435  ;;  %v3808_v2 = vpop.xlane.xlu1 %3807 }
0x13f0   :  { %6263 = vrcp.f32 %v4436_v22  ;;  %v3913_v49 = vand.u32 2147483648, %v3808_v2  ;;  %v4493_v41 = vand.u32 2147483648, %v4436_v22  ;;  %vm3907_vm6 = vweird.f32 %v3808_v2 }
0x13f1   :  { %6265 = vrcp.f32 %v3808_v2  ;;  %5816 = vmatmul.msk.bf16.gmra.mxu3 %vm152_vm1, %v4115_v35  ;;  %v3911_v29 = vand.u32 2147483647, %v3808_v2  ;;  %vm4487_vm4 = vweird.f32 %v4436_v22  ;;  %v4491_v37 = vand.u32 2147483647, %v4436_v22 }
0x13f3   :  { %vm3912_vm11 = vcmp.eq.f32.partialorder %v3911_v29, 8.507059e+37  ;;  %vm4492_vm12 = vcmp.eq.f32.partialorder %v4491_v37, 8.507059e+37 }
0x13f6   :  { %v6264_v23 = vpop.eup %6263 }
0x13f7   :  { %v6266_v46 = vpop.eup %6265  ;;  %v4483_v32 = vmul.f32 %v6264_v23, %v4436_v22  ;;  %v8269_v40 = vpop.xlane.xlu0 %3813  ;;  %vm4488_vm3 = vweird.f32 %v6264_v23 }
0x13f8   :  { %v3903_v18 = vmul.f32 %v6266_v46, %v3808_v2  ;;  %v3811_v17 = vpop.xlane.xlu1 %3810  ;;  %6267 = vrcp.f32 %v8269_v40  ;;  %vm3908_vm15 = vweird.f32 %v6266_v46  ;;  %vm8279_vm8 = vmor %vm4487_vm4, %vm4488_vm3  ;;  %v3914_v2 = vor.u32 1.1754944e-38, %v3913_v49 }
0x13f9   :  { %v4484_v57 = vsub.f32 1.0, %v4483_v32  ;;  %6269 = vrcp.f32 %v3811_v17  ;;  %vm3909_vm7 = vmor %vm3907_vm6, %vm3908_vm15  ;;  %v3941_v39 = vand.u32 2147483647, %v8269_v40  ;;  %vm3922_vm14 = vweird.f32 %v3811_v17 }
0x13fa   :  { %v3904_v36 = vsub.f32 1.0, %v3903_v18  ;;  %v4494_v18 = vor.u32 1.1754944e-38, %v4493_v41  ;;  %vm3937_vm15 = vweird.f32 %v8269_v40 }
0x13fb   :  { %v4485_v25 = vmul.f32 %v6264_v23, %v4484_v57  ;;  %v3926_v57 = vand.u32 2147483647, %v3811_v17 }
0x13fc   :  { %v3905_v24 = vmul.f32 %v6266_v46, %v3904_v36  ;;  %v3928_v36 = vand.u32 2147483648, %v3811_v17 }
0x13fd   :  { %v4486_v4 = vadd.f32 %v6264_v23, %v4485_v25  ;;  %vm3927_vm6 = vcmp.eq.f32.partialorder %v3926_v57, 8.507059e+37 }
0x13fe   :  { %v3906_v10 = vadd.f32 %v6266_v46, %v3905_v24  ;;  %v8272_v15 = vpop.eup %6267  ;;  %v3929_v29 = vor.u32 1.1754944e-38, %v3928_v36 }
0x13ff   :  { %v8274_v55 = vpop.xlane.xlu0 %4438  ;;  %v6270_v11 = vpop.eup %6269  ;;  %v3933_v45 = vmul.f32 %v8272_v15, %v8269_v40  ;;  %v4490_v35 = vsel %vm8279_vm8, %v6264_v23, %v4486_v4  ;;  %v3943_v23 = vand.u32 2147483648, %v8269_v40  ;;  %vm8304_vm8 = vcmp.eq.f32.partialorder %v3941_v39, 8.507059e+37 }
0x1400   :  { %6271 = vrcp.f32 %v8274_v55  ;;  %v8277_v61 = vpop.xlane.xlu1 %3816  ;;  %v3918_v33 = vmul.f32 %v6270_v11, %v3811_v17  ;;  %v3910_v48 = vsel %vm3909_vm7, %v6266_v46, %v3906_v10  ;;  %vm3923_vm13 = vweird.f32 %v6270_v11 }
0x1401   :  { %v3915_v25 = vsel %vm3912_vm11, %v3914_v2, %v3910_v48  ;;  %v4495_v46 = vsel %vm4492_vm12, %v4494_v18, %v4490_v35  ;;  %v3934_v10 = vsub.f32 1.0, %v3933_v45  ;;  %6273 = vrcp.f32 %v8277_v61  ;;  %vm3924_vm3 = vmor %vm3922_vm14, %vm3923_vm13 }
0x1402   :  { %v3919_v32 = vsub.f32 1.0, %v3918_v33  ;;  %v3916_v31 = vmul.f32 %v8085_v19, %v3915_v25  ;;  %v4496_v48 = vmul.f32 %v8079_v21, %v4495_v46  ;;  %v4506_v17 = vand.u32 2147483647, %v8274_v55 }
0x1403   :  { %v3935_v2 = vmul.f32 %v8272_v15, %v3934_v10  ;;  %v4508_v18 = vand.u32 2147483648, %v8274_v55  ;;  %v3944_v57 = vor.u32 1.1754944e-38, %v3943_v23  ;;  %vm3938_vm7 = vweird.f32 %v8272_v15 }
0x1404   :  { %v8287_v22 = vpop.f32.mrf.mxu3  ;;  %v3920_v24 = vmul.f32 %v6270_v11, %v3919_v32  ;;  %vm4502_vm11 = vweird.f32 %v8274_v55  ;;  %v4722_v25 = vpack.c.bf16 %v4496_v48, %v4496_v48  ;;  %vm4507_vm12 = vcmp.eq.f32.partialorder %v4506_v17, 8.507059e+37  ;;  %vm8322_vm14 = vmor %vm3937_vm15, %vm3938_vm7 }
0x1405   :  { %v4509_v23 = vor.u32 1.1754944e-38, %v4508_v18 }
0x1406   :  { %v6272_v14 = vpop.eup %6271  ;;  %v3921_v4 = vadd.f32 %v6270_v11, %v3920_v24 }
0x1407   :  { %v4498_v49 = vmul.f32 %v6272_v14, %v8274_v55  ;;  %v3090_v41 = vpop.xlane.xlu0 %3089  ;;  %vm4503_vm4 = vweird.f32 %v6272_v14  ;;  %v3956_v55 = vand.u32 2147483647, %v8277_v61 }
0x1408   :  { %v3112_v37 = vsub.f32 %v8023_v30, %v3090_v41  ;;  %v8295_v33 = vpop.xlane.xlu1 %4357  ;;  %v3925_v45 = vsel %vm3924_vm3, %v6270_v11, %v3921_v4  ;;  %v6274_v41 = vpop.eup %6273  ;;  %v4086_v11 = vpack.c.bf16 %v3916_v31, %v3916_v31  ;;  %vm4504_vm13 = vmor %vm4502_vm11, %vm4503_vm4 }
0x1409   :  { %v4499_v35 = vsub.f32 1.0, %v4498_v49  ;;  %v3930_v32 = vsel %vm3927_vm6, %v3929_v29, %v3925_v45  ;;  %v3948_v10 = vmul.f32 %v6274_v41, %v8277_v61  ;;  %vm3953_vm3 = vweird.f32 %v6274_v41 }
0x140a   :  { %v3140_v24 = vmul.f32 1.442695, %v3112_v37  ;;  %v3931_v30 = vmul.f32 %v8096_v52, %v3930_v32  ;;  %v3936_v52 = vadd.f32 %v8272_v15, %v3935_v2  ;;  %v3958_v37 = vand.u32 2147483648, %v8277_v61 }
0x140b   :  { %v4500_v36 = vmul.f32 %v6272_v14, %v4499_v35  ;;  %v3949_v29 = vsub.f32 1.0, %v3948_v10  ;;  %v4110_v17 = vunpack.c.l.b16 %v4086_v11  ;;  %vm3952_vm6 = vweird.f32 %v8277_v61 }
0x140c   :  { %6275 = vpow2.f32 %v3140_v24  ;;  %v8309_v19 = vpop.f32.mrf.mxu3  ;;  %v4087_v4 = vpack.c.bf16 %v3931_v30, %v3931_v30  ;;  %vm3954_vm15 = vmor %vm3952_vm6, %vm3953_vm3  ;;  %vm3957_vm4 = vcmp.eq.f32.partialorder %v3956_v55, 8.507059e+37 }
0x140d   :  { %v4501_v46 = vadd.f32 %v6272_v14, %v4500_v36  ;;  %v3950_v18 = vmul.f32 %v6274_v41, %v3949_v29 }
0x140e   :  { %v4111_v32 = vunpack.c.l.b16 %v4087_v4 }
0x140f   :  { %v4505_v49 = vsel %vm4504_vm13, %v6272_v14, %v4501_v46  ;;  %v3724_v31 = vpop.xlane.xlu0 %3723  ;;  %v3951_v46 = vadd.f32 %v6274_v41, %v3950_v18 }
0x1410   :  { %v4510_v48 = vsel %vm4507_vm12, %v4509_v23, %v4505_v49  ;;  %v3754_v45 = vsub.f32 %v8048_v20, %v3724_v31  ;;  %v3084_v35 = vpop.xlane.xlu1 %3083  ;;  %v3940_v20 = vsel %vm8322_vm14, %v8272_v15, %v3936_v52  ;;  %v4116_v40 = vpack.c.b16 %v4111_v32, %v4110_v17  ;;  %v3099_v17 = vpop.xlane.xlu2 %3098 }
0x1411   :  { %v4511_v14 = vmul.f32 %v8115_v38, %v4510_v48  ;;  %v3110_v24 = vsub.f32 %v8006_v5, %v3084_v35  ;;  %v8336_v23 = vunpack.c.l.b16 %v4722_v25  ;;  %v3959_v5 = vor.u32 1.1754944e-38, %v3958_v37 }
0x1412   :  { %v8328_v36 = vpop.eup %6275  ;;  %v3778_v30 = vmul.f32 1.442695, %v3754_v45  ;;  %5817 = vmatmul.msk.bf16.gmra.mxu3 %vm152_vm1, %v4116_v40  ;;  %v3945_v15 = vsel %vm8304_vm8, %v3944_v57, %v3940_v20  ;;  %v3955_v52 = vsel %vm3954_vm15, %v6274_v41, %v3951_v46  ;;  %v4388_v57 = vsub.f32 %v7863_v54, %v8081_v51 }
0x1413   :  { %v4723_v11 = vpack.c.bf16 %v4511_v14, %v4511_v14  ;;  %v3136_v10 = vmul.f32 1.442695, %v3110_v24  ;;  %v3184_v38 = vsel %vm152_vm1, %v8328_v36, 0.0  ;;  %v3960_v4 = vsel %vm3957_vm4, %v3959_v5, %v3955_v52 }
0x1414   :  { %6277 = vpow2.f32 %v3778_v30  ;;  %3185 = vadd.xlane.f32.xlu0 %v3184_v38  ;;  %v3961_v25 = vmul.f32 %v8113_v58, %v3960_v4  ;;  %v3946_v55 = vmul.f32 %v8100_v12, %v3945_v15  ;;  %v4406_v12 = vmul.f32 1.442695, %v4388_v57 }
0x1415   :  { %v8341_v61 = vunpack.c.l.b16 %v4723_v11  ;;  %6279 = vpow2.f32 %v3136_v10  ;;  %v3115_v51 = vsub.f32 %v8042_v60, %v3099_v17 }
0x1416   :  { %v4089_v48 = vpack.c.bf16 %v3961_v25, %v3961_v25  ;;  %v4088_v35 = vpack.c.bf16 %v3946_v55, %v3946_v55 }
0x1417   :  { %v3146_v40 = vmul.f32 1.442695, %v3115_v51 }
0x1418   :  { %v3087_v29 = vpop.xlane.xlu1 %3086  ;;  %v4112_v2 = vunpack.c.l.b16 %v4088_v35 }
0x1419   :  { %v3111_v37 = vsub.f32 %v8014_v0, %v3087_v29  ;;  %v4113_v0 = vunpack.c.l.b16 %v4089_v48  ;;  %v8383_v29 = vpop.xlane.xlu2 %3741 }
0x141a   :  { %v8348_v31 = vpop.eup %6277 }
0x141b   :  { %v8350_v21 = vpop.eup %6279  ;;  %v3138_v41 = vmul.f32 1.442695, %v3111_v37  ;;  %v3818_v45 = vsel %vm152_vm1, %v8348_v31, 0.0  ;;  %v4117_v18 = vpack.c.b16 %v4113_v0, %v4112_v2 }
0x141c   :  { %3819 = vadd.xlane.f32.xlu0 %v3818_v45  ;;  %v3178_v58 = vsel %vm152_vm1, %v8350_v21, 0.0 }
0x141d   :  { %6281 = vpow2.f32 %v3138_v41  ;;  %3179 = vadd.xlane.f32.xlu1 %v3178_v58 }
0x141e   :  { %6283 = vpow2.f32 %v4406_v12 }
0x1420   :  { %v3093_v32 = vpop.xlane.xlu1 %3092 }
0x1421   :  { %v3113_v14 = vsub.f32 %v8030_v63, %v3093_v32 }
0x1422   :  { %5818 = vmatmul.msk.bf16.gmra.mxu3 %vm152_vm1, %v4117_v18 }
0x1423   :  { %v8359_v54 = vpop.eup %6281  ;;  %v3142_v24 = vmul.f32 1.442695, %v3113_v14 }
0x1424   :  { %v8363_v20 = vpop.f32.mrf.mxu3  ;;  %v3181_v30 = vsel %vm152_vm1, %v8359_v54, 0.0  ;;  %v8367_v46 = vpop.eup %6283 }
0x1425   :  { %6285 = vpow2.f32 %v3142_v24  ;;  %3182 = vadd.xlane.f32.xlu2 %v3181_v30  ;;  %v4440_v5 = vsel %vm152_vm1, %v8367_v46, 0.0  ;;  %v8407_v30 = vpop.f32.mrf.mxu1 }
0x1426   :  { %6287 = vpow2.f32 %v3146_v40  ;;  %v8409_v40 = vpop.xlane.xlu0 %3744 }
0x1427   :  { %v3174_v58 = vpop.xlane.xlu2 %3173 }
0x1428   :  { %v3096_v11 = vpop.xlane.xlu1 %3095  ;;  %vm3321_vm8 = vweird.f32 %v3174_v58 }
0x1429   :  { %v3114_v63 = vsub.f32 %v8035_v53, %v3096_v11 }
0x142b   :  { %v8370_v10 = vpop.eup %6285  ;;  %v3144_v60 = vmul.f32 1.442695, %v3114_v63 }
0x142c   :  { %v8372_v38 = vpop.f32.mrf.mxu3  ;;  %v3187_v15 = vsel %vm152_vm1, %v8370_v10, 0.0  ;;  %v8378_v4 = vpop.eup %6287 }
0x142d   :  { %6289 = vpow2.f32 %v3144_v60  ;;  %4441 = vadd.xlane.f32.xlu2 %v4440_v5  ;;  %3188 = vadd.xlane.f32.xlu1 %v3187_v15  ;;  %v3193_v48 = vsel %vm152_vm1, %v8378_v4, 0.0 }
0x1430   :  { %v3727_v52 = vpop.xlane.xlu1 %3726 }
0x1431   :  { %v3755_v53 = vsub.f32 %v8054_v7, %v3727_v52  ;;  %v4368_v52 = vsel %vm152_vm1, %v8407_v30, -inf }
0x1433   :  { %v8381_v25 = vpop.eup %6289  ;;  %v3780_v55 = vmul.f32 1.442695, %v3755_v53 }
0x1434   :  { %v8385_v37 = vpop.f32.mrf.mxu3  ;;  %v3190_v57 = vsel %vm152_vm1, %v8381_v25, 0.0 }
0x1435   :  { %6291 = vpow2.f32 %v3780_v55  ;;  %3194 = vadd.xlane.f32.xlu2 %v3193_v48  ;;  %3191 = vadd.xlane.f32.xlu1 %v3190_v57 }
0x1438   :  { %v3730_v41 = vpop.xlane.xlu1 %3729 }
0x1439   :  { %v3756_v45 = vsub.f32 %v8063_v62, %v3730_v41 }
0x143b   :  { %v8392_v7 = vpop.eup %6291  ;;  %v3782_v35 = vmul.f32 1.442695, %v3756_v45  ;;  %v4391_v45 = vsub.f32 %v8019_v56, %v8266_v34 }
0x143c   :  { %v8394_v0 = vpop.f32.mrf.mxu3  ;;  %v3821_v12 = vsel %vm152_vm1, %v8392_v7, 0.0 }
0x143d   :  { %6293 = vpow2.f32 %v3782_v35  ;;  %3822 = vadd.xlane.f32.xlu1 %v3821_v12  ;;  %v3327_v12 = vand.u32 2147483648, %v3174_v58 }
0x143e   :  { %6295 = vrcp.f32 %v3174_v58 }
0x1440   :  { %v3733_v32 = vpop.xlane.xlu1 %3732 }
0x1441   :  { %v3757_v2 = vsub.f32 %v8073_v42, %v3733_v32 }
0x1443   :  { %v8401_v14 = vpop.eup %6293  ;;  %v3784_v62 = vmul.f32 1.442695, %v3757_v2 }
0x1444   :  { %v6296_v18 = vpop.eup %6295  ;;  %v8403_v51 = vpop.f32.mrf.mxu3  ;;  %v3824_v24 = vsel %vm152_vm1, %v8401_v14, 0.0 }
0x1445   :  { %6297 = vpow2.f32 %v3784_v62  ;;  %3825 = vadd.xlane.f32.xlu0 %v3824_v24  ;;  %v3317_v11 = vmul.f32 %v6296_v18, %v3174_v58  ;;  %vm3322_vm7 = vweird.f32 %v6296_v18  ;;  %v4412_v62 = vmul.f32 1.442695, %v4391_v45 }
0x1446   :  { %vm3323_vm11 = vmor %vm3321_vm8, %vm3322_vm7 }
0x1447   :  { %v3318_v42 = vsub.f32 1.0, %v3317_v11 }
0x1448   :  { %v3736_v63 = vpop.xlane.xlu1 %3735 }
0x1449   :  { %v3758_v5 = vsub.f32 %v8087_v50, %v3736_v63  ;;  %v3319_v48 = vmul.f32 %v6296_v18, %v3318_v42  ;;  %v8424_v50 = vpop.f32.mrf.mxu1  ;;  %v3328_v63 = vor.u32 1.1754944e-38, %v3327_v12 }
0x144a   :  { %v4371_v32 = vsel %vm152_vm1, %v8424_v50, -inf }
0x144b   :  { %v8411_v60 = vpop.eup %6297  ;;  %v3786_v57 = vmul.f32 1.442695, %v3758_v5  ;;  %v3320_v35 = vadd.f32 %v6296_v18, %v3319_v48 }
0x144c   :  { %v8414_v15 = vpop.f32.mrf.mxu3  ;;  %v3827_v53 = vsel %vm152_vm1, %v8411_v60, 0.0 }
0x144d   :  { %4758 = vrot.lane.b32.xlu2 %v7814_v3, %s6479_s11  ;;  %4369 = vmax.xlane.f32.xlu0 %v4368_v52  ;;  %v3325_v3 = vand.u32 2147483647, %v3174_v58  ;;  %v3324_v24 = vsel %vm3323_vm11, %v6296_v18, %v3320_v35 }
0x144e   :  { %3828 = vadd.xlane.f32.xlu1 %v3827_v53 }
0x144f   :  { %v3177_v41 = vpop.xlane.xlu0 %3176  ;;  %vm3326_vm12 = vcmp.eq.f32.partialorder %v3325_v3, 8.507059e+37 }
0x1450   :  { %6299 = vrcp.f32 %v3177_v41  ;;  %v3329_v34 = vsel %vm3326_vm12, %v3328_v63, %v3324_v24  ;;  %v3342_v5 = vand.u32 2147483648, %v3177_v41  ;;  %v3340_v53 = vand.u32 2147483647, %v3177_v41 }
0x1451   :  { %6301 = vpow2.f32 %v3786_v57  ;;  %v3330_v48 = vmul.f32 %v8202_v27, %v3329_v34  ;;  %vm3336_vm14 = vweird.f32 %v3177_v41  ;;  %v8438_v24 = vpop.f32.mrf.mxu1 }
0x1452   :  { %6303 = vpow2.f32 %v4412_v62  ;;  %v3343_v18 = vor.u32 1.1754944e-38, %v3342_v5  ;;  %vm3341_vm6 = vcmp.eq.f32.partialorder %v3340_v53, 8.507059e+37 }
0x1455   :  { %4372 = vmax.xlane.f32.xlu0 %v4371_v32  ;;  %v3444_v32 = vpack.c.bf16 %v3330_v48, %v3330_v48  ;;  %v3760_v48 = vsub.f32 %v8117_v59, %v8383_v29 }
0x1456   :  { %v6300_v2 = vpop.eup %6299 }
0x1457   :  { %v3332_v11 = vmul.f32 %v6300_v2, %v3177_v41  ;;  %v8430_v42 = vpop.eup %6301  ;;  %vm3337_vm13 = vweird.f32 %v6300_v2  ;;  %v3529_v63 = vunpack.c.l.b16 %v3444_v32  ;;  %v3739_v32 = vpop.xlane.xlu1 %3738 }
0x1458   :  { %v3830_v58 = vsel %vm152_vm1, %v8430_v42, 0.0  ;;  %vm3338_vm3 = vmor %vm3336_vm14, %vm3337_vm13  ;;  %v8435_v12 = vpop.eup %6303 }
0x1459   :  { %v3333_v56 = vsub.f32 1.0, %v3332_v11  ;;  %v4390_v11 = vsub.f32 %v8012_v13, %v8253_v43  ;;  %v4449_v41 = vsel %vm152_vm1, %v8435_v12, 0.0  ;;  %v4374_v43 = vsel %vm152_vm1, %v8438_v24, -inf }
0x145b   :  { %v3334_v52 = vmul.f32 %v6300_v2, %v3333_v56  ;;  %v4410_v34 = vmul.f32 1.442695, %v4390_v11  ;;  %v4367_v11 = vpop.xlane.xlu2 %4366 }
0x145d   :  { %v3335_v57 = vadd.f32 %v6300_v2, %v3334_v52  ;;  %3831 = vadd.xlane.f32.xlu0 %v3830_v58  ;;  %6305 = vpow2.f32 %v4410_v34  ;;  %v8457_v52 = vpop.f32.mrf.mxu1 }
0x145f   :  { %v3339_v45 = vsel %vm3338_vm3, %v6300_v2, %v3335_v57  ;;  %v3790_v57 = vmul.f32 1.442695, %v3760_v48 }
0x1460   :  { %v3344_v35 = vsel %vm3341_vm6, %v3343_v18, %v3339_v45 }
0x1461   :  { %v3345_v3 = vmul.f32 %v8235_v1, %v3344_v35  ;;  %v4392_v1 = vsub.f32 %v8060_v47, %v8295_v33  ;;  %v4377_v47 = vsel %vm152_vm1, %v8457_v52, -inf  ;;  %v3761_v35 = vsub.f32 %v8169_v26, %v8409_v40 }
0x1462   :  { %v4395_v26 = vsub.f32 %v8210_v28, %v4367_v11 }
0x1463   :  { %v3445_v62 = vpack.c.bf16 %v3345_v3, %v3345_v3  ;;  %v4414_v53 = vmul.f32 1.442695, %v4392_v1  ;;  %v8459_v58 = vpop.eup %6305  ;;  %v3792_v3 = vmul.f32 1.442695, %v3761_v35  ;;  %v4364_v1 = vpop.xlane.xlu1 %4363 }
0x1464   :  { %v8442_v27 = vpop.f32.mrf.mxu3  ;;  %v4446_v33 = vsel %vm152_vm1, %v8459_v58, 0.0  ;;  %v4420_v34 = vmul.f32 1.442695, %v4395_v26 }
0x1465   :  { %v3530_v2 = vunpack.c.l.b16 %v3445_v62  ;;  %4450 = vadd.xlane.f32.xlu0 %v4449_v41  ;;  %6307 = vpow2.f32 %v4414_v53  ;;  %v8467_v18 = vpop.f32.mrf.mxu1  ;;  %v3759_v62 = vsub.f32 %v8104_v9, %v3739_v32  ;;  %v4393_v9 = vsub.f32 %v8069_v44, %v8264_v16 }
0x1466   :  { %6309 = vpow2.f32 %v3790_v57  ;;  %v4380_v59 = vsel %vm152_vm1, %v8467_v18, -inf }
0x1467   :  { %v3537_v56 = vpack.c.b16 %v3530_v2, %v3529_v63  ;;  %4184 = vrot.lane.b32.xlu1 %v7823_v8, %s6467_s14  ;;  %6311 = vpow2.f32 %v3792_v3  ;;  %v3788_v40 = vmul.f32 1.442695, %v3759_v62  ;;  %v4416_v53 = vmul.f32 1.442695, %v4393_v9 }
0x1469   :  { %5803 = vmatmul.msk.bf16.vlgmr.msra.gmra.mxu2 %vm152_vm1, %v3537_v56  ;;  %6313 = vpow2.f32 %v3788_v40 }
0x146a   :  { %6315 = vpow2.f32 %v4420_v34 }
0x146b   :  { %v8469_v45 = vpop.eup %6307  ;;  %6317 = vpow2.f32 %v4416_v53 }
0x146c   :  { %v8451_v13 = vpop.f32.mrf.mxu3  ;;  %v4452_v29 = vsel %vm152_vm1, %v8469_v45, 0.0  ;;  %v8478_v41 = vpop.eup %6309 }
0x146d   :  { %4375 = vmax.xlane.f32.xlu0 %v4374_v43  ;;  %v8480_v63 = vpop.f32.mrf.mxu1  ;;  %v3836_v2 = vsel %vm152_vm1, %v8478_v41, 0.0  ;;  %v8489_v43 = vpop.eup %6311 }
0x146e   :  { %v4383_v56 = vsel %vm152_vm1, %v8480_v63, -inf  ;;  %v3839_v28 = vsel %vm152_vm1, %v8489_v43, 0.0 }
0x146f   :  { %v8493_v48 = vpop.eup %6313 }
0x1470   :  { %v3833_v44 = vsel %vm152_vm1, %v8493_v48, 0.0  ;;  %v8501_v57 = vpop.eup %6315 }
0x1471   :  { %9536 = vst [vmem:[#allocation15_spill] sm:$0xff] %v8501_v57  ;;  %v4461_v32 = vsel %vm152_vm1, %v8501_v57, 0.0 }
0x1475   :  { %4378 = vmax.xlane.f32.xlu0 %v4377_v47  ;;  %v8495_v47 = vpop.xlane.xlu0 %4444 }
0x1476   :  { %4447 = vadd.xlane.f32.xlu2 %v4446_v33  ;;  %v4394_v33 = vsub.f32 %v8198_v6, %v4364_v1  ;;  %6319 = vrcp.f32 %v8495_v47  ;;  %vm4532_vm13 = vweird.f32 %v8495_v47  ;;  %v4538_v57 = vand.u32 2147483648, %v8495_v47 }
0x1478   :  { %v4418_v35 = vmul.f32 1.442695, %v4394_v33 }
0x147d   :  { %4381 = vmax.xlane.f32.xlu0 %v4380_v59  ;;  %v8505_v59 = vpop.eup %6317 }
0x147e   :  { %4453 = vadd.xlane.f32.xlu2 %v4452_v29  ;;  %v8507_v29 = vpop.eup %6319  ;;  %v4455_v11 = vsel %vm152_vm1, %v8505_v59, 0.0 }
0x147f   :  { %v4528_v26 = vmul.f32 %v8507_v29, %v8495_v47  ;;  %vm4533_vm7 = vweird.f32 %v8507_v29 }
0x1480   :  { %vm8546_vm6 = vmor %vm4532_vm13, %vm4533_vm7 }
0x1481   :  { %v4529_v9 = vsub.f32 1.0, %v4528_v26 }
0x1485   :  { %3837 = vadd.xlane.f32.xlu0 %v3836_v2 }
0x1486   :  { %4384 = vmax.xlane.f32.xlu2 %v4383_v56 }
0x1487   :  { %v8513_v40 = vpop.xlane.xlu0 %3185 }
0x148d   :  { %3840 = vadd.xlane.f32.xlu0 %v3839_v28 }
0x1490   :  { %v3180_v16 = vpop.xlane.xlu1 %3179 }
0x1491   :  { %3834 = vadd.xlane.f32.xlu1 %v3833_v44  ;;  %6321 = vrcp.f32 %v3180_v16  ;;  %vm3351_vm4 = vweird.f32 %v3180_v16 }
0x1492   :  { %6323 = vpow2.f32 %v4418_v35  ;;  %v4530_v35 = vmul.f32 %v8507_v29, %v4529_v9 }
0x1494   :  { %v4531_v17 = vadd.f32 %v8507_v29, %v4530_v35 }
0x1495   :  { %4462 = vadd.xlane.f32.xlu0 %v4461_v32 }
0x1497   :  { %v6322_v6 = vpop.eup %6321 }
0x1498   :  { %v3347_v3 = vmul.f32 %v6322_v6, %v3180_v16  ;;  %v3183_v62 = vpop.xlane.xlu2 %3182  ;;  %v8516_v56 = vpop.eup %6323  ;;  %vm3352_vm15 = vweird.f32 %v6322_v6 }
0x1499   :  { %6325 = vrcp.f32 %v3183_v62  ;;  %4456 = vadd.xlane.f32.xlu1 %v4455_v11  ;;  %9537 = vst [vmem:[#allocation16_spill] sm:$0xff] %v8516_v56  ;;  %v4458_v33 = vsel %vm152_vm1, %v8516_v56, 0.0  ;;  %v3357_v11 = vand.u32 2147483648, %v3180_v16  ;;  %vm8530_vm8 = vmor %vm3351_vm4, %vm3352_vm15  ;;  %vm3366_vm12 = vweird.f32 %v3183_v62 }
0x149a   :  { %v3348_v2 = vsub.f32 1.0, %v3347_v3  ;;  %6327 = vrcp.f32 %v8513_v40 }
0x149b   :  { %v3358_v5 = vor.u32 1.1754944e-38, %v3357_v11 }
0x149c   :  { %v3349_v34 = vmul.f32 %v6322_v6, %v3348_v2  ;;  %v3355_v2 = vand.u32 2147483647, %v3180_v16  ;;  %v3370_v16 = vand.u32 2147483647, %v3183_v62 }
0x149e   :  { %v3350_v32 = vadd.f32 %v6322_v6, %v3349_v34  ;;  %v3372_v34 = vand.u32 2147483648, %v3183_v62  ;;  %vm3356_vm14 = vcmp.eq.f32.partialorder %v3355_v2, 8.507059e+37  ;;  %vm3371_vm15 = vcmp.eq.f32.partialorder %v3370_v16, 8.507059e+37 }
0x149f   :  { %v6326_v1 = vpop.eup %6325 }
0x14a0   :  { %v3362_v53 = vmul.f32 %v6326_v1, %v3183_v62  ;;  %v8518_v28 = vpop.xlane.xlu2 %4441  ;;  %v8522_v44 = vpop.xlane.xlu1 %3188  ;;  %vm3367_vm11 = vweird.f32 %v6326_v1 }
0x14a1   :  { %6329 = vrcp.f32 %v8518_v28  ;;  %4459 = vadd.xlane.f32.xlu1 %v4458_v33  ;;  %v8526_v3 = vpop.eup %6327  ;;  %vm3368_vm3 = vmor %vm3366_vm12, %vm3367_vm11  ;;  %vm4517_vm11 = vweird.f32 %v8518_v28 }
0x14a2   :  { %v3363_v26 = vsub.f32 1.0, %v3362_v53  ;;  %6331 = vrcp.f32 %v8522_v44  ;;  %v3377_v33 = vmul.f32 %v8526_v3, %v8513_v40  ;;  %v3354_v53 = vsel %vm8530_vm8, %v6322_v6, %v3350_v32 }
0x14a3   :  { %v3359_v55 = vsel %vm3356_vm14, %v3358_v5, %v3354_v53  ;;  %v3373_v32 = vor.u32 1.1754944e-38, %v3372_v34  ;;  %v4539_v34 = vor.u32 1.1754944e-38, %v4538_v57  ;;  %vm3381_vm8 = vweird.f32 %v8513_v40 }
0x14a4   :  { %v3364_v9 = vmul.f32 %v6326_v1, %v3363_v26  ;;  %v4536_v26 = vand.u32 2147483647, %v8495_v47  ;;  %v4535_v47 = vsel %vm8546_vm6, %v8507_v29, %v4531_v17  ;;  %v3378_v2 = vsub.f32 1.0, %v3377_v33 }
0x14a5   :  { %v3360_v53 = vmul.f32 %v8350_v21, %v3359_v55  ;;  %v4521_v21 = vand.u32 2147483647, %v8518_v28  ;;  %vm3382_vm14 = vweird.f32 %v8526_v3 }
0x14a6   :  { %v3365_v49 = vadd.f32 %v6326_v1, %v3364_v9  ;;  %vm4537_vm4 = vcmp.eq.f32.partialorder %v4536_v26, 8.507059e+37  ;;  %v3379_v16 = vmul.f32 %v8526_v3, %v3378_v2 }
0x14a7   :  { %v8539_v39 = vpop.eup %6329  ;;  %v4540_v33 = vsel %vm4537_vm4, %v4539_v34, %v4535_v47  ;;  %v3446_v26 = vpack.c.bf16 %v3360_v53, %v3360_v53  ;;  %v9544_v53 = vpack.i.bf16 %v8309_v19, %v8287_v22  ;;  %vm4522_vm6 = vcmp.eq.f32.partialorder %v4521_v21, 8.507059e+37  ;;  %vm8622_vm4 = vmor %vm3381_vm8, %vm3382_vm14 }
0x14a8   :  { %v3369_v6 = vsel %vm3368_vm3, %v6326_v1, %v3365_v49  ;;  %v4513_v62 = vmul.f32 %v8539_v39, %v8518_v28  ;;  %v8552_v11 = vpop.xlane.xlu2 %3194  ;;  %v8554_v9 = vpop.xlane.xlu1 %3191  ;;  %vm4518_vm7 = vweird.f32 %v8539_v39  ;;  %vm3396_vm3 = vweird.f32 %v8522_v44 }
0x14a9   :  { %v8556_v56 = vpop.eup %6331  ;;  %4824 = vrot.lane.b32.xlu0 %v7823_v8, %s6479_s11  ;;  %v3374_v49 = vsel %vm3371_vm15, %v3373_v32, %v3369_v6  ;;  %6333 = vrcp.f32 %v8552_v11  ;;  %v4523_v6 = vand.u32 2147483648, %v8518_v28  ;;  %v3385_v32 = vand.u32 2147483647, %v8513_v40  ;;  %vm8583_vm12 = vmor %vm4517_vm11, %vm4518_vm7 }
0x14aa   :  { %v4514_v5 = vsub.f32 1.0, %v4513_v62  ;;  %v3392_v1 = vmul.f32 %v8556_v56, %v8522_v44  ;;  %6335 = vrcp.f32 %v8554_v9  ;;  %v3375_v8 = vmul.f32 %v8359_v54, %v3374_v49  ;;  %v8581_v54 = vpop.xlane.xlu0 %3819 }
0x14ab   :  { %vm3397_vm13 = vweird.f32 %v8556_v56  ;;  %v3531_v19 = vunpack.c.l.b16 %v3446_v26  ;;  %v9549_v26 = vpack.c.b16 %v8341_v61, %v8336_v23  ;;  %vm3386_vm8 = vcmp.eq.f32.partialorder %v3385_v32, 8.507059e+37 }
0x14ac   :  { %v4515_v17 = vmul.f32 %v8539_v39, %v4514_v5  ;;  %v3393_v29 = vsub.f32 1.0, %v3392_v1  ;;  %v3447_v49 = vpack.c.bf16 %v3375_v8, %v3375_v8  ;;  %v3402_v1 = vand.u32 2147483648, %v8522_v44  ;;  %vm8607_vm15 = vmor %vm3396_vm3, %vm3397_vm13 }
0x14ad   :  { %v4524_v8 = vor.u32 1.1754944e-38, %v4523_v6  ;;  %vm3426_vm13 = vweird.f32 %v8552_v11  ;;  %vm3411_vm3 = vweird.f32 %v8554_v9 }
0x14ae   :  { %v4516_v35 = vadd.f32 %v8539_v39, %v4515_v17  ;;  %v3394_v57 = vmul.f32 %v8556_v56, %v3393_v29  ;;  %v4149_v17 = vpop.f32.mrf.mxu3  ;;  %v3380_v29 = vadd.f32 %v8526_v3, %v3379_v16  ;;  %v3532_v62 = vunpack.c.l.b16 %v3447_v49 }
0x14af   :  { %v8578_v55 = vpop.eup %6333 }
0x14b0   :  { %v3395_v47 = vadd.f32 %v8556_v56, %v3394_v57  ;;  %v4759_v2 = vpop.permute.xlu2 %4758  ;;  %v8589_v5 = vpop.eup %6335  ;;  %v4520_v28 = vsel %vm8583_vm12, %v8539_v39, %v4516_v35  ;;  %v3400_v57 = vand.u32 2147483647, %v8522_v44  ;;  %v3387_v39 = vand.u32 2147483648, %v8513_v40 }
0x14b1   :  { %v4773_v34 = vsel %vm249_vm2, %v4759_v2, 0  ;;  %5919 = vrot.lane.b32.xlu0 %v9544_v53, %s6480_s12  ;;  %v3422_v22 = vmul.f32 %v8578_v55, %v8552_v11  ;;  %v4525_v16 = vsel %vm4522_vm6, %v4524_v8, %v4520_v28  ;;  %v3407_v44 = vmul.f32 %v8589_v5, %v8554_v9  ;;  %v9550_v53 = vld [vmem:[#allocation14_spill] sm:$0xff]  ;;  %v8637_v61 = vpop.xlane.xlu1 %3822 }
0x14b2   :  { %4782 = vmatpush.bf16.msrb.mxu3 %v4773_v34  ;;  %v3399_v6 = vsel %vm8607_vm15, %v8556_v56, %v3395_v47  ;;  %v3403_v2 = vor.u32 1.1754944e-38, %v3402_v1  ;;  %v5933_v56 = vpack.i.bf16 %v8372_v38, %v8363_v20  ;;  %v3384_v47 = vsel %vm8622_vm4, %v8526_v3, %v3380_v29 }
0x14b3   :  { %vm3401_vm7 = vcmp.eq.f32.partialorder %v3400_v57, 8.507059e+37  ;;  %v3538_v49 = vpack.c.b16 %v3532_v62, %v3531_v19  ;;  %v3388_v40 = vor.u32 1.1754944e-38, %v3387_v39  ;;  %v4526_v34 = vmul.f32 %v8367_v46, %v4525_v16 }
0x14b4   :  { %v3404_v28 = vsel %vm3401_vm7, %v3403_v2, %v3399_v6  ;;  %v4541_v1 = vmul.f32 %v9550_v53, %v4540_v33  ;;  %v3423_v8 = vsub.f32 1.0, %v3422_v22  ;;  %v3408_v23 = vsub.f32 1.0, %v3407_v44 }
0x14b5   :  { %5831 = vmatmul.msk.bf16.vlgmr.msrb.gmra.mxu3 %vm152_vm1, %v9549_v26  ;;  %5804 = vmatmul.msk.bf16.gmra.mxu2 %vm152_vm1, %v3538_v49  ;;  %v3389_v38 = vsel %vm3386_vm8, %v3388_v40, %v3384_v47  ;;  %v3405_v3 = vmul.f32 %v8370_v10, %v3404_v28  ;;  %6337 = vrcp.f32 %v8637_v61  ;;  %v4724_v29 = vpack.c.bf16 %v4526_v34, %v4526_v34 }
0x14b6   :  { %v4725_v46 = vpack.c.bf16 %v4541_v1, %v4541_v1  ;;  %v4151_v57 = vpop.f32.mrf.mxu3  ;;  %6339 = vrcp.f32 %v8581_v54  ;;  %v3424_v33 = vmul.f32 %v8578_v55, %v3423_v8  ;;  %v3409_v32 = vmul.f32 %v8589_v5, %v3408_v23 }
0x14b7   :  { %v3390_v39 = vmul.f32 %v8328_v36, %v3389_v38  ;;  %v3449_v35 = vpack.c.bf16 %v3405_v3, %v3405_v3  ;;  %v5938_v22 = vpack.i.bf16 %v4151_v57, %v4149_v17  ;;  %vm3427_vm11 = vweird.f32 %v8578_v55 }
0x14b8   :  { %v8640_v20 = vpop.xlane.xlu0 %3825  ;;  %v4748_v19 = vunpack.c.l.b16 %v4724_v29  ;;  %v4749_v16 = vunpack.c.l.b16 %v4725_v46  ;;  %v3425_v10 = vadd.f32 %v8578_v55, %v3424_v33  ;;  %v3410_v6 = vadd.f32 %v8589_v5, %v3409_v32  ;;  %vm8664_vm14 = vmor %vm3426_vm13, %vm3427_vm11 }
0x14b9   :  { %5934 = vrot.lane.b32.xlu0 %v5933_v56, %s6480_s12  ;;  %vm3412_vm12 = vweird.f32 %v8589_v5  ;;  %v3448_v62 = vpack.c.bf16 %v3390_v39, %v3390_v39  ;;  %v3432_v36 = vand.u32 2147483648, %v8552_v11  ;;  %v3417_v17 = vand.u32 2147483648, %v8554_v9 }
0x14ba   :  { %v3430_v47 = vand.u32 2147483647, %v8552_v11  ;;  %v3415_v49 = vand.u32 2147483647, %v8554_v9  ;;  %v3534_v40 = vunpack.c.l.b16 %v3449_v35  ;;  %vm8673_vm6 = vmor %vm3411_vm3, %vm3412_vm12  ;;  %v4755_v34 = vpack.c.b16 %v4749_v16, %v4748_v19 }
0x14bb   :  { %v8653_v21 = vpop.eup %6337  ;;  %v3429_v53 = vsel %vm8664_vm14, %v8578_v55, %v3425_v10  ;;  %v3414_v11 = vsel %vm8673_vm6, %v8589_v5, %v3410_v6  ;;  %v3533_v1 = vunpack.c.l.b16 %v3448_v62  ;;  %v3433_v23 = vor.u32 1.1754944e-38, %v3432_v36 }
0x14bc   :  { %v8660_v26 = vpop.eup %6339  ;;  %v3978_v9 = vmul.f32 %v8653_v21, %v8637_v61  ;;  %v3418_v38 = vor.u32 1.1754944e-38, %v3417_v17  ;;  %vm3431_vm15 = vcmp.eq.f32.partialorder %v3430_v47, 8.507059e+37  ;;  %vm3416_vm4 = vcmp.eq.f32.partialorder %v3415_v49, 8.507059e+37 }
0x14bd   :  { %v3963_v8 = vmul.f32 %v8660_v26, %v8581_v54  ;;  %v3539_v3 = vpack.c.b16 %v3534_v40, %v3533_v1  ;;  %v3434_v55 = vsel %vm3431_vm15, %v3433_v23, %v3429_v53  ;;  %vm3983_vm7 = vweird.f32 %v8653_v21 }
0x14be   :  { %v3419_v29 = vsel %vm3416_vm4, %v3418_v38, %v3414_v11  ;;  %v3979_v46 = vsub.f32 1.0, %v3978_v9  ;;  %v3435_v35 = vmul.f32 %v8378_v4, %v3434_v55  ;;  %vm3968_vm8 = vweird.f32 %v8660_v26 }
0x14bf   :  { %v3964_v33 = vsub.f32 1.0, %v3963_v8  ;;  %v3420_v39 = vmul.f32 %v8381_v25, %v3419_v29  ;;  %v3988_v17 = vand.u32 2147483648, %v8637_v61  ;;  %vm3982_vm11 = vweird.f32 %v8637_v61 }
0x14c0   :  { %v4370_v44 = vpop.xlane.xlu0 %4369  ;;  %v3980_v16 = vmul.f32 %v8653_v21, %v3979_v46  ;;  %v3451_v25 = vpack.c.bf16 %v3435_v35, %v3435_v35  ;;  %v3986_v56 = vand.u32 2147483647, %v8637_v61  ;;  %vm3967_vm12 = vweird.f32 %v8581_v54  ;;  %vm3984_vm13 = vmor %vm3982_vm11, %vm3983_vm7 }
0x14c1   :  { %v4396_v2 = vsub.f32 %v8407_v30, %v4370_v44  ;;  %5939 = vrot.lane.b32.xlu0 %v5938_v22, %s6474_s27  ;;  %v8688_v57 = vpop.xlane.xlu1 %3828  ;;  %v3965_v6 = vmul.f32 %v8660_v26, %v3964_v33  ;;  %v8717_v30 = vpop.f32.mrf.mxu2  ;;  %vm3969_vm14 = vmor %vm3967_vm12, %vm3968_vm8  ;;  %v3989_v9 = vor.u32 1.1754944e-38, %v3988_v17  ;;  %vm3997_vm11 = vweird.f32 %v8640_v20 }
0x14c2   :  { %v3981_v4 = vadd.f32 %v8653_v21, %v3980_v16  ;;  %v3536_v49 = vunpack.c.l.b16 %v3451_v25  ;;  %vm3987_vm3 = vcmp.eq.f32.partialorder %v3986_v56, 8.507059e+37  ;;  %vm4012_vm7 = vweird.f32 %v8688_v57 }
0x14c3   :  { %v4422_v28 = vmul.f32 1.442695, %v4396_v2  ;;  %v3966_v36 = vadd.f32 %v8660_v26, %v3965_v6  ;;  %v4016_v17 = vand.u32 2147483647, %v8688_v57  ;;  %v4003_v56 = vand.u32 2147483648, %v8640_v20 }
0x14c4   :  { %v3985_v53 = vsel %vm3984_vm13, %v8653_v21, %v3981_v4 }
0x14c5   :  { %6341 = vpow2.f32 %v4422_v28  ;;  %5832 = vmatmul.msk.bf16.gmra.mxu3 %vm152_vm1, %v4755_v34  ;;  %5805 = vmatmul.msk.bf16.gmra.mxu2 %vm152_vm1, %v3539_v3  ;;  %v3973_v28 = vand.u32 2147483648, %v8581_v54  ;;  %v3971_v34 = vand.u32 2147483647, %v8581_v54  ;;  %v3970_v1 = vsel %vm3969_vm14, %v8660_v26, %v3966_v36 }
0x14c6   :  { %6343 = vrcp.f32 %v8688_v57  ;;  %v3990_v21 = vsel %vm3987_vm3, %v3989_v9, %v3985_v53  ;;  %vm4017_vm13 = vcmp.eq.f32.partialorder %v4016_v17, 8.507059e+37 }
0x14c7   :  { %6345 = vrcp.f32 %v8640_v20  ;;  %v3974_v23 = vor.u32 1.1754944e-38, %v3973_v28  ;;  %vm3972_vm6 = vcmp.eq.f32.partialorder %v3971_v34, 8.507059e+37  ;;  %v3991_v46 = vmul.f32 %v8392_v7, %v3990_v21 }
0x14c8   :  { %v4373_v5 = vpop.xlane.xlu0 %4372  ;;  %v4001_v34 = vand.u32 2147483647, %v8640_v20 }
0x14c9   :  { %v4397_v32 = vsub.f32 %v8424_v50, %v4373_v5  ;;  %v3450_v50 = vpack.c.bf16 %v3420_v39, %v3420_v39  ;;  %v3975_v55 = vsel %vm3972_vm6, %v3974_v23, %v3970_v1  ;;  %v8742_v39 = vpop.f32.mrf.mxu2  ;;  %v4091_v35 = vpack.c.bf16 %v3991_v46, %v3991_v46 }
0x14ca   :  { %v3976_v33 = vmul.f32 %v8348_v31, %v3975_v55  ;;  %v4004_v1 = vor.u32 1.1754944e-38, %v4003_v56  ;;  %vm4002_vm14 = vcmp.eq.f32.partialorder %v4001_v34, 8.507059e+37 }
0x14cb   :  { %v8694_v22 = vpop.eup %6341  ;;  %v4424_v19 = vmul.f32 1.442695, %v4397_v32  ;;  %v3535_v47 = vunpack.c.l.b16 %v3450_v50  ;;  %v4018_v50 = vand.u32 2147483648, %v8688_v57  ;;  %v4173_v4 = vunpack.c.l.b16 %v4091_v35 }
0x14cc   :  { %v4464_v10 = vsel %vm152_vm1, %v8694_v22, 0.0  ;;  %v8706_v62 = vpop.eup %6343 }
0x14cd   :  { %6347 = vpow2.f32 %v4424_v19  ;;  %4465 = vadd.xlane.f32.xlu2 %v4464_v10  ;;  %v8711_v2 = vpop.eup %6345  ;;  %v4008_v61 = vmul.f32 %v8706_v62, %v8688_v57  ;;  %v3540_v54 = vpack.c.b16 %v3536_v49, %v3535_v47  ;;  %v4090_v10 = vpack.c.bf16 %v3976_v33, %v3976_v33 }
0x14ce   :  { %v3993_v8 = vmul.f32 %v8711_v2, %v8640_v20  ;;  %vm4013_vm15 = vweird.f32 %v8706_v62  ;;  %vm3998_vm4 = vweird.f32 %v8711_v2  ;;  %v4019_v57 = vor.u32 1.1754944e-38, %v4018_v50 }
0x14cf   :  { %v4009_v38 = vsub.f32 1.0, %v4008_v61  ;;  %vm8758_vm8 = vmor %vm4012_vm7, %vm4013_vm15  ;;  %v4172_v28 = vunpack.c.l.b16 %v4090_v10 }
0x14d0   :  { %v8704_v44 = vpop.xlane.xlu0 %3831  ;;  %v3994_v26 = vsub.f32 1.0, %v3993_v8  ;;  %vm3999_vm12 = vmor %vm3997_vm11, %vm3998_vm4 }
0x14d1   :  { %v4010_v32 = vmul.f32 %v8706_v62, %v4009_v38  ;;  %v8767_v53 = vpop.f32.mrf.mxu2 }
0x14d2   :  { %v3995_v19 = vmul.f32 %v8711_v2, %v3994_v26 }
0x14d3   :  { %v8715_v40 = vpop.eup %6347  ;;  %v4011_v6 = vadd.f32 %v8706_v62, %v4010_v32 }
0x14d4   :  { %v4467_v11 = vsel %vm152_vm1, %v8715_v40, 0.0  ;;  %v3996_v36 = vadd.f32 %v8711_v2, %v3995_v19 }
0x14d5   :  { %4468 = vadd.xlane.f32.xlu1 %v4467_v11  ;;  %5806 = vmatmul.msk.bf16.gmra.mxu2 %vm152_vm1, %v3540_v54  ;;  %v4180_v11 = vpack.c.b16 %v4173_v4, %v4172_v28 }
0x14d6   :  { %v4000_v9 = vsel %vm3999_vm12, %v8711_v2, %v3996_v36 }
0x14d7   :  { %v4005_v54 = vsel %vm4002_vm14, %v4004_v1, %v4000_v9  ;;  %vm4027_vm14 = vweird.f32 %v8704_v44 }
0x14d8   :  { %v8735_v3 = vpop.xlane.xlu0 %4450  ;;  %v4006_v46 = vmul.f32 %v8401_v14, %v4005_v54 }
0x14d9   :  { %6349 = vrcp.f32 %v8735_v3  ;;  %v4185_v29 = vpop.permute.xlu1 %4184  ;;  %vm4562_vm6 = vweird.f32 %v8735_v3  ;;  %v4566_v33 = vand.u32 2147483647, %v8735_v3 }
0x14da   :  { %v4199_v5 = vsel %vm249_vm2, %v4185_v29, 0  ;;  %v4092_v35 = vpack.c.bf16 %v4006_v46, %v4006_v46 }
0x14db   :  { %4208 = vmatpush.bf16.msrb.mxu2 %v4199_v5  ;;  %vm4567_vm4 = vcmp.eq.f32.partialorder %v4566_v33, 8.507059e+37 }
0x14dc   :  { %v4174_v47 = vunpack.c.l.b16 %v4092_v35  ;;  %v4033_v35 = vand.u32 2147483648, %v8704_v44 }
0x14df   :  { %v8745_v16 = vpop.eup %6349 }
0x14e0   :  { %v4376_v7 = vpop.xlane.xlu0 %4375  ;;  %v4558_v31 = vmul.f32 %v8745_v16, %v8735_v3  ;;  %vm4563_vm3 = vweird.f32 %v8745_v16 }
0x14e1   :  { %v4398_v25 = vsub.f32 %v8438_v24, %v4376_v7  ;;  %v4015_v24 = vsel %vm8758_vm8, %v8706_v62, %v4011_v6  ;;  %vm4564_vm15 = vmor %vm4562_vm6, %vm4563_vm3 }
0x14e2   :  { %v4559_v61 = vsub.f32 1.0, %v4558_v31  ;;  %v4020_v8 = vsel %vm4017_vm13, %v4019_v57, %v4015_v24 }
0x14e3   :  { %v4426_v49 = vmul.f32 1.442695, %v4398_v25  ;;  %v4021_v38 = vmul.f32 %v8411_v60, %v4020_v8  ;;  %v8785_v60 = vpop.f32.mrf.mxu2 }
0x14e4   :  { %v4560_v62 = vmul.f32 %v8745_v16, %v4559_v61 }
0x14e5   :  { %6351 = vpow2.f32 %v4426_v49  ;;  %5819 = vmatmul.msk.bf16.vlgmr.msrb.gmra.mxu2 %vm152_vm1, %v4180_v11  ;;  %v4093_v5 = vpack.c.bf16 %v4021_v38, %v4021_v38 }
0x14e6   :  { %v4561_v26 = vadd.f32 %v8745_v16, %v4560_v62 }
0x14e7   :  { %v4175_v31 = vunpack.c.l.b16 %v4093_v5 }
0x14e8   :  { %v4379_v20 = vpop.xlane.xlu0 %4378  ;;  %v4565_v19 = vsel %vm4564_vm15, %v8745_v16, %v4561_v26 }
0x14e9   :  { %v4399_v23 = vsub.f32 %v8457_v52, %v4379_v20  ;;  %v4448_v21 = vpop.xlane.xlu2 %4447  ;;  %v4568_v52 = vand.u32 2147483648, %v8735_v3  ;;  %v4181_v28 = vpack.c.b16 %v4175_v31, %v4174_v47 }
0x14ea   :  { %6353 = vrcp.f32 %v4448_v21  ;;  %v4553_v56 = vand.u32 2147483648, %v4448_v21  ;;  %vm4547_vm8 = vweird.f32 %v4448_v21 }
0x14eb   :  { %v8776_v55 = vpop.eup %6351  ;;  %v4428_v29 = vmul.f32 1.442695, %v4399_v23  ;;  %v4569_v50 = vor.u32 1.1754944e-38, %v4568_v52  ;;  %v8805_v9 = vpop.f32.mrf.mxu2 }
0x14ec   :  { %v4470_v2 = vsel %vm152_vm1, %v8776_v55, 0.0  ;;  %v4554_v57 = vor.u32 1.1754944e-38, %v4553_v56  ;;  %v4034_v56 = vor.u32 1.1754944e-38, %v4033_v35 }
0x14ed   :  { %6355 = vpow2.f32 %v4428_v29  ;;  %4471 = vadd.xlane.f32.xlu2 %v4470_v2  ;;  %v4570_v3 = vsel %vm4567_vm4, %v4569_v50, %v4565_v19 }
0x14ee   :  { %6357 = vrcp.f32 %v8704_v44  ;;  %v4571_v11 = vmul.f32 %v8435_v12, %v4570_v3 }
0x14f0   :  { %v6354_v32 = vpop.eup %6353  ;;  %v4382_v14 = vpop.xlane.xlu0 %4381  ;;  %v4727_v29 = vpack.c.bf16 %v4571_v11, %v4571_v11 }
0x14f1   :  { %v4543_v10 = vmul.f32 %v6354_v32, %v4448_v21  ;;  %v4400_v6 = vsub.f32 %v8467_v18, %v4382_v14  ;;  %v8791_v7 = vpop.xlane.xlu2 %4453  ;;  %vm4548_vm7 = vweird.f32 %v6354_v32  ;;  %v4551_v18 = vand.u32 2147483647, %v4448_v21 }
0x14f2   :  { %vm4549_vm11 = vmor %vm4547_vm8, %vm4548_vm7  ;;  %v4751_v33 = vunpack.c.l.b16 %v4727_v29  ;;  %v4583_v11 = vand.u32 2147483648, %v8791_v7  ;;  %vm4577_vm7 = vweird.f32 %v8791_v7 }
0x14f3   :  { %v8793_v25 = vpop.eup %6355  ;;  %v4544_v4 = vsub.f32 1.0, %v4543_v10  ;;  %v4430_v36 = vmul.f32 1.442695, %v4400_v6  ;;  %vm4552_vm12 = vcmp.eq.f32.partialorder %v4551_v18, 8.507059e+37  ;;  %v4031_v6 = vand.u32 2147483647, %v8704_v44 }
0x14f4   :  { %v8795_v17 = vpop.eup %6357  ;;  %v4473_v16 = vsel %vm152_vm1, %v8793_v25, 0.0 }
0x14f5   :  { %v4545_v49 = vmul.f32 %v6354_v32, %v4544_v4  ;;  %6359 = vpow2.f32 %v4430_v36  ;;  %4474 = vadd.xlane.f32.xlu1 %v4473_v16  ;;  %v4023_v34 = vmul.f32 %v8795_v17, %v8704_v44  ;;  %5820 = vmatmul.msk.bf16.gmra.mxu2 %vm152_vm1, %v4181_v28  ;;  %vm4028_vm13 = vweird.f32 %v8795_v17 }
0x14f6   :  { %6361 = vrcp.f32 %v8791_v7  ;;  %vm4029_vm3 = vmor %vm4027_vm14, %vm4028_vm13  ;;  %vm4032_vm6 = vcmp.eq.f32.partialorder %v4031_v6, 8.507059e+37 }
0x14f7   :  { %v4546_v24 = vadd.f32 %v6354_v32, %v4545_v49  ;;  %v4024_v62 = vsub.f32 1.0, %v4023_v34 }
0x14f8   :  { %v8802_v61 = vpop.xlane.xlu0 %3837 }
0x14f9   :  { %v4550_v1 = vsel %vm4549_vm11, %v6354_v32, %v4546_v24  ;;  %v4385_v8 = vpop.xlane.xlu2 %4384  ;;  %v4025_v46 = vmul.f32 %v8795_v17, %v4024_v62  ;;  %v4581_v24 = vand.u32 2147483647, %v8791_v7 }
0x14fa   :  { %v4555_v20 = vsel %vm4552_vm12, %v4554_v57, %v4550_v1  ;;  %v4401_v23 = vsub.f32 %v8480_v63, %v4385_v8  ;;  %v8821_v63 = vpop.f32.mrf.mxu2  ;;  %vm4057_vm12 = vweird.f32 %v8802_v61 }
0x14fb   :  { %v8808_v54 = vpop.eup %6359  ;;  %v4556_v21 = vmul.f32 %v8459_v58, %v4555_v20  ;;  %v4026_v32 = vadd.f32 %v8795_v17, %v4025_v46  ;;  %vm8856_vm8 = vcmp.eq.f32.partialorder %v4581_v24, 8.507059e+37 }
0x14fc   :  { %v4476_v38 = vsel %vm152_vm1, %v8808_v54, 0.0  ;;  %v4432_v12 = vmul.f32 1.442695, %v4401_v23  ;;  %v8815_v52 = vpop.eup %6361 }
0x14fd   :  { %4477 = vadd.xlane.f32.xlu2 %v4476_v38  ;;  %v4726_v2 = vpack.c.bf16 %v4556_v21, %v4556_v21  ;;  %v4573_v14 = vmul.f32 %v8815_v52, %v8791_v7  ;;  %v4030_v4 = vsel %vm4029_vm3, %v8795_v17, %v4026_v32  ;;  %vm4578_vm15 = vweird.f32 %v8815_v52 }
0x14fe   :  { %6363 = vpow2.f32 %v4432_v12  ;;  %v4035_v47 = vsel %vm4032_vm6, %v4034_v56, %v4030_v4  ;;  %vm8866_vm11 = vmor %vm4577_vm7, %vm4578_vm15  ;;  %v9561_v56 = vpack.i.bf16 %v8451_v13, %v8442_v27 }
0x14ff   :  { %v4750_v26 = vunpack.c.l.b16 %v4726_v2  ;;  %6365 = vrcp.f32 %v8802_v61  ;;  %v4574_v36 = vsub.f32 1.0, %v4573_v14  ;;  %v4036_v57 = vmul.f32 %v8430_v42, %v4035_v47  ;;  %v8862_v2 = vpop.f32.mrf.mxu3 }
0x1500   :  { %v8817_v5 = vpop.xlane.xlu0 %3840 }
0x1501   :  { %6367 = vrcp.f32 %v8817_v5  ;;  %v4756_v58 = vpack.c.b16 %v4751_v33, %v4750_v26  ;;  %v4575_v44 = vmul.f32 %v8815_v52, %v4574_v36  ;;  %v4094_v12 = vpack.c.bf16 %v4036_v57, %v4036_v57 }
0x1502   :  { %v8840_v49 = vpop.f32.mrf.mxu2  ;;  %v4584_v26 = vor.u32 1.1754944e-38, %v4583_v11 }
0x1503   :  { %5833 = vmatmul.msk.bf16.gmra.mxu3 %vm152_vm1, %v4756_v58  ;;  %v4576_v8 = vadd.f32 %v8815_v52, %v4575_v44 }
0x1504   :  { %v3835_v19 = vpop.xlane.xlu1 %3834  ;;  %v8829_v10 = vpop.eup %6363 }
0x1505   :  { %6369 = vrcp.f32 %v3835_v19  ;;  %v4479_v50 = vsel %vm152_vm1, %v8829_v10, 0.0  ;;  %v8835_v31 = vpop.eup %6365  ;;  %v4048_v23 = vand.u32 2147483648, %v3835_v19  ;;  %v4046_v38 = vand.u32 2147483647, %v3835_v19 }
0x1506   :  { %4480 = vadd.xlane.f32.xlu1 %v4479_v50  ;;  %v4053_v18 = vmul.f32 %v8835_v31, %v8802_v61  ;;  %vm4042_vm13 = vweird.f32 %v3835_v19  ;;  %v4580_v58 = vsel %vm8866_vm11, %v8815_v52, %v4576_v8  ;;  %vm4058_vm6 = vweird.f32 %v8835_v31 }
0x1507   :  { %v8838_v3 = vpop.eup %6367  ;;  %v4049_v35 = vor.u32 1.1754944e-38, %v4048_v23  ;;  %vm4047_vm3 = vcmp.eq.f32.partialorder %v4046_v38, 8.507059e+37  ;;  %v4076_v52 = vand.u32 2147483647, %v8817_v5  ;;  %v4585_v47 = vsel %vm8856_vm8, %v4584_v26, %v4580_v58  ;;  %vm8903_vm7 = vmor %vm4057_vm12, %vm4058_vm6 }
0x1508   :  { %v4068_v28 = vmul.f32 %v8838_v3, %v8817_v5  ;;  %v4054_v20 = vsub.f32 1.0, %v4053_v18  ;;  %v8860_v42 = vpop.xlane.xlu0 %4462  ;;  %vm4073_vm15 = vweird.f32 %v8838_v3  ;;  %vm4072_vm8 = vweird.f32 %v8817_v5 }
0x1509   :  { %v4176_v8 = vunpack.c.l.b16 %v4094_v12  ;;  %vm8912_vm11 = vmor %vm4072_vm8, %vm4073_vm15  ;;  %v4586_v38 = vmul.f32 %v8469_v45, %v4585_v47  ;;  %vm8923_vm12 = vcmp.eq.f32.partialorder %v4076_v52, 8.507059e+37  ;;  %vm4622_vm8 = vweird.f32 %v8860_v42 }
0x150a   :  { %v4069_v62 = vsub.f32 1.0, %v4068_v28  ;;  %v4055_v32 = vmul.f32 %v8835_v31, %v4054_v20 }
0x150b   :  { %v6370_v16 = vpop.eup %6369 }
0x150c   :  { %v4038_v34 = vmul.f32 %v6370_v16, %v3835_v19  ;;  %v8847_v17 = vpop.xlane.xlu1 %4456  ;;  %vm4043_vm4 = vweird.f32 %v6370_v16  ;;  %v4070_v14 = vmul.f32 %v8838_v3, %v4069_v62  ;;  %v8881_v19 = vpop.f32.mrf.mxu2  ;;  %v4056_v28 = vadd.f32 %v8835_v31, %v4055_v32 }
0x150d   :  { %6371 = vrcp.f32 %v8847_v17  ;;  %vm4044_vm14 = vmor %vm4042_vm13, %vm4043_vm4  ;;  %v4598_v24 = vand.u32 2147483648, %v8847_v17  ;;  %v4596_v27 = vand.u32 2147483647, %v8847_v17  ;;  %vm4592_vm13 = vweird.f32 %v8847_v17 }
0x150e   :  { %v4039_v1 = vsub.f32 1.0, %v4038_v34  ;;  %6373 = vrcp.f32 %v8860_v42  ;;  %v4071_v34 = vadd.f32 %v8838_v3, %v4070_v14  ;;  %v4060_v45 = vsel %vm8903_vm7, %v8835_v31, %v4056_v28 }
0x150f   :  { %v4599_v46 = vor.u32 1.1754944e-38, %v4598_v24  ;;  %v4628_v62 = vand.u32 2147483648, %v8860_v42 }
0x1510   :  { %v4040_v21 = vmul.f32 %v6370_v16, %v4039_v1  ;;  %v4063_v1 = vand.u32 2147483648, %v8802_v61 }
0x1512   :  { %v4041_v33 = vadd.f32 %v6370_v16, %v4040_v21  ;;  %v4064_v52 = vor.u32 1.1754944e-38, %v4063_v1 }
0x1513   :  { %v6372_v7 = vpop.eup %6371 }
0x1514   :  { %v4045_v6 = vsel %vm4044_vm14, %v6370_v16, %v4041_v33  ;;  %v4588_v50 = vmul.f32 %v6372_v7, %v8847_v17  ;;  %v8879_v4 = vpop.xlane.xlu1 %4459  ;;  %v4078_v16 = vand.u32 2147483648, %v8817_v5  ;;  %vm4593_vm4 = vweird.f32 %v6372_v7  ;;  %v8910_v20 = vpop.eup %6373 }
0x1515   :  { %v4050_v36 = vsel %vm4047_vm3, %v4049_v35, %v4045_v6  ;;  %6375 = vrcp.f32 %v8879_v4  ;;  %5924 = vrot.lane.b32.xlu2 %v9561_v56, %s6474_s27  ;;  %vm4594_vm14 = vmor %vm4592_vm13, %vm4593_vm4  ;;  %v8928_v33 = vpop.f32.mrf.mxu3  ;;  %vm4597_vm3 = vcmp.eq.f32.partialorder %v4596_v27, 8.507059e+37  ;;  %v3570_v58 = vpop.f32.mrf.mxu2  ;;  %v4618_v32 = vmul.f32 %v8910_v20, %v8860_v42 }
0x1516   :  { %v4589_v44 = vsub.f32 1.0, %v4588_v50  ;;  %v4051_v18 = vmul.f32 %v8493_v48, %v4050_v36  ;;  %v4061_v48 = vand.u32 2147483647, %v8802_v61  ;;  %v4075_v61 = vsel %vm8912_vm11, %v8838_v3, %v4071_v34 }
0x1517   :  { %v4079_v12 = vor.u32 1.1754944e-38, %v4078_v16  ;;  %v9568_v6 = vpack.i.bf16 %v8394_v0, %v8385_v37  ;;  %v4728_v36 = vpack.c.bf16 %v4586_v38, %v4586_v38  ;;  %vm4623_vm15 = vweird.f32 %v8910_v20 }
0x1518   :  { %v4590_v57 = vmul.f32 %v6372_v7, %v4589_v44  ;;  %v4095_v13 = vpack.c.bf16 %v4051_v18, %v4051_v18  ;;  %vm4062_vm6 = vcmp.eq.f32.partialorder %v4061_v48, 8.507059e+37  ;;  %v4619_v44 = vsub.f32 1.0, %v4618_v32  ;;  %vm4624_vm11 = vmor %vm4622_vm8, %vm4623_vm15 }
0x1519   :  { %v4080_v31 = vsel %vm8923_vm12, %v4079_v12, %v4075_v61  ;;  %v4065_v47 = vsel %vm4062_vm6, %v4064_v52, %v4060_v45  ;;  %v4752_v37 = vunpack.c.l.b16 %v4728_v36  ;;  %vm4607_vm4 = vweird.f32 %v8879_v4 }
0x151a   :  { %v4591_v23 = vadd.f32 %v6372_v7, %v4590_v57  ;;  %v4177_v21 = vunpack.c.l.b16 %v4095_v13  ;;  %v4081_v18 = vmul.f32 %v8489_v43, %v4080_v31  ;;  %v4066_v34 = vmul.f32 %v8478_v41, %v4065_v47 }
0x151b   :  { %v8918_v29 = vpop.eup %6375  ;;  %v4825_v26 = vpop.permute.xlu0 %4824  ;;  %v4620_v57 = vmul.f32 %v8910_v20, %v4619_v44  ;;  %v4613_v41 = vand.u32 2147483648, %v8879_v4  ;;  %v4629_v12 = vor.u32 1.1754944e-38, %v4628_v62 }
0x151c   :  { %v4595_v17 = vsel %vm4594_vm14, %v6372_v7, %v4591_v23  ;;  %v4603_v3 = vmul.f32 %v8918_v29, %v8879_v4  ;;  %v4839_v35 = vsel %vm249_vm2, %v4825_v26, 0  ;;  %v4182_v50 = vpack.c.b16 %v4177_v21, %v4176_v8 }
0x151d   :  { %v4600_v14 = vsel %vm4597_vm3, %v4599_v46, %v4595_v17  ;;  %5949 = vrot.lane.b32.xlu2 %v9568_v6, %s6480_s12  ;;  %4848 = vmatpush.bf16.msra.mxu2 %v4839_v35  ;;  %v4097_v27 = vpack.c.bf16 %v4081_v18, %v4081_v18  ;;  %v8954_v13 = vpop.f32.mrf.mxu3  ;;  %v3572_v43 = vpop.f32.mrf.mxu2  ;;  %vm4608_vm2 = vweird.f32 %v8918_v29  ;;  %v4096_v48 = vpack.c.bf16 %v4066_v34, %v4066_v34  ;;  %v9570_v17 = vld [vmem:[#allocation16_spill] sm:$0xff] }
0x151e   :  { %v4601_v7 = vmul.f32 %v8505_v59, %v4600_v14  ;;  %v4604_v56 = vsub.f32 1.0, %v4603_v3  ;;  %5821 = vmatmul.msk.bf16.gmra.mxu2 %vm152_vm1, %v4182_v50  ;;  %v9569_v59 = vpack.i.bf16 %v8414_v15, %v8403_v51  ;;  %v4621_v1 = vadd.f32 %v8910_v20, %v4620_v57  ;;  %vm4609_vm7 = vmor %vm4607_vm4, %vm4608_vm2  ;;  %v9571_v3 = vld [vmem:[#allocation15_spill] sm:$0xff] }
0x151f   :  { %v4611_v51 = vand.u32 2147483647, %v8879_v4  ;;  %v4179_v15 = vunpack.c.l.b16 %v4097_v27  ;;  %v5978_v8 = vpack.i.bf16 %v3572_v43, %v3570_v58  ;;  %v4626_v23 = vand.u32 2147483647, %v8860_v42 }
0x1520   :  { %v4729_v16 = vpack.c.bf16 %v4601_v7, %v4601_v7  ;;  %v4605_v28 = vmul.f32 %v8918_v29, %v4604_v56  ;;  %v4178_v38 = vunpack.c.l.b16 %v4096_v48  ;;  %v4614_v61 = vor.u32 1.1754944e-38, %v4613_v41 }
0x1521   :  { %v4625_v5 = vsel %vm4624_vm11, %v8910_v20, %v4621_v1  ;;  %vm4612_vm13 = vcmp.eq.f32.partialorder %v4611_v51, 8.507059e+37  ;;  %vm4627_vm12 = vcmp.eq.f32.partialorder %v4626_v23, 8.507059e+37 }
0x1522   :  { %v4753_v0 = vunpack.c.l.b16 %v4729_v16  ;;  %v4606_v11 = vadd.f32 %v8918_v29, %v4605_v28  ;;  %v4183_v4 = vpack.c.b16 %v4179_v15, %v4178_v38  ;;  %v4630_v45 = vsel %vm4627_vm12, %v4629_v12, %v4625_v5 }
0x1524   :  { %v4757_v24 = vpack.c.b16 %v4753_v0, %v4752_v37  ;;  %v4610_v21 = vsel %vm4609_vm7, %v8918_v29, %v4606_v11  ;;  %v4631_v29 = vmul.f32 %v9571_v3, %v4630_v45  ;;  %v5953_v37 = vpack.i.bf16 %v8928_v33, %v8862_v2 }
0x1525   :  { %5964 = vrot.lane.b32.xlu2 %v9569_v59, %s6480_s12  ;;  %v4615_v46 = vsel %vm4612_vm13, %v4614_v61, %v4610_v21  ;;  %v4161_v26 = vpop.f32.mrf.mxu3 }
0x1526   :  { %5834 = vmatmul.msk.bf16.gmra.mxu3 %vm152_vm1, %v4757_v24  ;;  %v4616_v42 = vmul.f32 %v9570_v17, %v4615_v46  ;;  %v4731_v32 = vpack.c.bf16 %v4631_v29, %v4631_v29  ;;  %v5968_v41 = vpack.i.bf16 %v4161_v26, %v8954_v13 }
0x1528   :  { %v4730_v58 = vpack.c.bf16 %v4616_v42, %v4616_v42  ;;  %v4813_v20 = vunpack.c.l.b16 %v4731_v32 }
0x152a   :  { %v4812_v35 = vunpack.c.l.b16 %v4730_v58 }
0x152c   :  { %v4820_v50 = vpack.c.b16 %v4813_v20, %v4812_v35 }
0x152d   :  { %5979 = vrot.lane.b32.xlu2 %v5978_v8, %s6480_s12 }
0x152e   :  { %5822 = vmatmul.msk.bf16.gmra.mxu2 %vm152_vm1, %v4183_v4 }
0x1538   :  { %v4784_v14 = vpop.f32.mrf.mxu3  ;;  %v3575_v6 = vpop.f32.mrf.mxu2 }
0x153e   :  { %5835 = vmatmul.msk.bf16.vlgmr.msra.gmra.mxu2 %vm152_vm1, %v4820_v50 }
0x1540   :  { %v4786_v52 = vpop.f32.mrf.mxu3  ;;  %v4466_v31 = vpop.xlane.xlu2 %4465 }
0x1541   :  { %v5928_v7 = vpack.i.bf16 %v4786_v52, %v4784_v14  ;;  %6377 = vrcp.f32 %v4466_v31  ;;  %v3577_v36 = vpop.f32.mrf.mxu2  ;;  %v4643_v24 = vand.u32 2147483648, %v4466_v31  ;;  %vm4637_vm3 = vweird.f32 %v4466_v31 }
0x1542   :  { %v5993_v56 = vpack.i.bf16 %v3577_v36, %v3575_v6  ;;  %v4641_v59 = vand.u32 2147483647, %v4466_v31 }
0x1543   :  { %5929 = vrot.lane.b32.xlu1 %v5928_v7, %s6481_s0  ;;  %v4644_v1 = vor.u32 1.1754944e-38, %v4643_v24 }
0x1544   :  { %5994 = vrot.lane.b32.xlu2 %v5993_v56, %s6480_s12  ;;  %vm4642_vm2 = vcmp.eq.f32.partialorder %v4641_v59, 8.507059e+37 }
0x1547   :  { %v6378_v47 = vpop.eup %6377 }
0x1548   :  { %v4633_v16 = vmul.f32 %v6378_v47, %v4466_v31  ;;  %v4789_v44 = vpop.f32.mrf.mxu3  ;;  %v4469_v18 = vpop.xlane.xlu1 %4468  ;;  %vm4638_vm14 = vweird.f32 %v6378_v47 }
0x1549   :  { %6379 = vrcp.f32 %v4469_v18  ;;  %v3580_v28 = vpop.f32.mrf.mxu2  ;;  %vm4639_vm6 = vmor %vm4637_vm3, %vm4638_vm14  ;;  %v4658_v15 = vand.u32 2147483648, %v4469_v18  ;;  %v4656_v23 = vand.u32 2147483647, %v4469_v18  ;;  %vm4652_vm4 = vweird.f32 %v4469_v18 }
0x154a   :  { %v4634_v0 = vsub.f32 1.0, %v4633_v16 }
0x154b   :  { %5954 = vrot.lane.b32.xlu1 %v5953_v37, %s6474_s27  ;;  %v4659_v61 = vor.u32 1.1754944e-38, %v4658_v15  ;;  %vm4657_vm8 = vcmp.eq.f32.partialorder %v4656_v23, 8.507059e+37 }
0x154c   :  { %v4635_v34 = vmul.f32 %v6378_v47, %v4634_v0 }
0x154e   :  { %v4636_v57 = vadd.f32 %v6378_v47, %v4635_v34 }
0x154f   :  { %v6380_v27 = vpop.eup %6379 }
0x1550   :  { %v4640_v43 = vsel %vm4639_vm6, %v6378_v47, %v4636_v57  ;;  %v4648_v11 = vmul.f32 %v6380_v27, %v4469_v18  ;;  %v4791_v48 = vpop.f32.mrf.mxu3  ;;  %vm4653_vm15 = vweird.f32 %v6380_v27 }
0x1551   :  { %v5943_v2 = vpack.i.bf16 %v4791_v48, %v4789_v44  ;;  %v4645_v51 = vsel %vm4642_vm2, %v4644_v1, %v4640_v43  ;;  %v3582_v8 = vpop.f32.mrf.mxu2  ;;  %vm4654_vm7 = vmor %vm4652_vm4, %vm4653_vm15 }
0x1552   :  { %v4649_v33 = vsub.f32 1.0, %v4648_v11  ;;  %v6008_v21 = vpack.i.bf16 %v3582_v8, %v3580_v28  ;;  %v4646_v13 = vmul.f32 %v8694_v22, %v4645_v51 }
0x1553   :  { %5944 = vrot.lane.b32.xlu0 %v5943_v2, %s6481_s0  ;;  %5969 = vrot.lane.b32.xlu1 %v5968_v41, %s6474_s27 }
0x1554   :  { %v4650_v62 = vmul.f32 %v6380_v27, %v4649_v33  ;;  %6009 = vrot.lane.b32.xlu2 %v6008_v21, %s6480_s12  ;;  %v4732_v46 = vpack.c.bf16 %v4646_v13, %v4646_v13 }
0x1556   :  { %v4651_v38 = vadd.f32 %v6380_v27, %v4650_v62  ;;  %v4814_v17 = vunpack.c.l.b16 %v4732_v46 }
0x1558   :  { %v4655_v5 = vsel %vm4654_vm7, %v6380_v27, %v4651_v38 }
0x1559   :  { %v4660_v4 = vsel %vm4657_vm8, %v4659_v61, %v4655_v5  ;;  %v3585_v26 = vpop.f32.mrf.mxu2 }
0x155a   :  { %v4661_v12 = vmul.f32 %v8715_v40, %v4660_v4 }
0x155c   :  { %v4733_v45 = vpack.c.bf16 %v4661_v12, %v4661_v12 }
0x155e   :  { %v4815_v42 = vunpack.c.l.b16 %v4733_v45 }
0x1560   :  { %v4472_v3 = vpop.xlane.xlu2 %4471  ;;  %v4821_v29 = vpack.c.b16 %v4815_v42, %v4814_v17 }
0x1561   :  { %6381 = vrcp.f32 %v4472_v3  ;;  %v3587_v58 = vpop.f32.mrf.mxu2  ;;  %v4673_v50 = vand.u32 2147483648, %v4472_v3  ;;  %vm4667_vm13 = vweird.f32 %v4472_v3  ;;  %v4671_v31 = vand.u32 2147483647, %v4472_v3 }
0x1562   :  { %5836 = vmatmul.msk.bf16.gmra.mxu2 %vm152_vm1, %v4821_v29  ;;  %v6023_v32 = vpack.i.bf16 %v3587_v58, %v3585_v26 }
0x1563   :  { %v4674_v16 = vor.u32 1.1754944e-38, %v4673_v50  ;;  %vm4672_vm14 = vcmp.eq.f32.partialorder %v4671_v31, 8.507059e+37 }
0x1564   :  { %6024 = vrot.lane.b32.xlu2 %v6023_v32, %s6480_s12 }
0x1567   :  { %v6382_v22 = vpop.eup %6381 }
0x1568   :  { %v4663_v14 = vmul.f32 %v6382_v22, %v4472_v3  ;;  %v4475_v35 = vpop.xlane.xlu1 %4474  ;;  %vm4668_vm11 = vweird.f32 %v6382_v22 }
0x1569   :  { %6383 = vrcp.f32 %v4475_v35  ;;  %v4210_v40 = vpop.f32.mrf.mxu2  ;;  %vm4669_vm12 = vmor %vm4667_vm13, %vm4668_vm11  ;;  %v4688_v37 = vand.u32 2147483648, %v4475_v35  ;;  %v4686_v34 = vand.u32 2147483647, %v4475_v35  ;;  %vm4682_vm6 = vweird.f32 %v4475_v35 }
0x156a   :  { %v4664_v20 = vsub.f32 1.0, %v4663_v14 }
0x156b   :  { %v4689_v43 = vor.u32 1.1754944e-38, %v4688_v37  ;;  %vm4687_vm15 = vcmp.eq.f32.partialorder %v4686_v34, 8.507059e+37 }
0x156c   :  { %v4665_v6 = vmul.f32 %v6382_v22, %v4664_v20 }
0x156e   :  { %v4666_v52 = vadd.f32 %v6382_v22, %v4665_v6 }
0x156f   :  { %v6384_v7 = vpop.eup %6383 }
0x1570   :  { %v4670_v36 = vsel %vm4669_vm12, %v6382_v22, %v4666_v52  ;;  %v4678_v56 = vmul.f32 %v6384_v7, %v4475_v35  ;;  %v4478_v47 = vpop.xlane.xlu2 %4477  ;;  %vm4683_vm3 = vweird.f32 %v6384_v7 }
0x1571   :  { %6385 = vrcp.f32 %v4478_v47  ;;  %v4675_v18 = vsel %vm4672_vm14, %v4674_v16, %v4670_v36  ;;  %v4212_v0 = vpop.f32.mrf.mxu2  ;;  %vm4684_vm2 = vmor %vm4682_vm6, %vm4683_vm3  ;;  %v4703_v38 = vand.u32 2147483648, %v4478_v47  ;;  %vm4697_vm7 = vweird.f32 %v4478_v47  ;;  %v5920_v16 = vpop.permute.xlu0 %5919 }
0x1572   :  { %v4679_v44 = vsub.f32 1.0, %v4678_v56  ;;  %v5983_v24 = vpack.i.bf16 %v4212_v0, %v4210_v40  ;;  %v4676_v59 = vmul.f32 %v8776_v55, %v4675_v18  ;;  %v4701_v13 = vand.u32 2147483647, %v4478_v47 }
0x1573   :  { %v5921_v34 = vunpack.i.l.bf16 %v5920_v16 }
0x1574   :  { %v4680_v28 = vmul.f32 %v6384_v7, %v4679_v44  ;;  %5984 = vrot.lane.b32.xlu1 %v5983_v24, %s6474_s27  ;;  %v4734_v51 = vpack.c.bf16 %v4676_v59, %v4676_v59  ;;  %vm4702_vm11 = vcmp.eq.f32.partialorder %v4701_v13, 8.507059e+37 }
0x1576   :  { %v4681_v57 = vadd.f32 %v6384_v7, %v4680_v28  ;;  %v4816_v21 = vunpack.c.l.b16 %v4734_v51  ;;  %v5922_v28 = vunpack.i.h.bf16 %v5920_v16 }
0x1577   :  { %v6386_v27 = vpop.eup %6385 }
0x1578   :  { %v4685_v11 = vsel %vm4684_vm2, %v6384_v7, %v4681_v57  ;;  %v4693_v48 = vmul.f32 %v6386_v27, %v4478_v47  ;;  %vm4698_vm4 = vweird.f32 %v6386_v27  ;;  %v5925_v37 = vpop.permute.xlu2 %5924 }
0x1579   :  { %v4690_v41 = vsel %vm4687_vm15, %v4689_v43, %v4685_v11  ;;  %v4481_v2 = vpop.xlane.xlu1 %4480  ;;  %v4215_v15 = vpop.f32.mrf.mxu2  ;;  %vm4699_vm8 = vmor %vm4697_vm7, %vm4698_vm4  ;;  %v5926_v43 = vunpack.i.l.bf16 %v5925_v37 }
0x157a   :  { %v4694_v1 = vsub.f32 1.0, %v4693_v48  ;;  %v4691_v33 = vmul.f32 %v8793_v25, %v4690_v41  ;;  %6387 = vrcp.f32 %v4481_v2  ;;  %v4704_v25 = vor.u32 1.1754944e-38, %v4703_v38  ;;  %v5935_v59 = vpop.permute.xlu0 %5934  ;;  %v9572_v48 = vld [vmem:[#allocation7_spill] sm:$0xff] }
0x157b   :  { %v4718_v42 = vand.u32 2147483648, %v4481_v2  ;;  %v4716_v29 = vand.u32 2147483647, %v4481_v2  ;;  %vm4712_vm12 = vweird.f32 %v4481_v2  ;;  %v5063_v41 = vsel %vm1121_vm5, %v9572_v48, %v5922_v28 }
0x157c   :  { %v4695_v8 = vmul.f32 %v6386_v27, %v4694_v1  ;;  %v4735_v62 = vpack.c.bf16 %v4691_v33, %v4691_v33  ;;  %v9573_v1 = vld [vmem:[#allocation6_spill] sm:$0xff] }
0x157d   :  { %v4719_v14 = vor.u32 1.1754944e-38, %v4718_v42  ;;  %vm4717_vm3 = vcmp.eq.f32.partialorder %v4716_v29, 8.507059e+37 }
0x157e   :  { %v4696_v23 = vadd.f32 %v6386_v27, %v4695_v8  ;;  %v4817_v55 = vunpack.c.l.b16 %v4735_v62 }
0x1580   :  { %v4822_v61 = vpack.c.b16 %v4817_v55, %v4816_v21  ;;  %v6388_v5 = vpop.eup %6387  ;;  %v4700_v4 = vsel %vm4699_vm8, %v6386_v27, %v4696_v23  ;;  %v5927_v27 = vunpack.i.h.bf16 %v5925_v37 }
0x1581   :  { %v4708_v12 = vmul.f32 %v6388_v5, %v4481_v2  ;;  %v4217_v46 = vpop.f32.mrf.mxu2  ;;  %v4705_v17 = vsel %vm4702_vm11, %v4704_v25, %v4700_v4  ;;  %vm4713_vm13 = vweird.f32 %v6388_v5  ;;  %v5062_v2 = vsel %vm1121_vm5, %v9573_v1, %v5921_v34 }
0x1582   :  { %5837 = vmatmul.msk.bf16.gmra.mxu2 %vm152_vm1, %v4822_v61  ;;  %v5998_v45 = vpack.i.bf16 %v4217_v46, %v4215_v15  ;;  %v4706_v22 = vmul.f32 %v8808_v54, %v4705_v17  ;;  %vm4714_vm14 = vmor %vm4712_vm12, %vm4713_vm13  ;;  %v5868_v54 = vld [vmem:[%s9503_s4 + $0x88] sm:$0xff]  ;;  %v5078_v15 = vsel %vm152_vm1, %v5062_v2, %v5926_v43  ;;  %v5079_v8 = vsel %vm152_vm1, %v5063_v41, %v5927_v27  ;;  %v5940_v13 = vpop.permute.xlu0 %5939 }
0x1583   :  { %v4709_v26 = vsub.f32 1.0, %v4708_v12  ;;  %5156 = vmatpush.bf16.msra.mxu0 %v5868_v54  ;;  %v5937_v61 = vunpack.i.h.bf16 %v5935_v59  ;;  %v5942_v12 = vunpack.i.h.bf16 %v5940_v13  ;;  %v5941_v25 = vunpack.i.l.bf16 %v5940_v13  ;;  %v9575_v17 = vld [vmem:[#allocation8_spill] sm:$0xff] }
0x1584   :  { %5999 = vrot.lane.b32.xlu1 %v5998_v45, %s6474_s27  ;;  %v4736_v6 = vpack.c.bf16 %v4706_v22, %v4706_v22  ;;  %v9579_v13 = vld [vmem:[#allocation12_spill] sm:$0xff] }
0x1585   :  { %v4710_v3 = vmul.f32 %v6388_v5, %v4709_v26  ;;  %v9574_v26 = vld [vmem:[#allocation9_spill] sm:$0xff] }
0x1586   :  { %v4794_v58 = vpop.f32.mrf.mxu3  ;;  %v4818_v7 = vunpack.c.l.b16 %v4736_v6  ;;  %v5065_v45 = vsel %vm1121_vm5, %v9574_v26, %v5937_v61 }
0x1587   :  { %v4711_v32 = vadd.f32 %v6388_v5, %v4710_v3 }
0x1589   :  { %v4715_v35 = vsel %vm4714_vm14, %v6388_v5, %v4711_v32  ;;  %v5936_v5 = vunpack.i.l.bf16 %v5935_v59  ;;  %v5081_v32 = vsel %vm152_vm1, %v5065_v45, %v5942_v12 }
0x158a   :  { %v4720_v20 = vsel %vm4717_vm3, %v4719_v14, %v4715_v35 }
0x158b   :  { %v4721_v40 = vmul.f32 %v8829_v10, %v4720_v20  ;;  %v5064_v42 = vsel %vm1121_vm5, %v9575_v17, %v5936_v5  ;;  %v9045_v17 = vld [vmem:[%s9504_s5 + $0x70] ss:$0 sm:$0xff] }
0x158d   :  { %v4737_v50 = vpack.c.bf16 %v4721_v40, %v4721_v40 }
0x158e   :  { %v4796_v52 = vpop.f32.mrf.mxu3 }
0x158f   :  { %v5958_v31 = vpack.i.bf16 %v4796_v52, %v4794_v58  ;;  %v4819_v36 = vunpack.c.l.b16 %v4737_v50  ;;  %v5080_v58 = vsel %vm152_vm1, %v5064_v42, %v5941_v25 }
0x1591   :  { %5959 = vrot.lane.b32.xlu0 %v5958_v31, %s6481_s0  ;;  %v4823_v56 = vpack.c.b16 %v4819_v36, %v4818_v7  ;;  %v5950_v31 = vpop.permute.xlu2 %5949 }
0x1592   :  { %v5952_v36 = vunpack.i.h.bf16 %v5950_v31 }
0x1593   :  { %5838 = vmatmul.msk.bf16.gmra.mxu2 %vm152_vm1, %v4823_v56  ;;  %v5951_v56 = vunpack.i.l.bf16 %v5950_v31 }
0x1599   :  { %v5965_v2 = vpop.permute.xlu2 %5964 }
0x15a1   :  { %v4220_v47 = vpop.f32.mrf.mxu2 }
0x15a9   :  { %v4799_v44 = vpop.f32.mrf.mxu3  ;;  %v4222_v10 = vpop.f32.mrf.mxu2 }
0x15aa   :  { %v6013_v18 = vpack.i.bf16 %v4222_v10, %v4220_v47 }
0x15ac   :  { %6014 = vrot.lane.b32.xlu1 %v6013_v18, %s6474_s27  ;;  %v9577_v18 = vld [vmem:[#allocation10_spill] sm:$0xff] }
0x15ad   :  { %v5066_v37 = vsel %vm1121_vm5, %v9577_v18, %v5951_v56 }
0x15b1   :  { %v4801_v0 = vpop.f32.mrf.mxu3  ;;  %v4225_v24 = vpop.f32.mrf.mxu2 }
0x15b2   :  { %v5973_v57 = vpack.i.bf16 %v4801_v0, %v4799_v44  ;;  %v9576_v44 = vld [vmem:[#allocation11_spill] sm:$0xff] }
0x15b3   :  { %v5067_v10 = vsel %vm1121_vm5, %v9576_v44, %v5952_v36 }
0x15b4   :  { %5974 = vrot.lane.b32.xlu0 %v5973_v57, %s6481_s0 }
0x15b5   :  { %v5930_v11 = vpop.permute.xlu1 %5929 }
0x15b6   :  { %v5932_v33 = vunpack.i.h.bf16 %v5930_v11  ;;  %v5931_v51 = vunpack.i.l.bf16 %v5930_v11 }
0x15b8   :  { %v5095_v62 = vsel %vm1909_vm10, %v5079_v8, %v5932_v33  ;;  %v5094_v23 = vsel %vm1909_vm10, %v5078_v15, %v5931_v51  ;;  %v5967_v15 = vunpack.i.h.bf16 %v5965_v2  ;;  %v5966_v8 = vunpack.i.l.bf16 %v5965_v2 }
0x15b9   :  { %v5110_v21 = vpack.c.bf16 %v5095_v62, %v5094_v23  ;;  %v4227_v55 = vpop.f32.mrf.mxu2 }
0x15ba   :  { %v6028_v38 = vpack.i.bf16 %v4227_v55, %v4225_v24  ;;  %v9578_v55 = vld [vmem:[#allocation13_spill] sm:$0xff]  ;;  %v5068_v61 = vsel %vm1121_vm5, %v9579_v13, %v5966_v8 }
0x15bb   :  { %5843 = vmatmul.msk.bf16.vlgmr.msra.gmra.mxu0 %vm731_vm9, %v5110_v21 }
0x15bc   :  { %6029 = vrot.lane.b32.xlu1 %v6028_v38, %s6474_s27  ;;  %v5069_v38 = vsel %vm1121_vm5, %v9578_v55, %v5967_v15 }
0x15bd   :  { %v5955_v7 = vpop.permute.xlu1 %5954 }
0x15be   :  { %v5957_v54 = vunpack.i.h.bf16 %v5955_v7  ;;  %v5956_v47 = vunpack.i.l.bf16 %v5955_v7 }
0x15c0   :  { %v5083_v24 = vsel %vm152_vm1, %v5067_v10, %v5957_v54  ;;  %v5082_v57 = vsel %vm152_vm1, %v5066_v37, %v5956_v47 }
0x15c1   :  { %v4850_v4 = vpop.f32.mrf.mxu2 }
0x15c5   :  { %v5945_v46 = vpop.permute.xlu0 %5944  ;;  %v5970_v51 = vpop.permute.xlu1 %5969 }
0x15c6   :  { %v5947_v3 = vunpack.i.h.bf16 %v5945_v46  ;;  %v5946_v29 = vunpack.i.l.bf16 %v5945_v46  ;;  %v5972_v62 = vunpack.i.h.bf16 %v5970_v51  ;;  %v5971_v23 = vunpack.i.l.bf16 %v5970_v51 }
0x15c8   :  { %v5096_v22 = vsel %vm1909_vm10, %v5080_v58, %v5946_v29  ;;  %v5097_v14 = vsel %vm1909_vm10, %v5081_v32, %v5947_v3  ;;  %v5085_v12 = vsel %vm152_vm1, %v5069_v38, %v5972_v62  ;;  %v5084_v25 = vsel %vm152_vm1, %v5068_v61, %v5971_v23  ;;  %v5980_v3 = vpop.permute.xlu2 %5979  ;;  %v6425_v32 = vld [vmem:[%s9500_s1] sm:$0xff] }
0x15c9   :  { %v5111_v35 = vpack.c.bf16 %v5097_v14, %v5096_v22  ;;  %v4852_v20 = vpop.f32.mrf.mxu2  ;;  %v5982_v14 = vunpack.i.h.bf16 %v5980_v3 }
0x15ca   :  { %v5988_v40 = vpack.i.bf16 %v4852_v20, %v4850_v4 }
0x15cb   :  { %5844 = vmatmul.msk.bf16.gmra.mxu0 %vm731_vm9, %v5111_v35  ;;  %v5981_v35 = vunpack.i.l.bf16 %v5980_v3 }
0x15cc   :  { %5989 = vrot.lane.b32.xlu0 %v5988_v40, %s6481_s0 }
0x15cd   :  { %v5070_v31 = vsel %vm1121_vm5, %v8717_v30, %v5981_v35 }
0x15e5   :  { %v4855_v6 = vpop.f32.mrf.mxu2 }
0x15e6   :  { %v5985_v58 = vpop.permute.xlu1 %5984 }
0x15e7   :  { %v5987_v20 = vunpack.i.h.bf16 %v5985_v58  ;;  %v5986_v40 = vunpack.i.l.bf16 %v5985_v58 }
0x15e9   :  { %v5086_v47 = vsel %vm152_vm1, %v5070_v31, %v5986_v40 }
0x15ed   :  { %v4857_v50 = vpop.f32.mrf.mxu2 }
0x15ee   :  { %v6003_v52 = vpack.i.bf16 %v4857_v50, %v4855_v6 }
0x15f0   :  { %6004 = vrot.lane.b32.xlu0 %v6003_v52, %s6481_s0  ;;  %v5071_v52 = vsel %vm1121_vm5, %v8742_v39, %v5982_v14  ;;  %v6426_v39 = vld [vmem:[%s9500_s1 + $0x8] sm:$0xff] }
0x15f1   :  { %v5087_v54 = vsel %vm152_vm1, %v5071_v52, %v5987_v20 }
0x1603   :  { %v5960_v16 = vpop.permute.xlu0 %5959 }
0x1604   :  { %v5962_v0 = vunpack.i.h.bf16 %v5960_v16  ;;  %v5961_v28 = vunpack.i.l.bf16 %v5960_v16 }
0x1605   :  { %v4860_v34 = vpop.f32.mrf.mxu2 }
0x1606   :  { %v5098_v59 = vsel %vm1909_vm10, %v5082_v57, %v5961_v28  ;;  %v5099_v27 = vsel %vm1909_vm10, %v5083_v24, %v5962_v0 }
0x1607   :  { %v5112_v43 = vpack.c.bf16 %v5099_v27, %v5098_v59 }
0x1609   :  { %5845 = vmatmul.msk.bf16.gmra.mxu0 %vm731_vm9, %v5112_v43  ;;  %v6428_v43 = vld [vmem:[%s9500_s1 + $0x18] sm:$0xff] }
0x160d   :  { %v4862_v11 = vpop.f32.mrf.mxu2 }
0x160e   :  { %v6018_v48 = vpack.i.bf16 %v4862_v11, %v4860_v34  ;;  %v6427_v34 = vld [vmem:[%s9500_s1 + $0x10] sm:$0xff] }
0x1610   :  { %6019 = vrot.lane.b32.xlu0 %v6018_v48, %s6481_s0 }
0x1616   :  { %v4865_v41 = vpop.f32.mrf.mxu2 }
0x161e   :  { %v4867_v1 = vpop.f32.mrf.mxu2 }
0x161f   :  { %v6033_v33 = vpack.i.bf16 %v4867_v1, %v4865_v41  ;;  %v5995_v41 = vpop.permute.xlu2 %5994  ;;  %v6000_v1 = vpop.permute.xlu1 %5999 }
0x1620   :  { %v5997_v2 = vunpack.i.h.bf16 %v5995_v41  ;;  %v6002_v51 = vunpack.i.h.bf16 %v6000_v1  ;;  %v6001_v15 = vunpack.i.l.bf16 %v6000_v1 }
0x1621   :  { %6034 = vrot.lane.b32.xlu0 %v6033_v33, %s6481_s0  ;;  %v5996_v33 = vunpack.i.l.bf16 %v5995_v41 }
0x1622   :  { %v5073_v62 = vsel %vm1121_vm5, %v8785_v60, %v5997_v2 }
0x1623   :  { %v5072_v23 = vsel %vm1121_vm5, %v8767_v53, %v5996_v33  ;;  %v5089_v38 = vsel %vm152_vm1, %v5073_v62, %v6002_v51 }
0x1624   :  { %v5088_v13 = vsel %vm152_vm1, %v5072_v23, %v6001_v15 }
0x1626   :  { %v5975_v21 = vpop.permute.xlu0 %5974 }
0x1627   :  { %v5977_v5 = vunpack.i.h.bf16 %v5975_v21  ;;  %v5976_v4 = vunpack.i.l.bf16 %v5975_v21 }
0x1629   :  { %v5100_v46 = vsel %vm1909_vm10, %v5084_v25, %v5976_v4  ;;  %v5101_v26 = vsel %vm1909_vm10, %v5085_v12, %v5977_v5  ;;  %v6010_v12 = vpop.permute.xlu2 %6009  ;;  %v6015_v25 = vpop.permute.xlu1 %6014 }
0x162a   :  { %v5113_v45 = vpack.c.bf16 %v5101_v26, %v5100_v46  ;;  %v6012_v46 = vunpack.i.h.bf16 %v6010_v12  ;;  %v6011_v60 = vunpack.i.l.bf16 %v6010_v12  ;;  %v6017_v26 = vunpack.i.h.bf16 %v6015_v25  ;;  %v6434_v12 = vld [vmem:[%s9500_s1 + $0x48] sm:$0xff] }
0x162c   :  { %5846 = vmatmul.msk.bf16.gmra.mxu0 %vm731_vm9, %v5113_v45  ;;  %v6016_v45 = vunpack.i.l.bf16 %v6015_v25  ;;  %v5074_v3 = vsel %vm1121_vm5, %v8805_v9, %v6011_v60  ;;  %v6429_v9 = vld [vmem:[%s9500_s1 + $0x20] sm:$0xff] }
0x162e   :  { %v5090_v14 = vsel %vm152_vm1, %v5074_v3, %v6016_v45  ;;  %v6435_v45 = vld [vmem:[%s9500_s1 + $0x50] sm:$0xff] }
0x1631   :  { %v6025_v31 = vpop.permute.xlu2 %6024 }
0x1638   :  { %v5158_v42 = vpop.f32.mrf.mxu0 }
0x1639   :  { %v5159_v29 = vadd.f32 %v9045_v17, %v5158_v42  ;;  %v5075_v42 = vsel %vm1121_vm5, %v8821_v63, %v6012_v46 }
0x163b   :  { %v9051_v22 = vadd.f32 %v6425_v32, %v5159_v29  ;;  %v5091_v32 = vsel %vm152_vm1, %v5075_v42, %v6017_v26 }
0x163d   :  { %v5216_v6 = vsel %vm84_vm0, %v9051_v22, 0.0 }
0x163e   :  { %5217 = vadd.xlane.f32.xlu2 %v5216_v6  ;;  %v5990_v50 = vpop.permute.xlu0 %5989 }
0x163f   :  { %v5992_v7 = vunpack.i.h.bf16 %v5990_v50  ;;  %v5991_v36 = vunpack.i.l.bf16 %v5990_v50 }
0x1640   :  { %v5160_v56 = vpop.f32.mrf.mxu0 }
0x1641   :  { %v5161_v16 = vadd.f32 %v9045_v17, %v5160_v56  ;;  %v5102_v44 = vsel %vm1909_vm10, %v5086_v47, %v5991_v36  ;;  %v5103_v10 = vsel %vm1909_vm10, %v5087_v54, %v5992_v7  ;;  %v6030_v7 = vpop.permute.xlu1 %6029  ;;  %v6027_v54 = vunpack.i.h.bf16 %v6025_v31 }
0x1642   :  { %v5114_v18 = vpack.c.bf16 %v5103_v10, %v5102_v44  ;;  %v6026_v47 = vunpack.i.l.bf16 %v6025_v31  ;;  %v6031_v44 = vunpack.i.l.bf16 %v6030_v7  ;;  %v6430_v10 = vld [vmem:[%s9500_s1 + $0x28] sm:$0xff]  ;;  %v9580_v31 = vld [vmem:[#allocation5_spill] sm:$0xff] }
0x1643   :  { %v9067_v37 = vadd.f32 %v6426_v39, %v5161_v16  ;;  %v6032_v16 = vunpack.i.h.bf16 %v6030_v7 }
0x1644   :  { %5847 = vmatmul.msk.bf16.gmra.mxu0 %vm731_vm9, %v5114_v18 }
0x1645   :  { %v5219_v30 = vsel %vm84_vm0, %v9067_v37, 0.0 }
0x1646   :  { %5220 = vadd.xlane.f32.xlu1 %v5219_v30 }
0x1648   :  { %v5163_v0 = vpop.f32.mrf.mxu0 }
0x1649   :  { %v5164_v28 = vadd.f32 %v9045_v17, %v5163_v0  ;;  %v5077_v0 = vsel %vm1121_vm5, %v8881_v19, %v6027_v54 }
0x164b   :  { %v9076_v24 = vadd.f32 %v6427_v34, %v5164_v28  ;;  %v5076_v28 = vsel %vm1121_vm5, %v8840_v49, %v6026_v47  ;;  %v6431_v49 = vld [vmem:[%s9500_s1 + $0x30] sm:$0xff] }
0x164d   :  { %v5222_v57 = vsel %vm84_vm0, %v9076_v24, 0.0 }
0x164e   :  { %5223 = vadd.xlane.f32.xlu0 %v5222_v57 }
0x1650   :  { %v5165_v59 = vpop.f32.mrf.mxu0 }
0x1651   :  { %v5166_v27 = vadd.f32 %v9045_v17, %v5165_v59  ;;  %v5093_v59 = vsel %vm152_vm1, %v5077_v0, %v6032_v16 }
0x1653   :  { %v9084_v11 = vadd.f32 %v6428_v43, %v5166_v27  ;;  %v5092_v27 = vsel %vm152_vm1, %v5076_v28, %v6031_v44 }
0x1655   :  { %v5225_v48 = vsel %vm84_vm0, %v9084_v11, 0.0 }
0x1656   :  { %5226 = vadd.xlane.f32.xlu2 %v5225_v48 }
0x1662   :  { %v6005_v8 = vpop.permute.xlu0 %6004 }
0x1663   :  { %v6007_v21 = vunpack.i.h.bf16 %v6005_v8  ;;  %v6006_v55 = vunpack.i.l.bf16 %v6005_v8  ;;  %v6432_v8 = vld [vmem:[%s9500_s1 + $0x38] sm:$0xff] }
0x1665   :  { %v5104_v61 = vsel %vm1909_vm10, %v5088_v13, %v6006_v55  ;;  %v5105_v5 = vsel %vm1909_vm10, %v5089_v38, %v6007_v21  ;;  %v6433_v38 = vld [vmem:[%s9500_s1 + $0x40] sm:$0xff] }
0x1666   :  { %v5115_v4 = vpack.c.bf16 %v5105_v5, %v5104_v61 }
0x1668   :  { %5848 = vmatmul.msk.bf16.gmra.mxu0 %vm731_vm9, %v5115_v4 }
0x1682   :  { %v6020_v53 = vpop.permute.xlu0 %6019 }
0x1683   :  { %v6022_v29 = vunpack.i.h.bf16 %v6020_v53  ;;  %v6021_v58 = vunpack.i.l.bf16 %v6020_v53 }
0x1685   :  { %v5106_v35 = vsel %vm1909_vm10, %v5090_v14, %v6021_v58  ;;  %v5107_v20 = vsel %vm1909_vm10, %v5091_v32, %v6022_v29  ;;  %v6436_v58 = vld [vmem:[%s9500_s1 + $0x58] sm:$0xff] }
0x1686   :  { %v5116_v40 = vpack.c.bf16 %v5107_v20, %v5106_v35  ;;  %v5168_v6 = vpop.f32.mrf.mxu0 }
0x1687   :  { %v5169_v50 = vadd.f32 %v9045_v17, %v5168_v6 }
0x1688   :  { %5849 = vmatmul.msk.bf16.gmra.mxu0 %vm731_vm9, %v5116_v40  ;;  %v6437_v40 = vld [vmem:[%s9500_s1 + $0x60] sm:$0xff] }
0x1689   :  { %v9110_v63 = vadd.f32 %v6429_v9, %v5169_v50 }
0x168b   :  { %v5228_v52 = vsel %vm84_vm0, %v9110_v63, 0.0 }
0x168c   :  { %5229 = vadd.xlane.f32.xlu1 %v5228_v52 }
0x168e   :  { %v5170_v36 = vpop.f32.mrf.mxu0 }
0x168f   :  { %v5171_v56 = vadd.f32 %v9045_v17, %v5170_v36 }
0x1691   :  { %v9118_v18 = vadd.f32 %v6430_v10, %v5171_v56  ;;  %v6438_v56 = vld [vmem:[%s9500_s1 + $0x68] sm:$0xff] }
0x1693   :  { %v6035_v39 = vpop.permute.xlu0 %6034  ;;  %v5231_v30 = vsel %vm84_vm0, %v9118_v18, 0.0 }
0x1694   :  { %v6037_v34 = vunpack.i.h.bf16 %v6035_v39  ;;  %v6036_v57 = vunpack.i.l.bf16 %v6035_v39  ;;  %5232 = vadd.xlane.f32.xlu0 %v5231_v30 }
0x1696   :  { %v5108_v43 = vsel %vm1909_vm10, %v5092_v27, %v6036_v57  ;;  %v5109_v48 = vsel %vm1909_vm10, %v5093_v59, %v6037_v34 }
0x1697   :  { %v5117_v41 = vpack.c.bf16 %v5109_v48, %v5108_v43 }
0x1699   :  { %5850 = vmatmul.msk.bf16.gmra.mxu0 %vm731_vm9, %v5117_v41 }
0x16a9   :  { %v5173_v1 = vpop.f32.mrf.mxu0 }
0x16aa   :  { %v5174_v19 = vadd.f32 %v9045_v17, %v5173_v1 }
0x16ac   :  { %v9135_v2 = vadd.f32 %v6431_v49, %v5174_v19 }
0x16ae   :  { %v5234_v33 = vsel %vm84_vm0, %v9135_v2, 0.0 }
0x16af   :  { %5235 = vadd.xlane.f32.xlu2 %v5234_v33 }
0x16b1   :  { %v5175_v51 = vpop.f32.mrf.mxu0  ;;  %v5218_v9 = vpop.xlane.xlu2 %5217 }
0x16b2   :  { %v5176_v15 = vadd.f32 %v9045_v17, %v5175_v51  ;;  %v5264_v7 = vmul.f32 %v5218_v9, %v9580_v31 }
0x16b4   :  { %v9143_v62 = vadd.f32 %v6432_v8, %v5176_v15  ;;  %v9195_v47 = vsub.f32 %v9051_v22, %v5264_v7  ;;  %v6439_v22 = vld [vmem:[%s9500_s1 + $0x70] sm:$0xff]  ;;  %v6440_v15 = vld [vmem:[%s9500_s1 + $0x78] sm:$0xff] }
0x16b6   :  { %v5237_v23 = vsel %vm84_vm0, %v9143_v62, 0.0  ;;  %v5296_v30 = vmul.f32 %v9195_v47, %v9195_v47 }
0x16b7   :  { %5238 = vadd.xlane.f32.xlu1 %v5237_v23 }
0x16b8   :  { %v5312_v27 = vsel %vm84_vm0, %v5296_v30, 0.0 }
0x16b9   :  { %v5221_v10 = vpop.xlane.xlu1 %5220 }
0x16ba   :  { %v5265_v28 = vmul.f32 %v5221_v10, %v9580_v31 }
0x16bc   :  { %v9214_v43 = vsub.f32 %v9067_v37, %v5265_v28 }
0x16be   :  { %v5297_v37 = vmul.f32 %v9214_v43, %v9214_v43 }
0x16c1   :  { %v5178_v21 = vpop.f32.mrf.mxu0  ;;  %v5224_v41 = vpop.xlane.xlu0 %5223 }
0x16c2   :  { %v5179_v55 = vadd.f32 %v9045_v17, %v5178_v21  ;;  %v5266_v49 = vmul.f32 %v5224_v41, %v9580_v31 }
0x16c4   :  { %v9151_v13 = vadd.f32 %v6433_v38, %v5179_v55  ;;  %v9233_v38 = vsub.f32 %v9076_v24, %v5266_v49 }
0x16c6   :  { %v5240_v61 = vsel %vm84_vm0, %v9151_v13, 0.0 }
0x16c7   :  { %5241 = vadd.xlane.f32.xlu0 %v5240_v61  ;;  %v5315_v61 = vsel %vm84_vm0, %v5297_v37, 0.0 }
0x16c9   :  { %v5180_v5 = vpop.f32.mrf.mxu0  ;;  %v5227_v44 = vpop.xlane.xlu2 %5226 }
0x16ca   :  { %v5181_v4 = vadd.f32 %v9045_v17, %v5180_v5  ;;  %v5267_v39 = vmul.f32 %v5227_v44, %v9580_v31 }
0x16cc   :  { %v9159_v25 = vadd.f32 %v6434_v12, %v5181_v4  ;;  %v9205_v57 = vsub.f32 %v9084_v11, %v5267_v39 }
0x16ce   :  { %v5243_v46 = vsel %vm84_vm0, %v9159_v25, 0.0  ;;  %v5299_v11 = vmul.f32 %v9205_v57, %v9205_v57 }
0x16cf   :  { %5244 = vadd.xlane.f32.xlu2 %v5243_v46 }
0x16d0   :  { %v5321_v21 = vsel %vm84_vm0, %v5299_v11, 0.0 }
0x16e5   :  { %v5183_v60 = vpop.f32.mrf.mxu0 }
0x16e6   :  { %v5184_v26 = vadd.f32 %v9045_v17, %v5183_v60  ;;  %v5298_v60 = vmul.f32 %v9233_v38, %v9233_v38 }
0x16e8   :  { %v9167_v53 = vadd.f32 %v6435_v45, %v5184_v26 }
0x16ea   :  { %v5246_v42 = vsel %vm84_vm0, %v9167_v53, 0.0 }
0x16eb   :  { %5247 = vadd.xlane.f32.xlu1 %v5246_v42 }
0x16ed   :  { %v5185_v3 = vpop.f32.mrf.mxu0 }
0x16ee   :  { %v5186_v29 = vadd.f32 %v9045_v17, %v5185_v3 }
0x16f0   :  { %v9175_v32 = vadd.f32 %v6436_v58, %v5186_v29  ;;  %v5318_v29 = vsel %vm84_vm0, %v5298_v60, 0.0 }
0x16f2   :  { %v5249_v14 = vsel %vm84_vm0, %v9175_v32, 0.0 }
0x16f3   :  { %5250 = vadd.xlane.f32.xlu0 %v5249_v14 }
0x16ff   :  { %v5230_v1 = vpop.xlane.xlu1 %5229 }
0x1700   :  { %v5268_v33 = vmul.f32 %v5230_v1, %v9580_v31 }
0x1705   :  { %v5188_v35 = vpop.f32.mrf.mxu0 }
0x1706   :  { %v5189_v20 = vadd.f32 %v9045_v17, %v5188_v35 }
0x1707   :  { %v5233_v4 = vpop.xlane.xlu0 %5232 }
0x1708   :  { %v9183_v6 = vadd.f32 %v6437_v40, %v5189_v20  ;;  %v5269_v24 = vmul.f32 %v5233_v4, %v9580_v31 }
0x170a   :  { %v5252_v50 = vsel %vm84_vm0, %v9183_v6, 0.0 }
0x170b   :  { %5253 = vadd.xlane.f32.xlu2 %v5252_v50 }
0x170d   :  { %v5190_v52 = vpop.f32.mrf.mxu0 }
0x170e   :  { %v5191_v36 = vadd.f32 %v9045_v17, %v5190_v52 }
0x1710   :  { %v9192_v54 = vadd.f32 %v6438_v56, %v5191_v36 }
0x1712   :  { %v5255_v16 = vsel %vm84_vm0, %v9192_v54, 0.0 }
0x1713   :  { %5256 = vadd.xlane.f32.xlu1 %v5255_v16 }
0x1716   :  { %v5193_v0 = vpop.f32.mrf.mxu0 }
0x1717   :  { %v5194_v34 = vadd.f32 %v9045_v17, %v5193_v0 }
0x1719   :  { %v9210_v59 = vadd.f32 %v6439_v22, %v5194_v34 }
0x171b   :  { %5313 = vadd.xlane.f32.xlu1 %v5312_v27  ;;  %v5258_v48 = vsel %vm84_vm0, %v9210_v59, 0.0 }
0x171c   :  { %5259 = vadd.xlane.f32.xlu0 %v5258_v48 }
0x171e   :  { %v5195_v19 = vpop.f32.mrf.mxu0 }
0x171f   :  { %v5196_v51 = vadd.f32 %v9045_v17, %v5195_v19  ;;  %v9236_v17 = vsub.f32 %v9110_v63, %v5268_v33 }
0x1721   :  { %v9228_v8 = vadd.f32 %v6440_v15, %v5196_v51  ;;  %v5300_v63 = vmul.f32 %v9236_v17, %v9236_v17 }
0x1722   :  { %v5236_v23 = vpop.xlane.xlu2 %5235 }
0x1723   :  { %v5270_v55 = vmul.f32 %v5236_v23, %v9580_v31  ;;  %5322 = vadd.xlane.f32.xlu1 %v5321_v21  ;;  %v5261_v5 = vsel %vm84_vm0, %v9228_v8, 0.0  ;;  %v5324_v3 = vsel %vm84_vm0, %v5300_v63, 0.0 }
0x1724   :  { %5316 = vadd.xlane.f32.xlu0 %v5315_v61  ;;  %5262 = vadd.xlane.f32.xlu2 %v5261_v5 }
0x1725   :  { %v9242_v12 = vsub.f32 %v9135_v2, %v5270_v55  ;;  %v9254_v2 = vsub.f32 %v9118_v18, %v5269_v24 }
0x1727   :  { %v5302_v46 = vmul.f32 %v9242_v12, %v9242_v12  ;;  %v5301_v35 = vmul.f32 %v9254_v2, %v9254_v2 }
0x1729   :  { %v5330_v45 = vsel %vm84_vm0, %v5302_v46, 0.0  ;;  %v5327_v18 = vsel %vm84_vm0, %v5301_v35, 0.0 }
0x172a   :  { %v5239_v26 = vpop.xlane.xlu1 %5238 }
0x172b   :  { %v5271_v42 = vmul.f32 %v5239_v26, %v9580_v31  ;;  %5331 = vadd.xlane.f32.xlu1 %v5330_v45 }
0x172c   :  { %5325 = vadd.xlane.f32.xlu0 %v5324_v3  ;;  %5319 = vadd.xlane.f32.xlu2 %v5318_v29 }
0x172d   :  { %v9259_v58 = vsub.f32 %v9143_v62, %v5271_v42 }
0x172f   :  { %v5303_v14 = vmul.f32 %v9259_v58, %v9259_v58 }
0x1731   :  { %v5333_v20 = vsel %vm84_vm0, %v5303_v14, 0.0 }
0x1734   :  { %5334 = vadd.xlane.f32.xlu0 %v5333_v20  ;;  %5328 = vadd.xlane.f32.xlu2 %v5327_v18 }
0x173a   :  { %v5242_v40 = vpop.xlane.xlu0 %5241 }
0x173b   :  { %v5272_v50 = vmul.f32 %v5242_v40, %v9580_v31 }
0x173d   :  { %v9269_v62 = vsub.f32 %v9151_v13, %v5272_v50 }
0x173f   :  { %v5304_v9 = vmul.f32 %v9269_v62, %v9269_v62 }
0x1741   :  { %v5336_v52 = vsel %vm84_vm0, %v5304_v9, 0.0 }
0x1742   :  { %5337 = vadd.xlane.f32.xlu2 %v5336_v52  ;;  %v5245_v7 = vpop.xlane.xlu2 %5244 }
0x1743   :  { %v5273_v36 = vmul.f32 %v5245_v7, %v9580_v31 }
0x1745   :  { %v9276_v56 = vsub.f32 %v9159_v25, %v5273_v36 }
0x1747   :  { %v5305_v16 = vmul.f32 %v9276_v56, %v9276_v56 }
0x1749   :  { %v5339_v44 = vsel %vm84_vm0, %v5305_v16, 0.0 }
0x174a   :  { %5340 = vadd.xlane.f32.xlu1 %v5339_v44 }
0x175e   :  { %v5248_v13 = vpop.xlane.xlu1 %5247 }
0x175f   :  { %v5274_v10 = vmul.f32 %v5248_v13, %v9580_v31 }
0x1761   :  { %v9283_v39 = vsub.f32 %v9167_v53, %v5274_v10 }
0x1763   :  { %v5306_v30 = vmul.f32 %v9283_v39, %v9283_v39 }
0x1765   :  { %v5342_v0 = vsel %vm84_vm0, %v5306_v30, 0.0  ;;  %v9337_v30 = vld [vmem:[%s9504_s5 + $0x78] ss:$0 sm:$0xff] }
0x1766   :  { %v5251_v28 = vpop.xlane.xlu0 %5250  ;;  %5343 = vadd.xlane.f32.xlu0 %v5342_v0 }
0x1767   :  { %v5275_v25 = vmul.f32 %v5251_v28, %v9580_v31 }
0x1769   :  { %v9290_v34 = vsub.f32 %v9175_v32, %v5275_v25 }
0x176b   :  { %v5307_v22 = vmul.f32 %v9290_v34, %v9290_v34 }
0x176d   :  { %v5345_v27 = vsel %vm84_vm0, %v5307_v22, 0.0 }
0x176e   :  { %5346 = vadd.xlane.f32.xlu2 %v5345_v27 }
0x177e   :  { %v5254_v53 = vpop.xlane.xlu2 %5253 }
0x177f   :  { %v5276_v48 = vmul.f32 %v5254_v53, %v9580_v31  ;;  %v9348_v53 = vld [vmem:[%s9504_s5 + $0x80] ss:$0 sm:$0xff] }
0x1781   :  { %v9297_v41 = vsub.f32 %v9183_v6, %v5276_v48 }
0x1783   :  { %v5308_v1 = vmul.f32 %v9297_v41, %v9297_v41 }
0x1785   :  { %v5348_v11 = vsel %vm84_vm0, %v5308_v1, 0.0 }
0x1786   :  { %v5257_v19 = vpop.xlane.xlu1 %5256  ;;  %5349 = vadd.xlane.f32.xlu1 %v5348_v11 }
0x1787   :  { %v5277_v32 = vmul.f32 %v5257_v19, %v9580_v31 }
0x1789   :  { %v9304_v49 = vsub.f32 %v9192_v54, %v5277_v32 }
0x178b   :  { %v5309_v33 = vmul.f32 %v9304_v49, %v9304_v49 }
0x178d   :  { %v5351_v51 = vsel %vm84_vm0, %v5309_v33, 0.0 }
0x178e   :  { %5352 = vadd.xlane.f32.xlu0 %v5351_v51  ;;  %v5314_v6 = vpop.xlane.xlu1 %5313 }
0x178f   :  { %v5360_v37 = vmul.f32 %v5314_v6, %v9580_v31  ;;  %v5260_v15 = vpop.xlane.xlu0 %5259 }
0x1790   :  { %v5278_v21 = vmul.f32 %v5260_v15, %v9580_v31 }
0x1791   :  { %v5376_v23 = vadd.f32 1e-05, %v5360_v37 }
0x1792   :  { %v9312_v55 = vsub.f32 %v9210_v59, %v5278_v21 }
0x1793   :  { %6389 = vrsqrt.f32 %v5376_v23  ;;  %vm5398_vm9 = vweird.f32 %v5376_v23 }
0x1794   :  { %v5310_v54 = vmul.f32 %v9312_v55, %v9312_v55 }
0x1796   :  { %v5323_v61 = vpop.xlane.xlu1 %5322  ;;  %v5354_v4 = vsel %vm84_vm0, %v5310_v54, 0.0 }
0x1797   :  { %v5363_v5 = vmul.f32 %v5323_v61, %v9580_v31  ;;  %v5317_v46 = vpop.xlane.xlu0 %5316  ;;  %5355 = vadd.xlane.f32.xlu2 %v5354_v4  ;;  %v5263_v24 = vpop.xlane.xlu2 %5262 }
0x1798   :  { %v5361_v26 = vmul.f32 %v5317_v46, %v9580_v31  ;;  %v5279_v45 = vmul.f32 %v5263_v24, %v9580_v31 }
0x1799   :  { %v6390_v63 = vpop.eup %6389  ;;  %v5379_v60 = vadd.f32 1e-05, %v5363_v5 }
0x179a   :  { %v5393_v42 = vmul.f32 %v6390_v63, %v5376_v23  ;;  %v9320_v59 = vadd.f32 1e-05, %v5361_v26  ;;  %v9323_v3 = vsub.f32 %v9228_v8, %v5279_v45  ;;  %vm5399_vm1 = vweird.f32 %v6390_v63 }
0x179b   :  { %6391 = vrsqrt.f32 %v5379_v60  ;;  %vm5400_vm5 = vmor %vm5398_vm9, %vm5399_vm1  ;;  %vm5428_vm6 = vweird.f32 %v5379_v60 }
0x179c   :  { %v5394_v29 = vmul.f32 %v6390_v63, %v5393_v42  ;;  %6393 = vrsqrt.f32 %v9320_v59  ;;  %v5311_v14 = vmul.f32 %v9323_v3, %v9323_v3  ;;  %vm5408_vm4 = vweird.f32 %v9320_v59 }
0x179e   :  { %v5395_v35 = vmul.f32 0.5, %v5394_v29  ;;  %v5332_v20 = vpop.xlane.xlu1 %5331  ;;  %v5357_v40 = vsel %vm84_vm0, %v5311_v14, 0.0 }
0x179f   :  { %v5366_v18 = vmul.f32 %v5332_v20, %v9580_v31  ;;  %v5326_v9 = vpop.xlane.xlu0 %5325  ;;  %5358 = vadd.xlane.f32.xlu1 %v5357_v40  ;;  %v5320_v52 = vpop.xlane.xlu2 %5319 }
0x17a0   :  { %v5396_v50 = vsub.f32 1.5, %v5395_v35  ;;  %v5364_v36 = vmul.f32 %v5326_v9, %v9580_v31  ;;  %v5362_v16 = vmul.f32 %v5320_v52, %v9580_v31 }
0x17a1   :  { %v6392_v7 = vpop.eup %6391  ;;  %v9330_v8 = vadd.f32 1e-05, %v5366_v18 }
0x17a2   :  { %v5397_v44 = vmul.f32 %v6390_v63, %v5396_v50  ;;  %v5423_v13 = vmul.f32 %v6392_v7, %v5379_v60  ;;  %v6394_v10 = vpop.eup %6393  ;;  %v9340_v0 = vadd.f32 1e-05, %v5364_v36  ;;  %v9342_v28 = vadd.f32 1e-05, %v5362_v16 }
0x17a3   :  { %6395 = vrsqrt.f32 %v9330_v8  ;;  %v5403_v27 = vmul.f32 %v6394_v10, %v9320_v59  ;;  %vm5429_vm10 = vweird.f32 %v6392_v7  ;;  %vm5409_vm2 = vweird.f32 %v6394_v10 }
0x17a4   :  { %v5401_v25 = vsel %vm5400_vm5, %v6390_v63, %v5397_v44  ;;  %v5424_v22 = vmul.f32 %v6392_v7, %v5423_v13  ;;  %6397 = vrsqrt.f32 %v9340_v0  ;;  %vm5430_vm15 = vmor %vm5428_vm6, %vm5429_vm10  ;;  %vm5458_vm11 = vweird.f32 %v9330_v8 }
0x17a5   :  { %v5552_v48 = vmul.f32 %v5401_v25, %v9195_v47  ;;  %v5404_v11 = vmul.f32 %v6394_v10, %v5403_v27  ;;  %6399 = vrsqrt.f32 %v9342_v28  ;;  %vm5410_vm7 = vmor %vm5408_vm4, %vm5409_vm2  ;;  %vm5438_vm3 = vweird.f32 %v9340_v0 }
0x17a6   :  { %v5425_v1 = vmul.f32 0.5, %v5424_v22  ;;  %vm5418_vm9 = vweird.f32 %v9342_v28 }
0x17a7   :  { %v5569_v19 = vmul.f32 %v9337_v30, %v5552_v48  ;;  %v5405_v33 = vmul.f32 0.5, %v5404_v11  ;;  %v5335_v51 = vpop.xlane.xlu0 %5334  ;;  %v5329_v6 = vpop.xlane.xlu2 %5328 }
0x17a8   :  { %v5426_v32 = vsub.f32 1.5, %v5425_v1  ;;  %v5367_v23 = vmul.f32 %v5335_v51, %v9580_v31  ;;  %v5365_v47 = vmul.f32 %v5329_v6, %v9580_v31 }
0x17a9   :  { %v6396_v37 = vpop.eup %6395  ;;  %v5586_v15 = vadd.f32 %v9348_v53, %v5569_v19  ;;  %v5406_v54 = vsub.f32 1.5, %v5405_v33 }
0x17aa   :  { %v5427_v21 = vmul.f32 %v6392_v7, %v5426_v32  ;;  %v5453_v61 = vmul.f32 %v6396_v37, %v9330_v8  ;;  %v6398_v5 = vpop.eup %6397  ;;  %v9364_v4 = vadd.f32 1e-05, %v5367_v23  ;;  %v9366_v46 = vadd.f32 1e-05, %v5365_v47 }
0x17ab   :  { %5604 = vst.msk [vmem:[%s9506_s7] sm:$0xff] %vm84_vm0, %v5586_v15  ;;  %v6400_v24 = vpop.eup %6399  ;;  %v5407_v60 = vmul.f32 %v6394_v10, %v5406_v54  ;;  %v5433_v45 = vmul.f32 %v6398_v5, %v9340_v0  ;;  %vm5459_vm8 = vweird.f32 %v6396_v37  ;;  %vm5439_vm13 = vweird.f32 %v6398_v5 }
0x17ac   :  { %v5431_v63 = vsel %vm5430_vm15, %v6392_v7, %v5427_v21  ;;  %v5454_v26 = vmul.f32 %v6396_v37, %v5453_v61  ;;  %v5413_v29 = vmul.f32 %v6400_v24, %v9342_v28  ;;  %6401 = vrsqrt.f32 %v9364_v4  ;;  %vm5460_vm12 = vmor %vm5458_vm11, %vm5459_vm8 }
0x17ad   :  { %v5555_v42 = vmul.f32 %v5431_v63, %v9205_v57  ;;  %v5411_v14 = vsel %vm5410_vm7, %v6394_v10, %v5407_v60  ;;  %v5434_v20 = vmul.f32 %v6398_v5, %v5433_v45  ;;  %6403 = vrsqrt.f32 %v9366_v46  ;;  %vm5440_vm1 = vmor %vm5438_vm3, %vm5439_vm13 }
0x17ae   :  { %v5455_v35 = vmul.f32 0.5, %v5454_v26  ;;  %v5553_v18 = vmul.f32 %v5411_v14, %v9214_v43  ;;  %v5414_v40 = vmul.f32 %v6400_v24, %v5413_v29  ;;  %vm5419_vm14 = vweird.f32 %v6400_v24 }
0x17af   :  { %v5572_v59 = vmul.f32 %v9337_v30, %v5555_v42  ;;  %v5435_v9 = vmul.f32 0.5, %v5434_v20  ;;  %vm5420_vm5 = vmor %vm5418_vm9, %vm5419_vm14  ;;  %vm5468_vm6 = vweird.f32 %v9364_v4  ;;  %vm5448_vm4 = vweird.f32 %v9366_v46 }
0x17b0   :  { %v5456_v50 = vsub.f32 1.5, %v5455_v35  ;;  %v5570_v52 = vmul.f32 %v9337_v30, %v5553_v18  ;;  %v5415_v7 = vmul.f32 0.5, %v5414_v40 }
0x17b1   :  { %v5589_v57 = vadd.f32 %v9348_v53, %v5572_v59  ;;  %v5436_v43 = vsub.f32 1.5, %v5435_v9 }
0x17b2   :  { %v5457_v36 = vmul.f32 %v6396_v37, %v5456_v50  ;;  %v5587_v16 = vadd.f32 %v9348_v53, %v5570_v52  ;;  %v5416_v44 = vsub.f32 1.5, %v5415_v7  ;;  %v6402_v13 = vpop.eup %6401 }
0x17b3   :  { %5607 = vst.msk [vmem:[%s9506_s7 + $0x18] sm:$0xff] %vm84_vm0, %v5589_v57  ;;  %v5437_v25 = vmul.f32 %v6398_v5, %v5436_v43  ;;  %v5463_v27 = vmul.f32 %v6402_v13, %v9364_v4  ;;  %v6404_v48 = vpop.eup %6403  ;;  %vm5469_vm10 = vweird.f32 %v6402_v13 }
0x17b4   :  { %v5461_v10 = vsel %vm5460_vm12, %v6396_v37, %v5457_v36  ;;  %5605 = vst.msk [vmem:[%s9506_s7 + $0x8] sm:$0xff] %vm84_vm0, %v5587_v16  ;;  %v5417_v22 = vmul.f32 %v6400_v24, %v5416_v44  ;;  %v5443_v51 = vmul.f32 %v6404_v48, %v9366_v46  ;;  %vm5470_vm2 = vmor %vm5468_vm6, %vm5469_vm10  ;;  %vm5449_vm15 = vweird.f32 %v6404_v48 }
0x17b5   :  { %v5558_v8 = vmul.f32 %v5461_v10, %v9242_v12  ;;  %v5441_v1 = vsel %vm5440_vm1, %v6398_v5, %v5437_v25  ;;  %v5338_v0 = vpop.xlane.xlu2 %5337  ;;  %v5464_v33 = vmul.f32 %v6402_v13, %v5463_v27  ;;  %vm5450_vm7 = vmor %vm5448_vm4, %vm5449_vm15 }
0x17b6   :  { %v5556_v19 = vmul.f32 %v5441_v1, %v9236_v17  ;;  %v5421_v32 = vsel %vm5420_vm5, %v6400_v24, %v5417_v22  ;;  %v5368_v6 = vmul.f32 %v5338_v0, %v9580_v31  ;;  %v5444_v47 = vmul.f32 %v6404_v48, %v5443_v51 }
0x17b7   :  { %v5575_v11 = vmul.f32 %v9337_v30, %v5558_v8  ;;  %v5554_v12 = vmul.f32 %v5421_v32, %v9233_v38  ;;  %v5465_v15 = vmul.f32 0.5, %v5464_v33 }
0x17b8   :  { %v5573_v37 = vmul.f32 %v9337_v30, %v5556_v19  ;;  %v5384_v21 = vadd.f32 1e-05, %v5368_v6  ;;  %v5445_v61 = vmul.f32 0.5, %v5444_v47 }
0x17b9   :  { %v5592_v28 = vadd.f32 %v9348_v53, %v5575_v11  ;;  %v5571_v23 = vmul.f32 %v9337_v30, %v5554_v12  ;;  %v5466_v17 = vsub.f32 1.5, %v5465_v15 }
0x17ba   :  { %v5590_v38 = vadd.f32 %v9348_v53, %v5573_v37  ;;  %6405 = vrsqrt.f32 %v5384_v21  ;;  %v5446_v24 = vsub.f32 1.5, %v5445_v61  ;;  %vm5478_vm11 = vweird.f32 %v5384_v21 }
0x17bb   :  { %5610 = vst.msk [vmem:[%s9506_s7 + $0x30] sm:$0xff] %vm84_vm0, %v5592_v28  ;;  %v5588_v54 = vadd.f32 %v9348_v53, %v5571_v23  ;;  %v5467_v5 = vmul.f32 %v6402_v13, %v5466_v17 }
0x17bc   :  { %5608 = vst.msk [vmem:[%s9506_s7 + $0x20] sm:$0xff] %vm84_vm0, %v5590_v38  ;;  %v5447_v42 = vmul.f32 %v6404_v48, %v5446_v24 }
0x17bd   :  { %5606 = vst.msk [vmem:[%s9506_s7 + $0x10] sm:$0xff] %vm84_vm0, %v5588_v54  ;;  %v5341_v63 = vpop.xlane.xlu1 %5340  ;;  %v5471_v60 = vsel %vm5470_vm2, %v6402_v13, %v5467_v5 }
0x17be   :  { %v5369_v26 = vmul.f32 %v5341_v63, %v9580_v31  ;;  %v5559_v45 = vmul.f32 %v5471_v60, %v9259_v58  ;;  %v5451_v35 = vsel %vm5450_vm7, %v6404_v48, %v5447_v42 }
0x17bf   :  { %v5557_v20 = vmul.f32 %v5451_v35, %v9254_v2 }
0x17c0   :  { %v5385_v29 = vadd.f32 1e-05, %v5369_v26  ;;  %v6406_v4 = vpop.eup %6405  ;;  %v5576_v14 = vmul.f32 %v9337_v30, %v5559_v45 }
0x17c1   :  { %v5473_v59 = vmul.f32 %v6406_v4, %v5384_v21  ;;  %v5574_v40 = vmul.f32 %v9337_v30, %v5557_v20  ;;  %vm5479_vm8 = vweird.f32 %v6406_v4 }
0x17c2   :  { %6407 = vrsqrt.f32 %v5385_v29  ;;  %v5593_v18 = vadd.f32 %v9348_v53, %v5576_v14  ;;  %vm5480_vm13 = vmor %vm5478_vm11, %vm5479_vm8  ;;  %vm5488_vm14 = vweird.f32 %v5385_v29 }
0x17c3   :  { %v5474_v50 = vmul.f32 %v6406_v4, %v5473_v59  ;;  %v5591_v58 = vadd.f32 %v9348_v53, %v5574_v40 }
0x17c4   :  { %5611 = vst.msk [vmem:[%s9506_s7 + $0x38] sm:$0xff] %vm84_vm0, %v5593_v18 }
0x17c5   :  { %v5475_v46 = vmul.f32 0.5, %v5474_v50  ;;  %5609 = vst.msk [vmem:[%s9506_s7 + $0x28] sm:$0xff] %vm84_vm0, %v5591_v58 }
0x17c7   :  { %v5476_v2 = vsub.f32 1.5, %v5475_v46 }
0x17c8   :  { %v6408_v9 = vpop.eup %6407 }
0x17c9   :  { %v5483_v57 = vmul.f32 %v6408_v9, %v5385_v29  ;;  %v5477_v52 = vmul.f32 %v6406_v4, %v5476_v2  ;;  %vm5489_vm12 = vweird.f32 %v6408_v9 }
0x17ca   :  { %vm5490_vm3 = vmor %vm5488_vm14, %vm5489_vm12 }
0x17cb   :  { %v5484_v7 = vmul.f32 %v6408_v9, %v5483_v57  ;;  %v5481_v36 = vsel %vm5480_vm13, %v6406_v4, %v5477_v52 }
0x17cc   :  { %v5560_v43 = vmul.f32 %v5481_v36, %v9269_v62 }
0x17cd   :  { %v5485_v16 = vmul.f32 0.5, %v5484_v7 }
0x17ce   :  { %v5577_v44 = vmul.f32 %v9337_v30, %v5560_v43 }
0x17cf   :  { %v5486_v13 = vsub.f32 1.5, %v5485_v16 }
0x17d0   :  { %v5594_v10 = vadd.f32 %v9348_v53, %v5577_v44 }
0x17d1   :  { %v5487_v25 = vmul.f32 %v6408_v9, %v5486_v13 }
0x17d2   :  { %5612 = vst.msk [vmem:[%s9506_s7 + $0x40] sm:$0xff] %vm84_vm0, %v5594_v10 }
0x17d3   :  { %v5491_v8 = vsel %vm5490_vm3, %v6408_v9, %v5487_v25 }
0x17d4   :  { %v5561_v22 = vmul.f32 %v5491_v8, %v9276_v56 }
0x17d6   :  { %v5578_v62 = vmul.f32 %v9337_v30, %v5561_v22 }
0x17d8   :  { %v5595_v27 = vadd.f32 %v9348_v53, %v5578_v62 }
0x17d9   :  { %v5344_v48 = vpop.xlane.xlu0 %5343 }
0x17da   :  { %v5370_v1 = vmul.f32 %v5344_v48, %v9580_v31  ;;  %5613 = vst.msk [vmem:[%s9506_s7 + $0x48] sm:$0xff] %vm84_vm0, %v5595_v27 }
0x17dc   :  { %v5386_v0 = vadd.f32 1e-05, %v5370_v1 }
0x17de   :  { %6409 = vrsqrt.f32 %v5386_v0  ;;  %vm5498_vm9 = vweird.f32 %v5386_v0 }
0x17e1   :  { %v5347_v11 = vpop.xlane.xlu2 %5346 }
0x17e2   :  { %v5371_v19 = vmul.f32 %v5347_v11, %v9580_v31 }
0x17e4   :  { %v6410_v32 = vpop.eup %6409  ;;  %v5387_v33 = vadd.f32 1e-05, %v5371_v19 }
0x17e5   :  { %v5493_v56 = vmul.f32 %v6410_v32, %v5386_v0  ;;  %vm5499_vm1 = vweird.f32 %v6410_v32 }
0x17e6   :  { %6411 = vrsqrt.f32 %v5387_v33  ;;  %vm5500_vm5 = vmor %vm5498_vm9, %vm5499_vm1  ;;  %vm5508_vm6 = vweird.f32 %v5387_v33 }
0x17e7   :  { %v5494_v12 = vmul.f32 %v6410_v32, %v5493_v56 }
0x17e9   :  { %v5495_v51 = vmul.f32 0.5, %v5494_v12 }
0x17eb   :  { %v5496_v6 = vsub.f32 1.5, %v5495_v51 }
0x17ec   :  { %v6412_v28 = vpop.eup %6411 }
0x17ed   :  { %v5497_v37 = vmul.f32 %v6410_v32, %v5496_v6  ;;  %v5503_v15 = vmul.f32 %v6412_v28, %v5387_v33  ;;  %vm5509_vm10 = vweird.f32 %v6412_v28 }
0x17ee   :  { %vm5510_vm2 = vmor %vm5508_vm6, %vm5509_vm10 }
0x17ef   :  { %v5501_v23 = vsel %vm5500_vm5, %v6410_v32, %v5497_v37  ;;  %v5504_v47 = vmul.f32 %v6412_v28, %v5503_v15 }
0x17f0   :  { %v5562_v21 = vmul.f32 %v5501_v23, %v9283_v39 }
0x17f1   :  { %v5505_v38 = vmul.f32 0.5, %v5504_v47 }
0x17f2   :  { %v5579_v17 = vmul.f32 %v9337_v30, %v5562_v21 }
0x17f3   :  { %v5506_v54 = vsub.f32 1.5, %v5505_v38 }
0x17f4   :  { %v5596_v61 = vadd.f32 %v9348_v53, %v5579_v17 }
0x17f5   :  { %v5507_v5 = vmul.f32 %v6412_v28, %v5506_v54 }
0x17f6   :  { %5614 = vst.msk [vmem:[%s9506_s7 + $0x50] sm:$0xff] %vm84_vm0, %v5596_v61 }
0x17f7   :  { %v5511_v24 = vsel %vm5510_vm2, %v6412_v28, %v5507_v5 }
0x17f8   :  { %v5563_v63 = vmul.f32 %v5511_v24, %v9290_v34 }
0x17f9   :  { %v5350_v60 = vpop.xlane.xlu1 %5349 }
0x17fa   :  { %v5580_v39 = vmul.f32 %v9337_v30, %v5563_v63  ;;  %v5372_v26 = vmul.f32 %v5350_v60, %v9580_v31 }
0x17fc   :  { %v5597_v45 = vadd.f32 %v9348_v53, %v5580_v39  ;;  %v5388_v42 = vadd.f32 1e-05, %v5372_v26 }
0x17fe   :  { %5615 = vst.msk [vmem:[%s9506_s7 + $0x58] sm:$0xff] %vm84_vm0, %v5597_v45  ;;  %6413 = vrsqrt.f32 %v5388_v42  ;;  %vm5518_vm4 = vweird.f32 %v5388_v42 }
0x1801   :  { %v5353_v29 = vpop.xlane.xlu0 %5352 }
0x1802   :  { %v5373_v4 = vmul.f32 %v5353_v29, %v9580_v31 }
0x1804   :  { %v6414_v14 = vpop.eup %6413  ;;  %v5389_v35 = vadd.f32 1e-05, %v5373_v4 }
0x1805   :  { %v5513_v34 = vmul.f32 %v6414_v14, %v5388_v42  ;;  %vm5519_vm15 = vweird.f32 %v6414_v14 }
0x1806   :  { %6415 = vrsqrt.f32 %v5389_v35  ;;  %vm5520_vm7 = vmor %vm5518_vm4, %vm5519_vm15  ;;  %vm5528_vm11 = vweird.f32 %v5389_v35 }
0x1807   :  { %v5514_v20 = vmul.f32 %v6414_v14, %v5513_v34 }
0x1809   :  { %v5515_v59 = vmul.f32 0.5, %v5514_v20 }
0x180a   :  { %v5356_v40 = vpop.xlane.xlu2 %5355 }
0x180b   :  { %v5516_v18 = vsub.f32 1.5, %v5515_v59  ;;  %v5374_v58 = vmul.f32 %v5356_v40, %v9580_v31 }
0x180c   :  { %v6416_v50 = vpop.eup %6415 }
0x180d   :  { %v5517_v46 = vmul.f32 %v6414_v14, %v5516_v18  ;;  %v5523_v9 = vmul.f32 %v6416_v50, %v5389_v35  ;;  %v5390_v2 = vadd.f32 1e-05, %v5374_v58  ;;  %vm5529_vm8 = vweird.f32 %v6416_v50 }
0x180e   :  { %vm5530_vm13 = vmor %vm5528_vm11, %vm5529_vm8 }
0x180f   :  { %v5521_v57 = vsel %vm5520_vm7, %v6414_v14, %v5517_v46  ;;  %v5524_v52 = vmul.f32 %v6416_v50, %v5523_v9  ;;  %6417 = vrsqrt.f32 %v5390_v2  ;;  %vm5538_vm14 = vweird.f32 %v5390_v2 }
0x1810   :  { %v5564_v7 = vmul.f32 %v5521_v57, %v9297_v41 }
0x1811   :  { %v5525_v36 = vmul.f32 0.5, %v5524_v52 }
0x1812   :  { %v5581_v43 = vmul.f32 %v9337_v30, %v5564_v7  ;;  %v5359_v44 = vpop.xlane.xlu1 %5358 }
0x1813   :  { %v5526_v16 = vsub.f32 1.5, %v5525_v36  ;;  %v5375_v10 = vmul.f32 %v5359_v44, %v9580_v31 }
0x1814   :  { %v5598_v13 = vadd.f32 %v9348_v53, %v5581_v43 }
0x1815   :  { %v5527_v25 = vmul.f32 %v6416_v50, %v5526_v16  ;;  %v6418_v8 = vpop.eup %6417  ;;  %v5391_v41 = vadd.f32 1e-05, %v5375_v10 }
0x1816   :  { %5616 = vst.msk [vmem:[%s9506_s7 + $0x60] sm:$0xff] %vm84_vm0, %v5598_v13  ;;  %v5533_v62 = vmul.f32 %v6418_v8, %v5390_v2  ;;  %vm5539_vm12 = vweird.f32 %v6418_v8 }
0x1817   :  { %v5531_v22 = vsel %vm5530_vm13, %v6416_v50, %v5527_v25  ;;  %6419 = vrsqrt.f32 %v5391_v41  ;;  %vm5540_vm3 = vmor %vm5538_vm14, %vm5539_vm12  ;;  %vm5548_vm9 = vweird.f32 %v5391_v41 }
0x1818   :  { %v5565_v27 = vmul.f32 %v5531_v22, %v9304_v49  ;;  %v5534_v48 = vmul.f32 %v6418_v8, %v5533_v62 }
0x181a   :  { %v5582_v1 = vmul.f32 %v9337_v30, %v5565_v27  ;;  %v5535_v0 = vmul.f32 0.5, %v5534_v48 }
0x181c   :  { %v5599_v31 = vadd.f32 %v9348_v53, %v5582_v1  ;;  %v5536_v11 = vsub.f32 1.5, %v5535_v0 }
0x181d   :  { %v6420_v19 = vpop.eup %6419 }
0x181e   :  { %5617 = vst.msk [vmem:[%s9506_s7 + $0x68] sm:$0xff] %vm84_vm0, %v5599_v31  ;;  %v5537_v32 = vmul.f32 %v6418_v8, %v5536_v11  ;;  %v5543_v33 = vmul.f32 %v6420_v19, %v5391_v41  ;;  %vm5549_vm1 = vweird.f32 %v6420_v19 }
0x181f   :  { %vm5550_vm5 = vmor %vm5548_vm9, %vm5549_vm1 }
0x1820   :  { %v5541_v49 = vsel %vm5540_vm3, %v6418_v8, %v5537_v32  ;;  %v5544_v56 = vmul.f32 %v6420_v19, %v5543_v33 }
0x1821   :  { %v5566_v12 = vmul.f32 %v5541_v49, %v9312_v55 }
0x1822   :  { %v5545_v51 = vmul.f32 0.5, %v5544_v56 }
0x1823   :  { %v5583_v6 = vmul.f32 %v9337_v30, %v5566_v12 }
0x1824   :  { %v5546_v28 = vsub.f32 1.5, %v5545_v51 }
0x1825   :  { %v5600_v37 = vadd.f32 %v9348_v53, %v5583_v6 }
0x1826   :  { %v5547_v15 = vmul.f32 %v6420_v19, %v5546_v28 }
0x1827   :  { %5618 = vst.msk [vmem:[%s9506_s7 + $0x70] sm:$0xff] %vm84_vm0, %v5600_v37 }
0x1828   :  { %v5551_v23 = vsel %vm5550_vm5, %v6420_v19, %v5547_v15 }
0x1829   :  { %v5567_v47 = vmul.f32 %v5551_v23, %v9323_v3 }
0x182b   :  { %v5584_v55 = vmul.f32 %v9337_v30, %v5567_v47 }
0x182d   :  { %v5601_v21 = vadd.f32 %v9348_v53, %v5584_v55 }
0x182f   :  { %5619 = vst.msk [vmem:[%s9506_s7 + $0x78] sm:$0xff] %vm84_vm0, %v5601_v21 }
0x1830   :  { %6465 = dma.done.wait [#allocation3], 256  }
0x1831   :  { %6466 = vsyncadd [#allocation3], 4294967040 }
0x1832   :  { %5641 = vsyncpa [#allocation3], 1 }

</bundles_post_ra>
